<compile_context>
chip_gen: v5e
topology: v5e:2x2
jax: 0.10.0
libtpu: 0.0.40
codegen_flags: <defaults>
</compile_context>

<pallas_src>
import jax
import jax.numpy as jnp
from jax import lax
from jax.experimental import pallas as pl
from jax.experimental.pallas import tpu as pltpu


def _elu(v):
    # PyTorch nn.ELU (alpha=1): x if x > 0 else exp(x) - 1 (clamp exp arg).
    return jnp.where(v > 0.0, v, jnp.exp(jnp.minimum(v, 0.0)) - 1.0)


# ----------------------------------------------------------------------------
# Fused kernel: conv1+ELU+pool1 -> conv2+ELU+pool2 -> Linear, one image/step.
# ----------------------------------------------------------------------------
def _fused_convnet_kernel(x_ref, w1_ref, w2_ref, wfc_ref, b1_ref, b2_ref,
                          bfc_ref, o_ref, p1_ref, p2_ref):
    f32 = jnp.float32
    bf16 = jnp.bfloat16

    # -- prologue: zero only the 1-row halo of the p1 scratch.  Done every
    #    grid step (NOT pid==0-guarded) so each v7x core sees valid halos. --
    zrow = jnp.zeros((1, 16, 128), f32)
    p1_ref[0:1, :, :] = zrow
    p1_ref[33:34, :, :] = zrow

    rhs1 = w1_ref[...]                                     # (54,128) bf16

    # ------------------------------------------------------------------
    # Stage 1: conv1 (3x3, 3->32, pad 1) + ELU + 2x2 max pool.
    # Per chunk of 8 conv rows: one matmul, M=128 (8 rows x 16 col-quads),
    # K=54 (full 3x3x3 patch), N=128 (4 column streams x 32 ch).
    # Lane-block order [m0|m2|m1|m3] makes W-pool = max(lower, upper half).
    # ------------------------------------------------------------------
    for ci in range(8):
        lhs = x_ref[0, ci * 128:(ci + 1) * 128, :]         # (128,54) bf16
        acc = jnp.dot(lhs, rhs1, preferred_element_type=f32)   # (128,128) f32
        acc = acc.reshape(8, 16, 128)
        # W-pool -> [E[q] | O[q]] in 64 lanes.
        pw = jnp.maximum(acc[:, :, 0:64], acc[:, :, 64:128])   # (8,16,64)
        # H-pool over adjacent conv-row pairs.
        pw = jnp.max(pw.reshape(4, 2, 16, 64), axis=1)         # (4,16,64)
        # bias + ELU commute with max -> exact.
        pw = _elu(pw + b1_ref[...])
        # Duplicate-store the quad-shifted copies [O[q-1] | E[q+1]] so the
        # stage-2 LHS is a plain contiguous slice of the scratch.
        zq = jnp.zeros((4, 1, 32), f32)
        dup = jnp.concatenate(
            [jnp.concatenate([zq, pw[:, 0:15, 32:64]], axis=1),   # O[q-1]
             jnp.concatenate([pw[:, 1:16, 0:32], zq], axis=1)],   # E[q+1]
            axis=2)                                               # (4,16,64)
        r0 = 1 + 4 * ci
        p1_ref[r0:r0 + 4, :, 0:64] = pw
        p1_ref[r0:r0 + 4, :, 64:128] = dup

    # ------------------------------------------------------------------
    # Stage 2: conv2 (3x3, 32->64, pad 1) + ELU + 2x2 max pool -> p2.
    # Per chunk of 8 conv rows: 3 matmuls (one per ky tap), M=128
    # (8 rows x 16 col pairs), K=128 ([E|O|O[q-1]|E[q+1]] x 32 ch),
    # N=128 ([even|odd] output columns x 64 ch).
    # ------------------------------------------------------------------
    for cj in range(4):
        acc = jnp.zeros((128, 128), f32)
        for dy in range(3):
            lhs = p1_ref[8 * cj + dy:8 * cj + dy + 8, :, :]     # (8,16,128) f32
            lhs = lhs.reshape(128, 128).astype(bf16)
            acc = acc + jnp.dot(lhs, w2_ref[dy], preferred_element_type=f32)
        acc = acc.reshape(8, 16, 128)
        pw = jnp.maximum(acc[:, :, 0:64], acc[:, :, 64:128])    # W-pool (even|odd)
        pw = jnp.max(pw.reshape(4, 2, 16, 64), axis=1)          # H-pool -> (4,16,64)
        pw = _elu(pw + b2_ref[...])
        p2_ref[4 * cj:4 * cj + 4, :, :] = pw

    # ------------------------------------------------------------------
    # Stage 3: classifier Linear(64*16*16 -> 7).
    # Per-class in-lane accumulation on the VPU, then ONE cross-lane
    # reduction; classes end up on sublanes of an (8,1) output.
    # ------------------------------------------------------------------
    accs = [jnp.zeros((16, 64), f32) for _ in range(7)]
    for h in range(16):
        slab = p2_ref[h, :, :]                                  # (16,64)
        for cls in range(7):
            accs[cls] = accs[cls] + slab * wfc_ref[cls, h, :, :]
    parts = [jnp.sum(a, axis=0, keepdims=True) for a in accs]   # 7 x (1,64)
    parts.append(jnp.zeros((1, 64), f32))
    pmat = jnp.concatenate(parts, axis=0)                       # (8,64)
    logits = jnp.sum(pmat, axis=1, keepdims=True) + bfc_ref[...]  # (8,1)
    o_ref[...] = logits.reshape(1, 8, 1)


# ----------------------------------------------------------------------------
# Forward pass (mirrors ConvolutionalNN.forward)
# ----------------------------------------------------------------------------
def conv_nn_forward(x_nchw, params):
    w1, b1, w2, b2, wfc, bfc = params        # w1/w2 in HWIO, wfc (16384, 7)
    N, C, H, W = x_nchw.shape
    assert (C, H, W) == (3, 64, 64), "classifier Linear(64*16*16,7) => 3x64x64 input"

    f32, bf16 = jnp.float32, jnp.bfloat16

    # --- cheap wrapper-side layout prep (tiny XLA ops) ------------------------
    x = jnp.transpose(x_nchw, (0, 2, 3, 1)).astype(f32)          # NHWC
    xpad = jnp.pad(x, ((0, 0), (1, 1), (1, 1), (0, 0)))          # (N,66,66,3)

    # conv1 im2col-lite: lhs1[n, h*16+q, (dy*6+md)*3+ci] = xpad[n, h+dy, 4q+md, ci]
    taps = []
    for dy in range(3):
        for md in range(6):
            taps.append(xpad[:, dy:dy + 64, md:md + 61:4, :])    # (N,64,16,3)
    lhs1 = jnp.stack(taps, axis=3).reshape(N, 1024, 54).astype(bf16)

    # conv1 weights lane-packed over the 4 output-column streams (block order
    # [m0|m2|m1|m3] so W-pool is max(lower half, upper half)).
    pos = (0, 2, 1, 3)
    w1f = w1.astype(f32)
    rhs1 = jnp.zeros((3, 6, 3, 4, 32), f32)
    for m in range(4):
        for dx in range(3):
            rhs1 = rhs1.at[:, m + dx, :, pos[m], :].set(w1f[:, dx, :, :])
    rhs1 = rhs1.reshape(54, 128).astype(bf16)

    # conv2 weights: K blocks [E[q] | O[q] | O[q-1] | E[q+1]], lanes [even|odd].
    w2f = w2.astype(f32)
    rhs2 = jnp.zeros((3, 4, 32, 2, 64), f32)
    rhs2 = rhs2.at[:, 0, :, 0, :].set(w2f[:, 1])   # E[q]   -> even, dx=1
    rhs2 = rhs2.at[:, 0, :, 1, :].set(w2f[:, 0])   # E[q]   -> odd,  dx=0
    rhs2 = rhs2.at[:, 1, :, 0, :].set(w2f[:, 2])   # O[q]   -> even, dx=2
    rhs2 = rhs2.at[:, 1, :, 1, :].set(w2f[:, 1])   # O[q]   -> odd,  dx=1
    rhs2 = rhs2.at[:, 2, :, 0, :].set(w2f[:, 0])   # O[q-1] -> even, dx=0
    rhs2 = rhs2.at[:, 3, :, 1, :].set(w2f[:, 2])   # E[q+1] -> odd,  dx=2
    rhs2 = rhs2.reshape(3, 128, 128).astype(bf16)

    # classifier weight in (class, h, w, c) order (PyTorch CHW flatten folded in).
    wfc_r = wfc.astype(f32).reshape(64, 16, 16, 7).transpose(3, 1, 2, 0)  # (7,16,16,64)

    b1d = jnp.concatenate([b1, b1]).reshape(1, 64).astype(f32)   # [b1|b1] for [E|O]
    b2r = b2.reshape(1, 64).astype(f32)
    bfc8 = jnp.pad(bfc.astype(f32), (0, 1)).reshape(8, 1)        # classes on sublanes

    out = pl.pallas_call(
        _fused_convnet_kernel,
        out_shape=jax.ShapeDtypeStruct((N, 8, 1), f32),
        grid_spec=pltpu.PrefetchScalarGridSpec(
            num_scalar_prefetch=0,
            grid=(N,),
            in_specs=[
                pl.BlockSpec((1, 1024, 54), lambda n: (n, 0, 0)),
                pl.BlockSpec((54, 128), lambda n: (0, 0)),
                pl.BlockSpec((3, 128, 128), lambda n: (0, 0, 0)),
                pl.BlockSpec((7, 16, 16, 64), lambda n: (0, 0, 0, 0)),
                pl.BlockSpec((1, 64), lambda n: (0, 0)),
                pl.BlockSpec((1, 64), lambda n: (0, 0)),
                pl.BlockSpec((8, 1), lambda n: (0, 0)),
            ],
            out_specs=pl.BlockSpec((1, 8, 1), lambda n: (n, 0, 0)),
            scratch_shapes=[
                pltpu.VMEM((34, 16, 128), jnp.float32),   # p1 [E|O|O[q-1]|E[q+1]] (+row halo)
                pltpu.VMEM((16, 16, 64), jnp.float32),    # p2 (h, w, c)
            ],
        ),
        compiler_params=pltpu.CompilerParams(
            dimension_semantics=("parallel",),
        ),
    )(lhs1, rhs1, rhs2, wfc_r, b1d, b2r, bfc8)
    return out[:, :7, 0]


# ----------------------------------------------------------------------------
# Pure-XLA reference (sanity check only)
# ----------------------------------------------------------------------------
def reference_forward(x_nchw, params):
    w1, b1, w2, b2, wfc, bfc = params

    def conv(x, w_hwio, b):
        w_oihw = jnp.transpose(w_hwio, (3, 2, 0, 1))
        y = lax.conv_general_dilated(
            x, w_oihw, (1, 1), ((1, 1), (1, 1)),
            dimension_numbers=("NCHW", "OIHW", "NCHW"),
            precision=lax.Precision.HIGHEST)
        return y + b[None, :, None, None]

    def pool(x):
        return lax.reduce_window(x, -jnp.inf, lax.max,
                                 (1, 1, 2, 2), (1, 1, 2, 2), "VALID")

    h = pool(_elu(conv(x_nchw, w1, b1)))
    h = pool(_elu(conv(h, w2, b2)))
    h = h.reshape(h.shape[0], -1)
    return jnp.dot(h, wfc, precision=lax.Precision.HIGHEST) + bfc


# ----------------------------------------------------------------------------
if __name__ == "__main__":
    key = jax.random.PRNGKey(0)
    ks = jax.random.split(key, 7)

    # The classifier Linear(64*16*16, 7) forces 64x64 spatial input.
    N, H, W = 2, 64, 64
    x = jax.random.normal(ks[0], (N, 3, H, W), jnp.float32)

    # Deterministic synthetic parameters (conv weights in HWIO layout).
    w1 = jax.random.normal(ks[1], (3, 3, 3, 32), jnp.float32) * 0.10
    b1 = jax.random.normal(ks[2], (32,), jnp.float32) * 0.10
    w2 = jax.random.normal(ks[3], (3, 3, 32, 64), jnp.float32) * 0.05
    b2 = jax.random.normal(ks[4], (64,), jnp.float32) * 0.05
    wfc = jax.random.normal(ks[5], (64 * 16 * 16, 7), jnp.float32) * 0.01
    bfc = jax.random.normal(ks[6], (7,), jnp.float32) * 0.01
    params = (w1, b1, w2, b2, wfc, bfc)

    out = jax.jit(conv_nn_forward)(x, params)
    out = jax.block_until_ready(out)
    assert out.shape == (N, 7), out.shape

    ref = reference_forward(x, params)
    if not bool(jnp.allclose(out, ref, rtol=5e-2, atol=5e-2)):
        raise AssertionError(
            f"Pallas output mismatch vs reference: max abs diff = "
            f"{float(jnp.max(jnp.abs(out - ref)))}")

    print("KERNEL_OK")
</pallas_src>

<mosaic_0001>
module attributes {stable_mosaic.version = 11 : i64} {
  func.func @_fused_convnet_kernel(%arg0: i32, %arg1: memref<1x1024x54xbf16, #tpu.memory_space<vmem>>, %arg2: memref<54x128xbf16, #tpu.memory_space<vmem>>, %arg3: memref<3x128x128xbf16, #tpu.memory_space<vmem>>, %arg4: memref<7x16x16x64xf32, #tpu.memory_space<vmem>>, %arg5: memref<1x64xf32, #tpu.memory_space<vmem>>, %arg6: memref<1x64xf32, #tpu.memory_space<vmem>>, %arg7: memref<8x1xf32, #tpu.memory_space<vmem>>, %arg8: memref<1x8x1xf32, #tpu.memory_space<vmem>>, %arg9: memref<34x16x128xf32, #tpu.memory_space<vmem>>, %arg10: memref<16x16x64xf32, #tpu.memory_space<vmem>>) attributes {dimension_semantics = [#tpu.dimension_semantics<parallel>], iteration_bounds = array<i64: 2>, scalar_prefetch = 0 : i64, scratch_operands = 2 : i64, tpu.core_type = #tpu.core_type<tc>, window_params = [{transform_indices = @transform_0, window_bounds = array<i64: 1, 1024, 54>}, {pipeline_mode = #tpu.pipeline_mode<synchronous>, transform_indices = @transform_1, window_bounds = array<i64: 54, 128>}, {pipeline_mode = #tpu.pipeline_mode<synchronous>, transform_indices = @transform_2, window_bounds = array<i64: 3, 128, 128>}, {pipeline_mode = #tpu.pipeline_mode<synchronous>, transform_indices = @transform_3, window_bounds = array<i64: 7, 16, 16, 64>}, {pipeline_mode = #tpu.pipeline_mode<synchronous>, transform_indices = @transform_4, window_bounds = array<i64: 1, 64>}, {pipeline_mode = #tpu.pipeline_mode<synchronous>, transform_indices = @transform_5, window_bounds = array<i64: 1, 64>}, {pipeline_mode = #tpu.pipeline_mode<synchronous>, transform_indices = @transform_6, window_bounds = array<i64: 8, 1>}, {transform_indices = @transform_7, window_bounds = array<i64: 1, 8, 1>}]} {
    %cst = arith.constant 0.000000e+00 : f32
    %0 = vector.broadcast %cst : f32 to vector<1x16x128xf32>
    %c0 = arith.constant 0 : index
    %c0_0 = arith.constant 0 : index
    %c0_1 = arith.constant 0 : index
    %1 = vector.load %arg9[%c0, %c0_0, %c0_1] : memref<34x16x128xf32, #tpu.memory_space<vmem>>, vector<1x16x128xf32>
    tpu.vector_store %arg9[%c0, %c0_0, %c0_1], %0 {strides = array<i32>} : memref<34x16x128xf32, #tpu.memory_space<vmem>>, vector<1x16x128xf32>,
    %c33 = arith.constant 33 : index
    %c0_2 = arith.constant 0 : index
    %c0_3 = arith.constant 0 : index
    %2 = vector.load %arg9[%c33, %c0_2, %c0_3] : memref<34x16x128xf32, #tpu.memory_space<vmem>>, vector<1x16x128xf32>
    tpu.vector_store %arg9[%c33, %c0_2, %c0_3], %0 {strides = array<i32>} : memref<34x16x128xf32, #tpu.memory_space<vmem>>, vector<1x16x128xf32>,
    %c0_4 = arith.constant 0 : index
    %c0_5 = arith.constant 0 : index
    %3 = vector.load %arg2[%c0_4, %c0_5] : memref<54x128xbf16, #tpu.memory_space<vmem>>, vector<54x128xbf16>
    %c0_6 = arith.constant 0 : index
    %c0_7 = arith.constant 0 : index
    %c0_8 = arith.constant 0 : index
    %4 = vector.load %arg1[%c0_6, %c0_7, %c0_8] : memref<1x1024x54xbf16, #tpu.memory_space<vmem>>, vector<1x128x54xbf16>
    %5 = vector.shape_cast %4 : vector<1x128x54xbf16> to vector<128x54xbf16>
    %cst_9 = arith.constant dense<0.000000e+00> : vector<128x128xf32>
    %6 = tpu.matmul %5, %3, %cst_9 {dimension_numbers = #tpu.dot_dimension_numbers<[1], [0], [0], [1], [0, 0, 1, 1], [], []>} : vector<128x54xbf16>, vector<54x128xbf16>, vector<128x128xf32> -> vector<128x128xf32>
    %7 = vector.shape_cast %6 : vector<128x128xf32> to vector<8x16x128xf32>
    %8 = vector.extract_strided_slice %7 {offsets = [0, 0, 0], sizes = [8, 16, 64], strides = [1, 1, 1]} : vector<8x16x128xf32> to vector<8x16x64xf32>
    %9 = vector.extract_strided_slice %7 {offsets = [0, 0, 64], sizes = [8, 16, 64], strides = [1, 1, 1]} : vector<8x16x128xf32> to vector<8x16x64xf32>
    %10 = arith.maximumf %8, %9 : vector<8x16x64xf32>
    %11 = vector.shape_cast %10 : vector<8x16x64xf32> to vector<4x2x16x64xf32>
    %cst_10 = arith.constant dense<0xFF800000> : vector<4x16x64xf32>
    %12 = vector.multi_reduction <maximumf>, %11, %cst_10 [1] : vector<4x2x16x64xf32> to vector<4x16x64xf32>
    %c0_11 = arith.constant 0 : index
    %c0_12 = arith.constant 0 : index
    %13 = vector.load %arg5[%c0_11, %c0_12] : memref<1x64xf32, #tpu.memory_space<vmem>>, vector<1x64xf32>
    %14 = vector.shape_cast %13 : vector<1x64xf32> to vector<1x1x64xf32>
    %15 = vector.broadcast %14 : vector<1x1x64xf32> to vector<4x16x64xf32>
    %16 = arith.addf %12, %15 : vector<4x16x64xf32>
    %cst_13 = arith.constant 0.000000e+00 : f32
    %17 = vector.broadcast %cst_13 : f32 to vector<4x16x64xf32>
    %18 = arith.cmpf ogt, %16, %17 : vector<4x16x64xf32>
    %cst_14 = arith.constant 0.000000e+00 : f32
    %19 = vector.broadcast %cst_14 : f32 to vector<4x16x64xf32>
    %20 = arith.minimumf %16, %19 : vector<4x16x64xf32>
    %21 = math.exp %20 : vector<4x16x64xf32>
    %cst_15 = arith.constant 1.000000e+00 : f32
    %22 = vector.broadcast %cst_15 : f32 to vector<4x16x64xf32>
    %23 = arith.subf %21, %22 : vector<4x16x64xf32>
    %24 = arith.select %18, %16, %23 : vector<4x16x64xi1>, vector<4x16x64xf32>
    %cst_16 = arith.constant 0.000000e+00 : f32
    %25 = vector.broadcast %cst_16 : f32 to vector<4x1x32xf32>
    %26 = vector.extract_strided_slice %24 {offsets = [0, 0, 32], sizes = [4, 15, 32], strides = [1, 1, 1]} : vector<4x16x64xf32> to vector<4x15x32xf32>
    %27 = tpu.concatenate %25, %26 in 1 : vector<4x1x32xf32>, vector<4x15x32xf32> -> vector<4x16x32xf32>
    %28 = vector.extract_strided_slice %24 {offsets = [0, 1, 0], sizes = [4, 15, 32], strides = [1, 1, 1]} : vector<4x16x64xf32> to vector<4x15x32xf32>
    %29 = tpu.concatenate %28, %25 in 1 : vector<4x15x32xf32>, vector<4x1x32xf32> -> vector<4x16x32xf32>
    %30 = tpu.concatenate %27, %29 in 2 : vector<4x16x32xf32>, vector<4x16x32xf32> -> vector<4x16x64xf32>
    %c1 = arith.constant 1 : index
    %c0_17 = arith.constant 0 : index
    %c0_18 = arith.constant 0 : index
    %31 = vector.load %arg9[%c1, %c0_17, %c0_18] : memref<34x16x128xf32, #tpu.memory_space<vmem>>, vector<4x16x64xf32>
    tpu.vector_store %arg9[%c1, %c0_17, %c0_18], %24 {strides = array<i32>} : memref<34x16x128xf32, #tpu.memory_space<vmem>>, vector<4x16x64xf32>,
    %c1_19 = arith.constant 1 : index
    %c0_20 = arith.constant 0 : index
    %c64 = arith.constant 64 : index
    %32 = vector.load %arg9[%c1_19, %c0_20, %c64] : memref<34x16x128xf32, #tpu.memory_space<vmem>>, vector<4x16x64xf32>
    tpu.vector_store %arg9[%c1_19, %c0_20, %c64], %30 {strides = array<i32>} : memref<34x16x128xf32, #tpu.memory_space<vmem>>, vector<4x16x64xf32>,
    %c0_21 = arith.constant 0 : index
    %c128 = arith.constant 128 : index
    %c0_22 = arith.constant 0 : index
    %33 = vector.load %arg1[%c0_21, %c128, %c0_22] : memref<1x1024x54xbf16, #tpu.memory_space<vmem>>, vector<1x128x54xbf16>
    %34 = vector.shape_cast %33 : vector<1x128x54xbf16> to vector<128x54xbf16>
    %cst_23 = arith.constant dense<0.000000e+00> : vector<128x128xf32>
    %35 = tpu.matmul %34, %3, %cst_23 {dimension_numbers = #tpu.dot_dimension_numbers<[1], [0], [0], [1], [0, 0, 1, 1], [], []>} : vector<128x54xbf16>, vector<54x128xbf16>, vector<128x128xf32> -> vector<128x128xf32>
    %36 = vector.shape_cast %35 : vector<128x128xf32> to vector<8x16x128xf32>
    %37 = vector.extract_strided_slice %36 {offsets = [0, 0, 0], sizes = [8, 16, 64], strides = [1, 1, 1]} : vector<8x16x128xf32> to vector<8x16x64xf32>
    %38 = vector.extract_strided_slice %36 {offsets = [0, 0, 64], sizes = [8, 16, 64], strides = [1, 1, 1]} : vector<8x16x128xf32> to vector<8x16x64xf32>
    %39 = arith.maximumf %37, %38 : vector<8x16x64xf32>
    %40 = vector.shape_cast %39 : vector<8x16x64xf32> to vector<4x2x16x64xf32>
    %cst_24 = arith.constant dense<0xFF800000> : vector<4x16x64xf32>
    %41 = vector.multi_reduction <maximumf>, %40, %cst_24 [1] : vector<4x2x16x64xf32> to vector<4x16x64xf32>
    %c0_25 = arith.constant 0 : index
    %c0_26 = arith.constant 0 : index
    %42 = vector.load %arg5[%c0_25, %c0_26] : memref<1x64xf32, #tpu.memory_space<vmem>>, vector<1x64xf32>
    %43 = vector.shape_cast %42 : vector<1x64xf32> to vector<1x1x64xf32>
    %44 = vector.broadcast %43 : vector<1x1x64xf32> to vector<4x16x64xf32>
    %45 = arith.addf %41, %44 : vector<4x16x64xf32>
    %cst_27 = arith.constant 0.000000e+00 : f32
    %46 = vector.broadcast %cst_27 : f32 to vector<4x16x64xf32>
    %47 = arith.cmpf ogt, %45, %46 : vector<4x16x64xf32>
    %cst_28 = arith.constant 0.000000e+00 : f32
    %48 = vector.broadcast %cst_28 : f32 to vector<4x16x64xf32>
    %49 = arith.minimumf %45, %48 : vector<4x16x64xf32>
    %50 = math.exp %49 : vector<4x16x64xf32>
    %cst_29 = arith.constant 1.000000e+00 : f32
    %51 = vector.broadcast %cst_29 : f32 to vector<4x16x64xf32>
    %52 = arith.subf %50, %51 : vector<4x16x64xf32>
    %53 = arith.select %47, %45, %52 : vector<4x16x64xi1>, vector<4x16x64xf32>
    %cst_30 = arith.constant 0.000000e+00 : f32
    %54 = vector.broadcast %cst_30 : f32 to vector<4x1x32xf32>
    %55 = vector.extract_strided_slice %53 {offsets = [0, 0, 32], sizes = [4, 15, 32], strides = [1, 1, 1]} : vector<4x16x64xf32> to vector<4x15x32xf32>
    %56 = tpu.concatenate %54, %55 in 1 : vector<4x1x32xf32>, vector<4x15x32xf32> -> vector<4x16x32xf32>
    %57 = vector.extract_strided_slice %53 {offsets = [0, 1, 0], sizes = [4, 15, 32], strides = [1, 1, 1]} : vector<4x16x64xf32> to vector<4x15x32xf32>
    %58 = tpu.concatenate %57, %54 in 1 : vector<4x15x32xf32>, vector<4x1x32xf32> -> vector<4x16x32xf32>
    %59 = tpu.concatenate %56, %58 in 2 : vector<4x16x32xf32>, vector<4x16x32xf32> -> vector<4x16x64xf32>
    %c5 = arith.constant 5 : index
    %c0_31 = arith.constant 0 : index
    %c0_32 = arith.constant 0 : index
    %60 = vector.load %arg9[%c5, %c0_31, %c0_32] : memref<34x16x128xf32, #tpu.memory_space<vmem>>, vector<4x16x64xf32>
    tpu.vector_store %arg9[%c5, %c0_31, %c0_32], %53 {strides = array<i32>} : memref<34x16x128xf32, #tpu.memory_space<vmem>>, vector<4x16x64xf32>,
    %c5_33 = arith.constant 5 : index
    %c0_34 = arith.constant 0 : index
    %c64_35 = arith.constant 64 : index
    %61 = vector.load %arg9[%c5_33, %c0_34, %c64_35] : memref<34x16x128xf32, #tpu.memory_space<vmem>>, vector<4x16x64xf32>
    tpu.vector_store %arg9[%c5_33, %c0_34, %c64_35], %59 {strides = array<i32>} : memref<34x16x128xf32, #tpu.memory_space<vmem>>, vector<4x16x64xf32>,
    %c0_36 = arith.constant 0 : index
    %c256 = arith.constant 256 : index
    %c0_37 = arith.constant 0 : index
    %62 = vector.load %arg1[%c0_36, %c256, %c0_37] : memref<1x1024x54xbf16, #tpu.memory_space<vmem>>, vector<1x128x54xbf16>
    %63 = vector.shape_cast %62 : vector<1x128x54xbf16> to vector<128x54xbf16>
    %cst_38 = arith.constant dense<0.000000e+00> : vector<128x128xf32>
    %64 = tpu.matmul %63, %3, %cst_38 {dimension_numbers = #tpu.dot_dimension_numbers<[1], [0], [0], [1], [0, 0, 1, 1], [], []>} : vector<128x54xbf16>, vector<54x128xbf16>, vector<128x128xf32> -> vector<128x128xf32>
    %65 = vector.shape_cast %64 : vector<128x128xf32> to vector<8x16x128xf32>
    %66 = vector.extract_strided_slice %65 {offsets = [0, 0, 0], sizes = [8, 16, 64], strides = [1, 1, 1]} : vector<8x16x128xf32> to vector<8x16x64xf32>
    %67 = vector.extract_strided_slice %65 {offsets = [0, 0, 64], sizes = [8, 16, 64], strides = [1, 1, 1]} : vector<8x16x128xf32> to vector<8x16x64xf32>
    %68 = arith.maximumf %66, %67 : vector<8x16x64xf32>
    %69 = vector.shape_cast %68 : vector<8x16x64xf32> to vector<4x2x16x64xf32>
    %cst_39 = arith.constant dense<0xFF800000> : vector<4x16x64xf32>
    %70 = vector.multi_reduction <maximumf>, %69, %cst_39 [1] : vector<4x2x16x64xf32> to vector<4x16x64xf32>
    %c0_40 = arith.constant 0 : index
    %c0_41 = arith.constant 0 : index
    %71 = vector.load %arg5[%c0_40, %c0_41] : memref<1x64xf32, #tpu.memory_space<vmem>>, vector<1x64xf32>
    %72 = vector.shape_cast %71 : vector<1x64xf32> to vector<1x1x64xf32>
    %73 = vector.broadcast %72 : vector<1x1x64xf32> to vector<4x16x64xf32>
    %74 = arith.addf %70, %73 : vector<4x16x64xf32>
    %cst_42 = arith.constant 0.000000e+00 : f32
    %75 = vector.broadcast %cst_42 : f32 to vector<4x16x64xf32>
    %76 = arith.cmpf ogt, %74, %75 : vector<4x16x64xf32>
    %cst_43 = arith.constant 0.000000e+00 : f32
    %77 = vector.broadcast %cst_43 : f32 to vector<4x16x64xf32>
    %78 = arith.minimumf %74, %77 : vector<4x16x64xf32>
    %79 = math.exp %78 : vector<4x16x64xf32>
    %cst_44 = arith.constant 1.000000e+00 : f32
    %80 = vector.broadcast %cst_44 : f32 to vector<4x16x64xf32>
    %81 = arith.subf %79, %80 : vector<4x16x64xf32>
    %82 = arith.select %76, %74, %81 : vector<4x16x64xi1>, vector<4x16x64xf32>
    %cst_45 = arith.constant 0.000000e+00 : f32
    %83 = vector.broadcast %cst_45 : f32 to vector<4x1x32xf32>
    %84 = vector.extract_strided_slice %82 {offsets = [0, 0, 32], sizes = [4, 15, 32], strides = [1, 1, 1]} : vector<4x16x64xf32> to vector<4x15x32xf32>
    %85 = tpu.concatenate %83, %84 in 1 : vector<4x1x32xf32>, vector<4x15x32xf32> -> vector<4x16x32xf32>
    %86 = vector.extract_strided_slice %82 {offsets = [0, 1, 0], sizes = [4, 15, 32], strides = [1, 1, 1]} : vector<4x16x64xf32> to vector<4x15x32xf32>
    %87 = tpu.concatenate %86, %83 in 1 : vector<4x15x32xf32>, vector<4x1x32xf32> -> vector<4x16x32xf32>
    %88 = tpu.concatenate %85, %87 in 2 : vector<4x16x32xf32>, vector<4x16x32xf32> -> vector<4x16x64xf32>
    %c9 = arith.constant 9 : index
    %c0_46 = arith.constant 0 : index
    %c0_47 = arith.constant 0 : index
    %89 = vector.load %arg9[%c9, %c0_46, %c0_47] : memref<34x16x128xf32, #tpu.memory_space<vmem>>, vector<4x16x64xf32>
    tpu.vector_store %arg9[%c9, %c0_46, %c0_47], %82 {strides = array<i32>} : memref<34x16x128xf32, #tpu.memory_space<vmem>>, vector<4x16x64xf32>,
    %c9_48 = arith.constant 9 : index
    %c0_49 = arith.constant 0 : index
    %c64_50 = arith.constant 64 : index
    %90 = vector.load %arg9[%c9_48, %c0_49, %c64_50] : memref<34x16x128xf32, #tpu.memory_space<vmem>>, vector<4x16x64xf32>
    tpu.vector_store %arg9[%c9_48, %c0_49, %c64_50], %88 {strides = array<i32>} : memref<34x16x128xf32, #tpu.memory_space<vmem>>, vector<4x16x64xf32>,
    %c0_51 = arith.constant 0 : index
    %c384 = arith.constant 384 : index
    %c0_52 = arith.constant 0 : index
    %91 = vector.load %arg1[%c0_51, %c384, %c0_52] : memref<1x1024x54xbf16, #tpu.memory_space<vmem>>, vector<1x128x54xbf16>
    %92 = vector.shape_cast %91 : vector<1x128x54xbf16> to vector<128x54xbf16>
    %cst_53 = arith.constant dense<0.000000e+00> : vector<128x128xf32>
    %93 = tpu.matmul %92, %3, %cst_53 {dimension_numbers = #tpu.dot_dimension_numbers<[1], [0], [0], [1], [0, 0, 1, 1], [], []>} : vector<128x54xbf16>, vector<54x128xbf16>, vector<128x128xf32> -> vector<128x128xf32>
    %94 = vector.shape_cast %93 : vector<128x128xf32> to vector<8x16x128xf32>
    %95 = vector.extract_strided_slice %94 {offsets = [0, 0, 0], sizes = [8, 16, 64], strides = [1, 1, 1]} : vector<8x16x128xf32> to vector<8x16x64xf32>
    %96 = vector.extract_strided_slice %94 {offsets = [0, 0, 64], sizes = [8, 16, 64], strides = [1, 1, 1]} : vector<8x16x128xf32> to vector<8x16x64xf32>
    %97 = arith.maximumf %95, %96 : vector<8x16x64xf32>
    %98 = vector.shape_cast %97 : vector<8x16x64xf32> to vector<4x2x16x64xf32>
    %cst_54 = arith.constant dense<0xFF800000> : vector<4x16x64xf32>
    %99 = vector.multi_reduction <maximumf>, %98, %cst_54 [1] : vector<4x2x16x64xf32> to vector<4x16x64xf32>
    %c0_55 = arith.constant 0 : index
    %c0_56 = arith.constant 0 : index
    %100 = vector.load %arg5[%c0_55, %c0_56] : memref<1x64xf32, #tpu.memory_space<vmem>>, vector<1x64xf32>
    %101 = vector.shape_cast %100 : vector<1x64xf32> to vector<1x1x64xf32>
    %102 = vector.broadcast %101 : vector<1x1x64xf32> to vector<4x16x64xf32>
    %103 = arith.addf %99, %102 : vector<4x16x64xf32>
    %cst_57 = arith.constant 0.000000e+00 : f32
    %104 = vector.broadcast %cst_57 : f32 to vector<4x16x64xf32>
    %105 = arith.cmpf ogt, %103, %104 : vector<4x16x64xf32>
    %cst_58 = arith.constant 0.000000e+00 : f32
    %106 = vector.broadcast %cst_58 : f32 to vector<4x16x64xf32>
    %107 = arith.minimumf %103, %106 : vector<4x16x64xf32>
    %108 = math.exp %107 : vector<4x16x64xf32>
    %cst_59 = arith.constant 1.000000e+00 : f32
    %109 = vector.broadcast %cst_59 : f32 to vector<4x16x64xf32>
    %110 = arith.subf %108, %109 : vector<4x16x64xf32>
    %111 = arith.select %105, %103, %110 : vector<4x16x64xi1>, vector<4x16x64xf32>
    %cst_60 = arith.constant 0.000000e+00 : f32
    %112 = vector.broadcast %cst_60 : f32 to vector<4x1x32xf32>
    %113 = vector.extract_strided_slice %111 {offsets = [0, 0, 32], sizes = [4, 15, 32], strides = [1, 1, 1]} : vector<4x16x64xf32> to vector<4x15x32xf32>
    %114 = tpu.concatenate %112, %113 in 1 : vector<4x1x32xf32>, vector<4x15x32xf32> -> vector<4x16x32xf32>
    %115 = vector.extract_strided_slice %111 {offsets = [0, 1, 0], sizes = [4, 15, 32], strides = [1, 1, 1]} : vector<4x16x64xf32> to vector<4x15x32xf32>
    %116 = tpu.concatenate %115, %112 in 1 : vector<4x15x32xf32>, vector<4x1x32xf32> -> vector<4x16x32xf32>
    %117 = tpu.concatenate %114, %116 in 2 : vector<4x16x32xf32>, vector<4x16x32xf32> -> vector<4x16x64xf32>
    %c13 = arith.constant 13 : index
    %c0_61 = arith.constant 0 : index
    %c0_62 = arith.constant 0 : index
    %118 = vector.load %arg9[%c13, %c0_61, %c0_62] : memref<34x16x128xf32, #tpu.memory_space<vmem>>, vector<4x16x64xf32>
    tpu.vector_store %arg9[%c13, %c0_61, %c0_62], %111 {strides = array<i32>} : memref<34x16x128xf32, #tpu.memory_space<vmem>>, vector<4x16x64xf32>,
    %c13_63 = arith.constant 13 : index
    %c0_64 = arith.constant 0 : index
    %c64_65 = arith.constant 64 : index
    %119 = vector.load %arg9[%c13_63, %c0_64, %c64_65] : memref<34x16x128xf32, #tpu.memory_space<vmem>>, vector<4x16x64xf32>
    tpu.vector_store %arg9[%c13_63, %c0_64, %c64_65], %117 {strides = array<i32>} : memref<34x16x128xf32, #tpu.memory_space<vmem>>, vector<4x16x64xf32>,
    %c0_66 = arith.constant 0 : index
    %c512 = arith.constant 512 : index
    %c0_67 = arith.constant 0 : index
    %120 = vector.load %arg1[%c0_66, %c512, %c0_67] : memref<1x1024x54xbf16, #tpu.memory_space<vmem>>, vector<1x128x54xbf16>
    %121 = vector.shape_cast %120 : vector<1x128x54xbf16> to vector<128x54xbf16>
    %cst_68 = arith.constant dense<0.000000e+00> : vector<128x128xf32>
    %122 = tpu.matmul %121, %3, %cst_68 {dimension_numbers = #tpu.dot_dimension_numbers<[1], [0], [0], [1], [0, 0, 1, 1], [], []>} : vector<128x54xbf16>, vector<54x128xbf16>, vector<128x128xf32> -> vector<128x128xf32>
    %123 = vector.shape_cast %122 : vector<128x128xf32> to vector<8x16x128xf32>
    %124 = vector.extract_strided_slice %123 {offsets = [0, 0, 0], sizes = [8, 16, 64], strides = [1, 1, 1]} : vector<8x16x128xf32> to vector<8x16x64xf32>
    %125 = vector.extract_strided_slice %123 {offsets = [0, 0, 64], sizes = [8, 16, 64], strides = [1, 1, 1]} : vector<8x16x128xf32> to vector<8x16x64xf32>
    %126 = arith.maximumf %124, %125 : vector<8x16x64xf32>
    %127 = vector.shape_cast %126 : vector<8x16x64xf32> to vector<4x2x16x64xf32>
    %cst_69 = arith.constant dense<0xFF800000> : vector<4x16x64xf32>
    %128 = vector.multi_reduction <maximumf>, %127, %cst_69 [1] : vector<4x2x16x64xf32> to vector<4x16x64xf32>
    %c0_70 = arith.constant 0 : index
    %c0_71 = arith.constant 0 : index
    %129 = vector.load %arg5[%c0_70, %c0_71] : memref<1x64xf32, #tpu.memory_space<vmem>>, vector<1x64xf32>
    %130 = vector.shape_cast %129 : vector<1x64xf32> to vector<1x1x64xf32>
    %131 = vector.broadcast %130 : vector<1x1x64xf32> to vector<4x16x64xf32>
    %132 = arith.addf %128, %131 : vector<4x16x64xf32>
    %cst_72 = arith.constant 0.000000e+00 : f32
    %133 = vector.broadcast %cst_72 : f32 to vector<4x16x64xf32>
    %134 = arith.cmpf ogt, %132, %133 : vector<4x16x64xf32>
    %cst_73 = arith.constant 0.000000e+00 : f32
    %135 = vector.broadcast %cst_73 : f32 to vector<4x16x64xf32>
    %136 = arith.minimumf %132, %135 : vector<4x16x64xf32>
    %137 = math.exp %136 : vector<4x16x64xf32>
    %cst_74 = arith.constant 1.000000e+00 : f32
    %138 = vector.broadcast %cst_74 : f32 to vector<4x16x64xf32>
    %139 = arith.subf %137, %138 : vector<4x16x64xf32>
    %140 = arith.select %134, %132, %139 : vector<4x16x64xi1>, vector<4x16x64xf32>
    %cst_75 = arith.constant 0.000000e+00 : f32
    %141 = vector.broadcast %cst_75 : f32 to vector<4x1x32xf32>
    %142 = vector.extract_strided_slice %140 {offsets = [0, 0, 32], sizes = [4, 15, 32], strides = [1, 1, 1]} : vector<4x16x64xf32> to vector<4x15x32xf32>
    %143 = tpu.concatenate %141, %142 in 1 : vector<4x1x32xf32>, vector<4x15x32xf32> -> vector<4x16x32xf32>
    %144 = vector.extract_strided_slice %140 {offsets = [0, 1, 0], sizes = [4, 15, 32], strides = [1, 1, 1]} : vector<4x16x64xf32> to vector<4x15x32xf32>
    %145 = tpu.concatenate %144, %141 in 1 : vector<4x15x32xf32>, vector<4x1x32xf32> -> vector<4x16x32xf32>
    %146 = tpu.concatenate %143, %145 in 2 : vector<4x16x32xf32>, vector<4x16x32xf32> -> vector<4x16x64xf32>
    %c17 = arith.constant 17 : index
    %c0_76 = arith.constant 0 : index
    %c0_77 = arith.constant 0 : index
    %147 = vector.load %arg9[%c17, %c0_76, %c0_77] : memref<34x16x128xf32, #tpu.memory_space<vmem>>, vector<4x16x64xf32>
    tpu.vector_store %arg9[%c17, %c0_76, %c0_77], %140 {strides = array<i32>} : memref<34x16x128xf32, #tpu.memory_space<vmem>>, vector<4x16x64xf32>,
    %c17_78 = arith.constant 17 : index
    %c0_79 = arith.constant 0 : index
    %c64_80 = arith.constant 64 : index
    %148 = vector.load %arg9[%c17_78, %c0_79, %c64_80] : memref<34x16x128xf32, #tpu.memory_space<vmem>>, vector<4x16x64xf32>
    tpu.vector_store %arg9[%c17_78, %c0_79, %c64_80], %146 {strides = array<i32>} : memref<34x16x128xf32, #tpu.memory_space<vmem>>, vector<4x16x64xf32>,
    %c0_81 = arith.constant 0 : index
    %c640 = arith.constant 640 : index
    %c0_82 = arith.constant 0 : index
    %149 = vector.load %arg1[%c0_81, %c640, %c0_82] : memref<1x1024x54xbf16, #tpu.memory_space<vmem>>, vector<1x128x54xbf16>
    %150 = vector.shape_cast %149 : vector<1x128x54xbf16> to vector<128x54xbf16>
    %cst_83 = arith.constant dense<0.000000e+00> : vector<128x128xf32>
    %151 = tpu.matmul %150, %3, %cst_83 {dimension_numbers = #tpu.dot_dimension_numbers<[1], [0], [0], [1], [0, 0, 1, 1], [], []>} : vector<128x54xbf16>, vector<54x128xbf16>, vector<128x128xf32> -> vector<128x128xf32>
    %152 = vector.shape_cast %151 : vector<128x128xf32> to vector<8x16x128xf32>
    %153 = vector.extract_strided_slice %152 {offsets = [0, 0, 0], sizes = [8, 16, 64], strides = [1, 1, 1]} : vector<8x16x128xf32> to vector<8x16x64xf32>
    %154 = vector.extract_strided_slice %152 {offsets = [0, 0, 64], sizes = [8, 16, 64], strides = [1, 1, 1]} : vector<8x16x128xf32> to vector<8x16x64xf32>
    %155 = arith.maximumf %153, %154 : vector<8x16x64xf32>
    %156 = vector.shape_cast %155 : vector<8x16x64xf32> to vector<4x2x16x64xf32>
    %cst_84 = arith.constant dense<0xFF800000> : vector<4x16x64xf32>
    %157 = vector.multi_reduction <maximumf>, %156, %cst_84 [1] : vector<4x2x16x64xf32> to vector<4x16x64xf32>
    %c0_85 = arith.constant 0 : index
    %c0_86 = arith.constant 0 : index
    %158 = vector.load %arg5[%c0_85, %c0_86] : memref<1x64xf32, #tpu.memory_space<vmem>>, vector<1x64xf32>
    %159 = vector.shape_cast %158 : vector<1x64xf32> to vector<1x1x64xf32>
    %160 = vector.broadcast %159 : vector<1x1x64xf32> to vector<4x16x64xf32>
    %161 = arith.addf %157, %160 : vector<4x16x64xf32>
    %cst_87 = arith.constant 0.000000e+00 : f32
    %162 = vector.broadcast %cst_87 : f32 to vector<4x16x64xf32>
    %163 = arith.cmpf ogt, %161, %162 : vector<4x16x64xf32>
    %cst_88 = arith.constant 0.000000e+00 : f32
    %164 = vector.broadcast %cst_88 : f32 to vector<4x16x64xf32>
    %165 = arith.minimumf %161, %164 : vector<4x16x64xf32>
    %166 = math.exp %165 : vector<4x16x64xf32>
    %cst_89 = arith.constant 1.000000e+00 : f32
    %167 = vector.broadcast %cst_89 : f32 to vector<4x16x64xf32>
    %168 = arith.subf %166, %167 : vector<4x16x64xf32>
    %169 = arith.select %163, %161, %168 : vector<4x16x64xi1>, vector<4x16x64xf32>
    %cst_90 = arith.constant 0.000000e+00 : f32
    %170 = vector.broadcast %cst_90 : f32 to vector<4x1x32xf32>
    %171 = vector.extract_strided_slice %169 {offsets = [0, 0, 32], sizes = [4, 15, 32], strides = [1, 1, 1]} : vector<4x16x64xf32> to vector<4x15x32xf32>
    %172 = tpu.concatenate %170, %171 in 1 : vector<4x1x32xf32>, vector<4x15x32xf32> -> vector<4x16x32xf32>
    %173 = vector.extract_strided_slice %169 {offsets = [0, 1, 0], sizes = [4, 15, 32], strides = [1, 1, 1]} : vector<4x16x64xf32> to vector<4x15x32xf32>
    %174 = tpu.concatenate %173, %170 in 1 : vector<4x15x32xf32>, vector<4x1x32xf32> -> vector<4x16x32xf32>
    %175 = tpu.concatenate %172, %174 in 2 : vector<4x16x32xf32>, vector<4x16x32xf32> -> vector<4x16x64xf32>
    %c21 = arith.constant 21 : index
    %c0_91 = arith.constant 0 : index
    %c0_92 = arith.constant 0 : index
    %176 = vector.load %arg9[%c21, %c0_91, %c0_92] : memref<34x16x128xf32, #tpu.memory_space<vmem>>, vector<4x16x64xf32>
    tpu.vector_store %arg9[%c21, %c0_91, %c0_92], %169 {strides = array<i32>} : memref<34x16x128xf32, #tpu.memory_space<vmem>>, vector<4x16x64xf32>,
    %c21_93 = arith.constant 21 : index
    %c0_94 = arith.constant 0 : index
    %c64_95 = arith.constant 64 : index
    %177 = vector.load %arg9[%c21_93, %c0_94, %c64_95] : memref<34x16x128xf32, #tpu.memory_space<vmem>>, vector<4x16x64xf32>
    tpu.vector_store %arg9[%c21_93, %c0_94, %c64_95], %175 {strides = array<i32>} : memref<34x16x128xf32, #tpu.memory_space<vmem>>, vector<4x16x64xf32>,
    %c0_96 = arith.constant 0 : index
    %c768 = arith.constant 768 : index
    %c0_97 = arith.constant 0 : index
    %178 = vector.load %arg1[%c0_96, %c768, %c0_97] : memref<1x1024x54xbf16, #tpu.memory_space<vmem>>, vector<1x128x54xbf16>
    %179 = vector.shape_cast %178 : vector<1x128x54xbf16> to vector<128x54xbf16>
    %cst_98 = arith.constant dense<0.000000e+00> : vector<128x128xf32>
    %180 = tpu.matmul %179, %3, %cst_98 {dimension_numbers = #tpu.dot_dimension_numbers<[1], [0], [0], [1], [0, 0, 1, 1], [], []>} : vector<128x54xbf16>, vector<54x128xbf16>, vector<128x128xf32> -> vector<128x128xf32>
    %181 = vector.shape_cast %180 : vector<128x128xf32> to vector<8x16x128xf32>
    %182 = vector.extract_strided_slice %181 {offsets = [0, 0, 0], sizes = [8, 16, 64], strides = [1, 1, 1]} : vector<8x16x128xf32> to vector<8x16x64xf32>
    %183 = vector.extract_strided_slice %181 {offsets = [0, 0, 64], sizes = [8, 16, 64], strides = [1, 1, 1]} : vector<8x16x128xf32> to vector<8x16x64xf32>
    %184 = arith.maximumf %182, %183 : vector<8x16x64xf32>
    %185 = vector.shape_cast %184 : vector<8x16x64xf32> to vector<4x2x16x64xf32>
    %cst_99 = arith.constant dense<0xFF800000> : vector<4x16x64xf32>
    %186 = vector.multi_reduction <maximumf>, %185, %cst_99 [1] : vector<4x2x16x64xf32> to vector<4x16x64xf32>
    %c0_100 = arith.constant 0 : index
    %c0_101 = arith.constant 0 : index
    %187 = vector.load %arg5[%c0_100, %c0_101] : memref<1x64xf32, #tpu.memory_space<vmem>>, vector<1x64xf32>
    %188 = vector.shape_cast %187 : vector<1x64xf32> to vector<1x1x64xf32>
    %189 = vector.broadcast %188 : vector<1x1x64xf32> to vector<4x16x64xf32>
    %190 = arith.addf %186, %189 : vector<4x16x64xf32>
    %cst_102 = arith.constant 0.000000e+00 : f32
    %191 = vector.broadcast %cst_102 : f32 to vector<4x16x64xf32>
    %192 = arith.cmpf ogt, %190, %191 : vector<4x16x64xf32>
    %cst_103 = arith.constant 0.000000e+00 : f32
    %193 = vector.broadcast %cst_103 : f32 to vector<4x16x64xf32>
    %194 = arith.minimumf %190, %193 : vector<4x16x64xf32>
    %195 = math.exp %194 : vector<4x16x64xf32>
    %cst_104 = arith.constant 1.000000e+00 : f32
    %196 = vector.broadcast %cst_104 : f32 to vector<4x16x64xf32>
    %197 = arith.subf %195, %196 : vector<4x16x64xf32>
    %198 = arith.select %192, %190, %197 : vector<4x16x64xi1>, vector<4x16x64xf32>
    %cst_105 = arith.constant 0.000000e+00 : f32
    %199 = vector.broadcast %cst_105 : f32 to vector<4x1x32xf32>
    %200 = vector.extract_strided_slice %198 {offsets = [0, 0, 32], sizes = [4, 15, 32], strides = [1, 1, 1]} : vector<4x16x64xf32> to vector<4x15x32xf32>
    %201 = tpu.concatenate %199, %200 in 1 : vector<4x1x32xf32>, vector<4x15x32xf32> -> vector<4x16x32xf32>
    %202 = vector.extract_strided_slice %198 {offsets = [0, 1, 0], sizes = [4, 15, 32], strides = [1, 1, 1]} : vector<4x16x64xf32> to vector<4x15x32xf32>
    %203 = tpu.concatenate %202, %199 in 1 : vector<4x15x32xf32>, vector<4x1x32xf32> -> vector<4x16x32xf32>
    %204 = tpu.concatenate %201, %203 in 2 : vector<4x16x32xf32>, vector<4x16x32xf32> -> vector<4x16x64xf32>
    %c25 = arith.constant 25 : index
    %c0_106 = arith.constant 0 : index
    %c0_107 = arith.constant 0 : index
    %205 = vector.load %arg9[%c25, %c0_106, %c0_107] : memref<34x16x128xf32, #tpu.memory_space<vmem>>, vector<4x16x64xf32>
    tpu.vector_store %arg9[%c25, %c0_106, %c0_107], %198 {strides = array<i32>} : memref<34x16x128xf32, #tpu.memory_space<vmem>>, vector<4x16x64xf32>,
    %c25_108 = arith.constant 25 : index
    %c0_109 = arith.constant 0 : index
    %c64_110 = arith.constant 64 : index
    %206 = vector.load %arg9[%c25_108, %c0_109, %c64_110] : memref<34x16x128xf32, #tpu.memory_space<vmem>>, vector<4x16x64xf32>
    tpu.vector_store %arg9[%c25_108, %c0_109, %c64_110], %204 {strides = array<i32>} : memref<34x16x128xf32, #tpu.memory_space<vmem>>, vector<4x16x64xf32>,
    %c0_111 = arith.constant 0 : index
    %c896 = arith.constant 896 : index
    %c0_112 = arith.constant 0 : index
    %207 = vector.load %arg1[%c0_111, %c896, %c0_112] : memref<1x1024x54xbf16, #tpu.memory_space<vmem>>, vector<1x128x54xbf16>
    %208 = vector.shape_cast %207 : vector<1x128x54xbf16> to vector<128x54xbf16>
    %cst_113 = arith.constant dense<0.000000e+00> : vector<128x128xf32>
    %209 = tpu.matmul %208, %3, %cst_113 {dimension_numbers = #tpu.dot_dimension_numbers<[1], [0], [0], [1], [0, 0, 1, 1], [], []>} : vector<128x54xbf16>, vector<54x128xbf16>, vector<128x128xf32> -> vector<128x128xf32>
    %210 = vector.shape_cast %209 : vector<128x128xf32> to vector<8x16x128xf32>
    %211 = vector.extract_strided_slice %210 {offsets = [0, 0, 0], sizes = [8, 16, 64], strides = [1, 1, 1]} : vector<8x16x128xf32> to vector<8x16x64xf32>
    %212 = vector.extract_strided_slice %210 {offsets = [0, 0, 64], sizes = [8, 16, 64], strides = [1, 1, 1]} : vector<8x16x128xf32> to vector<8x16x64xf32>
    %213 = arith.maximumf %211, %212 : vector<8x16x64xf32>
    %214 = vector.shape_cast %213 : vector<8x16x64xf32> to vector<4x2x16x64xf32>
    %cst_114 = arith.constant dense<0xFF800000> : vector<4x16x64xf32>
    %215 = vector.multi_reduction <maximumf>, %214, %cst_114 [1] : vector<4x2x16x64xf32> to vector<4x16x64xf32>
    %c0_115 = arith.constant 0 : index
    %c0_116 = arith.constant 0 : index
    %216 = vector.load %arg5[%c0_115, %c0_116] : memref<1x64xf32, #tpu.memory_space<vmem>>, vector<1x64xf32>
    %217 = vector.shape_cast %216 : vector<1x64xf32> to vector<1x1x64xf32>
    %218 = vector.broadcast %217 : vector<1x1x64xf32> to vector<4x16x64xf32>
    %219 = arith.addf %215, %218 : vector<4x16x64xf32>
    %cst_117 = arith.constant 0.000000e+00 : f32
    %220 = vector.broadcast %cst_117 : f32 to vector<4x16x64xf32>
    %221 = arith.cmpf ogt, %219, %220 : vector<4x16x64xf32>
    %cst_118 = arith.constant 0.000000e+00 : f32
    %222 = vector.broadcast %cst_118 : f32 to vector<4x16x64xf32>
    %223 = arith.minimumf %219, %222 : vector<4x16x64xf32>
    %224 = math.exp %223 : vector<4x16x64xf32>
    %cst_119 = arith.constant 1.000000e+00 : f32
    %225 = vector.broadcast %cst_119 : f32 to vector<4x16x64xf32>
    %226 = arith.subf %224, %225 : vector<4x16x64xf32>
    %227 = arith.select %221, %219, %226 : vector<4x16x64xi1>, vector<4x16x64xf32>
    %cst_120 = arith.constant 0.000000e+00 : f32
    %228 = vector.broadcast %cst_120 : f32 to vector<4x1x32xf32>
    %229 = vector.extract_strided_slice %227 {offsets = [0, 0, 32], sizes = [4, 15, 32], strides = [1, 1, 1]} : vector<4x16x64xf32> to vector<4x15x32xf32>
    %230 = tpu.concatenate %228, %229 in 1 : vector<4x1x32xf32>, vector<4x15x32xf32> -> vector<4x16x32xf32>
    %231 = vector.extract_strided_slice %227 {offsets = [0, 1, 0], sizes = [4, 15, 32], strides = [1, 1, 1]} : vector<4x16x64xf32> to vector<4x15x32xf32>
    %232 = tpu.concatenate %231, %228 in 1 : vector<4x15x32xf32>, vector<4x1x32xf32> -> vector<4x16x32xf32>
    %233 = tpu.concatenate %230, %232 in 2 : vector<4x16x32xf32>, vector<4x16x32xf32> -> vector<4x16x64xf32>
    %c29 = arith.constant 29 : index
    %c0_121 = arith.constant 0 : index
    %c0_122 = arith.constant 0 : index
    %234 = vector.load %arg9[%c29, %c0_121, %c0_122] : memref<34x16x128xf32, #tpu.memory_space<vmem>>, vector<4x16x64xf32>
    tpu.vector_store %arg9[%c29, %c0_121, %c0_122], %227 {strides = array<i32>} : memref<34x16x128xf32, #tpu.memory_space<vmem>>, vector<4x16x64xf32>,
    %c29_123 = arith.constant 29 : index
    %c0_124 = arith.constant 0 : index
    %c64_125 = arith.constant 64 : index
    %235 = vector.load %arg9[%c29_123, %c0_124, %c64_125] : memref<34x16x128xf32, #tpu.memory_space<vmem>>, vector<4x16x64xf32>
    tpu.vector_store %arg9[%c29_123, %c0_124, %c64_125], %233 {strides = array<i32>} : memref<34x16x128xf32, #tpu.memory_space<vmem>>, vector<4x16x64xf32>,
    %cst_126 = arith.constant 0.000000e+00 : f32
    %236 = vector.broadcast %cst_126 : f32 to vector<128x128xf32>
    %c0_127 = arith.constant 0 : index
    %c0_128 = arith.constant 0 : index
    %c0_129 = arith.constant 0 : index
    %237 = vector.load %arg9[%c0_127, %c0_128, %c0_129] : memref<34x16x128xf32, #tpu.memory_space<vmem>>, vector<8x16x128xf32>
    %238 = vector.shape_cast %237 : vector<8x16x128xf32> to vector<128x128xf32>
    %239 = arith.truncf %238 : vector<128x128xf32> to vector<128x128xbf16>
    %c0_130 = arith.constant 0 : index
    %c0_131 = arith.constant 0 : index
    %c0_132 = arith.constant 0 : index
    %240 = vector.load %arg3[%c0_130, %c0_131, %c0_132] : memref<3x128x128xbf16, #tpu.memory_space<vmem>>, vector<1x128x128xbf16>
    %241 = vector.shape_cast %240 : vector<1x128x128xbf16> to vector<128x128xbf16>
    %cst_133 = arith.constant dense<0.000000e+00> : vector<128x128xf32>
    %242 = tpu.matmul %239, %241, %cst_133 {dimension_numbers = #tpu.dot_dimension_numbers<[1], [0], [0], [1], [0, 0, 1, 1], [], []>} : vector<128x128xbf16>, vector<128x128xbf16>, vector<128x128xf32> -> vector<128x128xf32>
    %243 = arith.addf %236, %242 : vector<128x128xf32>
    %c1_134 = arith.constant 1 : index
    %c0_135 = arith.constant 0 : index
    %c0_136 = arith.constant 0 : index
    %244 = vector.load %arg9[%c1_134, %c0_135, %c0_136] : memref<34x16x128xf32, #tpu.memory_space<vmem>>, vector<8x16x128xf32>
    %245 = vector.shape_cast %244 : vector<8x16x128xf32> to vector<128x128xf32>
    %246 = arith.truncf %245 : vector<128x128xf32> to vector<128x128xbf16>
    %c1_137 = arith.constant 1 : index
    %c0_138 = arith.constant 0 : index
    %c0_139 = arith.constant 0 : index
    %247 = vector.load %arg3[%c1_137, %c0_138, %c0_139] : memref<3x128x128xbf16, #tpu.memory_space<vmem>>, vector<1x128x128xbf16>
    %248 = vector.shape_cast %247 : vector<1x128x128xbf16> to vector<128x128xbf16>
    %cst_140 = arith.constant dense<0.000000e+00> : vector<128x128xf32>
    %249 = tpu.matmul %246, %248, %cst_140 {dimension_numbers = #tpu.dot_dimension_numbers<[1], [0], [0], [1], [0, 0, 1, 1], [], []>} : vector<128x128xbf16>, vector<128x128xbf16>, vector<128x128xf32> -> vector<128x128xf32>
    %250 = arith.addf %243, %249 : vector<128x128xf32>
    %c2 = arith.constant 2 : index
    %c0_141 = arith.constant 0 : index
    %c0_142 = arith.constant 0 : index
    %251 = vector.load %arg9[%c2, %c0_141, %c0_142] : memref<34x16x128xf32, #tpu.memory_space<vmem>>, vector<8x16x128xf32>
    %252 = vector.shape_cast %251 : vector<8x16x128xf32> to vector<128x128xf32>
    %253 = arith.truncf %252 : vector<128x128xf32> to vector<128x128xbf16>
    %c2_143 = arith.constant 2 : index
    %c0_144 = arith.constant 0 : index
    %c0_145 = arith.constant 0 : index
    %254 = vector.load %arg3[%c2_143, %c0_144, %c0_145] : memref<3x128x128xbf16, #tpu.memory_space<vmem>>, vector<1x128x128xbf16>
    %255 = vector.shape_cast %254 : vector<1x128x128xbf16> to vector<128x128xbf16>
    %cst_146 = arith.constant dense<0.000000e+00> : vector<128x128xf32>
    %256 = tpu.matmul %253, %255, %cst_146 {dimension_numbers = #tpu.dot_dimension_numbers<[1], [0], [0], [1], [0, 0, 1, 1], [], []>} : vector<128x128xbf16>, vector<128x128xbf16>, vector<128x128xf32> -> vector<128x128xf32>
    %257 = arith.addf %250, %256 : vector<128x128xf32>
    %258 = vector.shape_cast %257 : vector<128x128xf32> to vector<8x16x128xf32>
    %259 = vector.extract_strided_slice %258 {offsets = [0, 0, 0], sizes = [8, 16, 64], strides = [1, 1, 1]} : vector<8x16x128xf32> to vector<8x16x64xf32>
    %260 = vector.extract_strided_slice %258 {offsets = [0, 0, 64], sizes = [8, 16, 64], strides = [1, 1, 1]} : vector<8x16x128xf32> to vector<8x16x64xf32>
    %261 = arith.maximumf %259, %260 : vector<8x16x64xf32>
    %262 = vector.shape_cast %261 : vector<8x16x64xf32> to vector<4x2x16x64xf32>
    %cst_147 = arith.constant dense<0xFF800000> : vector<4x16x64xf32>
    %263 = vector.multi_reduction <maximumf>, %262, %cst_147 [1] : vector<4x2x16x64xf32> to vector<4x16x64xf32>
    %c0_148 = arith.constant 0 : index
    %c0_149 = arith.constant 0 : index
    %264 = vector.load %arg6[%c0_148, %c0_149] : memref<1x64xf32, #tpu.memory_space<vmem>>, vector<1x64xf32>
    %265 = vector.shape_cast %264 : vector<1x64xf32> to vector<1x1x64xf32>
    %266 = vector.broadcast %265 : vector<1x1x64xf32> to vector<4x16x64xf32>
    %267 = arith.addf %263, %266 : vector<4x16x64xf32>
    %cst_150 = arith.constant 0.000000e+00 : f32
    %268 = vector.broadcast %cst_150 : f32 to vector<4x16x64xf32>
    %269 = arith.cmpf ogt, %267, %268 : vector<4x16x64xf32>
    %cst_151 = arith.constant 0.000000e+00 : f32
    %270 = vector.broadcast %cst_151 : f32 to vector<4x16x64xf32>
    %271 = arith.minimumf %267, %270 : vector<4x16x64xf32>
    %272 = math.exp %271 : vector<4x16x64xf32>
    %cst_152 = arith.constant 1.000000e+00 : f32
    %273 = vector.broadcast %cst_152 : f32 to vector<4x16x64xf32>
    %274 = arith.subf %272, %273 : vector<4x16x64xf32>
    %275 = arith.select %269, %267, %274 : vector<4x16x64xi1>, vector<4x16x64xf32>
    %c0_153 = arith.constant 0 : index
    %c0_154 = arith.constant 0 : index
    %c0_155 = arith.constant 0 : index
    %276 = vector.load %arg10[%c0_153, %c0_154, %c0_155] : memref<16x16x64xf32, #tpu.memory_space<vmem>>, vector<4x16x64xf32>
    tpu.vector_store %arg10[%c0_153, %c0_154, %c0_155], %275 {strides = array<i32>} : memref<16x16x64xf32, #tpu.memory_space<vmem>>, vector<4x16x64xf32>,
    %cst_156 = arith.constant 0.000000e+00 : f32
    %277 = vector.broadcast %cst_156 : f32 to vector<128x128xf32>
    %c8 = arith.constant 8 : index
    %c0_157 = arith.constant 0 : index
    %c0_158 = arith.constant 0 : index
    %278 = vector.load %arg9[%c8, %c0_157, %c0_158] : memref<34x16x128xf32, #tpu.memory_space<vmem>>, vector<8x16x128xf32>
    %279 = vector.shape_cast %278 : vector<8x16x128xf32> to vector<128x128xf32>
    %280 = arith.truncf %279 : vector<128x128xf32> to vector<128x128xbf16>
    %c0_159 = arith.constant 0 : index
    %c0_160 = arith.constant 0 : index
    %c0_161 = arith.constant 0 : index
    %281 = vector.load %arg3[%c0_159, %c0_160, %c0_161] : memref<3x128x128xbf16, #tpu.memory_space<vmem>>, vector<1x128x128xbf16>
    %282 = vector.shape_cast %281 : vector<1x128x128xbf16> to vector<128x128xbf16>
    %cst_162 = arith.constant dense<0.000000e+00> : vector<128x128xf32>
    %283 = tpu.matmul %280, %282, %cst_162 {dimension_numbers = #tpu.dot_dimension_numbers<[1], [0], [0], [1], [0, 0, 1, 1], [], []>} : vector<128x128xbf16>, vector<128x128xbf16>, vector<128x128xf32> -> vector<128x128xf32>
    %284 = arith.addf %277, %283 : vector<128x128xf32>
    %c9_163 = arith.constant 9 : index
    %c0_164 = arith.constant 0 : index
    %c0_165 = arith.constant 0 : index
    %285 = vector.load %arg9[%c9_163, %c0_164, %c0_165] : memref<34x16x128xf32, #tpu.memory_space<vmem>>, vector<8x16x128xf32>
    %286 = vector.shape_cast %285 : vector<8x16x128xf32> to vector<128x128xf32>
    %287 = arith.truncf %286 : vector<128x128xf32> to vector<128x128xbf16>
    %c1_166 = arith.constant 1 : index
    %c0_167 = arith.constant 0 : index
    %c0_168 = arith.constant 0 : index
    %288 = vector.load %arg3[%c1_166, %c0_167, %c0_168] : memref<3x128x128xbf16, #tpu.memory_space<vmem>>, vector<1x128x128xbf16>
    %289 = vector.shape_cast %288 : vector<1x128x128xbf16> to vector<128x128xbf16>
    %cst_169 = arith.constant dense<0.000000e+00> : vector<128x128xf32>
    %290 = tpu.matmul %287, %289, %cst_169 {dimension_numbers = #tpu.dot_dimension_numbers<[1], [0], [0], [1], [0, 0, 1, 1], [], []>} : vector<128x128xbf16>, vector<128x128xbf16>, vector<128x128xf32> -> vector<128x128xf32>
    %291 = arith.addf %284, %290 : vector<128x128xf32>
    %c10 = arith.constant 10 : index
    %c0_170 = arith.constant 0 : index
    %c0_171 = arith.constant 0 : index
    %292 = vector.load %arg9[%c10, %c0_170, %c0_171] : memref<34x16x128xf32, #tpu.memory_space<vmem>>, vector<8x16x128xf32>
    %293 = vector.shape_cast %292 : vector<8x16x128xf32> to vector<128x128xf32>
    %294 = arith.truncf %293 : vector<128x128xf32> to vector<128x128xbf16>
    %c2_172 = arith.constant 2 : index
    %c0_173 = arith.constant 0 : index
    %c0_174 = arith.constant 0 : index
    %295 = vector.load %arg3[%c2_172, %c0_173, %c0_174] : memref<3x128x128xbf16, #tpu.memory_space<vmem>>, vector<1x128x128xbf16>
    %296 = vector.shape_cast %295 : vector<1x128x128xbf16> to vector<128x128xbf16>
    %cst_175 = arith.constant dense<0.000000e+00> : vector<128x128xf32>
    %297 = tpu.matmul %294, %296, %cst_175 {dimension_numbers = #tpu.dot_dimension_numbers<[1], [0], [0], [1], [0, 0, 1, 1], [], []>} : vector<128x128xbf16>, vector<128x128xbf16>, vector<128x128xf32> -> vector<128x128xf32>
    %298 = arith.addf %291, %297 : vector<128x128xf32>
    %299 = vector.shape_cast %298 : vector<128x128xf32> to vector<8x16x128xf32>
    %300 = vector.extract_strided_slice %299 {offsets = [0, 0, 0], sizes = [8, 16, 64], strides = [1, 1, 1]} : vector<8x16x128xf32> to vector<8x16x64xf32>
    %301 = vector.extract_strided_slice %299 {offsets = [0, 0, 64], sizes = [8, 16, 64], strides = [1, 1, 1]} : vector<8x16x128xf32> to vector<8x16x64xf32>
    %302 = arith.maximumf %300, %301 : vector<8x16x64xf32>
    %303 = vector.shape_cast %302 : vector<8x16x64xf32> to vector<4x2x16x64xf32>
    %cst_176 = arith.constant dense<0xFF800000> : vector<4x16x64xf32>
    %304 = vector.multi_reduction <maximumf>, %303, %cst_176 [1] : vector<4x2x16x64xf32> to vector<4x16x64xf32>
    %c0_177 = arith.constant 0 : index
    %c0_178 = arith.constant 0 : index
    %305 = vector.load %arg6[%c0_177, %c0_178] : memref<1x64xf32, #tpu.memory_space<vmem>>, vector<1x64xf32>
    %306 = vector.shape_cast %305 : vector<1x64xf32> to vector<1x1x64xf32>
    %307 = vector.broadcast %306 : vector<1x1x64xf32> to vector<4x16x64xf32>
    %308 = arith.addf %304, %307 : vector<4x16x64xf32>
    %cst_179 = arith.constant 0.000000e+00 : f32
    %309 = vector.broadcast %cst_179 : f32 to vector<4x16x64xf32>
    %310 = arith.cmpf ogt, %308, %309 : vector<4x16x64xf32>
    %cst_180 = arith.constant 0.000000e+00 : f32
    %311 = vector.broadcast %cst_180 : f32 to vector<4x16x64xf32>
    %312 = arith.minimumf %308, %311 : vector<4x16x64xf32>
    %313 = math.exp %312 : vector<4x16x64xf32>
    %cst_181 = arith.constant 1.000000e+00 : f32
    %314 = vector.broadcast %cst_181 : f32 to vector<4x16x64xf32>
    %315 = arith.subf %313, %314 : vector<4x16x64xf32>
    %316 = arith.select %310, %308, %315 : vector<4x16x64xi1>, vector<4x16x64xf32>
    %c4 = arith.constant 4 : index
    %c0_182 = arith.constant 0 : index
    %c0_183 = arith.constant 0 : index
    %317 = vector.load %arg10[%c4, %c0_182, %c0_183] : memref<16x16x64xf32, #tpu.memory_space<vmem>>, vector<4x16x64xf32>
    tpu.vector_store %arg10[%c4, %c0_182, %c0_183], %316 {strides = array<i32>} : memref<16x16x64xf32, #tpu.memory_space<vmem>>, vector<4x16x64xf32>,
    %cst_184 = arith.constant 0.000000e+00 : f32
    %318 = vector.broadcast %cst_184 : f32 to vector<128x128xf32>
    %c16 = arith.constant 16 : index
    %c0_185 = arith.constant 0 : index
    %c0_186 = arith.constant 0 : index
    %319 = vector.load %arg9[%c16, %c0_185, %c0_186] : memref<34x16x128xf32, #tpu.memory_space<vmem>>, vector<8x16x128xf32>
    %320 = vector.shape_cast %319 : vector<8x16x128xf32> to vector<128x128xf32>
    %321 = arith.truncf %320 : vector<128x128xf32> to vector<128x128xbf16>
    %c0_187 = arith.constant 0 : index
    %c0_188 = arith.constant 0 : index
    %c0_189 = arith.constant 0 : index
    %322 = vector.load %arg3[%c0_187, %c0_188, %c0_189] : memref<3x128x128xbf16, #tpu.memory_space<vmem>>, vector<1x128x128xbf16>
    %323 = vector.shape_cast %322 : vector<1x128x128xbf16> to vector<128x128xbf16>
    %cst_190 = arith.constant dense<0.000000e+00> : vector<128x128xf32>
    %324 = tpu.matmul %321, %323, %cst_190 {dimension_numbers = #tpu.dot_dimension_numbers<[1], [0], [0], [1], [0, 0, 1, 1], [], []>} : vector<128x128xbf16>, vector<128x128xbf16>, vector<128x128xf32> -> vector<128x128xf32>
    %325 = arith.addf %318, %324 : vector<128x128xf32>
    %c17_191 = arith.constant 17 : index
    %c0_192 = arith.constant 0 : index
    %c0_193 = arith.constant 0 : index
    %326 = vector.load %arg9[%c17_191, %c0_192, %c0_193] : memref<34x16x128xf32, #tpu.memory_space<vmem>>, vector<8x16x128xf32>
    %327 = vector.shape_cast %326 : vector<8x16x128xf32> to vector<128x128xf32>
    %328 = arith.truncf %327 : vector<128x128xf32> to vector<128x128xbf16>
    %c1_194 = arith.constant 1 : index
    %c0_195 = arith.constant 0 : index
    %c0_196 = arith.constant 0 : index
    %329 = vector.load %arg3[%c1_194, %c0_195, %c0_196] : memref<3x128x128xbf16, #tpu.memory_space<vmem>>, vector<1x128x128xbf16>
    %330 = vector.shape_cast %329 : vector<1x128x128xbf16> to vector<128x128xbf16>
    %cst_197 = arith.constant dense<0.000000e+00> : vector<128x128xf32>
    %331 = tpu.matmul %328, %330, %cst_197 {dimension_numbers = #tpu.dot_dimension_numbers<[1], [0], [0], [1], [0, 0, 1, 1], [], []>} : vector<128x128xbf16>, vector<128x128xbf16>, vector<128x128xf32> -> vector<128x128xf32>
    %332 = arith.addf %325, %331 : vector<128x128xf32>
    %c18 = arith.constant 18 : index
    %c0_198 = arith.constant 0 : index
    %c0_199 = arith.constant 0 : index
    %333 = vector.load %arg9[%c18, %c0_198, %c0_199] : memref<34x16x128xf32, #tpu.memory_space<vmem>>, vector<8x16x128xf32>
    %334 = vector.shape_cast %333 : vector<8x16x128xf32> to vector<128x128xf32>
    %335 = arith.truncf %334 : vector<128x128xf32> to vector<128x128xbf16>
    %c2_200 = arith.constant 2 : index
    %c0_201 = arith.constant 0 : index
    %c0_202 = arith.constant 0 : index
    %336 = vector.load %arg3[%c2_200, %c0_201, %c0_202] : memref<3x128x128xbf16, #tpu.memory_space<vmem>>, vector<1x128x128xbf16>
    %337 = vector.shape_cast %336 : vector<1x128x128xbf16> to vector<128x128xbf16>
    %cst_203 = arith.constant dense<0.000000e+00> : vector<128x128xf32>
    %338 = tpu.matmul %335, %337, %cst_203 {dimension_numbers = #tpu.dot_dimension_numbers<[1], [0], [0], [1], [0, 0, 1, 1], [], []>} : vector<128x128xbf16>, vector<128x128xbf16>, vector<128x128xf32> -> vector<128x128xf32>
    %339 = arith.addf %332, %338 : vector<128x128xf32>
    %340 = vector.shape_cast %339 : vector<128x128xf32> to vector<8x16x128xf32>
    %341 = vector.extract_strided_slice %340 {offsets = [0, 0, 0], sizes = [8, 16, 64], strides = [1, 1, 1]} : vector<8x16x128xf32> to vector<8x16x64xf32>
    %342 = vector.extract_strided_slice %340 {offsets = [0, 0, 64], sizes = [8, 16, 64], strides = [1, 1, 1]} : vector<8x16x128xf32> to vector<8x16x64xf32>
    %343 = arith.maximumf %341, %342 : vector<8x16x64xf32>
    %344 = vector.shape_cast %343 : vector<8x16x64xf32> to vector<4x2x16x64xf32>
    %cst_204 = arith.constant dense<0xFF800000> : vector<4x16x64xf32>
    %345 = vector.multi_reduction <maximumf>, %344, %cst_204 [1] : vector<4x2x16x64xf32> to vector<4x16x64xf32>
    %c0_205 = arith.constant 0 : index
    %c0_206 = arith.constant 0 : index
    %346 = vector.load %arg6[%c0_205, %c0_206] : memref<1x64xf32, #tpu.memory_space<vmem>>, vector<1x64xf32>
    %347 = vector.shape_cast %346 : vector<1x64xf32> to vector<1x1x64xf32>
    %348 = vector.broadcast %347 : vector<1x1x64xf32> to vector<4x16x64xf32>
    %349 = arith.addf %345, %348 : vector<4x16x64xf32>
    %cst_207 = arith.constant 0.000000e+00 : f32
    %350 = vector.broadcast %cst_207 : f32 to vector<4x16x64xf32>
    %351 = arith.cmpf ogt, %349, %350 : vector<4x16x64xf32>
    %cst_208 = arith.constant 0.000000e+00 : f32
    %352 = vector.broadcast %cst_208 : f32 to vector<4x16x64xf32>
    %353 = arith.minimumf %349, %352 : vector<4x16x64xf32>
    %354 = math.exp %353 : vector<4x16x64xf32>
    %cst_209 = arith.constant 1.000000e+00 : f32
    %355 = vector.broadcast %cst_209 : f32 to vector<4x16x64xf32>
    %356 = arith.subf %354, %355 : vector<4x16x64xf32>
    %357 = arith.select %351, %349, %356 : vector<4x16x64xi1>, vector<4x16x64xf32>
    %c8_210 = arith.constant 8 : index
    %c0_211 = arith.constant 0 : index
    %c0_212 = arith.constant 0 : index
    %358 = vector.load %arg10[%c8_210, %c0_211, %c0_212] : memref<16x16x64xf32, #tpu.memory_space<vmem>>, vector<4x16x64xf32>
    tpu.vector_store %arg10[%c8_210, %c0_211, %c0_212], %357 {strides = array<i32>} : memref<16x16x64xf32, #tpu.memory_space<vmem>>, vector<4x16x64xf32>,
    %cst_213 = arith.constant 0.000000e+00 : f32
    %359 = vector.broadcast %cst_213 : f32 to vector<128x128xf32>
    %c24 = arith.constant 24 : index
    %c0_214 = arith.constant 0 : index
    %c0_215 = arith.constant 0 : index
    %360 = vector.load %arg9[%c24, %c0_214, %c0_215] : memref<34x16x128xf32, #tpu.memory_space<vmem>>, vector<8x16x128xf32>
    %361 = vector.shape_cast %360 : vector<8x16x128xf32> to vector<128x128xf32>
    %362 = arith.truncf %361 : vector<128x128xf32> to vector<128x128xbf16>
    %c0_216 = arith.constant 0 : index
    %c0_217 = arith.constant 0 : index
    %c0_218 = arith.constant 0 : index
    %363 = vector.load %arg3[%c0_216, %c0_217, %c0_218] : memref<3x128x128xbf16, #tpu.memory_space<vmem>>, vector<1x128x128xbf16>
    %364 = vector.shape_cast %363 : vector<1x128x128xbf16> to vector<128x128xbf16>
    %cst_219 = arith.constant dense<0.000000e+00> : vector<128x128xf32>
    %365 = tpu.matmul %362, %364, %cst_219 {dimension_numbers = #tpu.dot_dimension_numbers<[1], [0], [0], [1], [0, 0, 1, 1], [], []>} : vector<128x128xbf16>, vector<128x128xbf16>, vector<128x128xf32> -> vector<128x128xf32>
    %366 = arith.addf %359, %365 : vector<128x128xf32>
    %c25_220 = arith.constant 25 : index
    %c0_221 = arith.constant 0 : index
    %c0_222 = arith.constant 0 : index
    %367 = vector.load %arg9[%c25_220, %c0_221, %c0_222] : memref<34x16x128xf32, #tpu.memory_space<vmem>>, vector<8x16x128xf32>
    %368 = vector.shape_cast %367 : vector<8x16x128xf32> to vector<128x128xf32>
    %369 = arith.truncf %368 : vector<128x128xf32> to vector<128x128xbf16>
    %c1_223 = arith.constant 1 : index
    %c0_224 = arith.constant 0 : index
    %c0_225 = arith.constant 0 : index
    %370 = vector.load %arg3[%c1_223, %c0_224, %c0_225] : memref<3x128x128xbf16, #tpu.memory_space<vmem>>, vector<1x128x128xbf16>
    %371 = vector.shape_cast %370 : vector<1x128x128xbf16> to vector<128x128xbf16>
    %cst_226 = arith.constant dense<0.000000e+00> : vector<128x128xf32>
    %372 = tpu.matmul %369, %371, %cst_226 {dimension_numbers = #tpu.dot_dimension_numbers<[1], [0], [0], [1], [0, 0, 1, 1], [], []>} : vector<128x128xbf16>, vector<128x128xbf16>, vector<128x128xf32> -> vector<128x128xf32>
    %373 = arith.addf %366, %372 : vector<128x128xf32>
    %c26 = arith.constant 26 : index
    %c0_227 = arith.constant 0 : index
    %c0_228 = arith.constant 0 : index
    %374 = vector.load %arg9[%c26, %c0_227, %c0_228] : memref<34x16x128xf32, #tpu.memory_space<vmem>>, vector<8x16x128xf32>
    %375 = vector.shape_cast %374 : vector<8x16x128xf32> to vector<128x128xf32>
    %376 = arith.truncf %375 : vector<128x128xf32> to vector<128x128xbf16>
    %c2_229 = arith.constant 2 : index
    %c0_230 = arith.constant 0 : index
    %c0_231 = arith.constant 0 : index
    %377 = vector.load %arg3[%c2_229, %c0_230, %c0_231] : memref<3x128x128xbf16, #tpu.memory_space<vmem>>, vector<1x128x128xbf16>
    %378 = vector.shape_cast %377 : vector<1x128x128xbf16> to vector<128x128xbf16>
    %cst_232 = arith.constant dense<0.000000e+00> : vector<128x128xf32>
    %379 = tpu.matmul %376, %378, %cst_232 {dimension_numbers = #tpu.dot_dimension_numbers<[1], [0], [0], [1], [0, 0, 1, 1], [], []>} : vector<128x128xbf16>, vector<128x128xbf16>, vector<128x128xf32> -> vector<128x128xf32>
    %380 = arith.addf %373, %379 : vector<128x128xf32>
    %381 = vector.shape_cast %380 : vector<128x128xf32> to vector<8x16x128xf32>
    %382 = vector.extract_strided_slice %381 {offsets = [0, 0, 0], sizes = [8, 16, 64], strides = [1, 1, 1]} : vector<8x16x128xf32> to vector<8x16x64xf32>
    %383 = vector.extract_strided_slice %381 {offsets = [0, 0, 64], sizes = [8, 16, 64], strides = [1, 1, 1]} : vector<8x16x128xf32> to vector<8x16x64xf32>
    %384 = arith.maximumf %382, %383 : vector<8x16x64xf32>
    %385 = vector.shape_cast %384 : vector<8x16x64xf32> to vector<4x2x16x64xf32>
    %cst_233 = arith.constant dense<0xFF800000> : vector<4x16x64xf32>
    %386 = vector.multi_reduction <maximumf>, %385, %cst_233 [1] : vector<4x2x16x64xf32> to vector<4x16x64xf32>
    %c0_234 = arith.constant 0 : index
    %c0_235 = arith.constant 0 : index
    %387 = vector.load %arg6[%c0_234, %c0_235] : memref<1x64xf32, #tpu.memory_space<vmem>>, vector<1x64xf32>
    %388 = vector.shape_cast %387 : vector<1x64xf32> to vector<1x1x64xf32>
    %389 = vector.broadcast %388 : vector<1x1x64xf32> to vector<4x16x64xf32>
    %390 = arith.addf %386, %389 : vector<4x16x64xf32>
    %cst_236 = arith.constant 0.000000e+00 : f32
    %391 = vector.broadcast %cst_236 : f32 to vector<4x16x64xf32>
    %392 = arith.cmpf ogt, %390, %391 : vector<4x16x64xf32>
    %cst_237 = arith.constant 0.000000e+00 : f32
    %393 = vector.broadcast %cst_237 : f32 to vector<4x16x64xf32>
    %394 = arith.minimumf %390, %393 : vector<4x16x64xf32>
    %395 = math.exp %394 : vector<4x16x64xf32>
    %cst_238 = arith.constant 1.000000e+00 : f32
    %396 = vector.broadcast %cst_238 : f32 to vector<4x16x64xf32>
    %397 = arith.subf %395, %396 : vector<4x16x64xf32>
    %398 = arith.select %392, %390, %397 : vector<4x16x64xi1>, vector<4x16x64xf32>
    %c12 = arith.constant 12 : index
    %c0_239 = arith.constant 0 : index
    %c0_240 = arith.constant 0 : index
    %399 = vector.load %arg10[%c12, %c0_239, %c0_240] : memref<16x16x64xf32, #tpu.memory_space<vmem>>, vector<4x16x64xf32>
    tpu.vector_store %arg10[%c12, %c0_239, %c0_240], %398 {strides = array<i32>} : memref<16x16x64xf32, #tpu.memory_space<vmem>>, vector<4x16x64xf32>,
    %cst_241 = arith.constant 0.000000e+00 : f32
    %400 = vector.broadcast %cst_241 : f32 to vector<16x64xf32>
    %cst_242 = arith.constant 0.000000e+00 : f32
    %401 = vector.broadcast %cst_242 : f32 to vector<16x64xf32>
    %cst_243 = arith.constant 0.000000e+00 : f32
    %402 = vector.broadcast %cst_243 : f32 to vector<16x64xf32>
    %cst_244 = arith.constant 0.000000e+00 : f32
    %403 = vector.broadcast %cst_244 : f32 to vector<16x64xf32>
    %cst_245 = arith.constant 0.000000e+00 : f32
    %404 = vector.broadcast %cst_245 : f32 to vector<16x64xf32>
    %cst_246 = arith.constant 0.000000e+00 : f32
    %405 = vector.broadcast %cst_246 : f32 to vector<16x64xf32>
    %cst_247 = arith.constant 0.000000e+00 : f32
    %406 = vector.broadcast %cst_247 : f32 to vector<16x64xf32>
    %c0_248 = arith.constant 0 : index
    %c0_249 = arith.constant 0 : index
    %c0_250 = arith.constant 0 : index
    %407 = vector.load %arg10[%c0_248, %c0_249, %c0_250] : memref<16x16x64xf32, #tpu.memory_space<vmem>>, vector<1x16x64xf32>
    %408 = vector.shape_cast %407 : vector<1x16x64xf32> to vector<16x64xf32>
    %c0_251 = arith.constant 0 : index
    %c0_252 = arith.constant 0 : index
    %c0_253 = arith.constant 0 : index
    %c0_254 = arith.constant 0 : index
    %409 = vector.load %arg4[%c0_251, %c0_252, %c0_253, %c0_254] : memref<7x16x16x64xf32, #tpu.memory_space<vmem>>, vector<1x1x16x64xf32>
    %410 = vector.shape_cast %409 : vector<1x1x16x64xf32> to vector<16x64xf32>
    %411 = arith.mulf %408, %410 : vector<16x64xf32>
    %412 = arith.addf %400, %411 : vector<16x64xf32>
    %c1_255 = arith.constant 1 : index
    %c0_256 = arith.constant 0 : index
    %c0_257 = arith.constant 0 : index
    %c0_258 = arith.constant 0 : index
    %413 = vector.load %arg4[%c1_255, %c0_256, %c0_257, %c0_258] : memref<7x16x16x64xf32, #tpu.memory_space<vmem>>, vector<1x1x16x64xf32>
    %414 = vector.shape_cast %413 : vector<1x1x16x64xf32> to vector<16x64xf32>
    %415 = arith.mulf %408, %414 : vector<16x64xf32>
    %416 = arith.addf %401, %415 : vector<16x64xf32>
    %c2_259 = arith.constant 2 : index
    %c0_260 = arith.constant 0 : index
    %c0_261 = arith.constant 0 : index
    %c0_262 = arith.constant 0 : index
    %417 = vector.load %arg4[%c2_259, %c0_260, %c0_261, %c0_262] : memref<7x16x16x64xf32, #tpu.memory_space<vmem>>, vector<1x1x16x64xf32>
    %418 = vector.shape_cast %417 : vector<1x1x16x64xf32> to vector<16x64xf32>
    %419 = arith.mulf %408, %418 : vector<16x64xf32>
    %420 = arith.addf %402, %419 : vector<16x64xf32>
    %c3 = arith.constant 3 : index
    %c0_263 = arith.constant 0 : index
    %c0_264 = arith.constant 0 : index
    %c0_265 = arith.constant 0 : index
    %421 = vector.load %arg4[%c3, %c0_263, %c0_264, %c0_265] : memref<7x16x16x64xf32, #tpu.memory_space<vmem>>, vector<1x1x16x64xf32>
    %422 = vector.shape_cast %421 : vector<1x1x16x64xf32> to vector<16x64xf32>
    %423 = arith.mulf %408, %422 : vector<16x64xf32>
    %424 = arith.addf %403, %423 : vector<16x64xf32>
    %c4_266 = arith.constant 4 : index
    %c0_267 = arith.constant 0 : index
    %c0_268 = arith.constant 0 : index
    %c0_269 = arith.constant 0 : index
    %425 = vector.load %arg4[%c4_266, %c0_267, %c0_268, %c0_269] : memref<7x16x16x64xf32, #tpu.memory_space<vmem>>, vector<1x1x16x64xf32>
    %426 = vector.shape_cast %425 : vector<1x1x16x64xf32> to vector<16x64xf32>
    %427 = arith.mulf %408, %426 : vector<16x64xf32>
    %428 = arith.addf %404, %427 : vector<16x64xf32>
    %c5_270 = arith.constant 5 : index
    %c0_271 = arith.constant 0 : index
    %c0_272 = arith.constant 0 : index
    %c0_273 = arith.constant 0 : index
    %429 = vector.load %arg4[%c5_270, %c0_271, %c0_272, %c0_273] : memref<7x16x16x64xf32, #tpu.memory_space<vmem>>, vector<1x1x16x64xf32>
    %430 = vector.shape_cast %429 : vector<1x1x16x64xf32> to vector<16x64xf32>
    %431 = arith.mulf %408, %430 : vector<16x64xf32>
    %432 = arith.addf %405, %431 : vector<16x64xf32>
    %c6 = arith.constant 6 : index
    %c0_274 = arith.constant 0 : index
    %c0_275 = arith.constant 0 : index
    %c0_276 = arith.constant 0 : index
    %433 = vector.load %arg4[%c6, %c0_274, %c0_275, %c0_276] : memref<7x16x16x64xf32, #tpu.memory_space<vmem>>, vector<1x1x16x64xf32>
    %434 = vector.shape_cast %433 : vector<1x1x16x64xf32> to vector<16x64xf32>
    %435 = arith.mulf %408, %434 : vector<16x64xf32>
    %436 = arith.addf %406, %435 : vector<16x64xf32>
    %c1_277 = arith.constant 1 : index
    %c0_278 = arith.constant 0 : index
    %c0_279 = arith.constant 0 : index
    %437 = vector.load %arg10[%c1_277, %c0_278, %c0_279] : memref<16x16x64xf32, #tpu.memory_space<vmem>>, vector<1x16x64xf32>
    %438 = vector.shape_cast %437 : vector<1x16x64xf32> to vector<16x64xf32>
    %c0_280 = arith.constant 0 : index
    %c1_281 = arith.constant 1 : index
    %c0_282 = arith.constant 0 : index
    %c0_283 = arith.constant 0 : index
    %439 = vector.load %arg4[%c0_280, %c1_281, %c0_282, %c0_283] : memref<7x16x16x64xf32, #tpu.memory_space<vmem>>, vector<1x1x16x64xf32>
    %440 = vector.shape_cast %439 : vector<1x1x16x64xf32> to vector<16x64xf32>
    %441 = arith.mulf %438, %440 : vector<16x64xf32>
    %442 = arith.addf %412, %441 : vector<16x64xf32>
    %c1_284 = arith.constant 1 : index
    %c1_285 = arith.constant 1 : index
    %c0_286 = arith.constant 0 : index
    %c0_287 = arith.constant 0 : index
    %443 = vector.load %arg4[%c1_284, %c1_285, %c0_286, %c0_287] : memref<7x16x16x64xf32, #tpu.memory_space<vmem>>, vector<1x1x16x64xf32>
    %444 = vector.shape_cast %443 : vector<1x1x16x64xf32> to vector<16x64xf32>
    %445 = arith.mulf %438, %444 : vector<16x64xf32>
    %446 = arith.addf %416, %445 : vector<16x64xf32>
    %c2_288 = arith.constant 2 : index
    %c1_289 = arith.constant 1 : index
    %c0_290 = arith.constant 0 : index
    %c0_291 = arith.constant 0 : index
    %447 = vector.load %arg4[%c2_288, %c1_289, %c0_290, %c0_291] : memref<7x16x16x64xf32, #tpu.memory_space<vmem>>, vector<1x1x16x64xf32>
    %448 = vector.shape_cast %447 : vector<1x1x16x64xf32> to vector<16x64xf32>
    %449 = arith.mulf %438, %448 : vector<16x64xf32>
    %450 = arith.addf %420, %449 : vector<16x64xf32>
    %c3_292 = arith.constant 3 : index
    %c1_293 = arith.constant 1 : index
    %c0_294 = arith.constant 0 : index
    %c0_295 = arith.constant 0 : index
    %451 = vector.load %arg4[%c3_292, %c1_293, %c0_294, %c0_295] : memref<7x16x16x64xf32, #tpu.memory_space<vmem>>, vector<1x1x16x64xf32>
    %452 = vector.shape_cast %451 : vector<1x1x16x64xf32> to vector<16x64xf32>
    %453 = arith.mulf %438, %452 : vector<16x64xf32>
    %454 = arith.addf %424, %453 : vector<16x64xf32>
    %c4_296 = arith.constant 4 : index
    %c1_297 = arith.constant 1 : index
    %c0_298 = arith.constant 0 : index
    %c0_299 = arith.constant 0 : index
    %455 = vector.load %arg4[%c4_296, %c1_297, %c0_298, %c0_299] : memref<7x16x16x64xf32, #tpu.memory_space<vmem>>, vector<1x1x16x64xf32>
    %456 = vector.shape_cast %455 : vector<1x1x16x64xf32> to vector<16x64xf32>
    %457 = arith.mulf %438, %456 : vector<16x64xf32>
    %458 = arith.addf %428, %457 : vector<16x64xf32>
    %c5_300 = arith.constant 5 : index
    %c1_301 = arith.constant 1 : index
    %c0_302 = arith.constant 0 : index
    %c0_303 = arith.constant 0 : index
    %459 = vector.load %arg4[%c5_300, %c1_301, %c0_302, %c0_303] : memref<7x16x16x64xf32, #tpu.memory_space<vmem>>, vector<1x1x16x64xf32>
    %460 = vector.shape_cast %459 : vector<1x1x16x64xf32> to vector<16x64xf32>
    %461 = arith.mulf %438, %460 : vector<16x64xf32>
    %462 = arith.addf %432, %461 : vector<16x64xf32>
    %c6_304 = arith.constant 6 : index
    %c1_305 = arith.constant 1 : index
    %c0_306 = arith.constant 0 : index
    %c0_307 = arith.constant 0 : index
    %463 = vector.load %arg4[%c6_304, %c1_305, %c0_306, %c0_307] : memref<7x16x16x64xf32, #tpu.memory_space<vmem>>, vector<1x1x16x64xf32>
    %464 = vector.shape_cast %463 : vector<1x1x16x64xf32> to vector<16x64xf32>
    %465 = arith.mulf %438, %464 : vector<16x64xf32>
    %466 = arith.addf %436, %465 : vector<16x64xf32>
    %c2_308 = arith.constant 2 : index
    %c0_309 = arith.constant 0 : index
    %c0_310 = arith.constant 0 : index
    %467 = vector.load %arg10[%c2_308, %c0_309, %c0_310] : memref<16x16x64xf32, #tpu.memory_space<vmem>>, vector<1x16x64xf32>
    %468 = vector.shape_cast %467 : vector<1x16x64xf32> to vector<16x64xf32>
    %c0_311 = arith.constant 0 : index
    %c2_312 = arith.constant 2 : index
    %c0_313 = arith.constant 0 : index
    %c0_314 = arith.constant 0 : index
    %469 = vector.load %arg4[%c0_311, %c2_312, %c0_313, %c0_314] : memref<7x16x16x64xf32, #tpu.memory_space<vmem>>, vector<1x1x16x64xf32>
    %470 = vector.shape_cast %469 : vector<1x1x16x64xf32> to vector<16x64xf32>
    %471 = arith.mulf %468, %470 : vector<16x64xf32>
    %472 = arith.addf %442, %471 : vector<16x64xf32>
    %c1_315 = arith.constant 1 : index
    %c2_316 = arith.constant 2 : index
    %c0_317 = arith.constant 0 : index
    %c0_318 = arith.constant 0 : index
    %473 = vector.load %arg4[%c1_315, %c2_316, %c0_317, %c0_318] : memref<7x16x16x64xf32, #tpu.memory_space<vmem>>, vector<1x1x16x64xf32>
    %474 = vector.shape_cast %473 : vector<1x1x16x64xf32> to vector<16x64xf32>
    %475 = arith.mulf %468, %474 : vector<16x64xf32>
    %476 = arith.addf %446, %475 : vector<16x64xf32>
    %c2_319 = arith.constant 2 : index
    %c2_320 = arith.constant 2 : index
    %c0_321 = arith.constant 0 : index
    %c0_322 = arith.constant 0 : index
    %477 = vector.load %arg4[%c2_319, %c2_320, %c0_321, %c0_322] : memref<7x16x16x64xf32, #tpu.memory_space<vmem>>, vector<1x1x16x64xf32>
    %478 = vector.shape_cast %477 : vector<1x1x16x64xf32> to vector<16x64xf32>
    %479 = arith.mulf %468, %478 : vector<16x64xf32>
    %480 = arith.addf %450, %479 : vector<16x64xf32>
    %c3_323 = arith.constant 3 : index
    %c2_324 = arith.constant 2 : index
    %c0_325 = arith.constant 0 : index
    %c0_326 = arith.constant 0 : index
    %481 = vector.load %arg4[%c3_323, %c2_324, %c0_325, %c0_326] : memref<7x16x16x64xf32, #tpu.memory_space<vmem>>, vector<1x1x16x64xf32>
    %482 = vector.shape_cast %481 : vector<1x1x16x64xf32> to vector<16x64xf32>
    %483 = arith.mulf %468, %482 : vector<16x64xf32>
    %484 = arith.addf %454, %483 : vector<16x64xf32>
    %c4_327 = arith.constant 4 : index
    %c2_328 = arith.constant 2 : index
    %c0_329 = arith.constant 0 : index
    %c0_330 = arith.constant 0 : index
    %485 = vector.load %arg4[%c4_327, %c2_328, %c0_329, %c0_330] : memref<7x16x16x64xf32, #tpu.memory_space<vmem>>, vector<1x1x16x64xf32>
    %486 = vector.shape_cast %485 : vector<1x1x16x64xf32> to vector<16x64xf32>
    %487 = arith.mulf %468, %486 : vector<16x64xf32>
    %488 = arith.addf %458, %487 : vector<16x64xf32>
    %c5_331 = arith.constant 5 : index
    %c2_332 = arith.constant 2 : index
    %c0_333 = arith.constant 0 : index
    %c0_334 = arith.constant 0 : index
    %489 = vector.load %arg4[%c5_331, %c2_332, %c0_333, %c0_334] : memref<7x16x16x64xf32, #tpu.memory_space<vmem>>, vector<1x1x16x64xf32>
    %490 = vector.shape_cast %489 : vector<1x1x16x64xf32> to vector<16x64xf32>
    %491 = arith.mulf %468, %490 : vector<16x64xf32>
    %492 = arith.addf %462, %491 : vector<16x64xf32>
    %c6_335 = arith.constant 6 : index
    %c2_336 = arith.constant 2 : index
    %c0_337 = arith.constant 0 : index
    %c0_338 = arith.constant 0 : index
    %493 = vector.load %arg4[%c6_335, %c2_336, %c0_337, %c0_338] : memref<7x16x16x64xf32, #tpu.memory_space<vmem>>, vector<1x1x16x64xf32>
    %494 = vector.shape_cast %493 : vector<1x1x16x64xf32> to vector<16x64xf32>
    %495 = arith.mulf %468, %494 : vector<16x64xf32>
    %496 = arith.addf %466, %495 : vector<16x64xf32>
    %c3_339 = arith.constant 3 : index
    %c0_340 = arith.constant 0 : index
    %c0_341 = arith.constant 0 : index
    %497 = vector.load %arg10[%c3_339, %c0_340, %c0_341] : memref<16x16x64xf32, #tpu.memory_space<vmem>>, vector<1x16x64xf32>
    %498 = vector.shape_cast %497 : vector<1x16x64xf32> to vector<16x64xf32>
    %c0_342 = arith.constant 0 : index
    %c3_343 = arith.constant 3 : index
    %c0_344 = arith.constant 0 : index
    %c0_345 = arith.constant 0 : index
    %499 = vector.load %arg4[%c0_342, %c3_343, %c0_344, %c0_345] : memref<7x16x16x64xf32, #tpu.memory_space<vmem>>, vector<1x1x16x64xf32>
    %500 = vector.shape_cast %499 : vector<1x1x16x64xf32> to vector<16x64xf32>
    %501 = arith.mulf %498, %500 : vector<16x64xf32>
    %502 = arith.addf %472, %501 : vector<16x64xf32>
    %c1_346 = arith.constant 1 : index
    %c3_347 = arith.constant 3 : index
    %c0_348 = arith.constant 0 : index
    %c0_349 = arith.constant 0 : index
    %503 = vector.load %arg4[%c1_346, %c3_347, %c0_348, %c0_349] : memref<7x16x16x64xf32, #tpu.memory_space<vmem>>, vector<1x1x16x64xf32>
    %504 = vector.shape_cast %503 : vector<1x1x16x64xf32> to vector<16x64xf32>
    %505 = arith.mulf %498, %504 : vector<16x64xf32>
    %506 = arith.addf %476, %505 : vector<16x64xf32>
    %c2_350 = arith.constant 2 : index
    %c3_351 = arith.constant 3 : index
    %c0_352 = arith.constant 0 : index
    %c0_353 = arith.constant 0 : index
    %507 = vector.load %arg4[%c2_350, %c3_351, %c0_352, %c0_353] : memref<7x16x16x64xf32, #tpu.memory_space<vmem>>, vector<1x1x16x64xf32>
    %508 = vector.shape_cast %507 : vector<1x1x16x64xf32> to vector<16x64xf32>
    %509 = arith.mulf %498, %508 : vector<16x64xf32>
    %510 = arith.addf %480, %509 : vector<16x64xf32>
    %c3_354 = arith.constant 3 : index
    %c3_355 = arith.constant 3 : index
    %c0_356 = arith.constant 0 : index
    %c0_357 = arith.constant 0 : index
    %511 = vector.load %arg4[%c3_354, %c3_355, %c0_356, %c0_357] : memref<7x16x16x64xf32, #tpu.memory_space<vmem>>, vector<1x1x16x64xf32>
    %512 = vector.shape_cast %511 : vector<1x1x16x64xf32> to vector<16x64xf32>
    %513 = arith.mulf %498, %512 : vector<16x64xf32>
    %514 = arith.addf %484, %513 : vector<16x64xf32>
    %c4_358 = arith.constant 4 : index
    %c3_359 = arith.constant 3 : index
    %c0_360 = arith.constant 0 : index
    %c0_361 = arith.constant 0 : index
    %515 = vector.load %arg4[%c4_358, %c3_359, %c0_360, %c0_361] : memref<7x16x16x64xf32, #tpu.memory_space<vmem>>, vector<1x1x16x64xf32>
    %516 = vector.shape_cast %515 : vector<1x1x16x64xf32> to vector<16x64xf32>
    %517 = arith.mulf %498, %516 : vector<16x64xf32>
    %518 = arith.addf %488, %517 : vector<16x64xf32>
    %c5_362 = arith.constant 5 : index
    %c3_363 = arith.constant 3 : index
    %c0_364 = arith.constant 0 : index
    %c0_365 = arith.constant 0 : index
    %519 = vector.load %arg4[%c5_362, %c3_363, %c0_364, %c0_365] : memref<7x16x16x64xf32, #tpu.memory_space<vmem>>, vector<1x1x16x64xf32>
    %520 = vector.shape_cast %519 : vector<1x1x16x64xf32> to vector<16x64xf32>
    %521 = arith.mulf %498, %520 : vector<16x64xf32>
    %522 = arith.addf %492, %521 : vector<16x64xf32>
    %c6_366 = arith.constant 6 : index
    %c3_367 = arith.constant 3 : index
    %c0_368 = arith.constant 0 : index
    %c0_369 = arith.constant 0 : index
    %523 = vector.load %arg4[%c6_366, %c3_367, %c0_368, %c0_369] : memref<7x16x16x64xf32, #tpu.memory_space<vmem>>, vector<1x1x16x64xf32>
    %524 = vector.shape_cast %523 : vector<1x1x16x64xf32> to vector<16x64xf32>
    %525 = arith.mulf %498, %524 : vector<16x64xf32>
    %526 = arith.addf %496, %525 : vector<16x64xf32>
    %c4_370 = arith.constant 4 : index
    %c0_371 = arith.constant 0 : index
    %c0_372 = arith.constant 0 : index
    %527 = vector.load %arg10[%c4_370, %c0_371, %c0_372] : memref<16x16x64xf32, #tpu.memory_space<vmem>>, vector<1x16x64xf32>
    %528 = vector.shape_cast %527 : vector<1x16x64xf32> to vector<16x64xf32>
    %c0_373 = arith.constant 0 : index
    %c4_374 = arith.constant 4 : index
    %c0_375 = arith.constant 0 : index
    %c0_376 = arith.constant 0 : index
    %529 = vector.load %arg4[%c0_373, %c4_374, %c0_375, %c0_376] : memref<7x16x16x64xf32, #tpu.memory_space<vmem>>, vector<1x1x16x64xf32>
    %530 = vector.shape_cast %529 : vector<1x1x16x64xf32> to vector<16x64xf32>
    %531 = arith.mulf %528, %530 : vector<16x64xf32>
    %532 = arith.addf %502, %531 : vector<16x64xf32>
    %c1_377 = arith.constant 1 : index
    %c4_378 = arith.constant 4 : index
    %c0_379 = arith.constant 0 : index
    %c0_380 = arith.constant 0 : index
    %533 = vector.load %arg4[%c1_377, %c4_378, %c0_379, %c0_380] : memref<7x16x16x64xf32, #tpu.memory_space<vmem>>, vector<1x1x16x64xf32>
    %534 = vector.shape_cast %533 : vector<1x1x16x64xf32> to vector<16x64xf32>
    %535 = arith.mulf %528, %534 : vector<16x64xf32>
    %536 = arith.addf %506, %535 : vector<16x64xf32>
    %c2_381 = arith.constant 2 : index
    %c4_382 = arith.constant 4 : index
    %c0_383 = arith.constant 0 : index
    %c0_384 = arith.constant 0 : index
    %537 = vector.load %arg4[%c2_381, %c4_382, %c0_383, %c0_384] : memref<7x16x16x64xf32, #tpu.memory_space<vmem>>, vector<1x1x16x64xf32>
    %538 = vector.shape_cast %537 : vector<1x1x16x64xf32> to vector<16x64xf32>
    %539 = arith.mulf %528, %538 : vector<16x64xf32>
    %540 = arith.addf %510, %539 : vector<16x64xf32>
    %c3_385 = arith.constant 3 : index
    %c4_386 = arith.constant 4 : index
    %c0_387 = arith.constant 0 : index
    %c0_388 = arith.constant 0 : index
    %541 = vector.load %arg4[%c3_385, %c4_386, %c0_387, %c0_388] : memref<7x16x16x64xf32, #tpu.memory_space<vmem>>, vector<1x1x16x64xf32>
    %542 = vector.shape_cast %541 : vector<1x1x16x64xf32> to vector<16x64xf32>
    %543 = arith.mulf %528, %542 : vector<16x64xf32>
    %544 = arith.addf %514, %543 : vector<16x64xf32>
    %c4_389 = arith.constant 4 : index
    %c4_390 = arith.constant 4 : index
    %c0_391 = arith.constant 0 : index
    %c0_392 = arith.constant 0 : index
    %545 = vector.load %arg4[%c4_389, %c4_390, %c0_391, %c0_392] : memref<7x16x16x64xf32, #tpu.memory_space<vmem>>, vector<1x1x16x64xf32>
    %546 = vector.shape_cast %545 : vector<1x1x16x64xf32> to vector<16x64xf32>
    %547 = arith.mulf %528, %546 : vector<16x64xf32>
    %548 = arith.addf %518, %547 : vector<16x64xf32>
    %c5_393 = arith.constant 5 : index
    %c4_394 = arith.constant 4 : index
    %c0_395 = arith.constant 0 : index
    %c0_396 = arith.constant 0 : index
    %549 = vector.load %arg4[%c5_393, %c4_394, %c0_395, %c0_396] : memref<7x16x16x64xf32, #tpu.memory_space<vmem>>, vector<1x1x16x64xf32>
    %550 = vector.shape_cast %549 : vector<1x1x16x64xf32> to vector<16x64xf32>
    %551 = arith.mulf %528, %550 : vector<16x64xf32>
    %552 = arith.addf %522, %551 : vector<16x64xf32>
    %c6_397 = arith.constant 6 : index
    %c4_398 = arith.constant 4 : index
    %c0_399 = arith.constant 0 : index
    %c0_400 = arith.constant 0 : index
    %553 = vector.load %arg4[%c6_397, %c4_398, %c0_399, %c0_400] : memref<7x16x16x64xf32, #tpu.memory_space<vmem>>, vector<1x1x16x64xf32>
    %554 = vector.shape_cast %553 : vector<1x1x16x64xf32> to vector<16x64xf32>
    %555 = arith.mulf %528, %554 : vector<16x64xf32>
    %556 = arith.addf %526, %555 : vector<16x64xf32>
    %c5_401 = arith.constant 5 : index
    %c0_402 = arith.constant 0 : index
    %c0_403 = arith.constant 0 : index
    %557 = vector.load %arg10[%c5_401, %c0_402, %c0_403] : memref<16x16x64xf32, #tpu.memory_space<vmem>>, vector<1x16x64xf32>
    %558 = vector.shape_cast %557 : vector<1x16x64xf32> to vector<16x64xf32>
    %c0_404 = arith.constant 0 : index
    %c5_405 = arith.constant 5 : index
    %c0_406 = arith.constant 0 : index
    %c0_407 = arith.constant 0 : index
    %559 = vector.load %arg4[%c0_404, %c5_405, %c0_406, %c0_407] : memref<7x16x16x64xf32, #tpu.memory_space<vmem>>, vector<1x1x16x64xf32>
    %560 = vector.shape_cast %559 : vector<1x1x16x64xf32> to vector<16x64xf32>
    %561 = arith.mulf %558, %560 : vector<16x64xf32>
    %562 = arith.addf %532, %561 : vector<16x64xf32>
    %c1_408 = arith.constant 1 : index
    %c5_409 = arith.constant 5 : index
    %c0_410 = arith.constant 0 : index
    %c0_411 = arith.constant 0 : index
    %563 = vector.load %arg4[%c1_408, %c5_409, %c0_410, %c0_411] : memref<7x16x16x64xf32, #tpu.memory_space<vmem>>, vector<1x1x16x64xf32>
    %564 = vector.shape_cast %563 : vector<1x1x16x64xf32> to vector<16x64xf32>
    %565 = arith.mulf %558, %564 : vector<16x64xf32>
    %566 = arith.addf %536, %565 : vector<16x64xf32>
    %c2_412 = arith.constant 2 : index
    %c5_413 = arith.constant 5 : index
    %c0_414 = arith.constant 0 : index
    %c0_415 = arith.constant 0 : index
    %567 = vector.load %arg4[%c2_412, %c5_413, %c0_414, %c0_415] : memref<7x16x16x64xf32, #tpu.memory_space<vmem>>, vector<1x1x16x64xf32>
    %568 = vector.shape_cast %567 : vector<1x1x16x64xf32> to vector<16x64xf32>
    %569 = arith.mulf %558, %568 : vector<16x64xf32>
    %570 = arith.addf %540, %569 : vector<16x64xf32>
    %c3_416 = arith.constant 3 : index
    %c5_417 = arith.constant 5 : index
    %c0_418 = arith.constant 0 : index
    %c0_419 = arith.constant 0 : index
    %571 = vector.load %arg4[%c3_416, %c5_417, %c0_418, %c0_419] : memref<7x16x16x64xf32, #tpu.memory_space<vmem>>, vector<1x1x16x64xf32>
    %572 = vector.shape_cast %571 : vector<1x1x16x64xf32> to vector<16x64xf32>
    %573 = arith.mulf %558, %572 : vector<16x64xf32>
    %574 = arith.addf %544, %573 : vector<16x64xf32>
    %c4_420 = arith.constant 4 : index
    %c5_421 = arith.constant 5 : index
    %c0_422 = arith.constant 0 : index
    %c0_423 = arith.constant 0 : index
    %575 = vector.load %arg4[%c4_420, %c5_421, %c0_422, %c0_423] : memref<7x16x16x64xf32, #tpu.memory_space<vmem>>, vector<1x1x16x64xf32>
    %576 = vector.shape_cast %575 : vector<1x1x16x64xf32> to vector<16x64xf32>
    %577 = arith.mulf %558, %576 : vector<16x64xf32>
    %578 = arith.addf %548, %577 : vector<16x64xf32>
    %c5_424 = arith.constant 5 : index
    %c5_425 = arith.constant 5 : index
    %c0_426 = arith.constant 0 : index
    %c0_427 = arith.constant 0 : index
    %579 = vector.load %arg4[%c5_424, %c5_425, %c0_426, %c0_427] : memref<7x16x16x64xf32, #tpu.memory_space<vmem>>, vector<1x1x16x64xf32>
    %580 = vector.shape_cast %579 : vector<1x1x16x64xf32> to vector<16x64xf32>
    %581 = arith.mulf %558, %580 : vector<16x64xf32>
    %582 = arith.addf %552, %581 : vector<16x64xf32>
    %c6_428 = arith.constant 6 : index
    %c5_429 = arith.constant 5 : index
    %c0_430 = arith.constant 0 : index
    %c0_431 = arith.constant 0 : index
    %583 = vector.load %arg4[%c6_428, %c5_429, %c0_430, %c0_431] : memref<7x16x16x64xf32, #tpu.memory_space<vmem>>, vector<1x1x16x64xf32>
    %584 = vector.shape_cast %583 : vector<1x1x16x64xf32> to vector<16x64xf32>
    %585 = arith.mulf %558, %584 : vector<16x64xf32>
    %586 = arith.addf %556, %585 : vector<16x64xf32>
    %c6_432 = arith.constant 6 : index
    %c0_433 = arith.constant 0 : index
    %c0_434 = arith.constant 0 : index
    %587 = vector.load %arg10[%c6_432, %c0_433, %c0_434] : memref<16x16x64xf32, #tpu.memory_space<vmem>>, vector<1x16x64xf32>
    %588 = vector.shape_cast %587 : vector<1x16x64xf32> to vector<16x64xf32>
    %c0_435 = arith.constant 0 : index
    %c6_436 = arith.constant 6 : index
    %c0_437 = arith.constant 0 : index
    %c0_438 = arith.constant 0 : index
    %589 = vector.load %arg4[%c0_435, %c6_436, %c0_437, %c0_438] : memref<7x16x16x64xf32, #tpu.memory_space<vmem>>, vector<1x1x16x64xf32>
    %590 = vector.shape_cast %589 : vector<1x1x16x64xf32> to vector<16x64xf32>
    %591 = arith.mulf %588, %590 : vector<16x64xf32>
    %592 = arith.addf %562, %591 : vector<16x64xf32>
    %c1_439 = arith.constant 1 : index
    %c6_440 = arith.constant 6 : index
    %c0_441 = arith.constant 0 : index
    %c0_442 = arith.constant 0 : index
    %593 = vector.load %arg4[%c1_439, %c6_440, %c0_441, %c0_442] : memref<7x16x16x64xf32, #tpu.memory_space<vmem>>, vector<1x1x16x64xf32>
    %594 = vector.shape_cast %593 : vector<1x1x16x64xf32> to vector<16x64xf32>
    %595 = arith.mulf %588, %594 : vector<16x64xf32>
    %596 = arith.addf %566, %595 : vector<16x64xf32>
    %c2_443 = arith.constant 2 : index
    %c6_444 = arith.constant 6 : index
    %c0_445 = arith.constant 0 : index
    %c0_446 = arith.constant 0 : index
    %597 = vector.load %arg4[%c2_443, %c6_444, %c0_445, %c0_446] : memref<7x16x16x64xf32, #tpu.memory_space<vmem>>, vector<1x1x16x64xf32>
    %598 = vector.shape_cast %597 : vector<1x1x16x64xf32> to vector<16x64xf32>
    %599 = arith.mulf %588, %598 : vector<16x64xf32>
    %600 = arith.addf %570, %599 : vector<16x64xf32>
    %c3_447 = arith.constant 3 : index
    %c6_448 = arith.constant 6 : index
    %c0_449 = arith.constant 0 : index
    %c0_450 = arith.constant 0 : index
    %601 = vector.load %arg4[%c3_447, %c6_448, %c0_449, %c0_450] : memref<7x16x16x64xf32, #tpu.memory_space<vmem>>, vector<1x1x16x64xf32>
    %602 = vector.shape_cast %601 : vector<1x1x16x64xf32> to vector<16x64xf32>
    %603 = arith.mulf %588, %602 : vector<16x64xf32>
    %604 = arith.addf %574, %603 : vector<16x64xf32>
    %c4_451 = arith.constant 4 : index
    %c6_452 = arith.constant 6 : index
    %c0_453 = arith.constant 0 : index
    %c0_454 = arith.constant 0 : index
    %605 = vector.load %arg4[%c4_451, %c6_452, %c0_453, %c0_454] : memref<7x16x16x64xf32, #tpu.memory_space<vmem>>, vector<1x1x16x64xf32>
    %606 = vector.shape_cast %605 : vector<1x1x16x64xf32> to vector<16x64xf32>
    %607 = arith.mulf %588, %606 : vector<16x64xf32>
    %608 = arith.addf %578, %607 : vector<16x64xf32>
    %c5_455 = arith.constant 5 : index
    %c6_456 = arith.constant 6 : index
    %c0_457 = arith.constant 0 : index
    %c0_458 = arith.constant 0 : index
    %609 = vector.load %arg4[%c5_455, %c6_456, %c0_457, %c0_458] : memref<7x16x16x64xf32, #tpu.memory_space<vmem>>, vector<1x1x16x64xf32>
    %610 = vector.shape_cast %609 : vector<1x1x16x64xf32> to vector<16x64xf32>
    %611 = arith.mulf %588, %610 : vector<16x64xf32>
    %612 = arith.addf %582, %611 : vector<16x64xf32>
    %c6_459 = arith.constant 6 : index
    %c6_460 = arith.constant 6 : index
    %c0_461 = arith.constant 0 : index
    %c0_462 = arith.constant 0 : index
    %613 = vector.load %arg4[%c6_459, %c6_460, %c0_461, %c0_462] : memref<7x16x16x64xf32, #tpu.memory_space<vmem>>, vector<1x1x16x64xf32>
    %614 = vector.shape_cast %613 : vector<1x1x16x64xf32> to vector<16x64xf32>
    %615 = arith.mulf %588, %614 : vector<16x64xf32>
    %616 = arith.addf %586, %615 : vector<16x64xf32>
    %c7 = arith.constant 7 : index
    %c0_463 = arith.constant 0 : index
    %c0_464 = arith.constant 0 : index
    %617 = vector.load %arg10[%c7, %c0_463, %c0_464] : memref<16x16x64xf32, #tpu.memory_space<vmem>>, vector<1x16x64xf32>
    %618 = vector.shape_cast %617 : vector<1x16x64xf32> to vector<16x64xf32>
    %c0_465 = arith.constant 0 : index
    %c7_466 = arith.constant 7 : index
    %c0_467 = arith.constant 0 : index
    %c0_468 = arith.constant 0 : index
    %619 = vector.load %arg4[%c0_465, %c7_466, %c0_467, %c0_468] : memref<7x16x16x64xf32, #tpu.memory_space<vmem>>, vector<1x1x16x64xf32>
    %620 = vector.shape_cast %619 : vector<1x1x16x64xf32> to vector<16x64xf32>
    %621 = arith.mulf %618, %620 : vector<16x64xf32>
    %622 = arith.addf %592, %621 : vector<16x64xf32>
    %c1_469 = arith.constant 1 : index
    %c7_470 = arith.constant 7 : index
    %c0_471 = arith.constant 0 : index
    %c0_472 = arith.constant 0 : index
    %623 = vector.load %arg4[%c1_469, %c7_470, %c0_471, %c0_472] : memref<7x16x16x64xf32, #tpu.memory_space<vmem>>, vector<1x1x16x64xf32>
    %624 = vector.shape_cast %623 : vector<1x1x16x64xf32> to vector<16x64xf32>
    %625 = arith.mulf %618, %624 : vector<16x64xf32>
    %626 = arith.addf %596, %625 : vector<16x64xf32>
    %c2_473 = arith.constant 2 : index
    %c7_474 = arith.constant 7 : index
    %c0_475 = arith.constant 0 : index
    %c0_476 = arith.constant 0 : index
    %627 = vector.load %arg4[%c2_473, %c7_474, %c0_475, %c0_476] : memref<7x16x16x64xf32, #tpu.memory_space<vmem>>, vector<1x1x16x64xf32>
    %628 = vector.shape_cast %627 : vector<1x1x16x64xf32> to vector<16x64xf32>
    %629 = arith.mulf %618, %628 : vector<16x64xf32>
    %630 = arith.addf %600, %629 : vector<16x64xf32>
    %c3_477 = arith.constant 3 : index
    %c7_478 = arith.constant 7 : index
    %c0_479 = arith.constant 0 : index
    %c0_480 = arith.constant 0 : index
    %631 = vector.load %arg4[%c3_477, %c7_478, %c0_479, %c0_480] : memref<7x16x16x64xf32, #tpu.memory_space<vmem>>, vector<1x1x16x64xf32>
    %632 = vector.shape_cast %631 : vector<1x1x16x64xf32> to vector<16x64xf32>
    %633 = arith.mulf %618, %632 : vector<16x64xf32>
    %634 = arith.addf %604, %633 : vector<16x64xf32>
    %c4_481 = arith.constant 4 : index
    %c7_482 = arith.constant 7 : index
    %c0_483 = arith.constant 0 : index
    %c0_484 = arith.constant 0 : index
    %635 = vector.load %arg4[%c4_481, %c7_482, %c0_483, %c0_484] : memref<7x16x16x64xf32, #tpu.memory_space<vmem>>, vector<1x1x16x64xf32>
    %636 = vector.shape_cast %635 : vector<1x1x16x64xf32> to vector<16x64xf32>
    %637 = arith.mulf %618, %636 : vector<16x64xf32>
    %638 = arith.addf %608, %637 : vector<16x64xf32>
    %c5_485 = arith.constant 5 : index
    %c7_486 = arith.constant 7 : index
    %c0_487 = arith.constant 0 : index
    %c0_488 = arith.constant 0 : index
    %639 = vector.load %arg4[%c5_485, %c7_486, %c0_487, %c0_488] : memref<7x16x16x64xf32, #tpu.memory_space<vmem>>, vector<1x1x16x64xf32>
    %640 = vector.shape_cast %639 : vector<1x1x16x64xf32> to vector<16x64xf32>
    %641 = arith.mulf %618, %640 : vector<16x64xf32>
    %642 = arith.addf %612, %641 : vector<16x64xf32>
    %c6_489 = arith.constant 6 : index
    %c7_490 = arith.constant 7 : index
    %c0_491 = arith.constant 0 : index
    %c0_492 = arith.constant 0 : index
    %643 = vector.load %arg4[%c6_489, %c7_490, %c0_491, %c0_492] : memref<7x16x16x64xf32, #tpu.memory_space<vmem>>, vector<1x1x16x64xf32>
    %644 = vector.shape_cast %643 : vector<1x1x16x64xf32> to vector<16x64xf32>
    %645 = arith.mulf %618, %644 : vector<16x64xf32>
    %646 = arith.addf %616, %645 : vector<16x64xf32>
    %c8_493 = arith.constant 8 : index
    %c0_494 = arith.constant 0 : index
    %c0_495 = arith.constant 0 : index
    %647 = vector.load %arg10[%c8_493, %c0_494, %c0_495] : memref<16x16x64xf32, #tpu.memory_space<vmem>>, vector<1x16x64xf32>
    %648 = vector.shape_cast %647 : vector<1x16x64xf32> to vector<16x64xf32>
    %c0_496 = arith.constant 0 : index
    %c8_497 = arith.constant 8 : index
    %c0_498 = arith.constant 0 : index
    %c0_499 = arith.constant 0 : index
    %649 = vector.load %arg4[%c0_496, %c8_497, %c0_498, %c0_499] : memref<7x16x16x64xf32, #tpu.memory_space<vmem>>, vector<1x1x16x64xf32>
    %650 = vector.shape_cast %649 : vector<1x1x16x64xf32> to vector<16x64xf32>
    %651 = arith.mulf %648, %650 : vector<16x64xf32>
    %652 = arith.addf %622, %651 : vector<16x64xf32>
    %c1_500 = arith.constant 1 : index
    %c8_501 = arith.constant 8 : index
    %c0_502 = arith.constant 0 : index
    %c0_503 = arith.constant 0 : index
    %653 = vector.load %arg4[%c1_500, %c8_501, %c0_502, %c0_503] : memref<7x16x16x64xf32, #tpu.memory_space<vmem>>, vector<1x1x16x64xf32>
    %654 = vector.shape_cast %653 : vector<1x1x16x64xf32> to vector<16x64xf32>
    %655 = arith.mulf %648, %654 : vector<16x64xf32>
    %656 = arith.addf %626, %655 : vector<16x64xf32>
    %c2_504 = arith.constant 2 : index
    %c8_505 = arith.constant 8 : index
    %c0_506 = arith.constant 0 : index
    %c0_507 = arith.constant 0 : index
    %657 = vector.load %arg4[%c2_504, %c8_505, %c0_506, %c0_507] : memref<7x16x16x64xf32, #tpu.memory_space<vmem>>, vector<1x1x16x64xf32>
    %658 = vector.shape_cast %657 : vector<1x1x16x64xf32> to vector<16x64xf32>
    %659 = arith.mulf %648, %658 : vector<16x64xf32>
    %660 = arith.addf %630, %659 : vector<16x64xf32>
    %c3_508 = arith.constant 3 : index
    %c8_509 = arith.constant 8 : index
    %c0_510 = arith.constant 0 : index
    %c0_511 = arith.constant 0 : index
    %661 = vector.load %arg4[%c3_508, %c8_509, %c0_510, %c0_511] : memref<7x16x16x64xf32, #tpu.memory_space<vmem>>, vector<1x1x16x64xf32>
    %662 = vector.shape_cast %661 : vector<1x1x16x64xf32> to vector<16x64xf32>
    %663 = arith.mulf %648, %662 : vector<16x64xf32>
    %664 = arith.addf %634, %663 : vector<16x64xf32>
    %c4_512 = arith.constant 4 : index
    %c8_513 = arith.constant 8 : index
    %c0_514 = arith.constant 0 : index
    %c0_515 = arith.constant 0 : index
    %665 = vector.load %arg4[%c4_512, %c8_513, %c0_514, %c0_515] : memref<7x16x16x64xf32, #tpu.memory_space<vmem>>, vector<1x1x16x64xf32>
    %666 = vector.shape_cast %665 : vector<1x1x16x64xf32> to vector<16x64xf32>
    %667 = arith.mulf %648, %666 : vector<16x64xf32>
    %668 = arith.addf %638, %667 : vector<16x64xf32>
    %c5_516 = arith.constant 5 : index
    %c8_517 = arith.constant 8 : index
    %c0_518 = arith.constant 0 : index
    %c0_519 = arith.constant 0 : index
    %669 = vector.load %arg4[%c5_516, %c8_517, %c0_518, %c0_519] : memref<7x16x16x64xf32, #tpu.memory_space<vmem>>, vector<1x1x16x64xf32>
    %670 = vector.shape_cast %669 : vector<1x1x16x64xf32> to vector<16x64xf32>
    %671 = arith.mulf %648, %670 : vector<16x64xf32>
    %672 = arith.addf %642, %671 : vector<16x64xf32>
    %c6_520 = arith.constant 6 : index
    %c8_521 = arith.constant 8 : index
    %c0_522 = arith.constant 0 : index
    %c0_523 = arith.constant 0 : index
    %673 = vector.load %arg4[%c6_520, %c8_521, %c0_522, %c0_523] : memref<7x16x16x64xf32, #tpu.memory_space<vmem>>, vector<1x1x16x64xf32>
    %674 = vector.shape_cast %673 : vector<1x1x16x64xf32> to vector<16x64xf32>
    %675 = arith.mulf %648, %674 : vector<16x64xf32>
    %676 = arith.addf %646, %675 : vector<16x64xf32>
    %c9_524 = arith.constant 9 : index
    %c0_525 = arith.constant 0 : index
    %c0_526 = arith.constant 0 : index
    %677 = vector.load %arg10[%c9_524, %c0_525, %c0_526] : memref<16x16x64xf32, #tpu.memory_space<vmem>>, vector<1x16x64xf32>
    %678 = vector.shape_cast %677 : vector<1x16x64xf32> to vector<16x64xf32>
    %c0_527 = arith.constant 0 : index
    %c9_528 = arith.constant 9 : index
    %c0_529 = arith.constant 0 : index
    %c0_530 = arith.constant 0 : index
    %679 = vector.load %arg4[%c0_527, %c9_528, %c0_529, %c0_530] : memref<7x16x16x64xf32, #tpu.memory_space<vmem>>, vector<1x1x16x64xf32>
    %680 = vector.shape_cast %679 : vector<1x1x16x64xf32> to vector<16x64xf32>
    %681 = arith.mulf %678, %680 : vector<16x64xf32>
    %682 = arith.addf %652, %681 : vector<16x64xf32>
    %c1_531 = arith.constant 1 : index
    %c9_532 = arith.constant 9 : index
    %c0_533 = arith.constant 0 : index
    %c0_534 = arith.constant 0 : index
    %683 = vector.load %arg4[%c1_531, %c9_532, %c0_533, %c0_534] : memref<7x16x16x64xf32, #tpu.memory_space<vmem>>, vector<1x1x16x64xf32>
    %684 = vector.shape_cast %683 : vector<1x1x16x64xf32> to vector<16x64xf32>
    %685 = arith.mulf %678, %684 : vector<16x64xf32>
    %686 = arith.addf %656, %685 : vector<16x64xf32>
    %c2_535 = arith.constant 2 : index
    %c9_536 = arith.constant 9 : index
    %c0_537 = arith.constant 0 : index
    %c0_538 = arith.constant 0 : index
    %687 = vector.load %arg4[%c2_535, %c9_536, %c0_537, %c0_538] : memref<7x16x16x64xf32, #tpu.memory_space<vmem>>, vector<1x1x16x64xf32>
    %688 = vector.shape_cast %687 : vector<1x1x16x64xf32> to vector<16x64xf32>
    %689 = arith.mulf %678, %688 : vector<16x64xf32>
    %690 = arith.addf %660, %689 : vector<16x64xf32>
    %c3_539 = arith.constant 3 : index
    %c9_540 = arith.constant 9 : index
    %c0_541 = arith.constant 0 : index
    %c0_542 = arith.constant 0 : index
    %691 = vector.load %arg4[%c3_539, %c9_540, %c0_541, %c0_542] : memref<7x16x16x64xf32, #tpu.memory_space<vmem>>, vector<1x1x16x64xf32>
    %692 = vector.shape_cast %691 : vector<1x1x16x64xf32> to vector<16x64xf32>
    %693 = arith.mulf %678, %692 : vector<16x64xf32>
    %694 = arith.addf %664, %693 : vector<16x64xf32>
    %c4_543 = arith.constant 4 : index
    %c9_544 = arith.constant 9 : index
    %c0_545 = arith.constant 0 : index
    %c0_546 = arith.constant 0 : index
    %695 = vector.load %arg4[%c4_543, %c9_544, %c0_545, %c0_546] : memref<7x16x16x64xf32, #tpu.memory_space<vmem>>, vector<1x1x16x64xf32>
    %696 = vector.shape_cast %695 : vector<1x1x16x64xf32> to vector<16x64xf32>
    %697 = arith.mulf %678, %696 : vector<16x64xf32>
    %698 = arith.addf %668, %697 : vector<16x64xf32>
    %c5_547 = arith.constant 5 : index
    %c9_548 = arith.constant 9 : index
    %c0_549 = arith.constant 0 : index
    %c0_550 = arith.constant 0 : index
    %699 = vector.load %arg4[%c5_547, %c9_548, %c0_549, %c0_550] : memref<7x16x16x64xf32, #tpu.memory_space<vmem>>, vector<1x1x16x64xf32>
    %700 = vector.shape_cast %699 : vector<1x1x16x64xf32> to vector<16x64xf32>
    %701 = arith.mulf %678, %700 : vector<16x64xf32>
    %702 = arith.addf %672, %701 : vector<16x64xf32>
    %c6_551 = arith.constant 6 : index
    %c9_552 = arith.constant 9 : index
    %c0_553 = arith.constant 0 : index
    %c0_554 = arith.constant 0 : index
    %703 = vector.load %arg4[%c6_551, %c9_552, %c0_553, %c0_554] : memref<7x16x16x64xf32, #tpu.memory_space<vmem>>, vector<1x1x16x64xf32>
    %704 = vector.shape_cast %703 : vector<1x1x16x64xf32> to vector<16x64xf32>
    %705 = arith.mulf %678, %704 : vector<16x64xf32>
    %706 = arith.addf %676, %705 : vector<16x64xf32>
    %c10_555 = arith.constant 10 : index
    %c0_556 = arith.constant 0 : index
    %c0_557 = arith.constant 0 : index
    %707 = vector.load %arg10[%c10_555, %c0_556, %c0_557] : memref<16x16x64xf32, #tpu.memory_space<vmem>>, vector<1x16x64xf32>
    %708 = vector.shape_cast %707 : vector<1x16x64xf32> to vector<16x64xf32>
    %c0_558 = arith.constant 0 : index
    %c10_559 = arith.constant 10 : index
    %c0_560 = arith.constant 0 : index
    %c0_561 = arith.constant 0 : index
    %709 = vector.load %arg4[%c0_558, %c10_559, %c0_560, %c0_561] : memref<7x16x16x64xf32, #tpu.memory_space<vmem>>, vector<1x1x16x64xf32>
    %710 = vector.shape_cast %709 : vector<1x1x16x64xf32> to vector<16x64xf32>
    %711 = arith.mulf %708, %710 : vector<16x64xf32>
    %712 = arith.addf %682, %711 : vector<16x64xf32>
    %c1_562 = arith.constant 1 : index
    %c10_563 = arith.constant 10 : index
    %c0_564 = arith.constant 0 : index
    %c0_565 = arith.constant 0 : index
    %713 = vector.load %arg4[%c1_562, %c10_563, %c0_564, %c0_565] : memref<7x16x16x64xf32, #tpu.memory_space<vmem>>, vector<1x1x16x64xf32>
    %714 = vector.shape_cast %713 : vector<1x1x16x64xf32> to vector<16x64xf32>
    %715 = arith.mulf %708, %714 : vector<16x64xf32>
    %716 = arith.addf %686, %715 : vector<16x64xf32>
    %c2_566 = arith.constant 2 : index
    %c10_567 = arith.constant 10 : index
    %c0_568 = arith.constant 0 : index
    %c0_569 = arith.constant 0 : index
    %717 = vector.load %arg4[%c2_566, %c10_567, %c0_568, %c0_569] : memref<7x16x16x64xf32, #tpu.memory_space<vmem>>, vector<1x1x16x64xf32>
    %718 = vector.shape_cast %717 : vector<1x1x16x64xf32> to vector<16x64xf32>
    %719 = arith.mulf %708, %718 : vector<16x64xf32>
    %720 = arith.addf %690, %719 : vector<16x64xf32>
    %c3_570 = arith.constant 3 : index
    %c10_571 = arith.constant 10 : index
    %c0_572 = arith.constant 0 : index
    %c0_573 = arith.constant 0 : index
    %721 = vector.load %arg4[%c3_570, %c10_571, %c0_572, %c0_573] : memref<7x16x16x64xf32, #tpu.memory_space<vmem>>, vector<1x1x16x64xf32>
    %722 = vector.shape_cast %721 : vector<1x1x16x64xf32> to vector<16x64xf32>
    %723 = arith.mulf %708, %722 : vector<16x64xf32>
    %724 = arith.addf %694, %723 : vector<16x64xf32>
    %c4_574 = arith.constant 4 : index
    %c10_575 = arith.constant 10 : index
    %c0_576 = arith.constant 0 : index
    %c0_577 = arith.constant 0 : index
    %725 = vector.load %arg4[%c4_574, %c10_575, %c0_576, %c0_577] : memref<7x16x16x64xf32, #tpu.memory_space<vmem>>, vector<1x1x16x64xf32>
    %726 = vector.shape_cast %725 : vector<1x1x16x64xf32> to vector<16x64xf32>
    %727 = arith.mulf %708, %726 : vector<16x64xf32>
    %728 = arith.addf %698, %727 : vector<16x64xf32>
    %c5_578 = arith.constant 5 : index
    %c10_579 = arith.constant 10 : index
    %c0_580 = arith.constant 0 : index
    %c0_581 = arith.constant 0 : index
    %729 = vector.load %arg4[%c5_578, %c10_579, %c0_580, %c0_581] : memref<7x16x16x64xf32, #tpu.memory_space<vmem>>, vector<1x1x16x64xf32>
    %730 = vector.shape_cast %729 : vector<1x1x16x64xf32> to vector<16x64xf32>
    %731 = arith.mulf %708, %730 : vector<16x64xf32>
    %732 = arith.addf %702, %731 : vector<16x64xf32>
    %c6_582 = arith.constant 6 : index
    %c10_583 = arith.constant 10 : index
    %c0_584 = arith.constant 0 : index
    %c0_585 = arith.constant 0 : index
    %733 = vector.load %arg4[%c6_582, %c10_583, %c0_584, %c0_585] : memref<7x16x16x64xf32, #tpu.memory_space<vmem>>, vector<1x1x16x64xf32>
    %734 = vector.shape_cast %733 : vector<1x1x16x64xf32> to vector<16x64xf32>
    %735 = arith.mulf %708, %734 : vector<16x64xf32>
    %736 = arith.addf %706, %735 : vector<16x64xf32>
    %c11 = arith.constant 11 : index
    %c0_586 = arith.constant 0 : index
    %c0_587 = arith.constant 0 : index
    %737 = vector.load %arg10[%c11, %c0_586, %c0_587] : memref<16x16x64xf32, #tpu.memory_space<vmem>>, vector<1x16x64xf32>
    %738 = vector.shape_cast %737 : vector<1x16x64xf32> to vector<16x64xf32>
    %c0_588 = arith.constant 0 : index
    %c11_589 = arith.constant 11 : index
    %c0_590 = arith.constant 0 : index
    %c0_591 = arith.constant 0 : index
    %739 = vector.load %arg4[%c0_588, %c11_589, %c0_590, %c0_591] : memref<7x16x16x64xf32, #tpu.memory_space<vmem>>, vector<1x1x16x64xf32>
    %740 = vector.shape_cast %739 : vector<1x1x16x64xf32> to vector<16x64xf32>
    %741 = arith.mulf %738, %740 : vector<16x64xf32>
    %742 = arith.addf %712, %741 : vector<16x64xf32>
    %c1_592 = arith.constant 1 : index
    %c11_593 = arith.constant 11 : index
    %c0_594 = arith.constant 0 : index
    %c0_595 = arith.constant 0 : index
    %743 = vector.load %arg4[%c1_592, %c11_593, %c0_594, %c0_595] : memref<7x16x16x64xf32, #tpu.memory_space<vmem>>, vector<1x1x16x64xf32>
    %744 = vector.shape_cast %743 : vector<1x1x16x64xf32> to vector<16x64xf32>
    %745 = arith.mulf %738, %744 : vector<16x64xf32>
    %746 = arith.addf %716, %745 : vector<16x64xf32>
    %c2_596 = arith.constant 2 : index
    %c11_597 = arith.constant 11 : index
    %c0_598 = arith.constant 0 : index
    %c0_599 = arith.constant 0 : index
    %747 = vector.load %arg4[%c2_596, %c11_597, %c0_598, %c0_599] : memref<7x16x16x64xf32, #tpu.memory_space<vmem>>, vector<1x1x16x64xf32>
    %748 = vector.shape_cast %747 : vector<1x1x16x64xf32> to vector<16x64xf32>
    %749 = arith.mulf %738, %748 : vector<16x64xf32>
    %750 = arith.addf %720, %749 : vector<16x64xf32>
    %c3_600 = arith.constant 3 : index
    %c11_601 = arith.constant 11 : index
    %c0_602 = arith.constant 0 : index
    %c0_603 = arith.constant 0 : index
    %751 = vector.load %arg4[%c3_600, %c11_601, %c0_602, %c0_603] : memref<7x16x16x64xf32, #tpu.memory_space<vmem>>, vector<1x1x16x64xf32>
    %752 = vector.shape_cast %751 : vector<1x1x16x64xf32> to vector<16x64xf32>
    %753 = arith.mulf %738, %752 : vector<16x64xf32>
    %754 = arith.addf %724, %753 : vector<16x64xf32>
    %c4_604 = arith.constant 4 : index
    %c11_605 = arith.constant 11 : index
    %c0_606 = arith.constant 0 : index
    %c0_607 = arith.constant 0 : index
    %755 = vector.load %arg4[%c4_604, %c11_605, %c0_606, %c0_607] : memref<7x16x16x64xf32, #tpu.memory_space<vmem>>, vector<1x1x16x64xf32>
    %756 = vector.shape_cast %755 : vector<1x1x16x64xf32> to vector<16x64xf32>
    %757 = arith.mulf %738, %756 : vector<16x64xf32>
    %758 = arith.addf %728, %757 : vector<16x64xf32>
    %c5_608 = arith.constant 5 : index
    %c11_609 = arith.constant 11 : index
    %c0_610 = arith.constant 0 : index
    %c0_611 = arith.constant 0 : index
    %759 = vector.load %arg4[%c5_608, %c11_609, %c0_610, %c0_611] : memref<7x16x16x64xf32, #tpu.memory_space<vmem>>, vector<1x1x16x64xf32>
    %760 = vector.shape_cast %759 : vector<1x1x16x64xf32> to vector<16x64xf32>
    %761 = arith.mulf %738, %760 : vector<16x64xf32>
    %762 = arith.addf %732, %761 : vector<16x64xf32>
    %c6_612 = arith.constant 6 : index
    %c11_613 = arith.constant 11 : index
    %c0_614 = arith.constant 0 : index
    %c0_615 = arith.constant 0 : index
    %763 = vector.load %arg4[%c6_612, %c11_613, %c0_614, %c0_615] : memref<7x16x16x64xf32, #tpu.memory_space<vmem>>, vector<1x1x16x64xf32>
    %764 = vector.shape_cast %763 : vector<1x1x16x64xf32> to vector<16x64xf32>
    %765 = arith.mulf %738, %764 : vector<16x64xf32>
    %766 = arith.addf %736, %765 : vector<16x64xf32>
    %c12_616 = arith.constant 12 : index
    %c0_617 = arith.constant 0 : index
    %c0_618 = arith.constant 0 : index
    %767 = vector.load %arg10[%c12_616, %c0_617, %c0_618] : memref<16x16x64xf32, #tpu.memory_space<vmem>>, vector<1x16x64xf32>
    %768 = vector.shape_cast %767 : vector<1x16x64xf32> to vector<16x64xf32>
    %c0_619 = arith.constant 0 : index
    %c12_620 = arith.constant 12 : index
    %c0_621 = arith.constant 0 : index
    %c0_622 = arith.constant 0 : index
    %769 = vector.load %arg4[%c0_619, %c12_620, %c0_621, %c0_622] : memref<7x16x16x64xf32, #tpu.memory_space<vmem>>, vector<1x1x16x64xf32>
    %770 = vector.shape_cast %769 : vector<1x1x16x64xf32> to vector<16x64xf32>
    %771 = arith.mulf %768, %770 : vector<16x64xf32>
    %772 = arith.addf %742, %771 : vector<16x64xf32>
    %c1_623 = arith.constant 1 : index
    %c12_624 = arith.constant 12 : index
    %c0_625 = arith.constant 0 : index
    %c0_626 = arith.constant 0 : index
    %773 = vector.load %arg4[%c1_623, %c12_624, %c0_625, %c0_626] : memref<7x16x16x64xf32, #tpu.memory_space<vmem>>, vector<1x1x16x64xf32>
    %774 = vector.shape_cast %773 : vector<1x1x16x64xf32> to vector<16x64xf32>
    %775 = arith.mulf %768, %774 : vector<16x64xf32>
    %776 = arith.addf %746, %775 : vector<16x64xf32>
    %c2_627 = arith.constant 2 : index
    %c12_628 = arith.constant 12 : index
    %c0_629 = arith.constant 0 : index
    %c0_630 = arith.constant 0 : index
    %777 = vector.load %arg4[%c2_627, %c12_628, %c0_629, %c0_630] : memref<7x16x16x64xf32, #tpu.memory_space<vmem>>, vector<1x1x16x64xf32>
    %778 = vector.shape_cast %777 : vector<1x1x16x64xf32> to vector<16x64xf32>
    %779 = arith.mulf %768, %778 : vector<16x64xf32>
    %780 = arith.addf %750, %779 : vector<16x64xf32>
    %c3_631 = arith.constant 3 : index
    %c12_632 = arith.constant 12 : index
    %c0_633 = arith.constant 0 : index
    %c0_634 = arith.constant 0 : index
    %781 = vector.load %arg4[%c3_631, %c12_632, %c0_633, %c0_634] : memref<7x16x16x64xf32, #tpu.memory_space<vmem>>, vector<1x1x16x64xf32>
    %782 = vector.shape_cast %781 : vector<1x1x16x64xf32> to vector<16x64xf32>
    %783 = arith.mulf %768, %782 : vector<16x64xf32>
    %784 = arith.addf %754, %783 : vector<16x64xf32>
    %c4_635 = arith.constant 4 : index
    %c12_636 = arith.constant 12 : index
    %c0_637 = arith.constant 0 : index
    %c0_638 = arith.constant 0 : index
    %785 = vector.load %arg4[%c4_635, %c12_636, %c0_637, %c0_638] : memref<7x16x16x64xf32, #tpu.memory_space<vmem>>, vector<1x1x16x64xf32>
    %786 = vector.shape_cast %785 : vector<1x1x16x64xf32> to vector<16x64xf32>
    %787 = arith.mulf %768, %786 : vector<16x64xf32>
    %788 = arith.addf %758, %787 : vector<16x64xf32>
    %c5_639 = arith.constant 5 : index
    %c12_640 = arith.constant 12 : index
    %c0_641 = arith.constant 0 : index
    %c0_642 = arith.constant 0 : index
    %789 = vector.load %arg4[%c5_639, %c12_640, %c0_641, %c0_642] : memref<7x16x16x64xf32, #tpu.memory_space<vmem>>, vector<1x1x16x64xf32>
    %790 = vector.shape_cast %789 : vector<1x1x16x64xf32> to vector<16x64xf32>
    %791 = arith.mulf %768, %790 : vector<16x64xf32>
    %792 = arith.addf %762, %791 : vector<16x64xf32>
    %c6_643 = arith.constant 6 : index
    %c12_644 = arith.constant 12 : index
    %c0_645 = arith.constant 0 : index
    %c0_646 = arith.constant 0 : index
    %793 = vector.load %arg4[%c6_643, %c12_644, %c0_645, %c0_646] : memref<7x16x16x64xf32, #tpu.memory_space<vmem>>, vector<1x1x16x64xf32>
    %794 = vector.shape_cast %793 : vector<1x1x16x64xf32> to vector<16x64xf32>
    %795 = arith.mulf %768, %794 : vector<16x64xf32>
    %796 = arith.addf %766, %795 : vector<16x64xf32>
    %c13_647 = arith.constant 13 : index
    %c0_648 = arith.constant 0 : index
    %c0_649 = arith.constant 0 : index
    %797 = vector.load %arg10[%c13_647, %c0_648, %c0_649] : memref<16x16x64xf32, #tpu.memory_space<vmem>>, vector<1x16x64xf32>
    %798 = vector.shape_cast %797 : vector<1x16x64xf32> to vector<16x64xf32>
    %c0_650 = arith.constant 0 : index
    %c13_651 = arith.constant 13 : index
    %c0_652 = arith.constant 0 : index
    %c0_653 = arith.constant 0 : index
    %799 = vector.load %arg4[%c0_650, %c13_651, %c0_652, %c0_653] : memref<7x16x16x64xf32, #tpu.memory_space<vmem>>, vector<1x1x16x64xf32>
    %800 = vector.shape_cast %799 : vector<1x1x16x64xf32> to vector<16x64xf32>
    %801 = arith.mulf %798, %800 : vector<16x64xf32>
    %802 = arith.addf %772, %801 : vector<16x64xf32>
    %c1_654 = arith.constant 1 : index
    %c13_655 = arith.constant 13 : index
    %c0_656 = arith.constant 0 : index
    %c0_657 = arith.constant 0 : index
    %803 = vector.load %arg4[%c1_654, %c13_655, %c0_656, %c0_657] : memref<7x16x16x64xf32, #tpu.memory_space<vmem>>, vector<1x1x16x64xf32>
    %804 = vector.shape_cast %803 : vector<1x1x16x64xf32> to vector<16x64xf32>
    %805 = arith.mulf %798, %804 : vector<16x64xf32>
    %806 = arith.addf %776, %805 : vector<16x64xf32>
    %c2_658 = arith.constant 2 : index
    %c13_659 = arith.constant 13 : index
    %c0_660 = arith.constant 0 : index
    %c0_661 = arith.constant 0 : index
    %807 = vector.load %arg4[%c2_658, %c13_659, %c0_660, %c0_661] : memref<7x16x16x64xf32, #tpu.memory_space<vmem>>, vector<1x1x16x64xf32>
    %808 = vector.shape_cast %807 : vector<1x1x16x64xf32> to vector<16x64xf32>
    %809 = arith.mulf %798, %808 : vector<16x64xf32>
    %810 = arith.addf %780, %809 : vector<16x64xf32>
    %c3_662 = arith.constant 3 : index
    %c13_663 = arith.constant 13 : index
    %c0_664 = arith.constant 0 : index
    %c0_665 = arith.constant 0 : index
    %811 = vector.load %arg4[%c3_662, %c13_663, %c0_664, %c0_665] : memref<7x16x16x64xf32, #tpu.memory_space<vmem>>, vector<1x1x16x64xf32>
    %812 = vector.shape_cast %811 : vector<1x1x16x64xf32> to vector<16x64xf32>
    %813 = arith.mulf %798, %812 : vector<16x64xf32>
    %814 = arith.addf %784, %813 : vector<16x64xf32>
    %c4_666 = arith.constant 4 : index
    %c13_667 = arith.constant 13 : index
    %c0_668 = arith.constant 0 : index
    %c0_669 = arith.constant 0 : index
    %815 = vector.load %arg4[%c4_666, %c13_667, %c0_668, %c0_669] : memref<7x16x16x64xf32, #tpu.memory_space<vmem>>, vector<1x1x16x64xf32>
    %816 = vector.shape_cast %815 : vector<1x1x16x64xf32> to vector<16x64xf32>
    %817 = arith.mulf %798, %816 : vector<16x64xf32>
    %818 = arith.addf %788, %817 : vector<16x64xf32>
    %c5_670 = arith.constant 5 : index
    %c13_671 = arith.constant 13 : index
    %c0_672 = arith.constant 0 : index
    %c0_673 = arith.constant 0 : index
    %819 = vector.load %arg4[%c5_670, %c13_671, %c0_672, %c0_673] : memref<7x16x16x64xf32, #tpu.memory_space<vmem>>, vector<1x1x16x64xf32>
    %820 = vector.shape_cast %819 : vector<1x1x16x64xf32> to vector<16x64xf32>
    %821 = arith.mulf %798, %820 : vector<16x64xf32>
    %822 = arith.addf %792, %821 : vector<16x64xf32>
    %c6_674 = arith.constant 6 : index
    %c13_675 = arith.constant 13 : index
    %c0_676 = arith.constant 0 : index
    %c0_677 = arith.constant 0 : index
    %823 = vector.load %arg4[%c6_674, %c13_675, %c0_676, %c0_677] : memref<7x16x16x64xf32, #tpu.memory_space<vmem>>, vector<1x1x16x64xf32>
    %824 = vector.shape_cast %823 : vector<1x1x16x64xf32> to vector<16x64xf32>
    %825 = arith.mulf %798, %824 : vector<16x64xf32>
    %826 = arith.addf %796, %825 : vector<16x64xf32>
    %c14 = arith.constant 14 : index
    %c0_678 = arith.constant 0 : index
    %c0_679 = arith.constant 0 : index
    %827 = vector.load %arg10[%c14, %c0_678, %c0_679] : memref<16x16x64xf32, #tpu.memory_space<vmem>>, vector<1x16x64xf32>
    %828 = vector.shape_cast %827 : vector<1x16x64xf32> to vector<16x64xf32>
    %c0_680 = arith.constant 0 : index
    %c14_681 = arith.constant 14 : index
    %c0_682 = arith.constant 0 : index
    %c0_683 = arith.constant 0 : index
    %829 = vector.load %arg4[%c0_680, %c14_681, %c0_682, %c0_683] : memref<7x16x16x64xf32, #tpu.memory_space<vmem>>, vector<1x1x16x64xf32>
    %830 = vector.shape_cast %829 : vector<1x1x16x64xf32> to vector<16x64xf32>
    %831 = arith.mulf %828, %830 : vector<16x64xf32>
    %832 = arith.addf %802, %831 : vector<16x64xf32>
    %c1_684 = arith.constant 1 : index
    %c14_685 = arith.constant 14 : index
    %c0_686 = arith.constant 0 : index
    %c0_687 = arith.constant 0 : index
    %833 = vector.load %arg4[%c1_684, %c14_685, %c0_686, %c0_687] : memref<7x16x16x64xf32, #tpu.memory_space<vmem>>, vector<1x1x16x64xf32>
    %834 = vector.shape_cast %833 : vector<1x1x16x64xf32> to vector<16x64xf32>
    %835 = arith.mulf %828, %834 : vector<16x64xf32>
    %836 = arith.addf %806, %835 : vector<16x64xf32>
    %c2_688 = arith.constant 2 : index
    %c14_689 = arith.constant 14 : index
    %c0_690 = arith.constant 0 : index
    %c0_691 = arith.constant 0 : index
    %837 = vector.load %arg4[%c2_688, %c14_689, %c0_690, %c0_691] : memref<7x16x16x64xf32, #tpu.memory_space<vmem>>, vector<1x1x16x64xf32>
    %838 = vector.shape_cast %837 : vector<1x1x16x64xf32> to vector<16x64xf32>
    %839 = arith.mulf %828, %838 : vector<16x64xf32>
    %840 = arith.addf %810, %839 : vector<16x64xf32>
    %c3_692 = arith.constant 3 : index
    %c14_693 = arith.constant 14 : index
    %c0_694 = arith.constant 0 : index
    %c0_695 = arith.constant 0 : index
    %841 = vector.load %arg4[%c3_692, %c14_693, %c0_694, %c0_695] : memref<7x16x16x64xf32, #tpu.memory_space<vmem>>, vector<1x1x16x64xf32>
    %842 = vector.shape_cast %841 : vector<1x1x16x64xf32> to vector<16x64xf32>
    %843 = arith.mulf %828, %842 : vector<16x64xf32>
    %844 = arith.addf %814, %843 : vector<16x64xf32>
    %c4_696 = arith.constant 4 : index
    %c14_697 = arith.constant 14 : index
    %c0_698 = arith.constant 0 : index
    %c0_699 = arith.constant 0 : index
    %845 = vector.load %arg4[%c4_696, %c14_697, %c0_698, %c0_699] : memref<7x16x16x64xf32, #tpu.memory_space<vmem>>, vector<1x1x16x64xf32>
    %846 = vector.shape_cast %845 : vector<1x1x16x64xf32> to vector<16x64xf32>
    %847 = arith.mulf %828, %846 : vector<16x64xf32>
    %848 = arith.addf %818, %847 : vector<16x64xf32>
    %c5_700 = arith.constant 5 : index
    %c14_701 = arith.constant 14 : index
    %c0_702 = arith.constant 0 : index
    %c0_703 = arith.constant 0 : index
    %849 = vector.load %arg4[%c5_700, %c14_701, %c0_702, %c0_703] : memref<7x16x16x64xf32, #tpu.memory_space<vmem>>, vector<1x1x16x64xf32>
    %850 = vector.shape_cast %849 : vector<1x1x16x64xf32> to vector<16x64xf32>
    %851 = arith.mulf %828, %850 : vector<16x64xf32>
    %852 = arith.addf %822, %851 : vector<16x64xf32>
    %c6_704 = arith.constant 6 : index
    %c14_705 = arith.constant 14 : index
    %c0_706 = arith.constant 0 : index
    %c0_707 = arith.constant 0 : index
    %853 = vector.load %arg4[%c6_704, %c14_705, %c0_706, %c0_707] : memref<7x16x16x64xf32, #tpu.memory_space<vmem>>, vector<1x1x16x64xf32>
    %854 = vector.shape_cast %853 : vector<1x1x16x64xf32> to vector<16x64xf32>
    %855 = arith.mulf %828, %854 : vector<16x64xf32>
    %856 = arith.addf %826, %855 : vector<16x64xf32>
    %c15 = arith.constant 15 : index
    %c0_708 = arith.constant 0 : index
    %c0_709 = arith.constant 0 : index
    %857 = vector.load %arg10[%c15, %c0_708, %c0_709] : memref<16x16x64xf32, #tpu.memory_space<vmem>>, vector<1x16x64xf32>
    %858 = vector.shape_cast %857 : vector<1x16x64xf32> to vector<16x64xf32>
    %c0_710 = arith.constant 0 : index
    %c15_711 = arith.constant 15 : index
    %c0_712 = arith.constant 0 : index
    %c0_713 = arith.constant 0 : index
    %859 = vector.load %arg4[%c0_710, %c15_711, %c0_712, %c0_713] : memref<7x16x16x64xf32, #tpu.memory_space<vmem>>, vector<1x1x16x64xf32>
    %860 = vector.shape_cast %859 : vector<1x1x16x64xf32> to vector<16x64xf32>
    %861 = arith.mulf %858, %860 : vector<16x64xf32>
    %862 = arith.addf %832, %861 : vector<16x64xf32>
    %c1_714 = arith.constant 1 : index
    %c15_715 = arith.constant 15 : index
    %c0_716 = arith.constant 0 : index
    %c0_717 = arith.constant 0 : index
    %863 = vector.load %arg4[%c1_714, %c15_715, %c0_716, %c0_717] : memref<7x16x16x64xf32, #tpu.memory_space<vmem>>, vector<1x1x16x64xf32>
    %864 = vector.shape_cast %863 : vector<1x1x16x64xf32> to vector<16x64xf32>
    %865 = arith.mulf %858, %864 : vector<16x64xf32>
    %866 = arith.addf %836, %865 : vector<16x64xf32>
    %c2_718 = arith.constant 2 : index
    %c15_719 = arith.constant 15 : index
    %c0_720 = arith.constant 0 : index
    %c0_721 = arith.constant 0 : index
    %867 = vector.load %arg4[%c2_718, %c15_719, %c0_720, %c0_721] : memref<7x16x16x64xf32, #tpu.memory_space<vmem>>, vector<1x1x16x64xf32>
    %868 = vector.shape_cast %867 : vector<1x1x16x64xf32> to vector<16x64xf32>
    %869 = arith.mulf %858, %868 : vector<16x64xf32>
    %870 = arith.addf %840, %869 : vector<16x64xf32>
    %c3_722 = arith.constant 3 : index
    %c15_723 = arith.constant 15 : index
    %c0_724 = arith.constant 0 : index
    %c0_725 = arith.constant 0 : index
    %871 = vector.load %arg4[%c3_722, %c15_723, %c0_724, %c0_725] : memref<7x16x16x64xf32, #tpu.memory_space<vmem>>, vector<1x1x16x64xf32>
    %872 = vector.shape_cast %871 : vector<1x1x16x64xf32> to vector<16x64xf32>
    %873 = arith.mulf %858, %872 : vector<16x64xf32>
    %874 = arith.addf %844, %873 : vector<16x64xf32>
    %c4_726 = arith.constant 4 : index
    %c15_727 = arith.constant 15 : index
    %c0_728 = arith.constant 0 : index
    %c0_729 = arith.constant 0 : index
    %875 = vector.load %arg4[%c4_726, %c15_727, %c0_728, %c0_729] : memref<7x16x16x64xf32, #tpu.memory_space<vmem>>, vector<1x1x16x64xf32>
    %876 = vector.shape_cast %875 : vector<1x1x16x64xf32> to vector<16x64xf32>
    %877 = arith.mulf %858, %876 : vector<16x64xf32>
    %878 = arith.addf %848, %877 : vector<16x64xf32>
    %c5_730 = arith.constant 5 : index
    %c15_731 = arith.constant 15 : index
    %c0_732 = arith.constant 0 : index
    %c0_733 = arith.constant 0 : index
    %879 = vector.load %arg4[%c5_730, %c15_731, %c0_732, %c0_733] : memref<7x16x16x64xf32, #tpu.memory_space<vmem>>, vector<1x1x16x64xf32>
    %880 = vector.shape_cast %879 : vector<1x1x16x64xf32> to vector<16x64xf32>
    %881 = arith.mulf %858, %880 : vector<16x64xf32>
    %882 = arith.addf %852, %881 : vector<16x64xf32>
    %c6_734 = arith.constant 6 : index
    %c15_735 = arith.constant 15 : index
    %c0_736 = arith.constant 0 : index
    %c0_737 = arith.constant 0 : index
    %883 = vector.load %arg4[%c6_734, %c15_735, %c0_736, %c0_737] : memref<7x16x16x64xf32, #tpu.memory_space<vmem>>, vector<1x1x16x64xf32>
    %884 = vector.shape_cast %883 : vector<1x1x16x64xf32> to vector<16x64xf32>
    %885 = arith.mulf %858, %884 : vector<16x64xf32>
    %886 = arith.addf %856, %885 : vector<16x64xf32>
    %cst_738 = arith.constant dense<0.000000e+00> : vector<64xf32>
    %887 = vector.multi_reduction <add>, %862, %cst_738 [0] : vector<16x64xf32> to vector<64xf32>
    %888 = vector.shape_cast %887 : vector<64xf32> to vector<1x64xf32>
    %cst_739 = arith.constant dense<0.000000e+00> : vector<64xf32>
    %889 = vector.multi_reduction <add>, %866, %cst_739 [0] : vector<16x64xf32> to vector<64xf32>
    %890 = vector.shape_cast %889 : vector<64xf32> to vector<1x64xf32>
    %cst_740 = arith.constant dense<0.000000e+00> : vector<64xf32>
    %891 = vector.multi_reduction <add>, %870, %cst_740 [0] : vector<16x64xf32> to vector<64xf32>
    %892 = vector.shape_cast %891 : vector<64xf32> to vector<1x64xf32>
    %cst_741 = arith.constant dense<0.000000e+00> : vector<64xf32>
    %893 = vector.multi_reduction <add>, %874, %cst_741 [0] : vector<16x64xf32> to vector<64xf32>
    %894 = vector.shape_cast %893 : vector<64xf32> to vector<1x64xf32>
    %cst_742 = arith.constant dense<0.000000e+00> : vector<64xf32>
    %895 = vector.multi_reduction <add>, %878, %cst_742 [0] : vector<16x64xf32> to vector<64xf32>
    %896 = vector.shape_cast %895 : vector<64xf32> to vector<1x64xf32>
    %cst_743 = arith.constant dense<0.000000e+00> : vector<64xf32>
    %897 = vector.multi_reduction <add>, %882, %cst_743 [0] : vector<16x64xf32> to vector<64xf32>
    %898 = vector.shape_cast %897 : vector<64xf32> to vector<1x64xf32>
    %cst_744 = arith.constant dense<0.000000e+00> : vector<64xf32>
    %899 = vector.multi_reduction <add>, %886, %cst_744 [0] : vector<16x64xf32> to vector<64xf32>
    %900 = vector.shape_cast %899 : vector<64xf32> to vector<1x64xf32>
    %cst_745 = arith.constant 0.000000e+00 : f32
    %901 = vector.broadcast %cst_745 : f32 to vector<1x64xf32>
    %902 = tpu.concatenate %888, %890, %892, %894, %896, %898, %900, %901 in 0 : vector<1x64xf32>, vector<1x64xf32>, vector<1x64xf32>, vector<1x64xf32>, vector<1x64xf32>, vector<1x64xf32>, vector<1x64xf32>, vector<1x64xf32> -> vector<8x64xf32>
    %cst_746 = arith.constant dense<0.000000e+00> : vector<8xf32>
    %903 = vector.multi_reduction <add>, %902, %cst_746 [1] : vector<8x64xf32> to vector<8xf32>
    %904 = vector.shape_cast %903 : vector<8xf32> to vector<8x1xf32>
    %c0_747 = arith.constant 0 : index
    %c0_748 = arith.constant 0 : index
    %905 = vector.load %arg7[%c0_747, %c0_748] : memref<8x1xf32, #tpu.memory_space<vmem>>, vector<8x1xf32>
    %906 = arith.addf %904, %905 : vector<8x1xf32>
    %907 = vector.shape_cast %906 : vector<8x1xf32> to vector<1x8x1xf32>
    %c0_749 = arith.constant 0 : index
    %c0_750 = arith.constant 0 : index
    %c0_751 = arith.constant 0 : index
    %908 = vector.load %arg8[%c0_749, %c0_750, %c0_751] : memref<1x8x1xf32, #tpu.memory_space<vmem>>, vector<1x8x1xf32>
    tpu.vector_store %arg8[%c0_749, %c0_750, %c0_751], %907 {strides = array<i32>} : memref<1x8x1xf32, #tpu.memory_space<vmem>>, vector<1x8x1xf32>,
    return
  }
  func.func @transform_0(%arg0: i32) -> (i32, i32, i32) {
    %c0_i32 = arith.constant 0 : i32
    %c0_i32_0 = arith.constant 0 : i32
    %c0_i32_1 = arith.constant 0 : i32
    return %arg0, %c0_i32, %c0_i32_0 : i32, i32, i32
  }
  func.func @transform_1(%arg0: i32) -> (i32, i32) {
    %c0_i32 = arith.constant 0 : i32
    %c0_i32_0 = arith.constant 0 : i32
    %c0_i32_1 = arith.constant 0 : i32
    return %c0_i32, %c0_i32_0 : i32, i32
  }
  func.func @transform_2(%arg0: i32) -> (i32, i32, i32) {
    %c0_i32 = arith.constant 0 : i32
    %c0_i32_0 = arith.constant 0 : i32
    %c0_i32_1 = arith.constant 0 : i32
    %c0_i32_2 = arith.constant 0 : i32
    return %c0_i32, %c0_i32_0, %c0_i32_1 : i32, i32, i32
  }
  func.func @transform_3(%arg0: i32) -> (i32, i32, i32, i32) {
    %c0_i32 = arith.constant 0 : i32
    %c0_i32_0 = arith.constant 0 : i32
    %c0_i32_1 = arith.constant 0 : i32
    %c0_i32_2 = arith.constant 0 : i32
    %c0_i32_3 = arith.constant 0 : i32
    return %c0_i32, %c0_i32_0, %c0_i32_1, %c0_i32_2 : i32, i32, i32, i32
  }
  func.func @transform_4(%arg0: i32) -> (i32, i32) {
    %c0_i32 = arith.constant 0 : i32
    %c0_i32_0 = arith.constant 0 : i32
    %c0_i32_1 = arith.constant 0 : i32
    return %c0_i32, %c0_i32_0 : i32, i32
  }
  func.func @transform_5(%arg0: i32) -> (i32, i32) {
    %c0_i32 = arith.constant 0 : i32
    %c0_i32_0 = arith.constant 0 : i32
    %c0_i32_1 = arith.constant 0 : i32
    return %c0_i32, %c0_i32_0 : i32, i32
  }
  func.func @transform_6(%arg0: i32) -> (i32, i32) {
    %c0_i32 = arith.constant 0 : i32
    %c0_i32_0 = arith.constant 0 : i32
    %c0_i32_1 = arith.constant 0 : i32
    return %c0_i32, %c0_i32_0 : i32, i32
  }
  func.func @transform_7(%arg0: i32) -> (i32, i32, i32) {
    %c0_i32 = arith.constant 0 : i32
    %c0_i32_0 = arith.constant 0 : i32
    %c0_i32_1 = arith.constant 0 : i32
    return %arg0, %c0_i32, %c0_i32_0 : i32, i32, i32
  }
}

</mosaic_0001>

<bundles_post_ra>
// kernel: conv_nn_forward.1
= control target key start
LH: loop header
LB: loop body
LE: loop exit
PB: predicated region body
PF: predicated region fallthrough
CT: control target
= control target key end

     0   :  { %s8871_s24 = smov 0   ;;  %s13599_s0 = inlined_call_operand.vmem [shape: bf16[2,1024,54], index: 0, kind: input, shape index: {}]   ;;  %s13600_s1 = inlined_call_operand.vmem [shape: bf16[54,128], index: 1, kind: input, shape index: {}]   ;;  %s13601_s2 = inlined_call_operand.vmem [shape: bf16[3,128,128], index: 2, kind: input, shape index: {}]   ;;  %s13602_s3 = inlined_call_operand.vmem [shape: f32[7,16,16,64], index: 3, kind: input, shape index: {}]   ;;  %s13603_s4 = inlined_call_operand.vmem [shape: f32[1,64], index: 4, kind: input, shape index: {}]   ;;  %s13604_s5 = inlined_call_operand.vmem [shape: f32[1,64], index: 5, kind: input, shape index: {}]   ;;  %s13605_s6 = inlined_call_operand.vmem [shape: f32[8,1], index: 6, kind: input, shape index: {}]   ;;  %s13606_s7 = inlined_call_operand.vmem [shape: f32[2,8,1], index: 7, kind: output, shape index: {}]  }
   0x1 LB: > { %s7258_s25 = sadd.s32 4294967295, %s8824_s24   ;;  %p7262_p0 = scmp.ge.s32.totalorder %s8824_s24, 1  ;;  %s8824_s24 = sphi %s8871_s24, %s17_s24  }
   0x2   : > { %p237_p1 = scmp.lt.s32.totalorder %s8824_s24, 3 }
   0x4   : > { %p238_p2 = pnand %p7262_p0, %p237_p1 }
   0x6   : > { %241 = sbr.rel (%p238_p2) target bundleno = 1839 (0x72f), region = 48 }
   0xb   : > { %v289_v0 = vld [vmem:[%s13600_s1 + $0x18] sm:$0x7]  ;;  %vm392_vm0 = vcmask 1042432   ;;  %p268_p3 = scmp.lt.s32.totalorder %s7258_s25, 1  ;;  %v8433_v4 = vld [vmem:[%s13600_s1 + $0x10] sm:$0xff]  ;;  %v8432_v5 = vld [vmem:[%s13600_s1 + $0x8] sm:$0xff] }
   0xc   : > { %v359_v1 = vunpack.c.l.b16 %v289_v0  ;;  %v8431_v6 = vld [vmem:[%s13600_s1] sm:$0xff]  ;;  %vm367_vm1 = vcmask 441344   ;;  %s8826_s15 = smov 64   ;;  %vm525_vm2 = vcmask 523264   ;;  %vm659_vm10 = vcmask 1046528   ;;  %s8827_s26 = smov 96  }
   0xd   : > { %s13846_s25 = smov (!%p268_p3, %s7258_s25), 1  ;;  %vm618_vm15 = vcmask 1040384   ;;  %s8828_s27 = smov 32  }
   0xe   : > { %v363_v2 = vpack.c.b16 %v359_v1, %v359_v1  ;;  %s8430_s9 = sshll.u32 %s13846_s25, 9  ;;  %s7265_s20 = sshll.u32 %s13846_s25, 3 }
   0xf   : > { %s8898_s14 = scalar_lea.vmem %s13599_s0, %s8430_s9  ;;  %s276_s23 = scalar_lea.vmem %s13606_s7, %s7265_s20 }
  0x10   : > { %v394_v3 = vsel %vm392_vm0, %v363_v2, 0  ;;  %v8434_v7 = vld [vmem:[%s8898_s14] sm:$0xff]  ;;  %v8435_v11 = vld [vmem:[%s8898_s14 + $0x8] sm:$0xff]  ;;  %v8436_v15 = vld [vmem:[%s8898_s14 + $0x10] sm:$0xff] }
  0x11   : > { %400 = vmatpush.bf16.msra.mxu0 %v394_v3  ;;  %851 = vmatpush.bf16.msra.mxu1 %v394_v3  ;;  %v8442_v8 = vld [vmem:[%s8898_s14 + $0x40] sm:$0xff]  ;;  %v8443_v12 = vld [vmem:[%s8898_s14 + $0x48] sm:$0xff]  ;;  %v8444_v16 = vld [vmem:[%s8898_s14 + $0x50] sm:$0xff] }
  0x12   : > { %1297 = vmatpush.bf16.msra.mxu2 %v394_v3  ;;  %1743 = vmatpush.bf16.msra.mxu3 %v394_v3  ;;  %v8450_v9 = vld [vmem:[%s8898_s14 + $0x80] sm:$0xff]  ;;  %v8451_v13 = vld [vmem:[%s8898_s14 + $0x88] sm:$0xff]  ;;  %v8452_v17 = vld [vmem:[%s8898_s14 + $0x90] sm:$0xff] }
  0x13   : > { %v8458_v10 = vld [vmem:[%s8898_s14 + $0xc0] sm:$0xff]  ;;  %v8459_v14 = vld [vmem:[%s8898_s14 + $0xc8] sm:$0xff]  ;;  %v8460_v18 = vld [vmem:[%s8898_s14 + $0xd0] sm:$0xff] }
  0x14   : > { %v8437_v19 = vld [vmem:[%s8898_s14 + $0x18] sm:$0xff]  ;;  %v8438_v23 = vld [vmem:[%s8898_s14 + $0x20] sm:$0xff]  ;;  %v8439_v27 = vld [vmem:[%s8898_s14 + $0x28] sm:$0xff] }
  0x15   : > { %401 = vmatpush.bf16.msra.mxu0 %v8433_v4  ;;  %852 = vmatpush.bf16.msra.mxu1 %v8433_v4  ;;  %v8445_v20 = vld [vmem:[%s8898_s14 + $0x58] sm:$0xff]  ;;  %v8446_v24 = vld [vmem:[%s8898_s14 + $0x60] sm:$0xff]  ;;  %v8447_v28 = vld [vmem:[%s8898_s14 + $0x68] sm:$0xff] }
  0x16   : > { %1298 = vmatpush.bf16.msra.mxu2 %v8433_v4  ;;  %1744 = vmatpush.bf16.msra.mxu3 %v8433_v4  ;;  %v8453_v21 = vld [vmem:[%s8898_s14 + $0x98] sm:$0xff]  ;;  %v8454_v25 = vld [vmem:[%s8898_s14 + $0xa0] sm:$0xff]  ;;  %v8455_v29 = vld [vmem:[%s8898_s14 + $0xa8] sm:$0xff] }
  0x17   : > { %v8461_v22 = vld [vmem:[%s8898_s14 + $0xd8] sm:$0xff]  ;;  %v8462_v26 = vld [vmem:[%s8898_s14 + $0xe0] sm:$0xff]  ;;  %v8463_v30 = vld [vmem:[%s8898_s14 + $0xe8] sm:$0xff] }
  0x18   : > { %v8440_v31 = vld [vmem:[%s8898_s14 + $0x30] sm:$0xff]  ;;  %v8441_v35 = vld [vmem:[%s8898_s14 + $0x38] sm:$0xff]  ;;  %v8466_v41 = vld [vmem:[%s8898_s14 + $0x100] sm:$0xff] }
  0x19   : > { %402 = vmatpush.bf16.msra.mxu0 %v8432_v5  ;;  %853 = vmatpush.bf16.msra.mxu1 %v8432_v5  ;;  %v8456_v32 = vld [vmem:[%s8898_s14 + $0xb0] sm:$0xff]  ;;  %v8457_v36 = vld [vmem:[%s8898_s14 + $0xb8] sm:$0xff]  ;;  %v8474_v42 = vld [vmem:[%s8898_s14 + $0x140] sm:$0xff] }
  0x1a   : > { %1299 = vmatpush.bf16.msra.mxu2 %v8432_v5  ;;  %1745 = vmatpush.bf16.msra.mxu3 %v8432_v5  ;;  %v8464_v33 = vld [vmem:[%s8898_s14 + $0xf0] sm:$0xff]  ;;  %v8449_v37 = vld [vmem:[%s8898_s14 + $0x78] sm:$0xff]  ;;  %v8467_v49 = vld [vmem:[%s8898_s14 + $0x108] sm:$0xff] }
  0x1b   : > { %v8448_v34 = vld [vmem:[%s8898_s14 + $0x70] sm:$0xff]  ;;  %v8465_v38 = vld [vmem:[%s8898_s14 + $0xf8] sm:$0xff]  ;;  %v8475_v50 = vld [vmem:[%s8898_s14 + $0x148] sm:$0xff] }
  0x1c   : > { %v8468_v60 = vld [vmem:[%s8898_s14 + $0x110] sm:$0xff] }
  0x1d   : > { %403 = vmatpush.bf16.msra.mxu0 %v8431_v6  ;;  %854 = vmatpush.bf16.msra.mxu1 %v8431_v6  ;;  %v8476_v61 = vld [vmem:[%s8898_s14 + $0x150] sm:$0xff] }
  0x1e   : > { %1300 = vmatpush.bf16.msra.mxu2 %v8431_v6  ;;  %1746 = vmatpush.bf16.msra.mxu3 %v8431_v6 }
  0x20   : > { %7310 = vmatmul.msk.bf16.vlgmr.msra.gmra.mxu0 %vm367_vm1, %v8434_v7  ;;  %7358 = vmatmul.msk.bf16.vlgmr.msra.gmra.mxu1 %vm367_vm1, %v8442_v8 }
  0x21   : > { %2189 = vmatpush.bf16.msrb.mxu0 %v394_v3  ;;  %2635 = vmatpush.bf16.msrb.mxu1 %v394_v3 }
  0x22   : > { %7406 = vmatmul.msk.bf16.vlgmr.msra.gmra.mxu2 %vm367_vm1, %v8450_v9  ;;  %7454 = vmatmul.msk.bf16.vlgmr.msra.gmra.mxu3 %vm367_vm1, %v8458_v10 }
  0x23   : > { %3081 = vmatpush.bf16.msrb.mxu2 %v394_v3  ;;  %3527 = vmatpush.bf16.msrb.mxu3 %v394_v3 }
  0x25   : > { %2190 = vmatpush.bf16.msrb.mxu0 %v8433_v4  ;;  %2636 = vmatpush.bf16.msrb.mxu1 %v8433_v4 }
  0x27   : > { %3082 = vmatpush.bf16.msrb.mxu2 %v8433_v4  ;;  %3528 = vmatpush.bf16.msrb.mxu3 %v8433_v4 }
  0x29   : > { %2191 = vmatpush.bf16.msrb.mxu0 %v8432_v5  ;;  %2637 = vmatpush.bf16.msrb.mxu1 %v8432_v5 }
  0x2b   : > { %3083 = vmatpush.bf16.msrb.mxu2 %v8432_v5  ;;  %3529 = vmatpush.bf16.msrb.mxu3 %v8432_v5 }
  0x2d   : > { %2192 = vmatpush.bf16.msrb.mxu0 %v8431_v6  ;;  %2638 = vmatpush.bf16.msrb.mxu1 %v8431_v6 }
  0x2f   : > { %3084 = vmatpush.bf16.msrb.mxu2 %v8431_v6  ;;  %3530 = vmatpush.bf16.msrb.mxu3 %v8431_v6 }
  0x30   : > { %7311 = vmatmul.msk.bf16.gmra.mxu0 %vm367_vm1, %v8435_v11  ;;  %7359 = vmatmul.msk.bf16.gmra.mxu1 %vm367_vm1, %v8443_v12  ;;  %v8477_v12 = vld [vmem:[%s8898_s14 + $0x158] sm:$0xff] }
  0x32   : > { %7407 = vmatmul.msk.bf16.gmra.mxu2 %vm367_vm1, %v8451_v13  ;;  %7455 = vmatmul.msk.bf16.gmra.mxu3 %vm367_vm1, %v8459_v14  ;;  %v8469_v13 = vld [vmem:[%s8898_s14 + $0x118] sm:$0xff] }
  0x40   : > { %7312 = vmatmul.msk.bf16.gmra.mxu0 %vm367_vm1, %v8436_v15  ;;  %7360 = vmatmul.msk.bf16.gmra.mxu1 %vm367_vm1, %v8444_v16 }
  0x42   : > { %7408 = vmatmul.msk.bf16.gmra.mxu2 %vm367_vm1, %v8452_v17  ;;  %7456 = vmatmul.msk.bf16.gmra.mxu3 %vm367_vm1, %v8460_v18 }
  0x50   : > { %7313 = vmatmul.msk.bf16.gmra.mxu0 %vm367_vm1, %v8437_v19  ;;  %7361 = vmatmul.msk.bf16.gmra.mxu1 %vm367_vm1, %v8445_v20 }
  0x52   : > { %7409 = vmatmul.msk.bf16.gmra.mxu2 %vm367_vm1, %v8453_v21  ;;  %7457 = vmatmul.msk.bf16.gmra.mxu3 %vm367_vm1, %v8461_v22 }
  0x60   : > { %7314 = vmatmul.msk.bf16.gmra.mxu0 %vm367_vm1, %v8438_v23  ;;  %7362 = vmatmul.msk.bf16.gmra.mxu1 %vm367_vm1, %v8446_v24 }
  0x62   : > { %7410 = vmatmul.msk.bf16.gmra.mxu2 %vm367_vm1, %v8454_v25  ;;  %7458 = vmatmul.msk.bf16.gmra.mxu3 %vm367_vm1, %v8462_v26 }
  0x70   : > { %7315 = vmatmul.msk.bf16.gmra.mxu0 %vm367_vm1, %v8439_v27  ;;  %7363 = vmatmul.msk.bf16.gmra.mxu1 %vm367_vm1, %v8447_v28  ;;  %v8470_v27 = vld [vmem:[%s8898_s14 + $0x120] sm:$0xff] }
  0x72   : > { %7411 = vmatmul.msk.bf16.gmra.mxu2 %vm367_vm1, %v8455_v29  ;;  %7459 = vmatmul.msk.bf16.gmra.mxu3 %vm367_vm1, %v8463_v30 }
  0x80   : > { %7316 = vmatmul.msk.bf16.gmra.mxu0 %vm367_vm1, %v8440_v31  ;;  %7364 = vmatmul.msk.bf16.gmra.mxu1 %vm367_vm1, %v8448_v34 }
  0x82   : > { %7412 = vmatmul.msk.bf16.gmra.mxu2 %vm367_vm1, %v8456_v32  ;;  %7460 = vmatmul.msk.bf16.gmra.mxu3 %vm367_vm1, %v8464_v33 }
  0x90   : > { %7317 = vmatmul.msk.bf16.gmra.mxu0 %vm367_vm1, %v8441_v35  ;;  %7365 = vmatmul.msk.bf16.gmra.mxu1 %vm367_vm1, %v8449_v37 }
  0x92   : > { %7413 = vmatmul.msk.bf16.gmra.mxu2 %vm367_vm1, %v8457_v36  ;;  %7461 = vmatmul.msk.bf16.gmra.mxu3 %vm367_vm1, %v8465_v38 }
  0x9d   : > { %v8964_v39 = vpop.f32.mrf.mxu0  ;;  %v8966_v40 = vpop.f32.mrf.mxu1 }
  0x9e   : > { %912 = vrot.lane.b32.xlu1 %v8966_v40, %s8826_s15  ;;  %461 = vrot.lane.b32.xlu0 %v8964_v39, %s8826_s15 }
  0xa0   : > { %7502 = vmatmul.msk.bf16.vlgmr.msrb.gmra.mxu0 %vm367_vm1, %v8466_v41  ;;  %7550 = vmatmul.msk.bf16.vlgmr.msrb.gmra.mxu1 %vm367_vm1, %v8474_v42 }
  0xa5   : > { %v8976_v43 = vpop.f32.mrf.mxu2  ;;  %v8978_v44 = vpop.f32.mrf.mxu3 }
  0xa6   : > { %1358 = vrot.lane.b32.xlu2 %v8976_v43, %s8826_s15  ;;  %v8982_v45 = vpop.f32.mrf.mxu0  ;;  %1804 = vrot.lane.b32.xlu0 %v8978_v44, %s8826_s15  ;;  %v8986_v46 = vpop.f32.mrf.mxu1 }
  0xad   : > { %v8988_v47 = vpop.f32.mrf.mxu2  ;;  %v8990_v48 = vpop.f32.mrf.mxu3 }
  0xae   : > { %1806 = vrot.lane.b32.xlu1 %v8990_v48, %s8826_s15  ;;  %914 = vrot.lane.b32.xlu2 %v8986_v46, %s8826_s15  ;;  %v9000_v51 = vpop.f32.mrf.mxu0  ;;  %v9014_v54 = vpop.f32.mrf.mxu1 }
  0xaf   : > { %463 = vrot.lane.b32.xlu0 %v8982_v45, %s8826_s15 }
  0xb0   : > { %7503 = vmatmul.msk.bf16.gmra.mxu0 %vm367_vm1, %v8467_v49  ;;  %7551 = vmatmul.msk.bf16.gmra.mxu1 %vm367_vm1, %v8475_v50  ;;  %v9181_v49 = vld [vmem:[%s13603_s4] ss:$0 sm:$0xff] }
  0xb5   : > { %v9004_v52 = vpop.f32.mrf.mxu2  ;;  %v9006_v53 = vpop.f32.mrf.mxu3 }
  0xb6   : > { %1808 = vrot.lane.b32.xlu2 %v9006_v53, %s8826_s15  ;;  %465 = vrot.lane.b32.xlu1 %v9000_v51, %s8826_s15  ;;  %v9016_v55 = vpop.f32.mrf.mxu0  ;;  %v9026_v57 = vpop.f32.mrf.mxu1 }
  0xb7   : > { %1360 = vrot.lane.b32.xlu0 %v8988_v47, %s8826_s15 }
  0xbd   : > { %v9018_v56 = vpop.f32.mrf.mxu2  ;;  %v9030_v59 = vpop.f32.mrf.mxu3 }
  0xbe   : > { %1364 = vrot.lane.b32.xlu2 %v9018_v56, %s8826_s15  ;;  %1362 = vrot.lane.b32.xlu1 %v9004_v52, %s8826_s15  ;;  %v9028_v58 = vpop.f32.mrf.mxu0  ;;  %v9042_v62 = vpop.f32.mrf.mxu1 }
  0xbf   : > { %916 = vrot.lane.b32.xlu0 %v9014_v54, %s8826_s15 }
  0xc0   : > { %7504 = vmatmul.msk.bf16.gmra.mxu0 %vm367_vm1, %v8468_v60  ;;  %7552 = vmatmul.msk.bf16.gmra.mxu1 %vm367_vm1, %v8476_v61 }
  0xc5   : > { %v9044_v63 = vpop.f32.mrf.mxu2  ;;  %v9052_v0 = vpop.f32.mrf.mxu3 }
  0xc6   : > { %467 = vrot.lane.b32.xlu1 %v9016_v55, %s8826_s15  ;;  %469 = vrot.lane.b32.xlu2 %v9028_v58, %s8826_s15  ;;  %v9054_v1 = vpop.f32.mrf.mxu0  ;;  %v9056_v2 = vpop.f32.mrf.mxu1 }
  0xc7   : > { %1810 = vrot.lane.b32.xlu0 %v9030_v59, %s8826_s15 }
  0xcd   : > { %v9064_v3 = vpop.f32.mrf.mxu2  ;;  %v9066_v4 = vpop.f32.mrf.mxu3 }
  0xce   : > { %918 = vrot.lane.b32.xlu1 %v9026_v57, %s8826_s15  ;;  %920 = vrot.lane.b32.xlu2 %v9042_v62, %s8826_s15  ;;  %v9068_v5 = vpop.f32.mrf.mxu0  ;;  %v9076_v6 = vpop.f32.mrf.mxu1 }
  0xcf   : > { %1366 = vrot.lane.b32.xlu0 %v9044_v63, %s8826_s15 }
  0xd0   : > { %7553 = vmatmul.msk.bf16.gmra.mxu1 %vm367_vm1, %v8477_v12  ;;  %7505 = vmatmul.msk.bf16.gmra.mxu0 %vm367_vm1, %v8469_v13 }
  0xd5   : > { %v9078_v7 = vpop.f32.mrf.mxu2  ;;  %v9080_v8 = vpop.f32.mrf.mxu3 }
  0xd6   : > { %1812 = vrot.lane.b32.xlu1 %v9052_v0, %s8826_s15  ;;  %471 = vrot.lane.b32.xlu2 %v9054_v1, %s8826_s15  ;;  %v9088_v9 = vpop.f32.mrf.mxu0  ;;  %v9090_v10 = vpop.f32.mrf.mxu1 }
  0xd7   : > { %922 = vrot.lane.b32.xlu0 %v9056_v2, %s8826_s15 }
  0xdd   : > { %v9092_v11 = vpop.f32.mrf.mxu2  ;;  %v9106_v15 = vpop.f32.mrf.mxu3 }
  0xde   : > { %1368 = vrot.lane.b32.xlu1 %v9064_v3, %s8826_s15  ;;  %1814 = vrot.lane.b32.xlu2 %v9066_v4, %s8826_s15  ;;  %v9104_v14 = vpop.f32.mrf.mxu0  ;;  %v9108_v16 = vpop.f32.mrf.mxu1 }
  0xdf   : > { %473 = vrot.lane.b32.xlu0 %v9068_v5, %s8826_s15 }
  0xe0   : > { %7506 = vmatmul.msk.bf16.gmra.mxu0 %vm367_vm1, %v8470_v27 }
  0xe5   : > { %v9116_v17 = vpop.f32.mrf.mxu2  ;;  %v9118_v18 = vpop.f32.mrf.mxu3 }
  0xe6   : > { %924 = vrot.lane.b32.xlu1 %v9076_v6, %s8826_s15  ;;  %1370 = vrot.lane.b32.xlu2 %v9078_v7, %s8826_s15  ;;  %13667 = vst [vmem:[#allocation4_spill] sm:$0xff] %v9118_v18  ;;  %v9120_v19 = vpop.f32.mrf.mxu0  ;;  %v9126_v20 = vpop.f32.mrf.mxu1 }
  0xe7   : > { %1816 = vrot.lane.b32.xlu0 %v9080_v8, %s8826_s15  ;;  %13668 = vst [vmem:[#allocation5_spill] sm:$0xff] %v9126_v20 }
  0xed   : > { %v9132_v22 = vpop.f32.mrf.mxu2  ;;  %v9136_v24 = vpop.f32.mrf.mxu3 }
  0xee   : > { %926 = vrot.lane.b32.xlu2 %v9090_v10, %s8826_s15  ;;  %475 = vrot.lane.b32.xlu1 %v9088_v9, %s8826_s15  ;;  %13669 = vst [vmem:[#allocation6_spill] sm:$0xff] %v9132_v22  ;;  %v9134_v23 = vpop.f32.mrf.mxu0  ;;  %v9144_v25 = vpop.f32.mrf.mxu1 }
  0xef   : > { %1372 = vrot.lane.b32.xlu0 %v9092_v11, %s8826_s15 }
  0xf5   : > { %v9150_v28 = vpop.f32.mrf.mxu2  ;;  %v9162_v33 = vpop.f32.mrf.mxu3 }
  0xf6   : > { %1818 = vrot.lane.b32.xlu1 %v9106_v15, %s8826_s15  ;;  %477 = vrot.lane.b32.xlu2 %v9104_v14, %s8826_s15  ;;  %13670 = vst [vmem:[#allocation7_spill] sm:$0xff] %v9150_v28  ;;  %v9156_v29 = vpop.f32.mrf.mxu0  ;;  %v9160_v31 = vpop.f32.mrf.mxu1 }
  0xf7   : > { %928 = vrot.lane.b32.xlu0 %v9108_v16, %s8826_s15  ;;  %13671 = vst [vmem:[#allocation8_spill] sm:$0xff] %v9160_v31 }
  0xf8   : > { %13672 = vst [vmem:[#allocation9_spill] sm:$0xff] %v9162_v33 }
  0xfd   : > { %v9184_v60 = vpop.f32.mrf.mxu2  ;;  %v9187_v61 = vpop.f32.mrf.mxu3 }
  0xfe   : > { %1374 = vrot.lane.b32.xlu1 %v9116_v17, %s8826_s15  ;;  %1820 = vrot.lane.b32.xlu2 %v9118_v18, %s8826_s15  ;;  %v9170_v34 = vpop.f32.mrf.mxu0  ;;  %v9175_v41 = vpop.f32.mrf.mxu1  ;;  %13675 = vst [vmem:[#allocation12_spill] sm:$0xff] %v9184_v60 }
  0xff   : > { %479 = vrot.lane.b32.xlu0 %v9120_v19, %s8826_s15  ;;  %13673 = vst [vmem:[#allocation10_spill] sm:$0xff] %v9170_v34 }
 0x100   : > { %v9130_v21 = vpop.permute.xlu2 %1358  ;;  %13674 = vst [vmem:[#allocation11_spill] sm:$0xff] %v9175_v41 }
 0x106   : > { %930 = vrot.lane.b32.xlu1 %v9126_v20, %s8826_s15  ;;  %1376 = vrot.lane.b32.xlu2 %v9132_v22, %s8826_s15 }
 0x107   : > { %1822 = vrot.lane.b32.xlu0 %v9136_v24, %s8826_s15 }
 0x108   : > { %v9146_v26 = vpop.permute.xlu2 %914 }
 0x10e   : > { %932 = vrot.lane.b32.xlu2 %v9144_v25, %s8826_s15  ;;  %481 = vrot.lane.b32.xlu1 %v9134_v23, %s8826_s15 }
 0x10f   : > { %1378 = vrot.lane.b32.xlu0 %v9150_v28, %s8826_s15 }
 0x110   : > { %v1809_v30 = vpop.permute.xlu2 %1808  ;;  %v462_v32 = vpop.permute.xlu0 %461 }
 0x111   : > { %v1854_v35 = vmax.f32 %v9006_v53, %v1809_v30  ;;  %v9173_v36 = vpop.permute.xlu1 %912 }
 0x113   : > { %v1869_v50 = vsel %vm525_vm2, %v1854_v35, -inf  ;;  %v9200_v35 = vpop.f32.mrf.mxu0 }
 0x114   : > { %13676 = vst [vmem:[#allocation13_spill] sm:$0xff] %v9200_v35 }
 0x116   : > { %1824 = vrot.lane.b32.xlu1 %v9162_v33, %s8826_s15  ;;  %483 = vrot.lane.b32.xlu2 %v9156_v29, %s8826_s15 }
 0x117   : > { %934 = vrot.lane.b32.xlu0 %v9160_v31, %s8826_s15 }
 0x118   : > { %v1365_v37 = vpop.permute.xlu2 %1364  ;;  %v1805_v38 = vpop.permute.xlu0 %1804 }
 0x119   : > { %v1852_v42 = vmax.f32 %v8978_v44, %v1805_v38 }
 0x11b   : > { %v1868_v53 = vsel %vm525_vm2, %v1852_v42, -inf }
 0x11c   : > { %v1870_v12 = vmax.f32 %v1868_v53, %v1869_v50  ;;  %v9204_v50 = vpop.f32.mrf.mxu1  ;;  %v9206_v53 = vpop.f32.mrf.mxu2 }
 0x11d   : > { %13677 = vst [vmem:[#allocation14_spill] sm:$0xff] %v9204_v50 }
 0x11e   : > { %1380 = vrot.lane.b32.xlu1 %v9184_v60, %s8826_s15  ;;  %1826 = vrot.lane.b32.xlu2 %v9187_v61, %s8826_s15  ;;  %v1896_v44 = vadd.f32 %v9181_v49, %v1870_v12  ;;  %13678 = vst [vmem:[#allocation15_spill] sm:$0xff] %v9206_v53  ;;  %v9208_v60 = vpop.f32.mrf.mxu3  ;;  %v8471_v12 = vld [vmem:[%s8898_s14 + $0x128] sm:$0xff] }
 0x11f   : > { %485 = vrot.lane.b32.xlu0 %v9170_v34, %s8826_s15  ;;  %13679 = vst [vmem:[#allocation16_spill] sm:$0xff] %v9208_v60  ;;  %v509_v34 = vmax.f32 %v8964_v39, %v462_v32  ;;  %7507 = vmatmul.msk.bf16.gmra.mxu0 %vm367_vm1, %v8471_v12  ;;  %v9236_v12 = vld [vmem:[%s13603_s4] ss:$0 sm:$0xff] }
 0x120   : > { %v9196_v13 = vpop.permute.xlu1 %1806  ;;  %v9198_v27 = vpop.permute.xlu2 %469  ;;  %v1912_v30 = vmin.f32 %v1896_v44, 0.0  ;;  %vm1904_vm3 = vcmp.gt.f32.partialorder %v1896_v44, 0.0 }
 0x121   : > { %v9202_v38 = vpop.permute.xlu0 %463 }
 0x122   : > { %v1920_v42 = vmul.f32 1.442695, %v1912_v30  ;;  %v1409_v30 = vmax.f32 %v9018_v56, %v1365_v37  ;;  %v526_v56 = vsel %vm525_vm2, %v509_v34, -inf }
 0x124   : > { %8618 = vpow2.f32 %v1920_v42 }
 0x126   : > { %936 = vrot.lane.b32.xlu1 %v9175_v41, %s8826_s15  ;;  %1382 = vrot.lane.b32.xlu2 %v9206_v53, %s8826_s15  ;;  %v9223_v41 = vpop.f32.mrf.mxu0  ;;  %v9228_v53 = vld [vmem:[%s13603_s4] ss:$0 sm:$0xff] }
 0x127   : > { %1828 = vrot.lane.b32.xlu0 %v9208_v60, %s8826_s15 }
 0x128   : > { %v466_v22 = vpop.permute.xlu1 %465  ;;  %v9219_v31 = vpop.permute.xlu2 %920 }
 0x129   : > { %v511_v42 = vmax.f32 %v9000_v51, %v466_v22  ;;  %v1361_v33 = vpop.permute.xlu0 %1360  ;;  %v9238_v51 = vpop.f32.mrf.mxu1  ;;  %v1426_v22 = vsel %vm525_vm2, %v1409_v30, -inf  ;;  %v1406_v30 = vmax.f32 %v8976_v43, %v9130_v21 }
 0x12a   : > { %v1407_v39 = vmax.f32 %v8988_v47, %v1361_v33  ;;  %v8619_v32 = vpop.eup %8618  ;;  %13680 = vst [vmem:[#allocation17_spill] sm:$0xff] %v9238_v51  ;;  %v9245_v33 = vpop.f32.mrf.mxu2 }
 0x12b   : > { %v527_v37 = vsel %vm525_vm2, %v511_v42, -inf  ;;  %v7462_v18 = vadd.f32 -1.0, %v8619_v32  ;;  %13681 = vst [vmem:[#allocation18_spill] sm:$0xff] %v9245_v33 }
 0x12c   : > { %v528_v60 = vmax.f32 %v526_v56, %v527_v37  ;;  %v1425_v20 = vsel %vm525_vm2, %v1407_v39, -inf  ;;  %v1422_v56 = vsel %vm525_vm2, %v1406_v30, -inf }
 0x12d   : > { %v1427_v28 = vmax.f32 %v1425_v20, %v1426_v22  ;;  %v9251_v34 = vsel %vm1904_vm3, %v1896_v44, %v7462_v18  ;;  %v960_v20 = vmax.f32 %v8966_v40, %v9173_v36  ;;  %v9275_v40 = vld [vmem:[%s13603_s4] ss:$0 sm:$0xff] }
 0x12e   : > { %v9243_v47 = vadd.f32 %v9228_v53, %v528_v60  ;;  %938 = vrot.lane.b32.xlu2 %v9204_v50, %s8826_s15  ;;  %487 = vrot.lane.b32.xlu1 %v9200_v35, %s8826_s15  ;;  %2057 = vst.msk [vmem:[#allocation2 + $0xd0] sm:$0xff] %vm525_vm2, %v9251_v34  ;;  %v9277_v36 = vpop.f32.mrf.mxu0 }
 0x12f   : > { %v9256_v42 = vadd.f32 %v9236_v12, %v1427_v28  ;;  %1384 = vrot.lane.b32.xlu0 %v9245_v33, %s8826_s15  ;;  %13682 = vst [vmem:[#allocation19_spill] sm:$0xff] %v9277_v36  ;;  %v976_v50 = vsel %vm525_vm2, %v960_v20, -inf  ;;  %v8472_v20 = vld [vmem:[%s8898_s14 + $0x130] sm:$0xff] }
 0x130   : > { %v570_v60 = vmin.f32 %v9243_v47, 0.0  ;;  %v1363_v39 = vpop.permute.xlu1 %1362  ;;  %v9265_v18 = vpop.permute.xlu2 %471  ;;  %7508 = vmatmul.msk.bf16.gmra.mxu0 %vm367_vm1, %v8472_v20  ;;  %vm562_vm4 = vcmp.gt.f32.partialorder %v9243_v47, 0.0 }
 0x131   : > { %v1467_v44 = vmin.f32 %v9256_v42, 0.0  ;;  %v1408_v43 = vmax.f32 %v9004_v52, %v1363_v39  ;;  %v917_v21 = vpop.permute.xlu0 %916  ;;  %v9280_v52 = vpop.f32.mrf.mxu3  ;;  %vm1459_vm5 = vcmp.gt.f32.partialorder %v9256_v42, 0.0 }
 0x132   : > { %v578_v28 = vmul.f32 1.442695, %v570_v60  ;;  %v962_v32 = vmax.f32 %v9014_v54, %v917_v21  ;;  %13683 = vst [vmem:[#allocation20_spill] sm:$0xff] %v9280_v52  ;;  %v9283_v39 = vpop.f32.mrf.mxu1  ;;  %v9311_v35 = vpop.f32.mrf.mxu2 }
 0x133   : > { %v1476_v37 = vmul.f32 1.442695, %v1467_v44  ;;  %v1423_v22 = vsel %vm525_vm2, %v1408_v43, -inf  ;;  %v1853_v44 = vmax.f32 %v8990_v48, %v9196_v13  ;;  %v510_v43 = vmax.f32 %v8982_v45, %v9202_v38 }
 0x134   : > { %8620 = vpow2.f32 %v578_v28  ;;  %v1424_v60 = vmax.f32 %v1422_v56, %v1423_v22  ;;  %v977_v54 = vsel %vm525_vm2, %v962_v32, -inf }
 0x135   : > { %8622 = vpow2.f32 %v1476_v37  ;;  %v978_v30 = vmax.f32 %v976_v50, %v977_v54  ;;  %v1871_v37 = vsel %vm525_vm2, %v1853_v44, -inf  ;;  %v529_v22 = vsel %vm525_vm2, %v510_v43, -inf }
 0x136   : > { %v9290_v21 = vadd.f32 %v9236_v12, %v1424_v60  ;;  %1830 = vrot.lane.b32.xlu1 %v9280_v52, %s8826_s15  ;;  %489 = vrot.lane.b32.xlu2 %v9223_v41, %s8826_s15 }
 0x137   : > { %v9298_v50 = vadd.f32 %v9275_v40, %v978_v30  ;;  %940 = vrot.lane.b32.xlu0 %v9238_v51, %s8826_s15 }
 0x138   : > { %v1466_v48 = vmin.f32 %v9290_v21, 0.0  ;;  %v468_v13 = vpop.permute.xlu1 %467  ;;  %v9303_v45 = vpop.permute.xlu2 %1814  ;;  %vm1458_vm6 = vcmp.gt.f32.partialorder %v9290_v21, 0.0 }
 0x139   : > { %v1020_v38 = vmin.f32 %v9298_v50, 0.0  ;;  %v512_v28 = vmax.f32 %v9016_v55, %v468_v13  ;;  %v1811_v32 = vpop.permute.xlu0 %1810  ;;  %v9315_v13 = vpop.f32.mrf.mxu3  ;;  %vm1012_vm7 = vcmp.gt.f32.partialorder %v9298_v50, 0.0 }
 0x13a   : > { %v8621_v56 = vpop.eup %8620  ;;  %v1474_v60 = vmul.f32 1.442695, %v1466_v48  ;;  %v1855_v54 = vmax.f32 %v9030_v59, %v1811_v32  ;;  %v9318_v48 = vpop.f32.mrf.mxu0 }
 0x13b   : > { %v8623_v30 = vpop.eup %8622  ;;  %v1028_v52 = vmul.f32 1.442695, %v1020_v38  ;;  %v530_v51 = vsel %vm525_vm2, %v512_v28, -inf  ;;  %v7318_v20 = vadd.f32 -1.0, %v8621_v56  ;;  %13684 = vst [vmem:[#allocation21_spill] sm:$0xff] %v9318_v48  ;;  %v961_v38 = vmax.f32 %v8986_v46, %v9146_v26  ;;  %v9343_v46 = vpop.f32.mrf.mxu1 }
 0x13c   : > { %8624 = vpow2.f32 %v1474_v60  ;;  %v531_v55 = vmax.f32 %v529_v22, %v530_v51  ;;  %v1872_v44 = vsel %vm525_vm2, %v1855_v54, -inf  ;;  %v7415_v33 = vadd.f32 -1.0, %v8623_v30 }
 0x13d   : > { %8626 = vpow2.f32 %v1028_v52  ;;  %v1873_v43 = vmax.f32 %v1871_v37, %v1872_v44  ;;  %v9321_v59 = vsel %vm562_vm4, %v9243_v47, %v7318_v20  ;;  %v979_v60 = vsel %vm525_vm2, %v961_v38, -inf }
 0x13e   : > { %v9327_v28 = vadd.f32 %v9228_v53, %v531_v55  ;;  %1386 = vrot.lane.b32.xlu1 %v9311_v35, %s8826_s15  ;;  %1832 = vrot.lane.b32.xlu2 %v9315_v13, %s8826_s15  ;;  %718 = vst.msk [vmem:[#allocation2 + $0x10] sm:$0xff] %vm525_vm2, %v9321_v59  ;;  %v9336_v51 = vsel %vm1459_vm5, %v9256_v42, %v7415_v33 }
 0x13f   : > { %v9339_v47 = vadd.f32 %v9181_v49, %v1873_v43  ;;  %491 = vrot.lane.b32.xlu0 %v9277_v36, %s8826_s15  ;;  %1612 = vst.msk [vmem:[#allocation2 + $0x98] sm:$0xff] %vm525_vm2, %v9336_v51 }
 0x140   : > { %v571_v26 = vmin.f32 %v9327_v28, 0.0  ;;  %v919_v52 = vpop.permute.xlu1 %918  ;;  %v1371_v32 = vpop.permute.xlu2 %1370  ;;  %vm563_vm8 = vcmp.gt.f32.partialorder %v9327_v28, 0.0 }
 0x141   : > { %v1913_v56 = vmin.f32 %v9339_v47, 0.0  ;;  %v963_v33 = vmax.f32 %v9026_v57, %v919_v52  ;;  %v1412_v42 = vmax.f32 %v9078_v7, %v1371_v32  ;;  %v1367_v37 = vpop.permute.xlu0 %1366  ;;  %v9357_v32 = vpop.f32.mrf.mxu2  ;;  %vm1905_vm9 = vcmp.gt.f32.partialorder %v9339_v47, 0.0 }
 0x142   : > { %v8625_v22 = vpop.eup %8624  ;;  %v580_v54 = vmul.f32 1.442695, %v571_v26  ;;  %v1410_v30 = vmax.f32 %v9044_v63, %v1367_v37 }
 0x143   : > { %v8627_v20 = vpop.eup %8626  ;;  %v1922_v55 = vmul.f32 1.442695, %v1913_v56  ;;  %v980_v44 = vsel %vm525_vm2, %v963_v33, -inf  ;;  %v1429_v43 = vsel %vm525_vm2, %v1412_v42, -inf  ;;  %v7414_v36 = vadd.f32 -1.0, %v8625_v22  ;;  %v9364_v56 = vpop.f32.mrf.mxu3 }
 0x144   : > { %8628 = vpow2.f32 %v580_v54  ;;  %v981_v57 = vmax.f32 %v979_v60, %v980_v44  ;;  %v1428_v7 = vsel %vm525_vm2, %v1410_v30, -inf  ;;  %v7366_v52 = vadd.f32 -1.0, %v8627_v20  ;;  %13685 = vst [vmem:[#allocation22_spill] sm:$0xff] %v9364_v56 }
 0x145   : > { %8630 = vpow2.f32 %v1922_v55  ;;  %v1430_v38 = vmax.f32 %v1428_v7, %v1429_v43  ;;  %v9361_v63 = vsel %vm1458_vm6, %v9290_v21, %v7414_v36  ;;  %v9376_v36 = vpop.f32.mrf.mxu0  ;;  %v9385_v55 = vpop.f32.mrf.mxu1 }
 0x146   : > { %v1005_v26 = vadd.f32 %v9275_v40, %v981_v57  ;;  %942 = vrot.lane.b32.xlu1 %v9283_v39, %s8826_s15  ;;  %1388 = vrot.lane.b32.xlu2 %v9357_v32, %s8826_s15  ;;  %v9371_v33 = vsel %vm1012_vm7, %v9298_v50, %v7366_v52  ;;  %1611 = vst.msk [vmem:[#allocation2 + $0x90] sm:$0xff] %vm525_vm2, %v9361_v63 }
 0x147   : > { %v1452_v42 = vadd.f32 %v9236_v12, %v1430_v38  ;;  %13686 = vst [vmem:[#allocation23_spill] sm:$0xff] %v9376_v36  ;;  %1834 = vrot.lane.b32.xlu0 %v9364_v56, %s8826_s15 }
 0x148   : > { %1165 = vst.msk [vmem:[#allocation2 + $0x50] sm:$0xff] %vm525_vm2, %v9371_v33  ;;  %v1021_v21 = vmin.f32 %v1005_v26, 0.0  ;;  %v9382_v37 = vpop.permute.xlu1 %1812  ;;  %v927_v22 = vpop.permute.xlu2 %926  ;;  %vm1013_vm11 = vcmp.gt.f32.partialorder %v1005_v26, 0.0 }
 0x149   : > { %v1468_v60 = vmin.f32 %v1452_v42, 0.0  ;;  %v967_v50 = vmax.f32 %v9090_v10, %v927_v22  ;;  %v923_v54 = vpop.permute.xlu0 %922  ;;  %vm1460_vm12 = vcmp.gt.f32.partialorder %v1452_v42, 0.0 }
 0x14a   : > { %v8629_v30 = vpop.eup %8628  ;;  %v1030_v20 = vmul.f32 1.442695, %v1021_v21  ;;  %v965_v44 = vmax.f32 %v9056_v2, %v923_v54 }
 0x14b   : > { %v8631_v43 = vpop.eup %8630  ;;  %v1478_v57 = vmul.f32 1.442695, %v1468_v60  ;;  %v7319_v7 = vadd.f32 -1.0, %v8629_v30  ;;  %v986_v52 = vsel %vm525_vm2, %v967_v50, -inf  ;;  %v513_v60 = vmax.f32 %v9028_v58, %v9198_v27 }
 0x14c   : > { %v985_v38 = vsel %vm525_vm2, %v965_v44, -inf  ;;  %8632 = vpow2.f32 %v1030_v20  ;;  %v7463_v56 = vadd.f32 -1.0, %v8631_v43 }
 0x14d   : > { %8634 = vpow2.f32 %v1478_v57  ;;  %v987_v10 = vmax.f32 %v985_v38, %v986_v52  ;;  %v9392_v22 = vsel %vm563_vm8, %v9327_v28, %v7319_v7  ;;  %v9420_v30 = vpop.f32.mrf.mxu0  ;;  %v532_v52 = vsel %vm525_vm2, %v513_v60, -inf  ;;  %v9429_v38 = vpop.f32.mrf.mxu1  ;;  %v8473_v60 = vld [vmem:[%s8898_s14 + $0x138] sm:$0xff] }
 0x14e   : > { %2250 = vrot.lane.b32.xlu1 %v9318_v48, %s8826_s15  ;;  %2252 = vrot.lane.b32.xlu2 %v9376_v36, %s8826_s15  ;;  %719 = vst.msk [vmem:[#allocation2 + $0x18] sm:$0xff] %vm525_vm2, %v9392_v22  ;;  %v9402_v2 = vsel %vm1905_vm9, %v9339_v47, %v7463_v56  ;;  %v2000_v47 = vrot.slane %v9251_v34, 1 }
 0x14f   : > { %v9405_v21 = vadd.f32 %v9275_v40, %v987_v10  ;;  %2696 = vrot.lane.b32.xlu0 %v9343_v46, %s8826_s15  ;;  %2058 = vst.msk [vmem:[#allocation2 + $0xd8] sm:$0xff] %vm525_vm2, %v9402_v2  ;;  %v13627_v28 = vrot.slane %v9402_v2, 1  ;;  %7509 = vmatmul.msk.bf16.gmra.mxu0 %vm367_vm1, %v8473_v60 }
 0x150   : > { %v9414_v50 = vpop.permute.xlu1 %1368  ;;  %v9416_v54 = vpop.permute.xlu2 %477 }
 0x151   : > { %v1023_v56 = vmin.f32 %v9405_v21, 0.0  ;;  %v474_v20 = vpop.permute.xlu0 %473  ;;  %v9426_v57 = vsel %vm659_vm10, %v2000_v47, %v13627_v28  ;;  %vm1015_vm13 = vcmp.gt.f32.partialorder %v9405_v21, 0.0 }
 0x152   : > { %v8633_v44 = vpop.eup %8632  ;;  %v515_v43 = vmax.f32 %v9068_v5, %v474_v20 }
 0x153   : > { %v8635_v58 = vpop.eup %8634  ;;  %v1034_v27 = vmul.f32 1.442695, %v1023_v56  ;;  %v7367_v7 = vadd.f32 -1.0, %v8633_v44  ;;  %v964_v56 = vmax.f32 %v9042_v62, %v9219_v31 }
 0x154   : > { %v533_v10 = vsel %vm525_vm2, %v515_v43, -inf  ;;  %v7416_v36 = vadd.f32 -1.0, %v8635_v58 }
 0x155   : > { %8636 = vpow2.f32 %v1034_v27  ;;  %v534_v48 = vmax.f32 %v532_v52, %v533_v10  ;;  %v9432_v5 = vsel %vm1013_vm11, %v1005_v26, %v7367_v7  ;;  %v1856_v26 = vmax.f32 %v9052_v0, %v9382_v37  ;;  %v9461_v7 = vpop.f32.mrf.mxu0 }
 0x156   : > { %2698 = vrot.lane.b32.xlu1 %v9385_v55, %s8826_s15  ;;  %2700 = vrot.lane.b32.xlu2 %v9429_v38, %s8826_s15  ;;  %1166 = vst.msk [vmem:[#allocation2 + $0x58] sm:$0xff] %vm525_vm2, %v9432_v5  ;;  %v9441_v47 = vsel %vm1460_vm12, %v1452_v42, %v7416_v36  ;;  %v982_v58 = vsel %vm525_vm2, %v964_v56, -inf  ;;  %v13629_v37 = vrot.slane %v9371_v33, 7 }
 0x157   : > { %v9446_v20 = vadd.f32 %v9228_v53, %v534_v48  ;;  %2254 = vrot.lane.b32.xlu0 %v9420_v30, %s8826_s15  ;;  %1613 = vst.msk [vmem:[#allocation2 + $0xa0] sm:$0xff] %vm525_vm2, %v9441_v47  ;;  %v1874_v52 = vsel %vm525_vm2, %v1856_v26, -inf }
 0x158   : > { %v925_v44 = vpop.permute.xlu1 %924  ;;  %v9454_v43 = vpop.permute.xlu2 %1820 }
 0x159   : > { %v572_v42 = vmin.f32 %v9446_v20, 0.0  ;;  %v966_v62 = vmax.f32 %v9076_v6, %v925_v44  ;;  %v1817_v31 = vpop.permute.xlu0 %1816  ;;  %v9473_v44 = vpop.f32.mrf.mxu1  ;;  %vm564_vm14 = vcmp.gt.f32.partialorder %v9446_v20, 0.0 }
 0x15a   : > { %v1858_v48 = vmax.f32 %v9080_v8, %v1817_v31  ;;  %v514_v8 = vmax.f32 %v9054_v1, %v9265_v18 }
 0x15b   : > { %v8637_v36 = vpop.eup %8636  ;;  %v582_v27 = vmul.f32 1.442695, %v572_v42  ;;  %v983_v0 = vsel %vm525_vm2, %v966_v62, -inf  ;;  %v1411_v42 = vmax.f32 %v9064_v3, %v9414_v50  ;;  %v1857_v50 = vmax.f32 %v9066_v4, %v9303_v45 }
 0x15c   : > { %v984_v10 = vmax.f32 %v982_v58, %v983_v0  ;;  %v1875_v60 = vsel %vm525_vm2, %v1858_v48, -inf  ;;  %v7369_v28 = vadd.f32 -1.0, %v8637_v36  ;;  %v535_v3 = vsel %vm525_vm2, %v514_v8, -inf }
 0x15d   : > { %8638 = vpow2.f32 %v582_v27  ;;  %v1876_v6 = vmax.f32 %v1874_v52, %v1875_v60  ;;  %v1431_v0 = vsel %vm525_vm2, %v1411_v42, -inf  ;;  %v9503_v60 = vpop.f32.mrf.mxu0  ;;  %v13628_v45 = vrot.slane %v9361_v63, 7 }
 0x15e   : > { %v9471_v56 = vadd.f32 %v9275_v40, %v984_v10  ;;  %1080 = vrot.lane.b32.xlu2 %v13629_v37, %s8827_s26  ;;  %2256 = vrot.lane.b32.xlu1 %v9461_v7, %s8826_s15  ;;  %v9481_v26 = vsel %vm1015_vm13, %v9405_v21, %v7369_v28  ;;  %v620_v42 = vrot.slane %v9392_v22, 7 }
 0x15f   : > { %v9486_v1 = vadd.f32 %v9181_v49, %v1876_v6  ;;  %2702 = vrot.lane.b32.xlu0 %v9473_v44, %s8826_s15  ;;  %1168 = vst.msk [vmem:[#allocation2 + $0x68] sm:$0xff] %vm525_vm2, %v9481_v26  ;;  %v619_v6 = vrot.slane %v9321_v59, 7 }
 0x160   : > { %v1022_v18 = vmin.f32 %v9471_v56, 0.0  ;;  %v476_v62 = vpop.permute.xlu1 %475  ;;  %v9493_v31 = vpop.permute.xlu2 %1376  ;;  %vm1014_vm3 = vcmp.gt.f32.partialorder %v9471_v56, 0.0 }
 0x161   : > { %v1914_v21 = vmin.f32 %v9486_v1, 0.0  ;;  %v516_v28 = vmax.f32 %v9088_v9, %v476_v62  ;;  %v1373_v48 = vpop.permute.xlu0 %1372  ;;  %vm1906_vm4 = vcmp.gt.f32.partialorder %v9486_v1, 0.0 }
 0x162   : > { %v1032_v36 = vmul.f32 1.442695, %v1022_v18  ;;  %v1413_v58 = vmax.f32 %v9092_v11, %v1373_v48 }
 0x163   : > { %v8639_v27 = vpop.eup %8638  ;;  %v1924_v52 = vmul.f32 1.442695, %v1914_v21  ;;  %v536_v10 = vsel %vm525_vm2, %v516_v28, -inf  ;;  %v1877_v28 = vsel %vm525_vm2, %v1857_v50, -inf }
 0x164   : > { %8640 = vpow2.f32 %v1032_v36  ;;  %v537_v9 = vmax.f32 %v535_v3, %v536_v10  ;;  %v1432_v8 = vsel %vm525_vm2, %v1413_v58, -inf  ;;  %v7320_v62 = vadd.f32 -1.0, %v8639_v27 }
 0x165   : > { %8642 = vpow2.f32 %v1924_v52  ;;  %v1433_v4 = vmax.f32 %v1431_v0, %v1432_v8  ;;  %v661_v10 = vrot.slane %v9392_v22, 1 }
 0x166   : > { %v9510_v11 = vadd.f32 %v9228_v53, %v537_v9  ;;  %631 = vrot.lane.b32.xlu1 %v619_v6, %s8827_s26  ;;  %2258 = vrot.lane.b32.xlu2 %v9503_v60, %s8826_s15  ;;  %v9517_v18 = vsel %vm564_vm14, %v9446_v20, %v7320_v62  ;;  %v621_v62 = vsel %vm618_vm15, %v619_v6, %v620_v42  ;;  %v9547_v6 = vpop.f32.mrf.mxu1  ;;  %v13687_v42 = vrot.slane %v9251_v34, 7 }
 0x167   : > { %v9520_v21 = vadd.f32 %v9236_v12, %v1433_v4  ;;  %1526 = vrot.lane.b32.xlu0 %v13628_v45, %s8827_s26  ;;  %720 = vst.msk [vmem:[#allocation2 + $0x20] sm:$0xff] %vm525_vm2, %v9517_v18 }
 0x168   : > { %v573_v48 = vmin.f32 %v9510_v11, 0.0  ;;  %v1819_v3 = vpop.permute.xlu1 %1818  ;;  %v933_v36 = vpop.permute.xlu2 %932  ;;  %vm565_vm5 = vcmp.gt.f32.partialorder %v9510_v11, 0.0 }
 0x169   : > { %v1469_v20 = vmin.f32 %v9520_v21, 0.0  ;;  %v1859_v27 = vmax.f32 %v9106_v15, %v1819_v3  ;;  %v970_v0 = vmax.f32 %v9144_v25, %v933_v36  ;;  %v929_v52 = vpop.permute.xlu0 %928  ;;  %vm1461_vm6 = vcmp.gt.f32.partialorder %v9520_v21, 0.0 }
 0x16a   : > { %v8641_v9 = vpop.eup %8640  ;;  %v584_v8 = vmul.f32 1.442695, %v573_v48  ;;  %v968_v50 = vmax.f32 %v9108_v16, %v929_v52 }
 0x16b   : > { %v8643_v4 = vpop.eup %8642  ;;  %v1480_v45 = vmul.f32 1.442695, %v1469_v20  ;;  %v1878_v37 = vsel %vm525_vm2, %v1859_v27, -inf  ;;  %v989_v58 = vsel %vm525_vm2, %v970_v0, -inf  ;;  %v7368_v15 = vadd.f32 -1.0, %v8641_v9 }
 0x16c   : > { %8644 = vpow2.f32 %v584_v8  ;;  %v1879_v25 = vmax.f32 %v1877_v28, %v1878_v37  ;;  %v988_v3 = vsel %vm525_vm2, %v968_v50, -inf  ;;  %v7464_v22 = vadd.f32 -1.0, %v8643_v4 }
 0x16d   : > { %v990_v36 = vmax.f32 %v988_v3, %v989_v58  ;;  %v9541_v48 = vsel %vm1014_vm3, %v9471_v56, %v7368_v15  ;;  %8646 = vpow2.f32 %v1480_v45  ;;  %v13636_v56 = vrot.slane %v9481_v26, 1 }
 0x16e   : > { %v9545_v16 = vadd.f32 %v9181_v49, %v1879_v25  ;;  %1972 = vrot.lane.b32.xlu1 %v13687_v42, %s8827_s26  ;;  %633 = vrot.lane.b32.xlu2 %v621_v62, %s8827_s26  ;;  %1167 = vst.msk [vmem:[#allocation2 + $0x60] sm:$0xff] %vm525_vm2, %v9541_v48  ;;  %v9556_v37 = vsel %vm1906_vm4, %v9486_v1, %v7464_v22  ;;  %v1111_v45 = vrot.slane %v9541_v48, 1  ;;  %v1109_v58 = vrot.slane %v9432_v5, 1 }
 0x16f   : > { %v9561_v28 = vadd.f32 %v9275_v40, %v990_v36  ;;  %2704 = vrot.lane.b32.xlu0 %v9547_v6, %s8826_s15  ;;  %2059 = vst.msk [vmem:[#allocation2 + $0xe0] sm:$0xff] %vm525_vm2, %v9556_v37  ;;  %v676_v15 = vsel %vm659_vm10, %v661_v10, 0.0  ;;  %v660_v25 = vrot.slane %v9321_v59, 1 }
 0x170   : > { %v1915_v20 = vmin.f32 %v9545_v16, 0.0  ;;  %v9569_v27 = vpop.permute.xlu1 %1374  ;;  %v484_v1 = vpop.permute.xlu2 %483  ;;  %v9574_v0 = vsel %vm659_vm10, %v1111_v45, %v13636_v56  ;;  %v1124_v36 = vsel %vm659_vm10, %v1109_v58, 0.0  ;;  %vm1907_vm7 = vcmp.gt.f32.partialorder %v9545_v16, 0.0 }
 0x171   : > { %v1024_v52 = vmin.f32 %v9561_v28, 0.0  ;;  %v520_v9 = vmax.f32 %v9156_v29, %v484_v1  ;;  %v480_v8 = vpop.permute.xlu0 %479  ;;  %v662_v59 = vsel %vm659_vm10, %v660_v25, %v661_v10  ;;  %v1108_v25 = vrot.slane %v9371_v33, 1 }
 0x172   : > { %v8645_v50 = vpop.eup %8644  ;;  %v1926_v62 = vmul.f32 1.442695, %v1915_v20  ;;  %v518_v4 = vmax.f32 %v9120_v19, %v480_v8  ;;  %vm1016_vm8 = vcmp.gt.f32.partialorder %v9561_v28, 0.0 }
 0x173   : > { %v8647_v3 = vpop.eup %8646  ;;  %v1036_v22 = vmul.f32 1.442695, %v1024_v52  ;;  %v7321_v42 = vadd.f32 -1.0, %v8645_v50  ;;  %v542_v45 = vsel %vm525_vm2, %v520_v9, -inf }
 0x174   : > { %8648 = vpow2.f32 %v1926_v62  ;;  %v541_v29 = vsel %vm525_vm2, %v518_v4, -inf  ;;  %v7417_v1 = vadd.f32 -1.0, %v8647_v3  ;;  %v1517_v62 = vrot.slane %v9441_v47, 7 }
 0x175   : > { %8650 = vpow2.f32 %v1036_v22  ;;  %v543_v20 = vmax.f32 %v541_v29, %v542_v45  ;;  %v9586_v19 = vsel %vm565_vm5, %v9510_v11, %v7321_v42  ;;  %v1554_v11 = vrot.slane %v9361_v63, 1 }
 0x176   : > { %686 = vrot.lane.b32.xlu1 %v676_v15, %s8828_s27  ;;  %1134 = vrot.lane.b32.xlu2 %v1124_v36, %s8828_s27  ;;  %721 = vst.msk [vmem:[#allocation2 + $0x28] sm:$0xff] %vm525_vm2, %v9586_v19  ;;  %v9595_v52 = vsel %vm1461_vm6, %v9520_v21, %v7417_v1  ;;  %v1555_v3 = vrot.slane %v9336_v51, 1  ;;  %v1069_v42 = vrot.slane %v9432_v5, 7 }
 0x177   : > { %v9598_v9 = vadd.f32 %v9228_v53, %v543_v20  ;;  %684 = vrot.lane.b32.xlu0 %v662_v59, %s8828_s27  ;;  %1614 = vst.msk [vmem:[#allocation2 + $0xa8] sm:$0xff] %vm525_vm2, %v9595_v52  ;;  %v1518_v8 = vrot.slane %v9595_v52, 7  ;;  %v1110_v20 = vsel %vm659_vm10, %v1108_v25, %v1109_v58  ;;  %v13688_v58 = vrot.slane %v9371_v33, 7 }
 0x178   : > { %v9605_v50 = vpop.permute.xlu1 %930  ;;  %v1827_v10 = vpop.permute.xlu2 %1826  ;;  %v1414_v33 = vmax.f32 %v9116_v17, %v9569_v27 }
 0x179   : > { %v575_v21 = vmin.f32 %v9598_v9, 0.0  ;;  %v1863_v4 = vmax.f32 %v9187_v61, %v1827_v10  ;;  %v1823_v15 = vpop.permute.xlu0 %1822  ;;  %v9617_v45 = vsel %vm618_vm15, %v1517_v62, %v1518_v8  ;;  %v1556_v61 = vsel %vm659_vm10, %v1554_v11, %v1555_v3 }
 0x17a   : > { %v8649_v22 = vpop.eup %8648  ;;  %v1861_v36 = vmax.f32 %v9136_v24, %v1823_v15  ;;  %v1070_v11 = vsel %vm618_vm15, %v13688_v58, %v1069_v42  ;;  %v9654_v42 = vpop.f32.mrf.mxu0  ;;  %v13691_v58 = vrot.slane %v9251_v34, 7  ;;  %vm567_vm9 = vcmp.gt.f32.partialorder %v9598_v9, 0.0  ;;  %v13693_v34 = vld [vmem:[#allocation5_spill] sm:$0xff] }
 0x17b   : > { %v8651_v29 = vpop.eup %8650  ;;  %v588_v1 = vmul.f32 1.442695, %v575_v21  ;;  %v7465_v59 = vadd.f32 -1.0, %v8649_v22  ;;  %v1884_v10 = vsel %vm525_vm2, %v1863_v4, -inf }
 0x17c   : > { %v1883_v24 = vsel %vm525_vm2, %v1861_v36, -inf  ;;  %v7370_v5 = vadd.f32 -1.0, %v8651_v29  ;;  %v13689_v29 = vld [vmem:[#allocation7_spill] sm:$0xff] }
 0x17d   : > { %v1885_v15 = vmax.f32 %v1883_v24, %v1884_v10  ;;  %v9627_v8 = vsel %vm1907_vm7, %v9545_v16, %v7465_v59  ;;  %8652 = vpow2.f32 %v588_v1  ;;  %v517_v16 = vmax.f32 %v9104_v14, %v9416_v54  ;;  %v9659_v59 = vpop.f32.mrf.mxu1 }
 0x17e   : > { %1132 = vrot.lane.b32.xlu1 %v1110_v20, %s8828_s27  ;;  %1578 = vrot.lane.b32.xlu2 %v1556_v61, %s8828_s27  ;;  %2060 = vst.msk [vmem:[#allocation2 + $0xe8] sm:$0xff] %vm525_vm2, %v9627_v8  ;;  %v9638_v21 = vsel %vm1016_vm8, %v9561_v28, %v7370_v5  ;;  %v1961_v54 = vrot.slane %v9402_v2, 7  ;;  %v1434_v10 = vsel %vm525_vm2, %v1414_v33, -inf }
 0x17f   : > { %v9643_v4 = vadd.f32 %v9181_v49, %v1885_v15  ;;  %1082 = vrot.lane.b32.xlu0 %v1070_v11, %s8827_s26  ;;  %1169 = vst.msk [vmem:[#allocation2 + $0x70] sm:$0xff] %vm525_vm2, %v9638_v21  ;;  %v538_v61 = vsel %vm525_vm2, %v517_v16, -inf }
 0x180   : > { %v482_v25 = vpop.permute.xlu1 %481  ;;  %v9650_v22 = vpop.permute.xlu2 %1382  ;;  %13690 = vst [vmem:[#allocation7_spill] sm:$0xff] %v9659_v59  ;;  %v1962_v11 = vsel %vm618_vm15, %v13691_v58, %v1961_v54 }
 0x181   : > { %v1917_v28 = vmin.f32 %v9643_v4, 0.0  ;;  %v519_v36 = vmax.f32 %v9134_v23, %v482_v25  ;;  %v1379_v14 = vpop.permute.xlu0 %1378  ;;  %v13692_v25 = vld [vmem:[#allocation4_spill] sm:$0xff]  ;;  %vm1909_vm11 = vcmp.gt.f32.partialorder %v9643_v4, 0.0 }
 0x182   : > { %v1416_v1 = vmax.f32 %v13689_v29, %v1379_v14 }
 0x183   : > { %v8653_v20 = vpop.eup %8652  ;;  %v1930_v17 = vmul.f32 1.442695, %v1917_v28  ;;  %v539_v27 = vsel %vm525_vm2, %v519_v36, -inf  ;;  %v1860_v28 = vmax.f32 %v13692_v25, %v9454_v43  ;;  %v969_v36 = vmax.f32 %v13693_v34, %v9605_v50  ;;  %v13694_v43 = vld [vmem:[#allocation9_spill] sm:$0xff]  ;;  %v9693_v50 = vpop.f32.mrf.mxu0 }
 0x184   : > { %v540_v24 = vmax.f32 %v538_v61, %v539_v27  ;;  %v1435_v23 = vsel %vm525_vm2, %v1416_v1, -inf  ;;  %v7323_v5 = vadd.f32 -1.0, %v8653_v20  ;;  %v13695_v27 = vld [vmem:[#allocation8_spill] sm:$0xff] }
 0x185   : > { %8654 = vpow2.f32 %v1930_v17  ;;  %v1436_v15 = vmax.f32 %v1434_v10, %v1435_v23  ;;  %v9700_v25 = vpop.f32.mrf.mxu1 }
 0x186   : > { %v9669_v16 = vadd.f32 %v9228_v53, %v540_v24  ;;  %2706 = vrot.lane.b32.xlu1 %v9659_v59, %s8826_s15  ;;  %1974 = vrot.lane.b32.xlu2 %v1962_v11, %s8827_s26  ;;  %v9675_v33 = vsel %vm567_vm9, %v9598_v9, %v7323_v5  ;;  %v1515_v24 = vrot.slane %v9336_v51, 7  ;;  %v1880_v5 = vsel %vm525_vm2, %v1860_v28, -inf  ;;  %v13697_v28 = vld [vmem:[#allocation6_spill] sm:$0xff]  ;;  %v13698_v51 = vld [vmem:[#allocation12_spill] sm:$0xff] }
 0x187   : > { %v9682_v14 = vadd.f32 %v9236_v12, %v1436_v15  ;;  %2260 = vrot.lane.b32.xlu0 %v9654_v42, %s8826_s15  ;;  %723 = vst.msk [vmem:[#allocation2 + $0x38] sm:$0xff] %vm525_vm2, %v9675_v33  ;;  %v991_v15 = vsel %vm525_vm2, %v969_v36, -inf  ;;  %v1415_v36 = vmax.f32 %v13697_v28, %v9493_v31 }
 0x188   : > { %v574_v54 = vmin.f32 %v9669_v16, 0.0  ;;  %v1825_v29 = vpop.permute.xlu1 %1824  ;;  %v9689_v9 = vpop.permute.xlu2 %938  ;;  %vm566_vm12 = vcmp.gt.f32.partialorder %v9669_v16, 0.0 }
 0x189   : > { %v1470_v1 = vmin.f32 %v9682_v14, 0.0  ;;  %v1862_v20 = vmax.f32 %v13694_v43, %v1825_v29  ;;  %v935_v61 = vpop.permute.xlu0 %934  ;;  %vm1462_vm13 = vcmp.gt.f32.partialorder %v9682_v14, 0.0 }
 0x18a   : > { %v586_v17 = vmul.f32 1.442695, %v574_v54  ;;  %v971_v10 = vmax.f32 %v13695_v27, %v935_v61  ;;  %v13696_v61 = vrot.slane %v9361_v63, 7 }
 0x18b   : > { %v8655_v23 = vpop.eup %8654  ;;  %v1482_v58 = vmul.f32 1.442695, %v1470_v1  ;;  %v1881_v11 = vsel %vm525_vm2, %v1862_v20, -inf  ;;  %v1570_v20 = vsel %vm659_vm10, %v1555_v3, 0.0 }
 0x18c   : > { %8656 = vpow2.f32 %v586_v17  ;;  %v1882_v34 = vmax.f32 %v1880_v5, %v1881_v11  ;;  %v992_v29 = vsel %vm525_vm2, %v971_v10, -inf  ;;  %v7467_v43 = vadd.f32 -1.0, %v8655_v23 }
 0x18d   : > { %8658 = vpow2.f32 %v1482_v58  ;;  %v993_v54 = vmax.f32 %v991_v15, %v992_v29  ;;  %v1516_v27 = vsel %vm618_vm15, %v13696_v61, %v1515_v24  ;;  %v13699_v5 = vrot.slane %v9402_v2, 1 }
 0x18e   : > { %v9710_v1 = vadd.f32 %v9181_v49, %v1882_v34  ;;  %1528 = vrot.lane.b32.xlu1 %v1516_v27, %s8827_s26  ;;  %2708 = vrot.lane.b32.xlu2 %v9700_v25, %s8826_s15  ;;  %v9719_v63 = vsel %vm1909_vm11, %v9643_v4, %v7467_v43  ;;  %v1437_v58 = vsel %vm525_vm2, %v1415_v36, -inf  ;;  %v13700_v34 = vld [vmem:[#allocation10_spill] sm:$0xff] }
 0x18f   : > { %v9722_v17 = vadd.f32 %v9275_v40, %v993_v54  ;;  %1580 = vrot.lane.b32.xlu0 %v1570_v20, %s8828_s27  ;;  %2062 = vst.msk [vmem:[#allocation2 + $0xf8] sm:$0xff] %vm525_vm2, %v9719_v63  ;;  %v2016_v40 = vsel %vm659_vm10, %v13699_v5, 0.0 }
 0x190   : > { %v1916_v49 = vmin.f32 %v9710_v1, 0.0  ;;  %v1381_v31 = vpop.permute.xlu1 %1380  ;;  %v490_v10 = vpop.permute.xlu2 %489  ;;  %vm1908_vm14 = vcmp.gt.f32.partialorder %v9710_v1, 0.0 }
 0x191   : > { %v1025_v24 = vmin.f32 %v9722_v17, 0.0  ;;  %v1417_v23 = vmax.f32 %v13698_v51, %v1381_v31  ;;  %v523_v3 = vmax.f32 %v9223_v41, %v490_v10  ;;  %v486_v4 = vpop.permute.xlu0 %485  ;;  %v9739_v41 = vpop.f32.mrf.mxu0  ;;  %v13633_v51 = vrot.slane %v9675_v33, 1 }
 0x192   : > { %v8657_v15 = vpop.eup %8656  ;;  %v1928_v11 = vmul.f32 1.442695, %v1916_v49  ;;  %v521_v29 = vmax.f32 %v13700_v34, %v486_v4  ;;  %vm1017_vm3 = vcmp.gt.f32.partialorder %v9722_v17, 0.0 }
 0x193   : > { %v8659_v43 = vpop.eup %8658  ;;  %v1038_v54 = vmul.f32 1.442695, %v1025_v24  ;;  %v1438_v61 = vsel %vm525_vm2, %v1417_v23, -inf  ;;  %v545_v27 = vsel %vm525_vm2, %v523_v3, -inf  ;;  %v7322_v28 = vadd.f32 -1.0, %v8657_v15 }
 0x194   : > { %8660 = vpow2.f32 %v1928_v11  ;;  %v1439_v2 = vmax.f32 %v1437_v58, %v1438_v61  ;;  %v544_v20 = vsel %vm525_vm2, %v521_v29, -inf  ;;  %v7418_v31 = vadd.f32 -1.0, %v8659_v43  ;;  %v13701_v58 = vld [vmem:[#allocation16_spill] sm:$0xff] }
 0x195   : > { %8662 = vpow2.f32 %v1038_v54  ;;  %v546_v36 = vmax.f32 %v544_v20, %v545_v27  ;;  %v9743_v49 = vsel %vm566_vm12, %v9669_v16, %v7322_v28  ;;  %v622_v43 = vrot.slane %v9517_v18, 7 }
 0x196   : > { %v9747_v10 = vadd.f32 %v9236_v12, %v1439_v2  ;;  %2026 = vrot.lane.b32.xlu1 %v2016_v40, %s8828_s27  ;;  %2264 = vrot.lane.b32.xlu2 %v9739_v41, %s8826_s15  ;;  %722 = vst.msk [vmem:[#allocation2 + $0x30] sm:$0xff] %vm525_vm2, %v9743_v49  ;;  %v9755_v24 = vsel %vm1462_vm13, %v9682_v14, %v7418_v31  ;;  %v666_v16 = vrot.slane %v9743_v49, 1  ;;  %v13635_v20 = vrot.slane %v9586_v19, 1 }
 0x197   : > { %v9760_v23 = vadd.f32 %v9228_v53, %v546_v36  ;;  %2024 = vrot.lane.b32.xlu0 %v9426_v57, %s8828_s27  ;;  %1615 = vst.msk [vmem:[#allocation2 + $0xb0] sm:$0xff] %vm525_vm2, %v9755_v24  ;;  %v13630_v36 = vrot.slane %v9719_v63, 1 }
 0x198   : > { %v1471_v12 = vmin.f32 %v9747_v10, 0.0  ;;  %v9767_v3 = vpop.permute.xlu1 %936  ;;  %v1833_v4 = vpop.permute.xlu2 %1832  ;;  %v9772_v14 = vsel %vm659_vm10, %v666_v16, %v13633_v51  ;;  %v9801_v16 = vld [vmem:[%s13603_s4] ss:$0 sm:$0xff]  ;;  %vm1463_vm4 = vcmp.gt.f32.partialorder %v9747_v10, 0.0 }
 0x199   : > { %v576_v5 = vmin.f32 %v9760_v23, 0.0  ;;  %v1866_v53 = vmax.f32 %v9315_v13, %v1833_v4  ;;  %v1829_v40 = vpop.permute.xlu0 %1828  ;;  %vm568_vm5 = vcmp.gt.f32.partialorder %v9760_v23, 0.0 }
 0x19a   : > { %v8661_v15 = vpop.eup %8660  ;;  %v1484_v57 = vmul.f32 1.442695, %v1471_v12  ;;  %v1864_v11 = vmax.f32 %v13701_v58, %v1829_v40  ;;  %v13632_v40 = vrot.slane %v9638_v21, 7 }
 0x19b   : > { %v8663_v34 = vpop.eup %8662  ;;  %v590_v29 = vmul.f32 1.442695, %v576_v5  ;;  %v7466_v54 = vadd.f32 -1.0, %v8661_v15  ;;  %v1887_v61 = vsel %vm525_vm2, %v1866_v53, -inf }
 0x19c   : > { %v1886_v27 = vsel %vm525_vm2, %v1864_v11, -inf  ;;  %v7371_v28 = vadd.f32 -1.0, %v8663_v34  ;;  %8664 = vpow2.f32 %v1484_v57  ;;  %v663_v34 = vrot.slane %v9517_v18, 1  ;;  %v8812_v18 = vld [vmem:[%s13603_s4] ss:$0 sm:$0xff] }
 0x19d   : > { %8666 = vpow2.f32 %v590_v29  ;;  %v1888_v13 = vmax.f32 %v1886_v27, %v1887_v61  ;;  %v9782_v2 = vsel %vm1908_vm14, %v9710_v1, %v7466_v54  ;;  %v13702_v61 = vld [vmem:[#allocation18_spill] sm:$0xff] }
 0x19e   : > { %2262 = vrot.lane.b32.xlu1 %v9693_v50, %s8826_s15  ;;  %1530 = vrot.lane.b32.xlu2 %v1517_v62, %s8827_s26  ;;  %2061 = vst.msk [vmem:[#allocation2 + $0xf0] sm:$0xff] %vm525_vm2, %v9782_v2  ;;  %v9794_v31 = vsel %vm1017_vm3, %v9722_v17, %v7371_v28  ;;  %v2006_v1 = vrot.slane %v9782_v2, 1  ;;  %v1114_v62 = vrot.slane %v9638_v21, 1  ;;  %v1071_v28 = vrot.slane %v9541_v48, 7 }
 0x19f   : > { %v9804_v12 = vadd.f32 %v9801_v16, %v1888_v13  ;;  %635 = vrot.lane.b32.xlu0 %v622_v43, %s8827_s26  ;;  %v13631_v17 = vrot.slane %v9794_v31, 1  ;;  %1170 = vst.msk [vmem:[#allocation2 + $0x78] sm:$0xff] %vm525_vm2, %v9794_v31  ;;  %v1075_v4 = vrot.slane %v9794_v31, 7 }
 0x1a0   : > { %v9814_v5 = vpop.permute.xlu1 %487  ;;  %v1389_v53 = vpop.permute.xlu2 %1388  ;;  %v9820_v15 = vsel %vm659_vm10, %v2006_v1, %v13630_v36  ;;  %v13634_v36 = vrot.slane %v9556_v37, 7 }
 0x1a1   : > { %v1918_v57 = vmin.f32 %v9804_v12, 0.0  ;;  %v1421_v58 = vmax.f32 %v9357_v32, %v1389_v53  ;;  %v1385_v11 = vpop.permute.xlu0 %1384  ;;  %v9828_v29 = vsel %vm659_vm10, %v1114_v62, %v13631_v17  ;;  %v9835_v13 = vsel %vm618_vm15, %v13632_v40, %v1075_v4 }
 0x1a2   : > { %v8665_v54 = vpop.eup %8664  ;;  %v1419_v27 = vmax.f32 %v13702_v61, %v1385_v11  ;;  %v665_v53 = vsel %vm659_vm10, %v663_v34, %v13635_v20  ;;  %v1072_v40 = vrot.slane %v9481_v26, 7  ;;  %vm1910_vm6 = vcmp.gt.f32.partialorder %v9804_v12, 0.0 }
 0x1a3   : > { %v8667_v1 = vpop.eup %8666  ;;  %v1932_v32 = vmul.f32 1.442695, %v1918_v57  ;;  %v7419_v62 = vadd.f32 -1.0, %v8665_v54  ;;  %v1444_v17 = vsel %vm525_vm2, %v1421_v58, -inf  ;;  %v1560_v58 = vrot.slane %v9755_v24, 1  ;;  %v13703_v54 = vld [vmem:[#allocation11_spill] sm:$0xff] }
 0x1a4   : > { %v1443_v11 = vsel %vm525_vm2, %v1419_v27, -inf  ;;  %v7324_v48 = vadd.f32 -1.0, %v8667_v1  ;;  %v972_v27 = vmax.f32 %v13703_v54, %v9767_v3  ;;  %v1073_v20 = vsel %vm618_vm15, %v1071_v28, %v1072_v40  ;;  %v13705_v40 = vld [vmem:[#allocation15_spill] sm:$0xff] }
 0x1a5   : > { %8668 = vpow2.f32 %v1932_v32  ;;  %v1445_v61 = vmax.f32 %v1443_v11, %v1444_v17  ;;  %v9845_v4 = vsel %vm1463_vm4, %v9747_v10, %v7419_v62  ;;  %v8811_v10 = vld [vmem:[%s13603_s4] ss:$0 sm:$0xff]  ;;  %v623_v11 = vrot.slane %v9586_v19, 7 }
 0x1a6   : > { %1084 = vrot.lane.b32.xlu1 %v1071_v28, %s8827_s26  ;;  %688 = vrot.lane.b32.xlu2 %v665_v53, %s8828_s27  ;;  %v13637_v57 = vrot.slane %v9845_v4, 1  ;;  %1616 = vst.msk [vmem:[#allocation2 + $0xb8] sm:$0xff] %vm525_vm2, %v9845_v4  ;;  %v9855_v34 = vsel %vm568_vm5, %v9760_v23, %v7324_v48  ;;  %v13704_v48 = vld [vmem:[#allocation17_spill] sm:$0xff]  ;;  %v994_v3 = vsel %vm525_vm2, %v972_v27, -inf }
 0x1a7   : > { %v1457_v17 = vadd.f32 %v8811_v10, %v1445_v61  ;;  %1976 = vrot.lane.b32.xlu0 %v13634_v36, %s8827_s26  ;;  %724 = vst.msk [vmem:[#allocation2 + $0x40] sm:$0xff] %vm525_vm2, %v9855_v34 }
 0x1a8   : > { %v9867_v1 = vpop.permute.xlu1 %1830  ;;  %v9869_v32 = vpop.permute.xlu2 %2252  ;;  %v9874_v23 = vsel %vm659_vm10, %v1560_v58, %v13637_v57  ;;  %v624_v57 = vsel %vm618_vm15, %v622_v43, %v623_v11  ;;  %v13706_v43 = vld [vmem:[#allocation13_spill] sm:$0xff]  ;;  %v13707_v11 = vld [vmem:[#allocation19_spill] sm:$0xff] }
 0x1a9   : > { %v1473_v53 = vmin.f32 %v1457_v17, 0.0  ;;  %v941_v62 = vpop.permute.xlu0 %940  ;;  %vm1465_vm7 = vcmp.gt.f32.partialorder %v1457_v17, 0.0 }
 0x1aa   : > { %v974_v61 = vmax.f32 %v13704_v48, %v941_v62  ;;  %v9886_v62 = vpop.f32.mrf.mxu0 }
 0x1ab   : > { %v8669_v51 = vpop.eup %8668  ;;  %v1488_v36 = vmul.f32 1.442695, %v1473_v53 }
 0x1ac   : > { %v995_v54 = vsel %vm525_vm2, %v974_v61, -inf  ;;  %v7468_v56 = vadd.f32 -1.0, %v8669_v51  ;;  %v1418_v51 = vmax.f32 %v13705_v40, %v9650_v22 }
 0x1ad   : > { %8670 = vpow2.f32 %v1488_v36  ;;  %v996_v58 = vmax.f32 %v994_v3, %v995_v54 }
 0x1ae   : > { %637 = vrot.lane.b32.xlu1 %v624_v57, %s8827_s26  ;;  %1086 = vrot.lane.b32.xlu2 %v1073_v20, %s8827_s26  ;;  %v9891_v27 = vsel %vm1910_vm6, %v9804_v12, %v7468_v56  ;;  %v522_v20 = vmax.f32 %v13706_v43, %v9814_v5  ;;  %v1440_v3 = vsel %vm525_vm2, %v1418_v51, -inf  ;;  %v13708_v5 = vrot.slane %v9481_v26, 1 }
 0x1af   : > { %v9898_v36 = vadd.f32 %v8812_v18, %v996_v58  ;;  %2266 = vrot.lane.b32.xlu0 %v9886_v62, %s8826_s15  ;;  %2063 = vst.msk [vmem:[#allocation2 + $0x100] sm:$0xff] %vm525_vm2, %v9891_v27  ;;  %v13710_v26 = vrot.slane %v9586_v19, 1 }
 0x1b0   : > { %v1387_v56 = vpop.permute.xlu1 %1386  ;;  %v9906_v12 = vpop.permute.xlu2 %2700  ;;  %v1125_v40 = vsel %vm659_vm10, %v13708_v5, 0.0  ;;  %v547_v43 = vsel %vm525_vm2, %v522_v20, -inf  ;;  %v2004_v5 = vrot.slane %v9627_v8, 1 }
 0x1b1   : > { %v1026_v22 = vmin.f32 %v9898_v36, 0.0  ;;  %v1420_v28 = vmax.f32 %v9311_v35, %v1387_v56  ;;  %v492_v57 = vpop.permute.xlu0 %491  ;;  %v677_v20 = vsel %vm659_vm10, %v13710_v26, 0.0  ;;  %vm1018_vm8 = vcmp.gt.f32.partialorder %v9898_v36, 0.0 }
 0x1b2   : > { %v524_v48 = vmax.f32 %v13707_v11, %v492_v57  ;;  %v13709_v57 = vrot.slane %v9595_v52, 1  ;;  %v9953_v26 = vpop.f32.mrf.mxu0 }
 0x1b3   : > { %v8671_v61 = vpop.eup %8670  ;;  %v1040_v54 = vmul.f32 1.442695, %v1026_v22  ;;  %v1441_v58 = vsel %vm525_vm2, %v1420_v28, -inf  ;;  %v13711_v28 = vld [vmem:[#allocation14_spill] sm:$0xff] }
 0x1b4   : > { %v1442_v59 = vmax.f32 %v1440_v3, %v1441_v58  ;;  %v548_v35 = vsel %vm525_vm2, %v524_v48, -inf  ;;  %v7421_v56 = vadd.f32 -1.0, %v8671_v61  ;;  %v1571_v11 = vsel %vm659_vm10, %v13709_v57, 0.0  ;;  %v13712_v61 = vld [vmem:[#allocation20_spill] sm:$0xff] }
 0x1b5   : > { %8672 = vpow2.f32 %v1040_v54  ;;  %v549_v53 = vmax.f32 %v547_v43, %v548_v35  ;;  %v973_v48 = vmax.f32 %v13711_v28, %v9689_v9  ;;  %v1865_v3 = vmax.f32 %v13712_v61, %v9867_v1 }
 0x1b6   : > { %v9922_v51 = vadd.f32 %v8811_v10, %v1442_v59  ;;  %1138 = vrot.lane.b32.xlu1 %v1125_v40, %s8828_s27  ;;  %1584 = vrot.lane.b32.xlu2 %v1571_v11, %s8828_s27  ;;  %v9929_v22 = vsel %vm1465_vm7, %v1457_v17, %v7421_v56  ;;  %v8813_v59 = vld [vmem:[%s13603_s4] ss:$0 sm:$0xff]  ;;  %v2003_v35 = vrot.slane %v9556_v37, 1 }
 0x1b7   : > { %v9938_v10 = vadd.f32 %v8813_v59, %v549_v53  ;;  %690 = vrot.lane.b32.xlu0 %v677_v20, %s8828_s27  ;;  %1618 = vst.msk [vmem:[#allocation2 + $0xc8] sm:$0xff] %vm525_vm2, %v9929_v22  ;;  %v13713_v53 = vld [vmem:[#allocation22_spill] sm:$0xff]  ;;  %v997_v57 = vsel %vm525_vm2, %v973_v48, -inf  ;;  %v1889_v11 = vsel %vm525_vm2, %v1865_v3, -inf }
 0x1b8   : > { %v1472_v19 = vmin.f32 %v9922_v51, 0.0  ;;  %v943_v17 = vpop.permute.xlu1 %942  ;;  %v9944_v54 = vpop.permute.xlu2 %1080  ;;  %vm1464_vm9 = vcmp.gt.f32.partialorder %v9922_v51, 0.0 }
 0x1b9   : > { %v577_v9 = vmin.f32 %v9938_v10, 0.0  ;;  %v975_v1 = vmax.f32 %v9283_v39, %v943_v17  ;;  %v1835_v58 = vpop.permute.xlu0 %1834  ;;  %v2005_v17 = vsel %vm659_vm10, %v2003_v35, %v2004_v5  ;;  %v13714_v35 = vrot.slane %v9595_v52, 1 }
 0x1ba   : > { %v1486_v40 = vmul.f32 1.442695, %v1472_v19  ;;  %v1867_v43 = vmax.f32 %v13713_v53, %v1835_v58  ;;  %vm569_vm11 = vcmp.gt.f32.partialorder %v9938_v10, 0.0 }
 0x1bb   : > { %v8673_v56 = vpop.eup %8672  ;;  %v592_v20 = vmul.f32 1.442695, %v577_v9  ;;  %v998_v28 = vsel %vm525_vm2, %v975_v1, -inf  ;;  %v2746_v9 = vmax.f32 %v9429_v38, %v9906_v12 }
 0x1bc   : > { %8674 = vpow2.f32 %v1486_v40  ;;  %v999_v39 = vmax.f32 %v997_v57, %v998_v28  ;;  %v1890_v61 = vsel %vm525_vm2, %v1867_v43, -inf  ;;  %v7372_v59 = vadd.f32 -1.0, %v8673_v56  ;;  %v9994_v28 = vpop.f32.mrf.mxu0 }
 0x1bd   : > { %8676 = vpow2.f32 %v592_v20  ;;  %v1891_v19 = vmax.f32 %v1889_v11, %v1890_v61  ;;  %v1964_v57 = vrot.slane %v9627_v8, 7  ;;  %v13639_v61 = vrot.slane %v9929_v22, 1 }
 0x1be   : > { %v9961_v48 = vadd.f32 %v8812_v18, %v999_v39  ;;  %2028 = vrot.lane.b32.xlu2 %v2005_v17, %s8828_s27  ;;  %2268 = vrot.lane.b32.xlu1 %v9953_v26, %s8826_s15  ;;  %v9967_v3 = vsel %vm1018_vm8, %v9898_v36, %v7372_v59  ;;  %v1557_v36 = vrot.slane %v9441_v47, 1  ;;  %v2761_v47 = vsel %vm525_vm2, %v2746_v9, -inf }
 0x1bf   : > { %v9972_v1 = vadd.f32 %v9801_v16, %v1891_v19  ;;  %1136 = vrot.lane.b32.xlu0 %v9574_v0, %s8828_s27  ;;  %1171 = vst.msk [vmem:[#allocation2 + $0x80] sm:$0xff] %vm525_vm2, %v9967_v3  ;;  %v9986_v16 = vld [vmem:[%s13603_s4] ss:$0 sm:$0xff] }
 0x1c0   : > { %v1027_v18 = vmin.f32 %v9961_v48, 0.0  ;;  %v2251_v58 = vpop.permute.xlu1 %2250  ;;  %v9979_v40 = vpop.permute.xlu2 %2258  ;;  %v1559_v56 = vsel %vm659_vm10, %v1557_v36, %v13714_v35  ;;  %v1524_v36 = vrot.slane %v9929_v22, 7  ;;  %vm1019_vm12 = vcmp.gt.f32.partialorder %v9961_v48, 0.0 }
 0x1c1   : > { %v1919_v53 = vmin.f32 %v9972_v1, 0.0  ;;  %v2697_v43 = vpop.permute.xlu0 %2696  ;;  %vm1911_vm13 = vcmp.gt.f32.partialorder %v9972_v1, 0.0 }
 0x1c2   : > { %v8675_v38 = vpop.eup %8674  ;;  %v1042_v12 = vmul.f32 1.442695, %v1027_v18  ;;  %v2744_v0 = vmax.f32 %v9343_v46, %v2697_v43 }
 0x1c3   : > { %v8677_v11 = vpop.eup %8676  ;;  %v1934_v20 = vmul.f32 1.442695, %v1919_v53  ;;  %v7420_v39 = vadd.f32 -1.0, %v8675_v38  ;;  %v13643_v53 = vrot.slane %v9855_v34, 7  ;;  %v13715_v38 = vld [vmem:[#allocation21_spill] sm:$0xff] }
 0x1c4   : > { %v2760_v59 = vsel %vm525_vm2, %v2744_v0, -inf  ;;  %v7325_v19 = vadd.f32 -1.0, %v8677_v11  ;;  %8678 = vpow2.f32 %v1042_v12  ;;  %v2298_v12 = vmax.f32 %v13715_v38, %v2251_v58  ;;  %v13717_v38 = vld [vmem:[#allocation23_spill] sm:$0xff] }
 0x1c5   : > { %8680 = vpow2.f32 %v1934_v20  ;;  %v2762_v46 = vmax.f32 %v2760_v59, %v2761_v47  ;;  %v10001_v52 = vsel %vm1464_vm9, %v9922_v51, %v7420_v39  ;;  %v13716_v58 = vrot.slane %v9556_v37, 7 }
 0x1c6   : > { %1582 = vrot.lane.b32.xlu1 %v1559_v56, %s8828_s27  ;;  %2270 = vrot.lane.b32.xlu2 %v9994_v28, %s8826_s15  ;;  %v10007_v17 = vsel %vm569_vm11, %v9938_v10, %v7325_v19  ;;  %v13641_v9 = vrot.slane %v10001_v52, 7  ;;  %1617 = vst.msk [vmem:[#allocation2 + $0xc0] sm:$0xff] %vm525_vm2, %v10001_v52  ;;  %v1563_v18 = vrot.slane %v10001_v52, 1  ;;  %v669_v56 = vrot.slane %v9855_v34, 1 }
 0x1c7   : > { %v10015_v51 = vadd.f32 %v9986_v16, %v2762_v46  ;;  %1532 = vrot.lane.b32.xlu0 %v9617_v45, %s8827_s26  ;;  %v629_v10 = vrot.slane %v10007_v17, 7  ;;  %725 = vst.msk [vmem:[#allocation2 + $0x48] sm:$0xff] %vm525_vm2, %v10007_v17  ;;  %v13640_v43 = vrot.slane %v10007_v17, 1  ;;  %v1965_v39 = vsel %vm618_vm15, %v13716_v58, %v1964_v57 }
 0x1c8   : > { %v2699_v0 = vpop.permute.xlu1 %2698  ;;  %v10025_v35 = vpop.permute.xlu2 %633  ;;  %v10031_v45 = vsel %vm659_vm10, %v1563_v18, %v13639_v61  ;;  %v10036_v11 = vsel %vm618_vm15, %v13641_v9, %v1524_v36  ;;  %v13646_v18 = vrot.slane %v9743_v49, 7  ;;  %v2017_v36 = vsel %vm659_vm10, %v2004_v5, 0.0 }
 0x1c9   : > { %v2804_v47 = vmin.f32 %v10015_v51, 0.0  ;;  %v2255_v20 = vpop.permute.xlu0 %2254  ;;  %v10045_v59 = vsel %vm618_vm15, %v13643_v53, %v629_v10  ;;  %v10055_v37 = vsel %vm659_vm10, %v669_v56, %v13640_v43  ;;  %v2299_v58 = vmax.f32 %v13717_v38, %v9869_v32 }
 0x1ca   : > { %v8679_v19 = vpop.eup %8678  ;;  %v2300_v46 = vmax.f32 %v9420_v30, %v2255_v20  ;;  %v10062_v30 = vld [vmem:[%s13603_s4] ss:$0 sm:$0xff]  ;;  %v13644_v20 = vrot.slane %v9967_v3, 7  ;;  %v2314_v5 = vsel %vm525_vm2, %v2298_v12, -inf  ;;  %v2745_v38 = vmax.f32 %v9385_v55, %v2699_v0 }
 0x1cb   : > { %v8681_v57 = vpop.eup %8680  ;;  %v2812_v10 = vmul.f32 1.442695, %v2804_v47  ;;  %v7373_v8 = vadd.f32 -1.0, %v8679_v19  ;;  %v2317_v53 = vsel %vm525_vm2, %v2299_v58, -inf  ;;  %vm2796_vm14 = vcmp.gt.f32.partialorder %v10015_v51, 0.0 }
 0x1cc   : > { %v2315_v61 = vsel %vm525_vm2, %v2300_v46, -inf  ;;  %v7469_v56 = vadd.f32 -1.0, %v8681_v57  ;;  %vm708_vm9 = vcmask 261120  }
 0x1cd   : > { %8682 = vpow2.f32 %v2812_v10  ;;  %v2316_v43 = vmax.f32 %v2314_v5, %v2315_v61  ;;  %v10069_v32 = vsel %vm1019_vm12, %v9961_v48, %v7373_v8  ;;  %v1117_v48 = vrot.slane %v9967_v3, 1 }
 0x1ce   : > { %1978 = vrot.lane.b32.xlu1 %v1965_v39, %s8827_s26  ;;  %639 = vrot.lane.b32.xlu2 %v13646_v18, %s8827_s26  ;;  %v13642_v12 = vrot.slane %v10069_v32, 1  ;;  %1172 = vst.msk [vmem:[#allocation2 + $0x88] sm:$0xff] %vm525_vm2, %v10069_v32  ;;  %v1078_v47 = vrot.slane %v10069_v32, 7  ;;  %v10081_v61 = vsel %vm1911_vm13, %v9972_v1, %v7469_v56  ;;  %v13645_v39 = vrot.slane %v9891_v27, 7 }
 0x1cf   : > { %v2342_v19 = vadd.f32 %v10062_v30, %v2316_v43  ;;  %2030 = vrot.lane.b32.xlu0 %v2017_v36, %s8828_s27  ;;  %v1970_v46 = vrot.slane %v10081_v61, 7  ;;  %2064 = vst.msk [vmem:[#allocation2 + $0x108] sm:$0xff] %vm525_vm2, %v10081_v61  ;;  %v13647_v57 = vrot.slane %v10081_v61, 1  ;;  %v2009_v8 = vrot.slane %v9891_v27, 1 }
 0x1d0   : > { %v2257_v10 = vpop.permute.xlu1 %2256  ;;  %v10092_v1 = vpop.permute.xlu2 %1134  ;;  %v10097_v43 = vsel %vm618_vm15, %v13644_v20, %v1078_v47  ;;  %v10102_v36 = vsel %vm659_vm10, %v1117_v48, %v13642_v12  ;;  %v13649_v47 = vrot.slane %v9755_v24, 7  ;;  %vm758_vm13 = vcmask 1048064  }
 0x1d1   : > { %v2358_v5 = vmin.f32 %v2342_v19, 0.0  ;;  %v2301_v56 = vmax.f32 %v9461_v7, %v2257_v10  ;;  %v2703_v9 = vpop.permute.xlu0 %2702  ;;  %v10109_v55 = vsel %vm618_vm15, %v13645_v39, %v1970_v46  ;;  %v10116_v48 = vsel %vm659_vm10, %v2009_v8, %v13647_v57  ;;  %v10119_v7 = vpop.f32.mrf.mxu0 }
 0x1d2   : > { %v2747_v0 = vmax.f32 %v9473_v44, %v2703_v9  ;;  %13718 = vst [vmem:[#allocation4_spill] sm:$0xff] %v10119_v7  ;;  %v13648_v46 = vrot.slane %v9782_v2, 7  ;;  %v2763_v44 = vsel %vm525_vm2, %v2745_v38, -inf  ;;  %vm2350_vm3 = vcmp.gt.f32.partialorder %v2342_v19, 0.0 }
 0x1d3   : > { %v8683_v12 = vpop.eup %8682  ;;  %v2366_v20 = vmul.f32 1.442695, %v2358_v5  ;;  %v2318_v10 = vsel %vm525_vm2, %v2301_v56, -inf }
 0x1d4   : > { %v7558_v39 = vadd.f32 -1.0, %v8683_v12  ;;  %v2319_v9 = vmax.f32 %v2317_v53, %v2318_v10  ;;  %v2764_v18 = vsel %vm525_vm2, %v2747_v0, -inf }
 0x1d5   : > { %8684 = vpow2.f32 %v2366_v20  ;;  %v2765_v8 = vmax.f32 %v2763_v44, %v2764_v18  ;;  %v13720_v44 = vrot.slane %v9675_v33, 1 }
 0x1d6   : > { %v2343_v57 = vadd.f32 %v10062_v30, %v2319_v9  ;;  %1534 = vrot.lane.b32.xlu1 %v13649_v47, %s8827_s26  ;;  %1980 = vrot.lane.b32.xlu2 %v13648_v46, %s8827_s26  ;;  %v10134_v58 = vsel %vm2796_vm14, %v10015_v51, %v7558_v39  ;;  %v13722_v47 = vrot.slane %v9743_v49, 7 }
 0x1d7   : > { %v2789_v53 = vadd.f32 %v9986_v16, %v2765_v8  ;;  %2272 = vrot.lane.b32.xlu0 %v10119_v7, %s8826_s15  ;;  %2949 = vst.msk [vmem:[#allocation2 + $0x150] sm:$0xff] %vm525_vm2, %v10134_v58  ;;  %v678_v9 = vsel %vm659_vm10, %v13720_v44, 0.0  ;;  %v8478_v8 = vld [vmem:[%s8898_s14 + $0x160] sm:$0xff]  ;;  %v626_v44 = vrot.slane %v9675_v33, 7  ;;  %v13655_v7 = vrot.slane %v10134_v58, 7 }
 0x1d8   : > { %v2359_v18 = vmin.f32 %v2343_v57, 0.0  ;;  %v10141_v20 = vpop.permute.xlu1 %631  ;;  %v10143_v12 = vpop.permute.xlu2 %1578  ;;  %7554 = vmatmul.msk.bf16.gmra.mxu1 %vm367_vm1, %v8478_v8  ;;  %vm2351_vm4 = vcmp.gt.f32.partialorder %v2343_v57, 0.0 }
 0x1d9   : > { %v2805_v38 = vmin.f32 %v2789_v53, 0.0  ;;  %v10145_v5 = vpop.permute.xlu0 %1526  ;;  %v10147_v10 = vpop.f32.mrf.mxu0  ;;  %vm2797_vm5 = vcmp.gt.f32.partialorder %v2789_v53, 0.0 }
 0x1da   : > { %v2368_v56 = vmul.f32 1.442695, %v2359_v18  ;;  %13719 = vst [vmem:[#allocation5_spill] sm:$0xff] %v10147_v10  ;;  %v13721_v18 = vrot.slane %v9638_v21, 7  ;;  %v627_v21 = vsel %vm618_vm15, %v13722_v47, %v626_v44 }
 0x1db   : > { %v8685_v51 = vpop.eup %8684  ;;  %v2814_v39 = vmul.f32 1.442695, %v2805_v38 }
 0x1dc   : > { %v7510_v0 = vadd.f32 -1.0, %v8685_v51  ;;  %8686 = vpow2.f32 %v2368_v56 }
 0x1dd   : > { %8688 = vpow2.f32 %v2814_v39 }
 0x1de   : > { %694 = vrot.lane.b32.xlu2 %v678_v9, %s8828_s27  ;;  %2274 = vrot.lane.b32.xlu1 %v10147_v10, %s8826_s15  ;;  %v10156_v46 = vsel %vm2350_vm3, %v2342_v19, %v7510_v0 }
 0x1df   : > { %1088 = vrot.lane.b32.xlu0 %v13721_v18, %s8827_s26  ;;  %2503 = vst.msk [vmem:[#allocation2 + $0x110] sm:$0xff] %vm525_vm2, %v10156_v46  ;;  %v13653_v18 = vrot.slane %v10156_v46, 7  ;;  %v2446_v49 = vrot.slane %v10156_v46, 1 }
 0x1e0   : > { %v10163_v38 = vpop.permute.xlu1 %1972  ;;  %v10165_v56 = vpop.permute.xlu2 %1974 }
 0x1e1   : > { %v2705_v51 = vpop.permute.xlu0 %2704 }
 0x1e2   : > { %v8687_v39 = vpop.eup %8686 }
 0x1e3   : > { %v8689_v9 = vpop.eup %8688  ;;  %v7511_v19 = vadd.f32 -1.0, %v8687_v39 }
 0x1e4   : > { %v7559_v0 = vadd.f32 -1.0, %v8689_v9 }
 0x1e5   : > { %v10173_v10 = vsel %vm2351_vm4, %v2343_v57, %v7511_v19  ;;  %v2748_v57 = vmax.f32 %v9547_v6, %v2705_v51 }
 0x1e6   : > { %1140 = vrot.lane.b32.xlu2 %v9828_v29, %s8828_s27  ;;  %692 = vrot.lane.b32.xlu1 %v9772_v14, %s8828_s27  ;;  %v13652_v33 = vrot.slane %v10173_v10, 1  ;;  %2504 = vst.msk [vmem:[#allocation2 + $0x118] sm:$0xff] %vm525_vm2, %v10173_v10  ;;  %v2407_v47 = vrot.slane %v10173_v10, 7  ;;  %v10185_v8 = vsel %vm2797_vm5, %v2789_v53, %v7559_v0  ;;  %v2892_v14 = vrot.slane %v10134_v58, 1 }
 0x1e7   : > { %641 = vrot.lane.b32.xlu0 %v627_v21, %s8827_s26  ;;  %v2853_v29 = vrot.slane %v10185_v8, 7  ;;  %2950 = vst.msk [vmem:[#allocation2 + $0x158] sm:$0xff] %vm525_vm2, %v10185_v8  ;;  %v13654_v39 = vrot.slane %v10185_v8, 1 }
 0x1e8   : > { %v10194_v44 = vpop.permute.xlu1 %686  ;;  %v2709_v9 = vpop.permute.xlu2 %2708  ;;  %v10199_v53 = vsel %vm659_vm10, %v2446_v49, %v13652_v33  ;;  %v10204_v6 = vsel %vm618_vm15, %v13653_v18, %v2407_v47  ;;  %v2766_v49 = vsel %vm525_vm2, %v2748_v57, -inf }
 0x1e9   : > { %v2750_v51 = vmax.f32 %v9700_v25, %v2709_v9  ;;  %v10207_v19 = vpop.permute.xlu0 %684  ;;  %v10212_v0 = vsel %vm618_vm15, %v13655_v7, %v2853_v29  ;;  %v10217_v21 = vsel %vm659_vm10, %v2892_v14, %v13654_v39  ;;  %v10221_v18 = vpop.f32.mrf.mxu0  ;;  %v13723_v29 = vrot.slane %v9794_v31, 1  ;;  %v8479_v9 = vld [vmem:[%s8898_s14 + $0x168] sm:$0xff] }
 0x1ea   : > { %7555 = vmatmul.msk.bf16.gmra.mxu1 %vm367_vm1, %v8479_v9 }
 0x1eb   : > { %v2767_v33 = vsel %vm525_vm2, %v2750_v51, -inf  ;;  %v1126_v14 = vsel %vm659_vm10, %v13723_v29, 0.0  ;;  %v13725_v29 = vrot.slane %v9755_v24, 7 }
 0x1ec   : > { %v2768_v47 = vmax.f32 %v2766_v49, %v2767_v33 }
 0x1ee   : > { %v2790_v25 = vadd.f32 %v9986_v16, %v2768_v47  ;;  %1090 = vrot.lane.b32.xlu1 %v9835_v13, %s8827_s26  ;;  %2276 = vrot.lane.b32.xlu2 %v10221_v18, %s8826_s15  ;;  %v1521_v13 = vrot.slane %v9845_v4, 7  ;;  %v13724_v47 = vrot.slane %v9845_v4, 1 }
 0x1ef   : > { %1142 = vrot.lane.b32.xlu0 %v1126_v14, %s8828_s27 }
 0x1f0   : > { %v2806_v57 = vmin.f32 %v2790_v25, 0.0  ;;  %v10233_v51 = vpop.permute.xlu1 %1132  ;;  %v2265_v33 = vpop.permute.xlu2 %2264  ;;  %v1572_v31 = vsel %vm659_vm10, %v13724_v47, 0.0  ;;  %v1522_v14 = vsel %vm618_vm15, %v13725_v29, %v1521_v13  ;;  %vm2798_vm6 = vcmp.gt.f32.partialorder %v2790_v25, 0.0 }
 0x1f1   : > { %v10236_v16 = vpop.permute.xlu0 %1082  ;;  %v2305_v9 = vmax.f32 %v9739_v41, %v2265_v33  ;;  %v10255_v7 = vpop.f32.mrf.mxu0  ;;  %v13726_v33 = vrot.slane %v9719_v63, 1 }
 0x1f2   : > { %v2816_v49 = vmul.f32 1.442695, %v2806_v57 }
 0x1f3   : > { %v2324_v13 = vsel %vm525_vm2, %v2305_v9, -inf  ;;  %v2018_v29 = vsel %vm659_vm10, %v13726_v33, 0.0 }
 0x1f4   : > { %8690 = vpow2.f32 %v2816_v49 }
 0x1f6   : > { %1588 = vrot.lane.b32.xlu1 %v1572_v31, %s8828_s27  ;;  %1536 = vrot.lane.b32.xlu2 %v1522_v14, %s8827_s26 }
 0x1f7   : > { %1586 = vrot.lane.b32.xlu0 %v9874_v23, %s8828_s27  ;;  %v1967_v23 = vrot.slane %v9719_v63, 7 }
 0x1f8   : > { %v10250_v39 = vpop.permute.xlu1 %2706  ;;  %v10252_v57 = vpop.permute.xlu2 %1530 }
 0x1f9   : > { %v2261_v4 = vpop.permute.xlu0 %2260 }
 0x1fa   : > { %v8691_v49 = vpop.eup %8690  ;;  %v2303_v47 = vmax.f32 %v9654_v42, %v2261_v4  ;;  %v13727_v42 = vrot.slane %v9782_v2, 7  ;;  %v10282_v2 = vpop.f32.mrf.mxu0 }
 0x1fb   : > { %v7560_v24 = vadd.f32 -1.0, %v8691_v49 }
 0x1fc   : > { %v2323_v31 = vsel %vm525_vm2, %v2303_v47, -inf  ;;  %v1968_v9 = vsel %vm618_vm15, %v13727_v42, %v1967_v23  ;;  %v8480_v42 = vld [vmem:[%s8898_s14 + $0x170] sm:$0xff] }
 0x1fd   : > { %v2325_v41 = vmax.f32 %v2323_v31, %v2324_v13  ;;  %v10263_v14 = vsel %vm2798_vm6, %v2790_v25, %v7560_v24  ;;  %v8482_v24 = vld [vmem:[%s8898_s14 + $0x180] sm:$0xff]  ;;  %v13728_v13 = vrot.slane %v9967_v3, 7  ;;  %v13729_v3 = vrot.slane %v9855_v34, 7  ;;  %7556 = vmatmul.msk.bf16.gmra.mxu1 %vm367_vm1, %v8480_v42 }
 0x1fe   : > { %2032 = vrot.lane.b32.xlu1 %v9820_v15, %s8828_s27  ;;  %2034 = vrot.lane.b32.xlu2 %v2018_v29, %s8828_s27  ;;  %2951 = vst.msk [vmem:[#allocation2 + $0x160] sm:$0xff] %vm525_vm2, %v10263_v14 }
 0x1ff   : > { %v2345_v4 = vadd.f32 %v10062_v30, %v2325_v41  ;;  %1982 = vrot.lane.b32.xlu0 %v1968_v9, %s8827_s26  ;;  %7598 = vmatmul.msk.bf16.vlgmr.msrb.gmra.mxu2 %vm367_vm1, %v8482_v24 }
 0x200   : > { %v10275_v63 = vpop.permute.xlu1 %1528  ;;  %v10277_v25 = vpop.permute.xlu2 %688 }
 0x201   : > { %v2361_v49 = vmin.f32 %v2345_v4, 0.0  ;;  %v10279_v47 = vpop.permute.xlu0 %1580  ;;  %vm2353_vm7 = vcmp.gt.f32.partialorder %v2345_v4, 0.0 }
 0x203   : > { %v2372_v15 = vmul.f32 1.442695, %v2361_v49  ;;  %v2302_v49 = vmax.f32 %v9503_v60, %v9979_v40 }
 0x205   : > { %8692 = vpow2.f32 %v2372_v15  ;;  %v13730_v15 = vrot.slane %v10001_v52, 7  ;;  %v13731_v52 = vrot.slane %v10069_v32, 1 }
 0x206   : > { %1092 = vrot.lane.b32.xlu2 %v13728_v13, %s8827_s26  ;;  %2280 = vrot.lane.b32.xlu1 %v10282_v2, %s8826_s15 }
 0x207   : > { %2278 = vrot.lane.b32.xlu0 %v10255_v7, %s8826_s15 }
 0x208   : > { %v10292_v31 = vpop.permute.xlu1 %2026  ;;  %v10294_v23 = vpop.permute.xlu2 %1086 }
 0x209   : > { %v10296_v41 = vpop.permute.xlu0 %2024 }
 0x20b   : > { %v8693_v33 = vpop.eup %8692 }
 0x20c   : > { %v7513_v29 = vadd.f32 -1.0, %v8693_v33  ;;  %v8483_v33 = vld [vmem:[%s8898_s14 + $0x188] sm:$0xff] }
 0x20e   : > { %645 = vrot.lane.b32.xlu2 %v10045_v59, %s8827_s26  ;;  %643 = vrot.lane.b32.xlu1 %v13729_v3, %s8827_s26  ;;  %v10304_v9 = vsel %vm2353_vm7, %v2345_v4, %v7513_v29  ;;  %v2320_v4 = vsel %vm525_vm2, %v2302_v49, -inf  ;;  %v1127_v29 = vsel %vm659_vm10, %v13731_v52, 0.0 }
 0x20f   : > { %1538 = vrot.lane.b32.xlu0 %v13730_v15, %s8827_s26  ;;  %2506 = vst.msk [vmem:[#allocation2 + $0x128] sm:$0xff] %vm525_vm2, %v10304_v9  ;;  %7599 = vmatmul.msk.bf16.gmra.mxu2 %vm367_vm1, %v8483_v33  ;;  %v8490_v33 = vld [vmem:[%s8898_s14 + $0x1c0] sm:$0xff] }
 0x210   : > { %v2263_v24 = vpop.permute.xlu1 %2262  ;;  %v10313_v13 = vpop.permute.xlu2 %1584  ;;  %7646 = vmatmul.msk.bf16.vlgmr.msrb.gmra.mxu3 %vm367_vm1, %v8490_v33  ;;  %v655_v33 = vsel %vm618_vm15, 0.0, %v10141_v20 }
 0x211   : > { %v2304_v34 = vmax.f32 %v9693_v50, %v2263_v24  ;;  %v10317_v59 = vpop.permute.xlu0 %635  ;;  %v13732_v50 = vrot.slane %v9891_v27, 7 }
 0x213   : > { %v2321_v60 = vsel %vm525_vm2, %v2304_v34, -inf  ;;  %v13733_v34 = vrot.slane %v10007_v17, 1 }
 0x214   : > { %v2322_v40 = vmax.f32 %v2320_v4, %v2321_v60 }
 0x215   : > { %v679_v27 = vsel %vm659_vm10, %v13733_v34, 0.0 }
 0x216   : > { %v2344_v3 = vadd.f32 %v10062_v30, %v2322_v40  ;;  %1146 = vrot.lane.b32.xlu2 %v1127_v29, %s8828_s27  ;;  %1984 = vrot.lane.b32.xlu1 %v13732_v50, %s8827_s26 }
 0x217   : > { %696 = vrot.lane.b32.xlu0 %v10055_v37, %s8828_s27  ;;  %v8481_v37 = vld [vmem:[%s8898_s14 + $0x178] sm:$0xff] }
 0x218   : > { %v2360_v42 = vmin.f32 %v2344_v3, 0.0  ;;  %v10333_v49 = vpop.permute.xlu1 %1084  ;;  %v10335_v32 = vpop.permute.xlu2 %2028  ;;  %7557 = vmatmul.msk.bf16.gmra.mxu1 %vm367_vm1, %v8481_v37  ;;  %vm2352_vm8 = vcmp.gt.f32.partialorder %v2344_v3, 0.0 }
 0x219   : > { %v10337_v15 = vpop.permute.xlu0 %1976 }
 0x21a   : > { %v2370_v24 = vmul.f32 1.442695, %v2360_v42 }
 0x21c   : > { %8694 = vpow2.f32 %v2370_v24 }
 0x21e   : > { %1590 = vrot.lane.b32.xlu2 %v10031_v45, %s8828_s27  ;;  %698 = vrot.lane.b32.xlu1 %v679_v27, %s8828_s27  ;;  %v8484_v45 = vld [vmem:[%s8898_s14 + $0x190] sm:$0xff]  ;;  %v2450_v27 = vrot.slane %v10304_v9, 1 }
 0x21f   : > { %1094 = vrot.lane.b32.xlu0 %v10097_v43, %s8827_s26  ;;  %7600 = vmatmul.msk.bf16.gmra.mxu2 %vm367_vm1, %v8484_v45 }
 0x220   : > { %v10348_v4 = vpop.permute.xlu1 %637  ;;  %v2271_v60 = vpop.permute.xlu2 %2270 }
 0x221   : > { %v2308_v40 = vmax.f32 %v9994_v28, %v2271_v60  ;;  %v2267_v17 = vpop.permute.xlu0 %2266 }
 0x222   : > { %v8695_v52 = vpop.eup %8694  ;;  %v2306_v29 = vmax.f32 %v9886_v62, %v2267_v17  ;;  %v13734_v62 = vrot.slane %v9929_v22, 1 }
 0x223   : > { %v7512_v50 = vadd.f32 -1.0, %v8695_v52  ;;  %v2327_v42 = vsel %vm525_vm2, %v2308_v40, -inf  ;;  %v709_v52 = vsel %vm708_vm9, %v655_v33, %v10207_v19  ;;  %v8485_v19 = vld [vmem:[%s8898_s14 + $0x198] sm:$0xff] }
 0x224   : > { %v2326_v43 = vsel %vm525_vm2, %v2306_v29, -inf  ;;  %v1573_v28 = vsel %vm659_vm10, %v13734_v62, 0.0 }
 0x225   : > { %v2328_v24 = vmax.f32 %v2326_v43, %v2327_v42  ;;  %v10358_v34 = vsel %vm2352_vm8, %v2344_v3, %v7512_v50  ;;  %v8491_v42 = vld [vmem:[%s8898_s14 + $0x1c8] sm:$0xff] }
 0x226   : > { %1986 = vrot.lane.b32.xlu2 %v10109_v55, %s8827_s26  ;;  %1144 = vrot.lane.b32.xlu1 %v10102_v36, %s8828_s27  ;;  %2505 = vst.msk [vmem:[#allocation2 + $0x120] sm:$0xff] %vm525_vm2, %v10358_v34  ;;  %v2449_v37 = vrot.slane %v10358_v34, 1 }
 0x227   : > { %v2346_v3 = vadd.f32 %v10062_v30, %v2328_v24  ;;  %1592 = vrot.lane.b32.xlu0 %v1573_v28, %s8828_s27  ;;  %7647 = vmatmul.msk.bf16.gmra.mxu3 %vm367_vm1, %v8491_v42  ;;  %v13735_v24 = vrot.slane %v10081_v61, 1 }
 0x228   : > { %v10374_v55 = vpop.permute.xlu1 %1138  ;;  %v10376_v36 = vpop.permute.xlu2 %639  ;;  %v10381_v22 = vsel %vm659_vm10, %v2449_v37, %v2450_v27 }
 0x229   : > { %v2362_v60 = vmin.f32 %v2346_v3, 0.0  ;;  %v10383_v40 = vpop.permute.xlu0 %690  ;;  %vm2354_vm11 = vcmp.gt.f32.partialorder %v2346_v3, 0.0  ;;  %v2019_v62 = vsel %vm659_vm10, %v13735_v24, 0.0  ;;  %v13738_v24 = vrot.slane %v10173_v10, 1  ;;  %v8493_v10 = vld [vmem:[%s8898_s14 + $0x1d8] sm:$0xff] }
 0x22b   : > { %v2374_v17 = vmul.f32 1.442695, %v2362_v60 }
 0x22d   : > { %8696 = vpow2.f32 %v2374_v17 }
 0x22e   : > { %734 = vrot.lane.b32.xlu2 %v709_v52, %s8826_s15  ;;  %1540 = vrot.lane.b32.xlu1 %v10036_v11, %s8827_s26  ;;  %v710_v11 = vsel %vm708_vm9, %v10025_v35, %v10194_v44  ;;  %v1157_v44 = vsel %vm708_vm9, %v10236_v16, %v10092_v1  ;;  %v8492_v1 = vld [vmem:[%s8898_s14 + $0x1d0] sm:$0xff]  ;;  %v1550_v16 = vsel %vm618_vm15, 0.0, %v10145_v5  ;;  %v2049_v52 = vsel %vm708_vm9, %v10165_v56, %v10292_v31 }
 0x22f   : > { %2036 = vrot.lane.b32.xlu0 %v10116_v48, %s8828_s27  ;;  %v13736_v48 = vrot.slane %v10156_v46, 7  ;;  %7601 = vmatmul.msk.bf16.gmra.mxu2 %vm367_vm1, %v8485_v19  ;;  %v1104_v46 = vsel %vm618_vm15, 0.0, %v9944_v54 }
 0x230   : > { %v2269_v29 = vpop.permute.xlu1 %2268  ;;  %v10394_v50 = vpop.permute.xlu2 %1980  ;;  %v1156_v60 = vsel %vm708_vm9, %v1104_v46, %v10233_v51  ;;  %v1996_v51 = vsel %vm618_vm15, 0.0, %v10163_v38 }
 0x231   : > { %v10396_v45 = vpop.permute.xlu0 %1136  ;;  %v2307_v5 = vmax.f32 %v9953_v26, %v2269_v29  ;;  %v2462_v26 = vsel %vm659_vm10, %v13738_v24, 0.0 }
 0x233   : > { %v8697_v20 = vpop.eup %8696  ;;  %v2329_v56 = vsel %vm525_vm2, %v2307_v5, -inf }
 0x234   : > { %v7514_v43 = vadd.f32 -1.0, %v8697_v20 }
 0x236   : > { %2418 = vrot.lane.b32.xlu2 %v13736_v48, %s8827_s26  ;;  %2038 = vrot.lane.b32.xlu1 %v2019_v62, %s8828_s27  ;;  %v10411_v28 = vsel %vm2354_vm11, %v2346_v3, %v7514_v43  ;;  %v1603_v3 = vsel %vm708_vm9, %v10275_v63, %v10279_v47  ;;  %v2048_v63 = vsel %vm708_vm9, %v1996_v51, %v10296_v41  ;;  %v8486_v41 = vld [vmem:[%s8898_s14 + $0x1a0] sm:$0xff] }
 0x237   : > { %736 = vrot.lane.b32.xlu0 %v710_v11, %s8826_s15  ;;  %2507 = vst.msk [vmem:[#allocation2 + $0x130] sm:$0xff] %vm525_vm2, %v10411_v28  ;;  %7648 = vmatmul.msk.bf16.gmra.mxu3 %vm367_vm1, %v8492_v1  ;;  %v1602_v47 = vsel %vm708_vm9, %v1550_v16, %v10143_v12  ;;  %v13737_v12 = vld [vmem:[#allocation4_spill] sm:$0xff]  ;;  %v8487_v16 = vld [vmem:[%s8898_s14 + $0x1a8] sm:$0xff] }
 0x238   : > { %v10417_v61 = vpop.permute.xlu1 %1582  ;;  %v10419_v37 = vpop.permute.xlu2 %694 }
 0x239   : > { %v10421_v35 = vpop.permute.xlu0 %1532 }
 0x23e   : > { %1629 = vrot.lane.b32.xlu2 %v1603_v3, %s8826_s15  ;;  %1183 = vrot.lane.b32.xlu1 %v1157_v44, %s8826_s15  ;;  %v656_v44 = vsel %vm618_vm15, 0.0, %v10317_v59 }
 0x23f   : > { %1181 = vrot.lane.b32.xlu0 %v1156_v60, %s8826_s15  ;;  %7602 = vmatmul.msk.bf16.gmra.mxu2 %vm367_vm1, %v8486_v41  ;;  %v10492_v60 = vpop.f32.mrf.mxu1  ;;  %v8494_v41 = vld [vmem:[%s8898_s14 + $0x1e0] sm:$0xff] }
 0x240   : > { %v10436_v17 = vpop.permute.xlu1 %1978  ;;  %v10438_v54 = vpop.permute.xlu2 %1140 }
 0x241   : > { %v10440_v33 = vpop.permute.xlu0 %2030 }
 0x246   : > { %2073 = vrot.lane.b32.xlu2 %v2048_v63, %s8826_s15  ;;  %1627 = vrot.lane.b32.xlu1 %v1602_v47, %s8826_s15 }
 0x247   : > { %2075 = vrot.lane.b32.xlu0 %v2049_v52, %s8826_s15  ;;  %7649 = vmatmul.msk.bf16.gmra.mxu3 %vm367_vm1, %v8493_v10  ;;  %v1159_v52 = vsel %vm708_vm9, %v10294_v23, %v10374_v55  ;;  %v8505_v23 = vld [vmem:[%s13601_s2 + $0x38] sm:$0xff]  ;;  %v1551_v55 = vsel %vm618_vm15, 0.0, %v10252_v57 }
 0x248   : > { %v10459_v42 = vpop.permute.xlu1 %1534  ;;  %v10461_v38 = vpop.permute.xlu2 %2276  ;;  %4115 = vmatpush.bf16.msra.mxu1 %v8505_v23  ;;  %v8513_v10 = vld [vmem:[%s13601_s2 + $0x78] sm:$0xff] }
 0x249   : > { %v2273_v20 = vpop.permute.xlu0 %2272  ;;  %4018 = vmatpush.bf16.msra.mxu0 %v8513_v10 }
 0x24a   : > { %v2309_v43 = vmax.f32 %v13737_v12, %v2273_v20  ;;  %v1605_v20 = vsel %vm708_vm9, %v10421_v35, %v10313_v13  ;;  %v2051_v12 = vsel %vm708_vm9, %v10436_v17, %v10440_v33  ;;  %v8504_v13 = vld [vmem:[%s13601_s2 + $0x30] sm:$0xff]  ;;  %v1997_v17 = vsel %vm618_vm15, 0.0, %v10337_v15  ;;  %v8503_v33 = vld [vmem:[%s13601_s2 + $0x28] sm:$0xff] }
 0x24b   : > { %v2050_v24 = vsel %vm708_vm9, %v1997_v17, %v10335_v32  ;;  %v8495_v32 = vld [vmem:[%s8898_s14 + $0x1e8] sm:$0xff] }
 0x24c   : > { %v2330_v31 = vsel %vm525_vm2, %v2309_v43, -inf  ;;  %v1604_v43 = vsel %vm708_vm9, %v1551_v55, %v10417_v61  ;;  %v2410_v61 = vrot.slane %v10304_v9, 7  ;;  %4116 = vmatpush.bf16.msra.mxu1 %v8504_v13  ;;  %v13739_v9 = vld [vmem:[#allocation5_spill] sm:$0xff] }
 0x24d   : > { %v2331_v19 = vmax.f32 %v2329_v56, %v2330_v31  ;;  %v657_v31 = vsel %vm618_vm15, 0.0, %v10376_v36  ;;  %v8502_v36 = vld [vmem:[%s13601_s2 + $0x20] sm:$0xff] }
 0x24e   : > { %2472 = vrot.lane.b32.xlu2 %v2462_v26, %s8828_s27  ;;  %2470 = vrot.lane.b32.xlu1 %v10199_v53, %s8828_s27  ;;  %v712_v53 = vsel %vm708_vm9, %v10348_v4, %v10383_v40  ;;  %v2409_v40 = vrot.slane %v10358_v34, 7 }
 0x24f   : > { %v2347_v29 = vadd.f32 %v10062_v30, %v2331_v19  ;;  %2420 = vrot.lane.b32.xlu0 %v10204_v6, %s8827_s26  ;;  %v711_v6 = vsel %vm708_vm9, %v656_v44, %v10277_v25  ;;  %7603 = vmatmul.msk.bf16.gmra.mxu2 %vm367_vm1, %v8487_v16  ;;  %v1105_v25 = vsel %vm618_vm15, 0.0, %v10333_v49  ;;  %v8501_v44 = vld [vmem:[%s13601_s2 + $0x18] sm:$0xff] }
 0x250   : > { %v10477_v62 = vpop.permute.xlu1 %2274  ;;  %v10479_v11 = vpop.permute.xlu2 %1536  ;;  %v1158_v47 = vsel %vm708_vm9, %v1105_v25, %v10396_v45  ;;  %v2411_v19 = vsel %vm618_vm15, %v2409_v40, %v2410_v61  ;;  %4117 = vmatpush.bf16.msra.mxu1 %v8503_v33  ;;  %v8496_v61 = vld [vmem:[%s8898_s14 + $0x1f0] sm:$0xff] }
 0x251   : > { %v2363_v48 = vmin.f32 %v2347_v29, 0.0  ;;  %v10481_v46 = vpop.permute.xlu0 %1088  ;;  %vm2355_vm12 = vcmp.gt.f32.partialorder %v2347_v29, 0.0 }
 0x252   : > { %v1106_v33 = vsel %vm618_vm15, 0.0, %v10481_v46  ;;  %v8509_v46 = vld [vmem:[%s13601_s2 + $0x58] sm:$0xff] }
 0x253   : > { %v2376_v3 = vmul.f32 1.442695, %v2363_v48 }
 0x254   : > { %4118 = vmatpush.bf16.msra.mxu1 %v8502_v36  ;;  %v1552_v36 = vsel %vm618_vm15, 0.0, %v10459_v42 }
 0x255   : > { %8698 = vpow2.f32 %v2376_v3  ;;  %v2463_v3 = vsel %vm659_vm10, %v2450_v27, 0.0  ;;  %v2310_v27 = vmax.f32 %v13739_v9, %v10477_v62 }
 0x256   : > { %740 = vrot.lane.b32.xlu2 %v712_v53, %s8826_s15  ;;  %738 = vrot.lane.b32.xlu1 %v711_v6, %s8826_s15  ;;  %v2412_v53 = vrot.slane %v10411_v28, 7  ;;  %v2311_v6 = vmax.f32 %v10221_v18, %v10461_v38  ;;  %v8500_v18 = vld [vmem:[%s13601_s2 + $0x10] sm:$0xff] }
 0x257   : > { %2710 = vrot.lane.b32.xlu0 %v10492_v60, %s8826_s15  ;;  %7650 = vmatmul.msk.bf16.gmra.mxu3 %vm367_vm1, %v8494_v41 }
 0x258   : > { %v693_v59 = vpop.permute.xlu1 %692  ;;  %v10498_v1 = vpop.permute.xlu2 %2034  ;;  %4119 = vmatpush.bf16.msra.mxu1 %v8501_v44  ;;  %v1160_v44 = vsel %vm708_vm9, %v1106_v33, %v10438_v54  ;;  %v8508_v54 = vld [vmem:[%s13601_s2 + $0x50] sm:$0xff] }
 0x259   : > { %v10501_v51 = vpop.permute.xlu0 %641  ;;  %v713_v26 = vsel %vm708_vm9, %v657_v31, %v693_v59  ;;  %v10594_v59 = vpop.f32.mrf.mxu1 }
 0x25b   : > { %v8699_v4 = vpop.eup %8698 }
 0x25c   : > { %v7515_v63 = vadd.f32 -1.0, %v8699_v4  ;;  %4120 = vmatpush.bf16.msra.mxu1 %v8500_v18 }
 0x25e   : > { %1185 = vrot.lane.b32.xlu2 %v1158_v47, %s8826_s15  ;;  %2422 = vrot.lane.b32.xlu1 %v2409_v40, %s8827_s26  ;;  %v10514_v5 = vsel %vm2355_vm12, %v2347_v29, %v7515_v63  ;;  %v2335_v63 = vsel %vm525_vm2, %v2311_v6, -inf  ;;  %v8511_v47 = vld [vmem:[%s13601_s2 + $0x68] sm:$0xff] }
 0x25f   : > { %1187 = vrot.lane.b32.xlu0 %v1159_v52, %s8826_s15  ;;  %2508 = vst.msk [vmem:[#allocation2 + $0x138] sm:$0xff] %vm525_vm2, %v10514_v5  ;;  %v2332_v52 = vsel %vm525_vm2, %v2310_v27, -inf  ;;  %v8535_v27 = vld [vmem:[%s13601_s2 + $0x68] sm:$0xff] }
 0x260   : > { %v10519_v49 = vpop.permute.xlu1 %1090  ;;  %v10521_v34 = vpop.permute.xlu2 %1092 }
 0x261   : > { %v10523_v45 = vpop.permute.xlu0 %1142 }
 0x262   : > { %v1161_v55 = vsel %vm708_vm9, %v10519_v49, %v10523_v45  ;;  %v8498_v45 = vld [vmem:[%s13601_s2] sm:$0xff] }
 0x266   : > { %2079 = vrot.lane.b32.xlu2 %v2051_v12, %s8826_s15  ;;  %1633 = vrot.lane.b32.xlu1 %v1605_v20, %s8826_s15 }
 0x267   : > { %1631 = vrot.lane.b32.xlu0 %v1604_v43, %s8826_s15  ;;  %7651 = vmatmul.msk.bf16.gmra.mxu3 %vm367_vm1, %v8495_v32  ;;  %v1998_v32 = vsel %vm618_vm15, 0.0, %v10394_v50  ;;  %v8830_v50 = vmov 0.0|0.0  }
 0x268   : > { %v1589_v56 = vpop.permute.xlu1 %1588  ;;  %v10543_v57 = vpop.permute.xlu2 %645 }
 0x269   : > { %v10548_v35 = vpop.permute.xlu0 %1586  ;;  %v1607_v12 = vsel %vm708_vm9, %v10479_v11, %v1589_v56  ;;  %v8510_v11 = vld [vmem:[%s13601_s2 + $0x60] sm:$0xff] }
 0x26a   : > { %v1606_v10 = vsel %vm708_vm9, %v1552_v36, %v10548_v35 }
 0x26e   : > { %2424 = vrot.lane.b32.xlu2 %v2411_v19, %s8827_s26  ;;  %2077 = vrot.lane.b32.xlu1 %v2050_v24, %s8826_s15  ;;  %v8537_v19 = vld [vmem:[%s13601_s2 + $0x78] sm:$0xff] }
 0x26f   : > { %742 = vrot.lane.b32.xlu0 %v713_v26, %s8826_s15  ;;  %v8829_v26 = vmov 0.0   ;;  %4620 = vmatpush.bf16.msra.mxu3 %v8537_v19  ;;  %v8531_v19 = vld [vmem:[%s13601_s2 + $0x48] sm:$0xff] }
 0x270   : > { %v10565_v15 = vpop.permute.xlu1 %2032  ;;  %v10567_v29 = vpop.permute.xlu2 %1146  ;;  %278 = vst [vmem:[#allocation2] sm:$0xff] %v8829_v26  ;;  %v1107_v26 = vsel %vm618_vm15, 0.0, %v10521_v34  ;;  %v8530_v34 = vld [vmem:[%s13601_s2 + $0x40] sm:$0xff] }
 0x271   : > { %v10572_v48 = vpop.permute.xlu0 %1982  ;;  %v2052_v42 = vsel %vm708_vm9, %v1998_v32, %v10565_v15  ;;  %v8518_v32 = vld [vmem:[%s13601_s2 + $0xa0] sm:$0xff] }
 0x276   : > { %2476 = vrot.lane.b32.xlu2 %v2463_v3, %s8828_s27  ;;  %2474 = vrot.lane.b32.xlu1 %v10381_v22, %s8828_s27  ;;  %v8512_v22 = vld [vmem:[%s13601_s2 + $0x70] sm:$0xff] }
 0x277   : > { %2426 = vrot.lane.b32.xlu0 %v2412_v53, %s8827_s26  ;;  %4019 = vmatpush.bf16.msra.mxu0 %v8512_v22  ;;  %v8536_v3 = vld [vmem:[%s13601_s2 + $0x70] sm:$0xff] }
 0x278   : > { %v10598_v16 = vpop.permute.xlu2 %1590  ;;  %v2281_v4 = vpop.permute.xlu1 %2280  ;;  %7652 = vmatmul.msk.bf16.gmra.mxu3 %vm367_vm1, %v8496_v61  ;;  %v2452_v61 = vrot.slane %v10411_v28, 1 }
 0x279   : > { %v2313_v38 = vmax.f32 %v10282_v2, %v2281_v4  ;;  %v2279_v25 = vpop.permute.xlu0 %2278  ;;  %v8499_v2 = vld [vmem:[%s13601_s2 + $0x8] sm:$0xff]  ;;  %4621 = vmatpush.bf16.msra.mxu3 %v8536_v3  ;;  %v8489_v3 = vld [vmem:[%s8898_s14 + $0x1b8] sm:$0xff] }
 0x27a   : > { %v2312_v40 = vmax.f32 %v10255_v7, %v2279_v25  ;;  %v714_v7 = vsel %vm708_vm9, %v10501_v51, %v10419_v37  ;;  %4121 = vmatpush.bf16.msra.mxu1 %v8499_v2  ;;  %v8507_v25 = vld [vmem:[%s13601_s2 + $0x48] sm:$0xff]  ;;  %v8506_v2 = vld [vmem:[%s13601_s2 + $0x40] sm:$0xff] }
 0x27b   : > { %v2336_v62 = vsel %vm525_vm2, %v2313_v38, -inf  ;;  %4020 = vmatpush.bf16.msra.mxu0 %v8511_v47  ;;  %v8534_v47 = vld [vmem:[%s13601_s2 + $0x60] sm:$0xff] }
 0x27c   : > { %v2337_v41 = vmax.f32 %v2335_v63, %v2336_v62  ;;  %v2333_v23 = vsel %vm525_vm2, %v2312_v40, -inf  ;;  %v2053_v40 = vsel %vm708_vm9, %v10572_v48, %v10498_v1 }
 0x27d   : > { %v2334_v20 = vmax.f32 %v2332_v52, %v2333_v23  ;;  %4622 = vmatpush.bf16.msra.mxu3 %v8535_v27  ;;  %v2413_v23 = vrot.slane %v10514_v5, 7 }
 0x27e   : > { %v2349_v43 = vadd.f32 %v10062_v30, %v2337_v41  ;;  %1191 = vrot.lane.b32.xlu2 %v1161_v55, %s8826_s15  ;;  %744 = vrot.lane.b32.xlu1 %v714_v7, %s8826_s15  ;;  %v2453_v41 = vrot.slane %v10514_v5, 1  ;;  %v8488_v7 = vld [vmem:[%s8898_s14 + $0x1b0] sm:$0xff]  ;;  %v8497_v55 = vld [vmem:[%s8898_s14 + $0x1f8] sm:$0xff] }
 0x27f   : > { %v2348_v13 = vadd.f32 %v10062_v30, %v2334_v20  ;;  %1637 = vrot.lane.b32.xlu0 %v1607_v12, %s8826_s15  ;;  %v10643_v30 = vpop.f32.mrf.mxu1  ;;  %4021 = vmatpush.bf16.msra.mxu0 %v8510_v11  ;;  %v8521_v20 = vld [vmem:[%s13601_s2 + $0xb8] sm:$0xff]  ;;  %v2414_v5 = vsel %vm618_vm15, %v2412_v53, %v2413_v23  ;;  %v8532_v53 = vld [vmem:[%s13601_s2 + $0x50] sm:$0xff] }
 0x280   : > { %v2365_v37 = vmin.f32 %v2349_v43, 0.0  ;;  %v10631_v51 = vpop.permute.xlu2 %1986  ;;  %v10633_v49 = vpop.permute.xlu1 %643  ;;  %4122 = vmatpush.bf16.msra.mxu1 %v8498_v45  ;;  %vm2357_vm14 = vcmp.gt.f32.partialorder %v2349_v43, 0.0  ;;  %v8533_v12 = vld [vmem:[%s13601_s2 + $0x58] sm:$0xff]  ;;  %7604 = vmatmul.msk.bf16.gmra.mxu2 %vm367_vm1, %v8488_v7  ;;  %v2454_v28 = vsel %vm659_vm10, %v2452_v61, %v2453_v41 }
 0x281   : > { %v2364_v56 = vmin.f32 %v2348_v13, 0.0  ;;  %v10641_v17 = vpop.permute.xlu0 %1538  ;;  %vm2356_vm3 = vcmp.gt.f32.partialorder %v2348_v13, 0.0  ;;  %4623 = vmatpush.bf16.msra.mxu3 %v8534_v47  ;;  %4254 = vmatpush.bf16.msra.mxu2 %v8521_v20 }
 0x282   : > { %v2380_v31 = vmul.f32 1.442695, %v2365_v37  ;;  %v8520_v37 = vld [vmem:[%s13601_s2 + $0xb0] sm:$0xff]  ;;  %v10735_v11 = vpop.f32.mrf.mxu2  ;;  %v1553_v20 = vsel %vm618_vm15, 0.0, %v10641_v17 }
 0x283   : > { %v2378_v24 = vmul.f32 1.442695, %v2364_v56  ;;  %4123 = vmatmul.bf16.vlgmr.msra.gmra.mxu1 %v8830_v50  ;;  %4022 = vmatpush.bf16.msra.mxu0 %v8509_v46  ;;  %v8517_v50 = vld [vmem:[%s13601_s2 + $0x98] sm:$0xff] }
 0x284   : > { %8700 = vpow2.f32 %v2380_v31  ;;  %v8519_v31 = vld [vmem:[%s13601_s2 + $0xa8] sm:$0xff] }
 0x285   : > { %8702 = vpow2.f32 %v2378_v24  ;;  %4624 = vmatpush.bf16.msra.mxu3 %v8533_v12  ;;  %4255 = vmatpush.bf16.msra.mxu2 %v8520_v37  ;;  %v658_v24 = vsel %vm618_vm15, 0.0, %v10633_v49 }
 0x286   : > { %1635 = vrot.lane.b32.xlu2 %v1606_v10, %s8826_s15  ;;  %1189 = vrot.lane.b32.xlu1 %v1160_v44, %s8826_s15 }
 0x287   : > { %2081 = vrot.lane.b32.xlu0 %v2052_v42, %s8826_s15  ;;  %v10680_v18 = vpop.f32.mrf.mxu1  ;;  %4023 = vmatpush.bf16.msra.mxu0 %v8508_v54 }
 0x288   : > { %v735_v35 = vpop.permute.xlu2 %734  ;;  %v10671_v6 = vpop.permute.xlu1 %1984  ;;  %7653 = vmatmul.msk.bf16.gmra.mxu3 %vm367_vm1, %v8497_v55 }
 0x289   : > { %759 = vst.msk [vmem:[#allocation2 + $0x10] sm:$0xff] %vm758_vm13, %v735_v35  ;;  %v697_v15 = vpop.permute.xlu0 %696  ;;  %4625 = vmatpush.bf16.msra.mxu3 %v8532_v53  ;;  %4256 = vmatpush.bf16.msra.mxu2 %v8519_v31 }
 0x28a   : > { %v8701_v9 = vpop.eup %8700  ;;  %v715_v36 = vsel %vm708_vm9, %v658_v24, %v697_v15  ;;  %v10767_v42 = vpop.f32.mrf.mxu2  ;;  %v8516_v15 = vld [vmem:[%s13601_s2 + $0x90] sm:$0xff] }
 0x28b   : > { %v8703_v4 = vpop.eup %8702  ;;  %v7517_v22 = vadd.f32 -1.0, %v8701_v9  ;;  %4024 = vmatpush.bf16.msra.mxu0 %v8507_v25  ;;  %v8515_v25 = vld [vmem:[%s13601_s2 + $0x88] sm:$0xff] }
 0x28c   : > { %v7516_v38 = vadd.f32 -1.0, %v8703_v4 }
 0x28d   : > { %v10688_v63 = vsel %vm2357_vm14, %v2349_v43, %v7517_v22  ;;  %v2464_v43 = vsel %vm659_vm10, %v2453_v41, 0.0  ;;  %4626 = vmatpush.bf16.msra.mxu3 %v8531_v19  ;;  %4257 = vmatpush.bf16.msra.mxu2 %v8518_v32  ;;  %v8514_v41 = vld [vmem:[%s13601_s2 + $0x80] sm:$0xff] }
 0x28e   : > { %2716 = vrot.lane.b32.xlu2 %v10680_v18, %s8826_s15  ;;  %2083 = vrot.lane.b32.xlu1 %v2053_v40, %s8826_s15  ;;  %v10693_v62 = vsel %vm2356_vm3, %v2348_v13, %v7516_v38  ;;  %2510 = vst.msk [vmem:[#allocation2 + $0x148] sm:$0xff] %vm525_vm2, %v10688_v63 }
 0x28f   : > { %2712 = vrot.lane.b32.xlu0 %v10594_v59, %s8826_s15  ;;  %2509 = vst.msk [vmem:[#allocation2 + $0x140] sm:$0xff] %vm525_vm2, %v10693_v62  ;;  %4025 = vmatpush.bf16.msra.mxu0 %v8506_v2  ;;  %v10742_v33 = vpop.f32.mrf.mxu1  ;;  %v2415_v35 = vrot.slane %v10693_v62, 7 }
 0x290   : > { %v10704_v1 = vpop.permute.xlu2 %2418  ;;  %v699_v48 = vpop.permute.xlu1 %698  ;;  %7605 = vmatmul.msk.bf16.gmra.mxu2 %vm367_vm1, %v8489_v3  ;;  %v3929_v7 = vld [vmem:[#allocation2 + $0x10] sm:$0xff] }
 0x291   : > { %v10706_v52 = vpop.permute.xlu0 %1094  ;;  %v716_v13 = vsel %vm708_vm9, %v10543_v57, %v699_v48  ;;  %4627 = vmatpush.bf16.msra.mxu3 %v8530_v34  ;;  %4258 = vmatpush.bf16.msra.mxu2 %v8517_v50 }
 0x292   : > { %v10789_v38 = vpop.f32.mrf.mxu2  ;;  %v1163_v40 = vsel %vm708_vm9, %v10706_v52, %v10567_v29 }
 0x295   : > { %4259 = vmatpush.bf16.msra.mxu2 %v8516_v15 }
 0x296   : > { %2480 = vrot.lane.b32.xlu2 %v2464_v43, %s8828_s27  ;;  %2428 = vrot.lane.b32.xlu1 %v2414_v5, %s8827_s26  ;;  %v1999_v43 = vsel %vm618_vm15, 0.0, %v10671_v6  ;;  %v2456_v6 = vrot.slane %v10688_v63, 1 }
 0x297   : > { %748 = vrot.lane.b32.xlu0 %v716_v13, %s8826_s15  ;;  %v10775_v54 = vpop.f32.mrf.mxu1  ;;  %v1608_v13 = vsel %vm708_vm9, %v1553_v20, %v10598_v16 }
 0x298   : > { %v1630_v45 = vpop.permute.xlu2 %1629  ;;  %v1145_v56 = vpop.permute.xlu1 %1144  ;;  %v2465_v16 = vsel %vm659_vm10, %v2456_v6, 0.0 }
 0x299   : > { %1652 = vst.msk [vmem:[#allocation2 + $0x98] sm:$0xff] %vm758_vm13, %v1630_v45  ;;  %v1593_v57 = vpop.permute.xlu0 %1592  ;;  %v1162_v46 = vsel %vm708_vm9, %v1107_v26, %v1145_v56  ;;  %4260 = vmatpush.bf16.msra.mxu2 %v8515_v25 }
 0x29a   : > { %v10818_v37 = vpop.f32.mrf.mxu2 }
 0x29d   : > { %4261 = vmatpush.bf16.msra.mxu2 %v8514_v41 }
 0x29e   : > { %2478 = vrot.lane.b32.xlu1 %v2454_v28, %s8828_s27  ;;  %746 = vrot.lane.b32.xlu2 %v715_v36, %s8826_s15 }
 0x29f   : > { %1193 = vrot.lane.b32.xlu0 %v1162_v46, %s8826_s15  ;;  %v10801_v48 = vpop.f32.mrf.mxu1  ;;  %v13740_v46 = vld [vmem:[#allocation7_spill] sm:$0xff] }
 0x2a0   : > { %v2074_v49 = vpop.permute.xlu2 %2073  ;;  %v1541_v10 = vpop.permute.xlu1 %1540  ;;  %v4533_v36 = vld [vmem:[#allocation2 + $0x98] sm:$0xff]  ;;  %v2749_v32 = vmax.f32 %v13740_v46, %v10250_v39 }
 0x2a1   : > { %2097 = vst.msk [vmem:[#allocation2 + $0xd0] sm:$0xff] %vm758_vm13, %v2074_v49  ;;  %v2037_v44 = vpop.permute.xlu0 %2036  ;;  %v1609_v47 = vsel %vm708_vm9, %v1541_v10, %v1593_v57  ;;  %v2455_v57 = vrot.slane %v10693_v62, 1 }
 0x2a2   : > { %v2054_v5 = vsel %vm708_vm9, %v1999_v43, %v2037_v44  ;;  %v10835_v61 = vpop.f32.mrf.mxu2  ;;  %v2769_v50 = vsel %vm525_vm2, %v2749_v32, -inf }
 0x2a3   : > { %v2457_v24 = vsel %vm659_vm10, %v2455_v57, %v2456_v6 }
 0x2a6   : > { %2714 = vrot.lane.b32.xlu1 %v10643_v30, %s8826_s15  ;;  %2430 = vrot.lane.b32.xlu2 %v2415_v35, %s8827_s26 }
 0x2a7   : > { %v10823_v56 = vpop.f32.mrf.mxu1 }
 0x2a8   : > { %v10783_v9 = vpop.permute.xlu2 %2472  ;;  %v2039_v27 = vpop.permute.xlu1 %2038 }
 0x2a9   : > { %v2055_v4 = vsel %vm708_vm9, %v10631_v51, %v2039_v27  ;;  %v737_v22 = vpop.permute.xlu0 %736  ;;  %v2416_v51 = vrot.slane %v10688_v63, 7 }
 0x2aa   : > { %760 = vst.msk [vmem:[#allocation2 + $0x18] sm:$0xff] %vm758_vm13, %v737_v22  ;;  %2087 = vrot.lane.b32.xlu0 %v2055_v4, %s8826_s15  ;;  %v10851_v44 = vpop.f32.mrf.mxu2 }
 0x2ab   : > { %v2417_v52 = vsel %vm618_vm15, %v2415_v35, %v2416_v51  ;;  %v2442_v35 = vsel %vm618_vm15, 0.0, %v10704_v1 }
 0x2ae   : > { %1195 = vrot.lane.b32.xlu1 %v1163_v40, %s8826_s15  ;;  %1641 = vrot.lane.b32.xlu2 %v1609_v47, %s8826_s15 }
 0x2af   : > { %v10840_v62 = vpop.f32.mrf.mxu1 }
 0x2b0   : > { %v741_v23 = vpop.permute.xlu2 %740  ;;  %v1184_v2 = vpop.permute.xlu1 %1183 }
 0x2b1   : > { %762 = vst.msk [vmem:[#allocation2 + $0x28] sm:$0xff] %vm758_vm13, %v741_v23  ;;  %v1182_v29 = vpop.permute.xlu0 %1181  ;;  %v3930_v55 = vld [vmem:[#allocation2 + $0x18] sm:$0xff] }
 0x2b2   : > { %1206 = vst.msk [vmem:[#allocation2 + $0x58] sm:$0xff] %vm758_vm13, %v1184_v2  ;;  %2432 = vrot.lane.b32.xlu0 %v2417_v52, %s8827_s26  ;;  %v3945_v12 = vpack.c.bf16 %v3930_v55, %v3929_v7  ;;  %v10874_v2 = vpop.f32.mrf.mxu2 }
 0x2b3   : > { %1205 = vst.msk [vmem:[#allocation2 + $0x50] sm:$0xff] %vm758_vm13, %v1182_v29  ;;  %v13741_v29 = vrot.slane %v10134_v58, 7  ;;  %v13742_v58 = vrot.slane %v10185_v8, 1 }
 0x2b4   : > { %4026 = vmatmul.bf16.vlgmr.msra.gmra.mxu0 %v3945_v12  ;;  %4128 = vmatmul.bf16.gmra.mxu1 %v3945_v12 }
 0x2b5   : > { %v2908_v12 = vsel %vm659_vm10, %v13742_v58, 0.0 }
 0x2b6   : > { %1639 = vrot.lane.b32.xlu1 %v1608_v13, %s8826_s15  ;;  %2085 = vrot.lane.b32.xlu2 %v2054_v5, %s8826_s15  ;;  %v10896_v5 = vpop.f32.mrf.mxu3 }
 0x2b8   : > { %v1186_v17 = vpop.permute.xlu2 %1185  ;;  %v1628_v53 = vpop.permute.xlu1 %1627  ;;  %v3932_v41 = vld [vmem:[#allocation2 + $0x28] sm:$0xff] }
 0x2b9   : > { %1207 = vst.msk [vmem:[#allocation2 + $0x60] sm:$0xff] %vm758_vm13, %v1186_v17  ;;  %v2076_v45 = vpop.permute.xlu0 %2075 }
 0x2ba   : > { %1651 = vst.msk [vmem:[#allocation2 + $0x90] sm:$0xff] %vm758_vm13, %v1628_v53  ;;  %2718 = vrot.lane.b32.xlu0 %v10742_v33, %s8826_s15 }
 0x2bb   : > { %2098 = vst.msk [vmem:[#allocation2 + $0xd8] sm:$0xff] %vm758_vm13, %v2076_v45 }
 0x2be   : > { %2484 = vrot.lane.b32.xlu1 %v2465_v16, %s8828_s27  ;;  %2720 = vrot.lane.b32.xlu2 %v10775_v54, %s8826_s15 }
 0x2c0   : > { %v2080_v31 = vpop.permute.xlu2 %2079  ;;  %v2471_v63 = vpop.permute.xlu1 %2470 }
 0x2c1   : > { %2100 = vst.msk [vmem:[#allocation2 + $0xe8] sm:$0xff] %vm758_vm13, %v2080_v31  ;;  %v2421_v19 = vpop.permute.xlu0 %2420  ;;  %v4532_v26 = vld [vmem:[#allocation2 + $0x90] sm:$0xff]  ;;  %v2494_v15 = vsel %vm708_vm9, %v2442_v35, %v2471_v63 }
 0x2c2   : > { %2482 = vrot.lane.b32.xlu0 %v2457_v24, %s8828_s27  ;;  %v4548_v28 = vpack.c.bf16 %v4533_v36, %v4532_v26  ;;  %v2495_v27 = vsel %vm708_vm9, %v2421_v19, %v10783_v9  ;;  %v10915_v19 = vpop.f32.mrf.mxu3 }
 0x2c4   : > { %4628 = vmatmul.bf16.vlgmr.msra.gmra.mxu3 %v4548_v28 }
 0x2c6   : > { %2724 = vrot.lane.b32.xlu1 %v10823_v56, %s8826_s15  ;;  %2726 = vrot.lane.b32.xlu2 %v10840_v62, %s8826_s15 }
 0x2c8   : > { %v10848_v34 = vpop.permute.xlu2 %2424  ;;  %v739_v49 = vpop.permute.xlu1 %738 }
 0x2c9   : > { %761 = vst.msk [vmem:[#allocation2 + $0x20] sm:$0xff] %vm758_vm13, %v739_v49  ;;  %v2711_v10 = vpop.permute.xlu0 %2710 }
 0x2ca   : > { %v2751_v3 = vmax.f32 %v10492_v60, %v2711_v10  ;;  %2722 = vrot.lane.b32.xlu0 %v10801_v48, %s8826_s15  ;;  %v10868_v60 = vld [vmem:[%s13603_s4] ss:$0 sm:$0xff] }
 0x2cc   : > { %v2770_v39 = vsel %vm525_vm2, %v2751_v3, -inf  ;;  %v2855_v3 = vrot.slane %v10263_v14, 7 }
 0x2cd   : > { %v2771_v4 = vmax.f32 %v2769_v50, %v2770_v39  ;;  %v2895_v39 = vrot.slane %v10263_v14, 1 }
 0x2ce   : > { %2521 = vrot.lane.b32.xlu2 %v2495_v27, %s8826_s15  ;;  %2519 = vrot.lane.b32.xlu1 %v2494_v15, %s8826_s15 }
 0x2cf   : > { %v2791_v22 = vadd.f32 %v10868_v60, %v2771_v4 }
 0x2d0   : > { %v2477_v1 = vpop.permute.xlu2 %2476  ;;  %v2423_v25 = vpop.permute.xlu1 %2422  ;;  %v3931_v40 = vld [vmem:[#allocation2 + $0x20] sm:$0xff] }
 0x2d1   : > { %v2807_v47 = vmin.f32 %v2791_v22, 0.0  ;;  %v1188_v51 = vpop.permute.xlu0 %1187  ;;  %v3946_v9 = vpack.c.bf16 %v3932_v41, %v3931_v40  ;;  %vm2799_vm1 = vcmp.gt.f32.partialorder %v2791_v22, 0.0  ;;  %v2443_v57 = vsel %vm618_vm15, 0.0, %v2423_v25 }
 0x2d2   : > { %1208 = vst.msk [vmem:[#allocation2 + $0x68] sm:$0xff] %vm758_vm13, %v1188_v51  ;;  %2866 = vrot.lane.b32.xlu0 %v10212_v0, %s8827_s26  ;;  %v2497_v36 = vsel %vm708_vm9, %v10848_v34, %v2477_v1  ;;  %v10933_v34 = vpop.f32.mrf.mxu3 }
 0x2d3   : > { %v2818_v23 = vmul.f32 1.442695, %v2807_v47  ;;  %4031 = vmatmul.bf16.gmra.mxu0 %v3946_v9  ;;  %4133 = vmatmul.bf16.gmra.mxu1 %v3946_v9 }
 0x2d4   : > { %4262 = vmatmul.bf16.vlgmr.msra.gmra.mxu2 %v3946_v9 }
 0x2d5   : > { %8704 = vpow2.f32 %v2818_v23 }
 0x2d6   : > { %2864 = vrot.lane.b32.xlu2 %v13741_v29, %s8827_s26  ;;  %2916 = vrot.lane.b32.xlu1 %v10217_v21, %s8828_s27  ;;  %v10889_v21 = vpop.f32.mrf.mxu2 }
 0x2d8   : > { %v1192_v52 = vpop.permute.xlu2 %1191  ;;  %v1634_v7 = vpop.permute.xlu1 %1633 }
 0x2d9   : > { %1210 = vst.msk [vmem:[#allocation2 + $0x78] sm:$0xff] %vm758_vm13, %v1192_v52  ;;  %v1632_v0 = vpop.permute.xlu0 %1631 }
 0x2da   : > { %1654 = vst.msk [vmem:[#allocation2 + $0xa8] sm:$0xff] %vm758_vm13, %v1634_v7  ;;  %3150 = vrot.lane.b32.xlu0 %v10835_v61, %s8826_s15  ;;  %v10952_v14 = vpop.f32.mrf.mxu3 }
 0x2db   : > { %v8705_v55 = vpop.eup %8704  ;;  %1653 = vst.msk [vmem:[#allocation2 + $0xa0] sm:$0xff] %vm758_vm13, %v1632_v0 }
 0x2dc   : > { %v7561_v20 = vadd.f32 -1.0, %v8705_v55 }
 0x2de   : > { %2918 = vrot.lane.b32.xlu2 %v2908_v12, %s8828_s27  ;;  %3152 = vrot.lane.b32.xlu1 %v10851_v44, %s8826_s15  ;;  %v10894_v43 = vsel %vm2799_vm1, %v2791_v22, %v7561_v20  ;;  %v10908_v16 = vpop.f32.mrf.mxu2 }
 0x2df   : > { %2952 = vst.msk [vmem:[#allocation2 + $0x168] sm:$0xff] %vm525_vm2, %v10894_v43  ;;  %v2856_v10 = vrot.slane %v10894_v43, 7  ;;  %v2896_v35 = vrot.slane %v10894_v43, 1 }
 0x2e0   : > { %v1636_v13 = vpop.permute.xlu2 %1635  ;;  %v2078_v17 = vpop.permute.xlu1 %2077 }
 0x2e1   : > { %1655 = vst.msk [vmem:[#allocation2 + $0xb0] sm:$0xff] %vm758_vm13, %v1636_v13  ;;  %v743_v8 = vpop.permute.xlu0 %742  ;;  %v4535_v45 = vld [vmem:[#allocation2 + $0xa8] sm:$0xff]  ;;  %v2857_v50 = vsel %vm618_vm15, %v2855_v3, %v2856_v10  ;;  %v2897_v25 = vsel %vm659_vm10, %v2895_v39, %v2896_v35  ;;  %v8545_v39 = vld [vmem:[%s13601_s2 + $0xb8] sm:$0xff] }
 0x2e2   : > { %2099 = vst.msk [vmem:[#allocation2 + $0xe0] sm:$0xff] %vm758_vm13, %v2078_v17  ;;  %3156 = vrot.lane.b32.xlu0 %v10889_v21, %s8826_s15  ;;  %v4534_v53 = vld [vmem:[#allocation2 + $0xa0] sm:$0xff]  ;;  %v10972_v43 = vpop.f32.mrf.mxu3  ;;  %4855 = vmatpush.bf16.msrb.mxu1 %v8545_v39 }
 0x2e3   : > { %763 = vst.msk [vmem:[#allocation2 + $0x30] sm:$0xff] %vm758_vm13, %v743_v8  ;;  %v10905_v6 = vpack.c.bf16 %v4535_v45, %v4534_v53 }
 0x2e5   : > { %4633 = vmatmul.bf16.gmra.mxu3 %v10905_v6 }
 0x2e6   : > { %3154 = vrot.lane.b32.xlu2 %v10874_v2, %s8826_s15  ;;  %3142 = vrot.lane.b32.xlu1 %v10735_v11, %s8826_s15  ;;  %v10926_v28 = vpop.f32.mrf.mxu2 }
 0x2e8   : > { %v2717_v31 = vpop.permute.xlu2 %2716  ;;  %v2475_v63 = vpop.permute.xlu1 %2474  ;;  %v4536_v51 = vld [vmem:[#allocation2 + $0xb0] sm:$0xff] }
 0x2e9   : > { %v2496_v24 = vsel %vm708_vm9, %v2443_v57, %v2475_v63  ;;  %v10918_v26 = vpop.permute.xlu0 %2426  ;;  %v2754_v23 = vmax.f32 %v10680_v18, %v2717_v31  ;;  %v2909_v18 = vsel %vm659_vm10, %v2896_v35, 0.0 }
 0x2ea   : > { %2523 = vrot.lane.b32.xlu0 %v2496_v24, %s8826_s15  ;;  %v3933_v4 = vld [vmem:[#allocation2 + $0x30] sm:$0xff]  ;;  %v2444_v31 = vsel %vm618_vm15, 0.0, %v10918_v26 }
 0x2eb   : > { %v2773_v20 = vsel %vm525_vm2, %v2754_v23, -inf }
 0x2ee   : > { %3144 = vrot.lane.b32.xlu2 %v10767_v42, %s8826_s15  ;;  %2525 = vrot.lane.b32.xlu1 %v2497_v36, %s8826_s15  ;;  %v10944_v47 = vpop.f32.mrf.mxu2  ;;  %v10983_v36 = vpop.f32.mrf.mxu3 }
 0x2f0   : > { %v2481_v46 = vpop.permute.xlu2 %2480  ;;  %v745_v32 = vpop.permute.xlu1 %744 }
 0x2f1   : > { %764 = vst.msk [vmem:[#allocation2 + $0x38] sm:$0xff] %vm758_vm13, %v745_v32  ;;  %v1638_v49 = vpop.permute.xlu0 %1637 }
 0x2f2   : > { %1656 = vst.msk [vmem:[#allocation2 + $0xb8] sm:$0xff] %vm758_vm13, %v1638_v49  ;;  %3146 = vrot.lane.b32.xlu0 %v10789_v38, %s8826_s15 }
 0x2f6   : > { %2870 = vrot.lane.b32.xlu2 %v2857_v50, %s8827_s26  ;;  %3148 = vrot.lane.b32.xlu1 %v10818_v37, %s8826_s15  ;;  %v10964_v55 = vpop.f32.mrf.mxu2 }
 0x2f8   : > { %v747_v15 = vpop.permute.xlu2 %746  ;;  %v1190_v27 = vpop.permute.xlu1 %1189  ;;  %v3934_v22 = vld [vmem:[#allocation2 + $0x38] sm:$0xff] }
 0x2f9   : > { %765 = vst.msk [vmem:[#allocation2 + $0x40] sm:$0xff] %vm758_vm13, %v747_v15  ;;  %v2082_v1 = vpop.permute.xlu0 %2081  ;;  %v3947_v40 = vpack.c.bf16 %v3934_v22, %v3933_v4  ;;  %v4537_v41 = vld [vmem:[#allocation2 + $0xb8] sm:$0xff]  ;;  %v8544_v22 = vld [vmem:[%s13601_s2 + $0xb0] sm:$0xff] }
 0x2fa   : > { %1209 = vst.msk [vmem:[#allocation2 + $0x70] sm:$0xff] %vm758_vm13, %v1190_v27  ;;  %2920 = vrot.lane.b32.xlu0 %v2897_v25, %s8828_s27  ;;  %v10948_v9 = vpack.c.bf16 %v4537_v41, %v4536_v51  ;;  %4856 = vmatpush.bf16.msrb.mxu1 %v8544_v22  ;;  %v3937_v51 = vld [vmem:[#allocation2 + $0x50] sm:$0xff]  ;;  %v3939_v22 = vld [vmem:[#allocation2 + $0x60] sm:$0xff] }
 0x2fb   : > { %2101 = vst.msk [vmem:[#allocation2 + $0xf0] sm:$0xff] %vm758_vm13, %v2082_v1  ;;  %4036 = vmatmul.bf16.gmra.mxu0 %v3947_v40  ;;  %4138 = vmatmul.bf16.gmra.mxu1 %v3947_v40  ;;  %v11005_v1 = vpop.f32.mrf.mxu3 }
 0x2fc   : > { %4267 = vmatmul.bf16.gmra.mxu2 %v3947_v40  ;;  %4638 = vmatmul.bf16.gmra.mxu3 %v10948_v9  ;;  %v8543_v40 = vld [vmem:[%s13601_s2 + $0xa8] sm:$0xff] }
 0x2fe   : > { %3158 = vrot.lane.b32.xlu2 %v10908_v16, %s8826_s15  ;;  %2868 = vrot.lane.b32.xlu1 %v2855_v3, %s8827_s26 }
 0x2ff   : > { %4857 = vmatpush.bf16.msrb.mxu1 %v8543_v40 }
 0x300   : > { %v10958_v29 = vpop.permute.xlu2 %2430  ;;  %v2084_v52 = vpop.permute.xlu1 %2083  ;;  %v3935_v49 = vld [vmem:[#allocation2 + $0x40] sm:$0xff] }
 0x301   : > { %2102 = vst.msk [vmem:[#allocation2 + $0xf8] sm:$0xff] %vm758_vm13, %v2084_v52  ;;  %v2713_v7 = vpop.permute.xlu0 %2712  ;;  %v3938_v52 = vld [vmem:[#allocation2 + $0x58] sm:$0xff] }
 0x302   : > { %v2752_v0 = vmax.f32 %v10594_v59, %v2713_v7  ;;  %3160 = vrot.lane.b32.xlu0 %v10926_v28, %s8826_s15  ;;  %v3949_v7 = vpack.c.bf16 %v3938_v52, %v3937_v51  ;;  %v8526_v52 = vld [vmem:[%s13601_s2 + $0x20] sm:$0xff] }
 0x304   : > { %v2772_v58 = vsel %vm525_vm2, %v2752_v0, -inf  ;;  %v8542_v0 = vld [vmem:[%s13601_s2 + $0xa0] sm:$0xff] }
 0x305   : > { %v2774_v12 = vmax.f32 %v2772_v58, %v2773_v20  ;;  %v11019_v58 = vpop.f32.mrf.mxu3  ;;  %4858 = vmatpush.bf16.msrb.mxu1 %v8542_v0 }
 0x306   : > { %3164 = vrot.lane.b32.xlu2 %v10964_v55, %s8826_s15  ;;  %2922 = vrot.lane.b32.xlu1 %v2909_v18, %s8828_s27  ;;  %v8541_v18 = vld [vmem:[%s13601_s2 + $0x98] sm:$0xff] }
 0x307   : > { %v2792_v59 = vadd.f32 %v10868_v60, %v2774_v12  ;;  %v8529_v12 = vld [vmem:[%s13601_s2 + $0x38] sm:$0xff] }
 0x308   : > { %v1642_v13 = vpop.permute.xlu2 %1641  ;;  %v2429_v17 = vpop.permute.xlu1 %2428  ;;  %4717 = vmatpush.bf16.msrb.mxu0 %v8529_v12 }
 0x309   : > { %v2808_v8 = vmin.f32 %v2792_v59, 0.0  ;;  %1658 = vst.msk [vmem:[#allocation2 + $0xc8] sm:$0xff] %vm758_vm13, %v1642_v13  ;;  %v2499_v53 = vsel %vm708_vm9, %v2429_v17, %v2481_v46  ;;  %v749_v45 = vpop.permute.xlu0 %748  ;;  %vm2800_vm4 = vcmp.gt.f32.partialorder %v2792_v59, 0.0  ;;  %4859 = vmatpush.bf16.msrb.mxu1 %v8541_v18  ;;  %v8528_v17 = vld [vmem:[%s13601_s2 + $0x30] sm:$0xff] }
 0x30a   : > { %766 = vst.msk [vmem:[#allocation2 + $0x48] sm:$0xff] %vm758_vm13, %v749_v45  ;;  %2529 = vrot.lane.b32.xlu0 %v2499_v53, %s8826_s15 }
 0x30b   : > { %v2820_v57 = vmul.f32 1.442695, %v2808_v8  ;;  %v8540_v8 = vld [vmem:[%s13601_s2 + $0x90] sm:$0xff] }
 0x30c   : > { %4718 = vmatpush.bf16.msrb.mxu0 %v8528_v17 }
 0x30d   : > { %8706 = vpow2.f32 %v2820_v57  ;;  %4860 = vmatpush.bf16.msrb.mxu1 %v8540_v8 }
 0x30e   : > { %3162 = vrot.lane.b32.xlu1 %v10944_v47, %s8826_s15 }
 0x310   : > { %v2086_v63 = vpop.permute.xlu2 %2085  ;;  %v2479_v24 = vpop.permute.xlu1 %2478 }
 0x311   : > { %2103 = vst.msk [vmem:[#allocation2 + $0x100] sm:$0xff] %vm758_vm13, %v2086_v63  ;;  %v2498_v46 = vsel %vm708_vm9, %v2444_v31, %v2479_v24  ;;  %v1194_v32 = vpop.permute.xlu0 %1193  ;;  %v3936_v10 = vld [vmem:[#allocation2 + $0x48] sm:$0xff]  ;;  %v11043_v24 = vpop.f32.mrf.mxu3 }
 0x312   : > { %1211 = vst.msk [vmem:[#allocation2 + $0x80] sm:$0xff] %vm758_vm13, %v1194_v32  ;;  %2527 = vrot.lane.b32.xlu2 %v2498_v46, %s8826_s15  ;;  %v3948_v3 = vpack.c.bf16 %v3936_v10, %v3935_v49  ;;  %v8527_v31 = vld [vmem:[%s13601_s2 + $0x28] sm:$0xff]  ;;  %v11047_v49 = vpop.f32.mrf.mxu2 }
 0x313   : > { %v8707_v50 = vpop.eup %8706  ;;  %v8539_v63 = vld [vmem:[%s13601_s2 + $0x88] sm:$0xff]  ;;  %4719 = vmatpush.bf16.msrb.mxu0 %v8527_v31 }
 0x314   : > { %v7562_v35 = vadd.f32 -1.0, %v8707_v50  ;;  %4041 = vmatmul.bf16.gmra.mxu0 %v3948_v3  ;;  %4143 = vmatmul.bf16.gmra.mxu1 %v3948_v3  ;;  %v4124_v50 = vpop.f32.mrf.mxu1 }
 0x315   : > { %4272 = vmatmul.bf16.gmra.mxu2 %v3948_v3  ;;  %4861 = vmatpush.bf16.msrb.mxu1 %v8539_v63  ;;  %v8524_v63 = vld [vmem:[%s13601_s2 + $0x10] sm:$0xff] }
 0x316   : > { %v10989_v26 = vsel %vm2800_vm4, %v2792_v59, %v7562_v35 }
 0x317   : > { %v2858_v15 = vrot.slane %v10989_v26, 7  ;;  %2953 = vst.msk [vmem:[#allocation2 + $0x170] sm:$0xff] %vm525_vm2, %v10989_v26  ;;  %4720 = vmatpush.bf16.msrb.mxu0 %v8526_v52 }
 0x318   : > { %v10997_v27 = vpop.permute.xlu2 %2720  ;;  %v2715_v4 = vpop.permute.xlu1 %2714 }
 0x319   : > { %v2753_v53 = vmax.f32 %v10643_v30, %v2715_v4  ;;  %v3940_v30 = vld [vmem:[#allocation2 + $0x68] sm:$0xff]  ;;  %v2756_v17 = vmax.f32 %v10775_v54, %v10997_v27  ;;  %v8560_v54 = vld [vmem:[%s13601_s2 + $0x70] sm:$0xff] }
 0x31a   : > { %2872 = vrot.lane.b32.xlu2 %v2858_v15, %s8827_s26  ;;  %v4539_v4 = vld [vmem:[#allocation2 + $0xc8] sm:$0xff]  ;;  %v11080_v31 = vpop.f32.mrf.mxu2 }
 0x31b   : > { %v2775_v46 = vsel %vm525_vm2, %v2753_v53, -inf  ;;  %v2778_v27 = vsel %vm525_vm2, %v2756_v17, -inf }
 0x31c   : > { %v2088_v25 = vpop.permute.xlu0 %2087 }
 0x31d   : > { %2104 = vst.msk [vmem:[#allocation2 + $0x108] sm:$0xff] %vm758_vm13, %v2088_v25 }
 0x320   : > { %v11011_v41 = vpop.permute.xlu2 %2726  ;;  %v1196_v23 = vpop.permute.xlu1 %1195 }
 0x321   : > { %1212 = vst.msk [vmem:[#allocation2 + $0x88] sm:$0xff] %vm758_vm13, %v1196_v23  ;;  %v3950_v23 = vpack.c.bf16 %v3940_v30, %v3939_v22  ;;  %v8523_v22 = vld [vmem:[%s13601_s2 + $0x8] sm:$0xff] }
 0x324   : > { %v11017_v20 = vpop.permute.xlu0 %2432  ;;  %4046 = vmatmul.bf16.gmra.mxu0 %v3949_v7  ;;  %4148 = vmatmul.bf16.gmra.mxu1 %v3949_v7 }
 0x325   : > { %4277 = vmatmul.bf16.gmra.mxu2 %v3949_v7  ;;  %v8538_v7 = vld [vmem:[%s13601_s2 + $0x80] sm:$0xff] }
 0x326   : > { %4862 = vmatpush.bf16.msrb.mxu1 %v8538_v7 }
 0x328   : > { %v2522_v59 = vpop.permute.xlu2 %2521  ;;  %v1640_v13 = vpop.permute.xlu1 %1639 }
 0x329   : > { %2544 = vst.msk [vmem:[#allocation2 + $0x118] sm:$0xff] %vm758_vm13, %v2522_v59  ;;  %v8525_v59 = vld [vmem:[%s13601_s2 + $0x18] sm:$0xff] }
 0x32a   : > { %1657 = vst.msk [vmem:[#allocation2 + $0xc0] sm:$0xff] %vm758_vm13, %v1640_v13  ;;  %v8561_v13 = vld [vmem:[%s13601_s2 + $0x78] sm:$0xff]  ;;  %4721 = vmatpush.bf16.msrb.mxu0 %v8525_v59  ;;  %v4540_v59 = vld [vmem:[#allocation2 + $0xd0] sm:$0xff] }
 0x32b   : > { %5222 = vmatpush.bf16.msrb.mxu2 %v8561_v13  ;;  %v3942_v13 = vld [vmem:[#allocation2 + $0x78] sm:$0xff] }
 0x32c   : > { %v2719_v45 = vpop.permute.xlu0 %2718 }
 0x32d   : > { %v2755_v57 = vmax.f32 %v10742_v33, %v2719_v45  ;;  %v11077_v45 = vpop.f32.mrf.mxu3 }
 0x32e   : > { %4722 = vmatpush.bf16.msrb.mxu0 %v8524_v63 }
 0x32f   : > { %v2776_v32 = vsel %vm525_vm2, %v2755_v57, -inf  ;;  %5223 = vmatpush.bf16.msrb.mxu2 %v8560_v54 }
 0x330   : > { %v2777_v10 = vmax.f32 %v2775_v46, %v2776_v32  ;;  %v11049_v33 = vpop.permute.xlu2 %2864  ;;  %v11051_v3 = vpop.permute.xlu1 %2484  ;;  %v2759_v46 = vmax.f32 %v10840_v62, %v11011_v41  ;;  %v8559_v62 = vld [vmem:[%s13601_s2 + $0x68] sm:$0xff] }
 0x331   : > { %v4027_v35 = vpop.f32.mrf.mxu0  ;;  %v4538_v39 = vld [vmem:[#allocation2 + $0xc0] sm:$0xff] }
 0x332   : > { %v2793_v25 = vadd.f32 %v10868_v60, %v2777_v10  ;;  %v11054_v40 = vadd.f32 %v4124_v50, %v4027_v35  ;;  %v11056_v51 = vpack.c.bf16 %v4539_v4, %v4538_v39  ;;  %v4541_v50 = vld [vmem:[#allocation2 + $0xd8] sm:$0xff]  ;;  %v3941_v4 = vld [vmem:[#allocation2 + $0x70] sm:$0xff]  ;;  %v2782_v41 = vsel %vm525_vm2, %v2759_v46, -inf  ;;  %4723 = vmatpush.bf16.msrb.mxu0 %v8523_v22 }
 0x333   : > { %5224 = vmatpush.bf16.msrb.mxu2 %v8559_v62  ;;  %v11108_v17 = vpack.c.bf16 %v4541_v50, %v4540_v59  ;;  %v11125_v50 = vpop.f32.mrf.mxu2 }
 0x334   : > { %v2809_v0 = vmin.f32 %v2793_v25, 0.0  ;;  %4643 = vmatmul.bf16.gmra.mxu3 %v11056_v51  ;;  %v11065_v12 = vpop.permute.xlu0 %2482  ;;  %4051 = vmatmul.bf16.gmra.mxu0 %v3950_v23  ;;  %vm2801_vm5 = vcmp.gt.f32.partialorder %v2793_v25, 0.0 }
 0x335   : > { %4153 = vmatmul.bf16.gmra.mxu1 %v3950_v23  ;;  %4282 = vmatmul.bf16.gmra.mxu2 %v3950_v23 }
 0x336   : > { %v2822_v18 = vmul.f32 1.442695, %v2809_v0 }
 0x338   : > { %8708 = vpow2.f32 %v2822_v18  ;;  %v11075_v8 = vpop.permute.xlu2 %2918  ;;  %v2725_v53 = vpop.permute.xlu1 %2724 }
 0x339   : > { %v2758_v57 = vmax.f32 %v10823_v56, %v2725_v53  ;;  %v3951_v53 = vpack.c.bf16 %v3942_v13, %v3941_v4  ;;  %v8553_v4 = vld [vmem:[%s13601_s2 + $0x38] sm:$0xff] }
 0x33a   : > { %5319 = vmatpush.bf16.msrb.mxu3 %v8553_v4 }
 0x33b   : > { %v2779_v32 = vsel %vm525_vm2, %v2758_v57, -inf }
 0x33c   : > { %v2780_v30 = vmax.f32 %v2778_v27, %v2779_v32  ;;  %v2723_v56 = vpop.permute.xlu0 %2722  ;;  %v11114_v32 = vpop.f32.mrf.mxu3 }
 0x33d   : > { %v2757_v10 = vmax.f32 %v10801_v48, %v2723_v56  ;;  %v8522_v56 = vld [vmem:[%s13601_s2] sm:$0xff] }
 0x33e   : > { %v8709_v35 = vpop.eup %8708  ;;  %v11094_v39 = vadd.f32 %v10868_v60, %v2780_v30  ;;  %v2898_v30 = vrot.slane %v10989_v26, 1  ;;  %4724 = vmatpush.bf16.msrb.mxu0 %v8522_v56  ;;  %v8557_v26 = vld [vmem:[%s13601_s2 + $0x58] sm:$0xff]  ;;  %v11176_v56 = vpop.f32.mrf.mxu2 }
 0x33f   : > { %v2781_v23 = vsel %vm525_vm2, %v2757_v10, -inf  ;;  %v7563_v48 = vadd.f32 -1.0, %v8709_v35  ;;  %v8558_v35 = vld [vmem:[%s13601_s2 + $0x60] sm:$0xff] }
 0x340   : > { %v2810_v52 = vmin.f32 %v11094_v39, 0.0  ;;  %v2783_v7 = vmax.f32 %v2781_v23, %v2782_v41  ;;  %v11105_v0 = vpop.permute.xlu2 %3154  ;;  %v2520_v18 = vpop.permute.xlu1 %2519  ;;  %5225 = vmatpush.bf16.msrb.mxu2 %v8558_v35  ;;  %vm2802_vm6 = vcmp.gt.f32.partialorder %v11094_v39, 0.0  ;;  %v3944_v35 = vld [vmem:[#allocation2 + $0x88] sm:$0xff] }
 0x341   : > { %2543 = vst.msk [vmem:[#allocation2 + $0x110] sm:$0xff] %vm758_vm13, %v2520_v18  ;;  %v2841_v57 = vsel %vm2801_vm5, %v2793_v25, %v7563_v48  ;;  %v11139_v23 = vpop.f32.mrf.mxu1  ;;  %v3196_v13 = vmax.f32 %v10874_v2, %v11105_v0  ;;  %v11170_v0 = vld [vmem:[%s13603_s4] ss:$0 sm:$0xff] }
 0x342   : > { %v2824_v63 = vmul.f32 1.442695, %v2810_v52  ;;  %v11111_v54 = vadd.f32 %v10868_v60, %v2783_v7  ;;  %v2899_v27 = vrot.slane %v2841_v57, 1  ;;  %2954 = vst.msk [vmem:[#allocation2 + $0x178] sm:$0xff] %vm525_vm2, %v2841_v57  ;;  %v2859_v46 = vrot.slane %v2841_v57, 7  ;;  %v11150_v7 = vpop.f32.mrf.mxu0  ;;  %v8556_v57 = vld [vmem:[%s13601_s2 + $0x50] sm:$0xff] }
 0x344   : > { %8710 = vpow2.f32 %v2824_v63  ;;  %v2811_v25 = vmin.f32 %v11111_v54, 0.0  ;;  %4648 = vmatmul.bf16.gmra.mxu3 %v11108_v17  ;;  %v11122_v60 = vpop.permute.xlu0 %2866  ;;  %4056 = vmatmul.bf16.gmra.mxu0 %v3951_v53  ;;  %v2910_v10 = vsel %vm659_vm10, %v2899_v27, 0.0  ;;  %v2900_v22 = vsel %vm659_vm10, %v2898_v30, %v2899_v27  ;;  %v8551_v63 = vld [vmem:[%s13601_s2 + $0x28] sm:$0xff]  ;;  %v11161_v27 = vpop.f32.mrf.mxu3 }
 0x345   : > { %4158 = vmatmul.bf16.gmra.mxu1 %v3951_v53  ;;  %4287 = vmatmul.bf16.gmra.mxu2 %v3951_v53  ;;  %v2860_v62 = vsel %vm618_vm15, %v2858_v15, %v2859_v46  ;;  %v8552_v15 = vld [vmem:[%s13601_s2 + $0x30] sm:$0xff]  ;;  %vm2803_vm7 = vcmp.gt.f32.partialorder %v11111_v54, 0.0 }
 0x346   : > { %v2826_v41 = vmul.f32 1.442695, %v2811_v25  ;;  %2926 = vrot.lane.b32.xlu2 %v2910_v10, %s8828_s27  ;;  %2924 = vrot.lane.b32.xlu1 %v2900_v22, %s8828_s27  ;;  %v4542_v10 = vld [vmem:[#allocation2 + $0xe0] sm:$0xff] }
 0x347   : > { %2874 = vrot.lane.b32.xlu0 %v2860_v62, %s8827_s26  ;;  %5226 = vmatpush.bf16.msrb.mxu2 %v8557_v26 }
 0x348   : > { %8712 = vpow2.f32 %v2826_v41  ;;  %v11142_v48 = vpop.permute.xlu2 %3144  ;;  %v2917_v52 = vpop.permute.xlu1 %2916  ;;  %5320 = vmatpush.bf16.msrb.mxu3 %v8552_v15  ;;  %v4543_v15 = vld [vmem:[#allocation2 + $0xe8] sm:$0xff] }
 0x349   : > { %v4129_v41 = vpop.f32.mrf.mxu1 }
 0x34a   : > { %v8711_v18 = vpop.eup %8710 }
 0x34b   : > { %v7564_v59 = vadd.f32 -1.0, %v8711_v18  ;;  %5227 = vmatpush.bf16.msrb.mxu2 %v8556_v57  ;;  %v3943_v18 = vld [vmem:[#allocation2 + $0x80] sm:$0xff] }
 0x34c   : > { %v3151_v53 = vpop.permute.xlu0 %3150  ;;  %5321 = vmatpush.bf16.msrb.mxu3 %v8551_v63  ;;  %v8555_v63 = vld [vmem:[%s13601_s2 + $0x48] sm:$0xff] }
 0x34d   : > { %v3194_v46 = vmax.f32 %v10835_v61, %v3151_v53  ;;  %v11165_v30 = vsel %vm2802_vm6, %v11094_v39, %v7564_v59  ;;  %v3213_v39 = vsel %vm525_vm2, %v3196_v13, -inf }
 0x34e   : > { %v8713_v2 = vpop.eup %8712  ;;  %3170 = vrot.lane.b32.xlu2 %v11125_v50, %s8826_s15  ;;  %3168 = vrot.lane.b32.xlu1 %v11080_v31, %s8826_s15  ;;  %2955 = vst.msk [vmem:[#allocation2 + $0x180] sm:$0xff] %vm525_vm2, %v11165_v30 }
 0x34f   : > { %v7565_v61 = vadd.f32 -1.0, %v8713_v2  ;;  %v3212_v25 = vsel %vm525_vm2, %v3194_v46, -inf  ;;  %3166 = vrot.lane.b32.xlu0 %v11047_v49, %s8826_s15  ;;  %v11195_v46 = vpack.c.bf16 %v4543_v15, %v4542_v10  ;;  %v11197_v2 = vpack.c.bf16 %v3944_v35, %v3943_v18  ;;  %5228 = vmatpush.bf16.msrb.mxu2 %v8555_v63 }
 0x350   : > { %v3214_v4 = vmax.f32 %v3212_v25, %v3213_v39  ;;  %v11185_v22 = vpop.permute.xlu2 %2870  ;;  %v3153_v62 = vpop.permute.xlu1 %3152  ;;  %v8550_v25 = vld [vmem:[%s13601_s2 + $0x20] sm:$0xff]  ;;  %v2901_v63 = vrot.slane %v11165_v30, 1 }
 0x351   : > { %v4032_v26 = vpop.f32.mrf.mxu0  ;;  %v11188_v59 = vsel %vm2803_vm7, %v11111_v54, %v7565_v61  ;;  %v3195_v57 = vmax.f32 %v10851_v44, %v3153_v62  ;;  %v2888_v54 = vsel %vm618_vm15, 0.0, %v11049_v33  ;;  %v2941_v44 = vsel %vm708_vm9, %v11122_v60, %v11075_v8  ;;  %5322 = vmatpush.bf16.msrb.mxu3 %v8550_v25  ;;  %v8549_v60 = vld [vmem:[%s13601_s2 + $0x18] sm:$0xff] }
 0x352   : > { %v11191_v13 = vadd.f32 %v11170_v0, %v3214_v4  ;;  %v11193_v53 = vadd.f32 %v4129_v41, %v4032_v26  ;;  %2956 = vst.msk [vmem:[#allocation2 + $0x188] sm:$0xff] %vm525_vm2, %v11188_v59  ;;  %v2940_v10 = vsel %vm708_vm9, %v2888_v54, %v2917_v52  ;;  %v11222_v4 = vpop.f32.mrf.mxu3  ;;  %v2902_v15 = vrot.slane %v11188_v59, 1 }
 0x353   : > { %v3215_v62 = vsel %vm525_vm2, %v3195_v57, -inf  ;;  %v2501_v25 = vsel %vm708_vm9, %v11017_v20, %v11051_v3  ;;  %v4179_v20 = vld [vmem:[#allocation2 + $0x90] sm:$0xff] }
 0x354   : > { %v3252_v61 = vmin.f32 %v11191_v13, 0.0  ;;  %4653 = vmatmul.bf16.gmra.mxu3 %v11195_v46  ;;  %v3157_v39 = vpop.permute.xlu0 %3156  ;;  %4061 = vmatmul.bf16.gmra.mxu0 %v11197_v2  ;;  %vm3244_vm8 = vcmp.gt.f32.partialorder %v11191_v13, 0.0 }
 0x355   : > { %v3197_v35 = vmax.f32 %v10889_v21, %v3157_v39  ;;  %4863 = vmatmul.bf16.vlgmr.msrb.gmra.mxu1 %v10905_v6  ;;  %4292 = vmatmul.bf16.gmra.mxu2 %v11197_v2  ;;  %v8554_v21 = vld [vmem:[%s13601_s2 + $0x40] sm:$0xff]  ;;  %v8548_v39 = vld [vmem:[%s13601_s2 + $0x10] sm:$0xff] }
 0x356   : > { %v3262_v33 = vmul.f32 1.442695, %v3252_v61  ;;  %2967 = vrot.lane.b32.xlu2 %v2941_v44, %s8826_s15  ;;  %2965 = vrot.lane.b32.xlu1 %v2940_v10, %s8826_s15  ;;  %v2903_v44 = vsel %vm659_vm10, %v2901_v63, %v2902_v15 }
 0x357   : > { %v3216_v41 = vsel %vm525_vm2, %v3197_v35, -inf  ;;  %3172 = vrot.lane.b32.xlu0 %v11176_v56, %s8826_s15  ;;  %v4263_v8 = vpop.f32.mrf.mxu2  ;;  %5229 = vmatpush.bf16.msrb.mxu2 %v8554_v21  ;;  %v4544_v21 = vld [vmem:[#allocation2 + $0xf0] sm:$0xff] }
 0x358   : > { %8714 = vpow2.f32 %v3262_v33  ;;  %v3217_v6 = vmax.f32 %v3215_v62, %v3216_v41  ;;  %v11235_v52 = vadd.f32 %v4263_v8, %v11054_v40  ;;  %v3143_v26 = vpop.permute.xlu1 %3142  ;;  %v11239_v57 = vpop.permute.xlu2 %3158  ;;  %5323 = vmatpush.bf16.msrb.mxu3 %v8549_v60  ;;  %v2445_v40 = vsel %vm618_vm15, 0.0, %v10958_v29  ;;  %v4545_v62 = vld [vmem:[#allocation2 + $0xf8] sm:$0xff] }
 0x359   : > { %v2500_v35 = vsel %vm708_vm9, %v2445_v40, %v11065_v12  ;;  %v2862_v12 = vrot.slane %v11188_v59, 7  ;;  %v11267_v8 = vpack.c.bf16 %v4545_v62, %v4544_v21  ;;  %v4180_v60 = vld [vmem:[#allocation2 + $0x98] sm:$0xff]  ;;  %v3190_v63 = vmax.f32 %v10735_v11, %v3143_v26 }
 0x35a   : > { %v3237_v18 = vadd.f32 %v11170_v0, %v3217_v6  ;;  %v11260_v3 = vpop.f32.mrf.mxu3 }
 0x35c   : > { %v3253_v54 = vmin.f32 %v3237_v18, 0.0  ;;  %v2524_v61 = vpop.permute.xlu0 %2523  ;;  %5324 = vmatpush.bf16.msrb.mxu3 %v8548_v39  ;;  %v8547_v39 = vld [vmem:[%s13601_s2 + $0x8] sm:$0xff]  ;;  %vm3245_vm11 = vcmp.gt.f32.partialorder %v3237_v18, 0.0 }
 0x35d   : > { %2545 = vst.msk [vmem:[#allocation2 + $0x120] sm:$0xff] %vm758_vm13, %v2524_v61  ;;  %v2861_v61 = vrot.slane %v11165_v30, 7 }
 0x35e   : > { %v8715_v10 = vpop.eup %8714  ;;  %v3264_v33 = vmul.f32 1.442695, %v3253_v54  ;;  %2928 = vrot.lane.b32.xlu2 %v2903_v44, %s8828_s27  ;;  %2533 = vrot.lane.b32.xlu1 %v2501_v25, %s8826_s15  ;;  %v11270_v54 = vpack.c.bf16 %v4180_v60, %v4179_v20  ;;  %v11282_v25 = vpop.f32.mrf.mxu1 }
 0x35f   : > { %v7608_v29 = vadd.f32 -1.0, %v8715_v10  ;;  %2531 = vrot.lane.b32.xlu0 %v2500_v35, %s8826_s15  ;;  %v2863_v30 = vsel %vm618_vm15, %v2861_v61, %v2862_v12  ;;  %v3206_v10 = vsel %vm525_vm2, %v3190_v63, -inf }
 0x360   : > { %8716 = vpow2.f32 %v3264_v33  ;;  %v2526_v41 = vpop.permute.xlu1 %2525  ;;  %5325 = vmatpush.bf16.msrb.mxu3 %v8547_v39 }
 0x361   : > { %v11264_v6 = vsel %vm3244_vm8, %v11191_v13, %v7608_v29  ;;  %2546 = vst.msk [vmem:[#allocation2 + $0x128] sm:$0xff] %vm758_vm13, %v2526_v41  ;;  %v11278_v13 = vpop.permute.xlu2 %3164 }
 0x362   : > { %3397 = vst.msk [vmem:[#allocation2 + $0x1a0] sm:$0xff] %vm525_vm2, %v11264_v6  ;;  %v11305_v41 = vpop.f32.mrf.mxu3 }
 0x364   : > { %4658 = vmatmul.bf16.gmra.mxu3 %v11267_v8  ;;  %v3147_v40 = vpop.permute.xlu0 %3146  ;;  %4725 = vmatmul.bf16.vlgmr.msrb.gmra.mxu0 %v11197_v2 }
 0x365   : > { %v3192_v11 = vmax.f32 %v10789_v38, %v3147_v40  ;;  %4297 = vmatmul.bf16.gmra.mxu2 %v11270_v54  ;;  %4868 = vmatmul.bf16.gmra.mxu1 %v10948_v9  ;;  %v8546_v38 = vld [vmem:[%s13601_s2] sm:$0xff]  ;;  %v3191_v9 = vmax.f32 %v10767_v42, %v11142_v48  ;;  %v4547_v40 = vld [vmem:[#allocation2 + $0x108] sm:$0xff] }
 0x366   : > { %v8717_v26 = vpop.eup %8716  ;;  %3590 = vrot.lane.b32.xlu2 %v10915_v19, %s8826_s15  ;;  %2878 = vrot.lane.b32.xlu1 %v2863_v30, %s8827_s26  ;;  %v4134_v63 = vpop.f32.mrf.mxu1 }
 0x367   : > { %v7609_v44 = vadd.f32 -1.0, %v8717_v26  ;;  %v3207_v2 = vsel %vm525_vm2, %v3192_v11, -inf  ;;  %2876 = vrot.lane.b32.xlu0 %v2861_v61, %s8827_s26  ;;  %5326 = vmatpush.bf16.msrb.mxu3 %v8546_v38  ;;  %v3209_v21 = vsel %vm525_vm2, %v3191_v9, -inf  ;;  %v11317_v11 = vpop.f32.mrf.mxu0 }
 0x368   : > { %v3208_v35 = vmax.f32 %v3206_v10, %v3207_v2  ;;  %v3149_v33 = vpop.permute.xlu1 %3148  ;;  %v5134_v10 = vld [vmem:[#allocation2 + $0x110] sm:$0xff] }
 0x369   : > { %v11299_v29 = vsel %vm3245_vm11, %v3237_v18, %v7609_v44  ;;  %v3193_v20 = vmax.f32 %v10818_v37, %v3149_v33  ;;  %v2911_v37 = vsel %vm659_vm10, %v2902_v15, 0.0  ;;  %v4546_v44 = vld [vmem:[#allocation2 + $0x100] sm:$0xff]  ;;  %v3201_v15 = vmax.f32 %v10964_v55, %v11278_v13 }
 0x36a   : > { %v3234_v62 = vadd.f32 %v11170_v0, %v3208_v35  ;;  %3398 = vst.msk [vmem:[#allocation2 + $0x1a8] sm:$0xff] %vm525_vm2, %v11299_v29  ;;  %v11320_v59 = vpack.c.bf16 %v4547_v40, %v4546_v44  ;;  %v5135_v35 = vld [vmem:[#allocation2 + $0x118] sm:$0xff]  ;;  %v11332_v55 = vpop.f32.mrf.mxu3 }
 0x36b   : > { %v3210_v42 = vsel %vm525_vm2, %v3193_v20, -inf  ;;  %v11327_v20 = vpack.c.bf16 %v5135_v35, %v5134_v10 }
 0x36c   : > { %v3250_v12 = vmin.f32 %v3234_v62, 0.0  ;;  %v2921_v48 = vpop.permute.xlu0 %2920  ;;  %v2528_v60 = vpop.permute.xlu2 %2527  ;;  %v3211_v18 = vmax.f32 %v3209_v21, %v3210_v42  ;;  %vm3242_vm12 = vcmp.gt.f32.partialorder %v3234_v62, 0.0 }
 0x36d   : > { %2547 = vst.msk [vmem:[#allocation2 + $0x130] sm:$0xff] %vm758_vm13, %v2528_v60  ;;  %v11339_v42 = vpop.f32.mrf.mxu2 }
 0x36e   : > { %v3258_v61 = vmul.f32 1.442695, %v3250_v12  ;;  %3588 = vrot.lane.b32.xlu1 %v10896_v5, %s8826_s15  ;;  %v3235_v39 = vadd.f32 %v11170_v0, %v3211_v18  ;;  %v11337_v13 = vpop.f32.mrf.mxu1 }
 0x36f   : > { %2930 = vrot.lane.b32.xlu0 %v2911_v37, %s8828_s27 }
 0x370   : > { %8718 = vpow2.f32 %v3258_v61  ;;  %v3251_v30 = vmin.f32 %v3235_v39, 0.0  ;;  %v2869_v26 = vpop.permute.xlu1 %2868  ;;  %vm3243_vm14 = vcmp.gt.f32.partialorder %v3235_v39, 0.0 }
 0x371   : > { %v2889_v2 = vsel %vm618_vm15, 0.0, %v2869_v26 }
 0x372   : > { %v3260_v38 = vmul.f32 1.442695, %v3251_v30  ;;  %v2942_v9 = vsel %vm708_vm9, %v2889_v2, %v2921_v48  ;;  %v3222_v48 = vsel %vm525_vm2, %v3201_v15, -inf  ;;  %v3301_v30 = vrot.slane %v11264_v6, 7 }
 0x373   : > { %2969 = vrot.lane.b32.xlu2 %v2942_v9, %s8826_s15 }
 0x374   : > { %4663 = vmatmul.bf16.gmra.mxu3 %v11320_v59  ;;  %v3161_v33 = vpop.permute.xlu0 %3160  ;;  %8720 = vpow2.f32 %v3260_v38  ;;  %4730 = vmatmul.bf16.gmra.mxu0 %v11270_v54  ;;  %v3302_v54 = vrot.slane %v11299_v29, 7 }
 0x375   : > { %v3199_v21 = vmax.f32 %v10926_v28, %v3161_v33  ;;  %4873 = vmatmul.bf16.gmra.mxu1 %v11056_v51  ;;  %5230 = vmatmul.bf16.vlgmr.msrb.gmra.mxu2 %v11327_v20 }
 0x376   : > { %v8719_v12 = vpop.eup %8718  ;;  %3594 = vrot.lane.b32.xlu1 %v10952_v14, %s8826_s15  ;;  %v3303_v2 = vsel %vm618_vm15, %v3301_v30, %v3302_v54  ;;  %v5137_v54 = vld [vmem:[#allocation2 + $0x128] sm:$0xff] }
 0x377   : > { %v7606_v60 = vadd.f32 -1.0, %v8719_v12  ;;  %v3221_v28 = vsel %vm525_vm2, %v3199_v21, -inf  ;;  %3592 = vrot.lane.b32.xlu0 %v10933_v34, %s8826_s15  ;;  %v3198_v12 = vmax.f32 %v10908_v16, %v11239_v57  ;;  %v3341_v57 = vrot.slane %v11264_v6, 1 }
 0x378   : > { %v3223_v18 = vmax.f32 %v3221_v28, %v3222_v48  ;;  %v4037_v61 = vpop.f32.mrf.mxu0  ;;  %v2923_v37 = vpop.permute.xlu1 %2922 }
 0x379   : > { %v11346_v40 = vadd.f32 %v4134_v63, %v4037_v61  ;;  %v11349_v26 = vsel %vm3242_vm12, %v3234_v62, %v7606_v60  ;;  %v2943_v62 = vsel %vm708_vm9, %v11185_v22, %v2923_v37  ;;  %v4139_v33 = vpop.f32.mrf.mxu1  ;;  %v4496_v60 = vld [vmem:[#allocation2 + $0xa0] sm:$0xff]  ;;  %v11370_v22 = vpop.f32.mrf.mxu3  ;;  %v4497_v61 = vld [vmem:[#allocation2 + $0xa8] sm:$0xff] }
 0x37a   : > { %v3239_v44 = vadd.f32 %v11170_v0, %v3223_v18  ;;  %3395 = vst.msk [vmem:[#allocation2 + $0x190] sm:$0xff] %vm525_vm2, %v11349_v26  ;;  %v8721_v10 = vpop.eup %8720  ;;  %v4510_v37 = vpack.c.bf16 %v4497_v61, %v4496_v60  ;;  %v3338_v61 = vrot.slane %v11349_v26, 1 }
 0x37b   : > { %v7607_v15 = vadd.f32 -1.0, %v8721_v10  ;;  %3316 = vrot.lane.b32.xlu2 %v3303_v2, %s8827_s26  ;;  %v3218_v10 = vsel %vm525_vm2, %v3198_v12, -inf }
 0x37c   : > { %v3255_v38 = vmin.f32 %v3239_v44, 0.0  ;;  %v2530_v9 = vpop.permute.xlu0 %2529  ;;  %vm3247_vm3 = vcmp.gt.f32.partialorder %v3239_v44, 0.0 }
 0x37d   : > { %2548 = vst.msk [vmem:[#allocation2 + $0x138] sm:$0xff] %vm758_vm13, %v2530_v9  ;;  %v11360_v35 = vsel %vm3243_vm14, %v3235_v39, %v7607_v15  ;;  %v3342_v39 = vrot.slane %v11299_v29, 1 }
 0x37e   : > { %v3268_v63 = vmul.f32 1.442695, %v3255_v38  ;;  %3314 = vrot.lane.b32.xlu1 %v3301_v30, %s8827_s26  ;;  %3396 = vst.msk [vmem:[#allocation2 + $0x198] sm:$0xff] %vm525_vm2, %v11360_v35  ;;  %v5136_v30 = vld [vmem:[#allocation2 + $0x120] sm:$0xff] }
 0x37f   : > { %2971 = vrot.lane.b32.xlu0 %v2943_v62, %s8826_s15  ;;  %v4268_v21 = vpop.f32.mrf.mxu2  ;;  %v3343_v15 = vsel %vm659_vm10, %v3341_v57, %v3342_v39 }
 0x380   : > { %8722 = vpow2.f32 %v3268_v63  ;;  %v11368_v48 = vadd.f32 %v4268_v21, %v11193_v53  ;;  %v3163_v28 = vpop.permute.xlu1 %3162  ;;  %v11379_v53 = vpack.c.bf16 %v5137_v54, %v5136_v30  ;;  %v11389_v62 = vpop.f32.mrf.mxu0  ;;  %v3299_v30 = vrot.slane %v11360_v35, 7 }
 0x381   : > { %v3200_v18 = vmax.f32 %v10944_v47, %v3163_v28  ;;  %v3355_v47 = vsel %vm659_vm10, %v3342_v39, 0.0  ;;  %v4141_v6 = vpop.f32.mrf.mxu1  ;;  %v11395_v12 = vpop.f32.mrf.mxu3  ;;  %v3339_v28 = vrot.slane %v11360_v35, 1  ;;  %v4499_v39 = vld [vmem:[#allocation2 + $0xb8] sm:$0xff] }
 0x382   : > { %13743 = vst [vmem:[#allocation9_spill] sm:$0xff] %v11395_v12 }
 0x383   : > { %v3219_v16 = vsel %vm525_vm2, %v3200_v18, -inf  ;;  %3596 = vrot.lane.b32.xlu2 %v10972_v43, %s8826_s15 }
 0x384   : > { %5327 = vmatmul.bf16.vlgmr.msrb.gmra.mxu3 %v11320_v59  ;;  %v3220_v29 = vmax.f32 %v3218_v10, %v3219_v16  ;;  %4735 = vmatmul.bf16.gmra.mxu0 %v4510_v37  ;;  %v5139_v37 = vld [vmem:[#allocation2 + $0x138] sm:$0xff]  ;;  %v4498_v16 = vld [vmem:[#allocation2 + $0xb0] sm:$0xff] }
 0x385   : > { %4878 = vmatmul.bf16.gmra.mxu1 %v11108_v17  ;;  %5235 = vmatmul.bf16.gmra.mxu2 %v11379_v53 }
 0x386   : > { %v8723_v2 = vpop.eup %8722  ;;  %3368 = vrot.lane.b32.xlu1 %v3355_v47, %s8828_s27  ;;  %v3238_v38 = vadd.f32 %v11170_v0, %v3220_v29  ;;  %v3340_v47 = vsel %vm659_vm10, %v3338_v61, %v3339_v28 }
 0x387   : > { %3366 = vrot.lane.b32.xlu0 %v3343_v15, %s8828_s27  ;;  %v7611_v9 = vadd.f32 -1.0, %v8723_v2  ;;  %v4511_v2 = vpack.c.bf16 %v4499_v39, %v4498_v16  ;;  %v5138_v15 = vld [vmem:[#allocation2 + $0x130] sm:$0xff] }
 0x388   : > { %v3254_v63 = vmin.f32 %v3238_v38, 0.0  ;;  %vm3246_vm1 = vcmp.gt.f32.partialorder %v3238_v38, 0.0 }
 0x389   : > { %v11391_v21 = vsel %vm3247_vm3, %v3239_v44, %v7611_v9  ;;  %v11404_v44 = vpop.f32.mrf.mxu2  ;;  %v11408_v29 = vpop.f32.mrf.mxu3  ;;  %v3298_v9 = vrot.slane %v11349_v26, 7 }
 0x38a   : > { %3400 = vst.msk [vmem:[#allocation2 + $0x1b8] sm:$0xff] %vm525_vm2, %v11391_v21  ;;  %v3266_v60 = vmul.f32 1.442695, %v3254_v63  ;;  %v2873_v26 = vpop.permute.xlu2 %2872 }
 0x38b   : > { %3602 = vrot.lane.b32.xlu2 %v11019_v58, %s8826_s15  ;;  %v3300_v35 = vsel %vm618_vm15, %v3298_v9, %v3299_v30 }
 0x38c   : > { %8724 = vpow2.f32 %v3266_v60  ;;  %v11414_v60 = vpack.c.bf16 %v5139_v37, %v5138_v15 }
 0x38e   : > { %3600 = vrot.lane.b32.xlu1 %v11005_v1, %s8826_s15 }
 0x38f   : > { %3598 = vrot.lane.b32.xlu0 %v10983_v36, %s8826_s15 }
 0x391   : > { %v4042_v54 = vpop.f32.mrf.mxu0  ;;  %v4144_v18 = vpop.f32.mrf.mxu1 }
 0x392   : > { %v4140_v10 = vadd.f32 %v4139_v33, %v4042_v54  ;;  %v8725_v57 = vpop.eup %8724  ;;  %v11432_v16 = vpop.f32.mrf.mxu3 }
 0x393   : > { %v7610_v63 = vadd.f32 -1.0, %v8725_v57  ;;  %3362 = vrot.lane.b32.xlu2 %v3340_v47, %s8828_s27  ;;  %13746 = vst [vmem:[#allocation12_spill] sm:$0xff] %v11432_v16  ;;  %v8567_v16 = vld [vmem:[%s13601_s2 + $0xa8] sm:$0xff] }
 0x394   : > { %5332 = vmatmul.bf16.gmra.mxu3 %v11327_v20  ;;  %4740 = vmatmul.bf16.gmra.mxu0 %v4511_v2 }
 0x395   : > { %4883 = vmatmul.bf16.gmra.mxu1 %v11195_v46  ;;  %5240 = vmatmul.bf16.gmra.mxu2 %v11414_v60  ;;  %v11420_v33 = vsel %vm3246_vm1, %v3238_v38, %v7610_v63  ;;  %v3354_v38 = vsel %vm659_vm10, %v3339_v28, 0.0  ;;  %v8569_v28 = vld [vmem:[%s13601_s2 + $0xb8] sm:$0xff] }
 0x396   : > { %3312 = vrot.lane.b32.xlu1 %v3300_v35, %s8827_s26  ;;  %3399 = vst.msk [vmem:[#allocation2 + $0x1b0] sm:$0xff] %vm525_vm2, %v11420_v33  ;;  %5457 = vmatpush.bf16.msra.mxu0 %v8569_v28 }
 0x397   : > { %3310 = vrot.lane.b32.xlu0 %v3298_v9, %s8827_s26 }
 0x398   : > { %v4273_v39 = vpop.f32.mrf.mxu2 }
 0x399   : > { %v11426_v54 = vadd.f32 %v4273_v39, %v11346_v40  ;;  %v4044_v61 = vpop.f32.mrf.mxu0  ;;  %v11428_v37 = vpop.f32.mrf.mxu1 }
 0x39a   : > { %v11430_v30 = vadd.f32 %v4141_v6, %v4044_v61  ;;  %v11439_v40 = vpop.f32.mrf.mxu3  ;;  %v3304_v6 = vrot.slane %v11420_v33, 7 }
 0x39b   : > { %13744 = vst [vmem:[#allocation8_spill] sm:$0xff] %v11426_v54 }
 0x39c   : > { %13745 = vst [vmem:[#allocation6_spill] sm:$0xff] %v11430_v30 }
 0x39f   : > { %3364 = vrot.lane.b32.xlu0 %v3354_v38, %s8828_s27  ;;  %v3345_v38 = vrot.slane %v11391_v21, 1 }
 0x3a0   : > { %v2927_v57 = vpop.permute.xlu2 %2926  ;;  %v11436_v47 = vpop.f32.mrf.mxu2 }
 0x3a1   : > { %v4047_v2 = vpop.f32.mrf.mxu0  ;;  %v4149_v15 = vpop.f32.mrf.mxu1 }
 0x3a2   : > { %v4145_v9 = vadd.f32 %v4144_v18, %v4047_v2  ;;  %v3356_v2 = vsel %vm659_vm10, %v3345_v38, 0.0  ;;  %v11462_v28 = vpop.f32.mrf.mxu3 }
 0x3a3   : > { %13748 = vst [vmem:[#allocation16_spill] sm:$0xff] %v11462_v28 }
 0x3a4   : > { %5337 = vmatmul.bf16.gmra.mxu3 %v11379_v53  ;;  %4745 = vmatmul.bf16.gmra.mxu0 %v11056_v51  ;;  %v8568_v51 = vld [vmem:[%s13601_s2 + $0xb0] sm:$0xff] }
 0x3a5   : > { %4888 = vmatmul.bf16.gmra.mxu1 %v11267_v8  ;;  %5458 = vmatpush.bf16.msra.mxu0 %v8568_v51  ;;  %v8566_v51 = vld [vmem:[%s13601_s2 + $0xa0] sm:$0xff] }
 0x3a7   : > { %3318 = vrot.lane.b32.xlu0 %v3304_v6, %s8827_s26 }
 0x3a8   : > { %v3171_v63 = vpop.permute.xlu2 %3170  ;;  %v4278_v35 = vpop.f32.mrf.mxu2 }
 0x3a9   : > { %v11448_v18 = vadd.f32 %v4278_v35, %v4140_v10  ;;  %v11450_v39 = vpop.f32.mrf.mxu0  ;;  %v11452_v61 = vpop.f32.mrf.mxu1  ;;  %5459 = vmatpush.bf16.msra.mxu0 %v8567_v16  ;;  %v8565_v16 = vld [vmem:[%s13601_s2 + $0x98] sm:$0xff] }
 0x3aa   : > { %13747 = vst [vmem:[#allocation10_spill] sm:$0xff] %v11452_v61 }
 0x3ad   : > { %5460 = vmatpush.bf16.msra.mxu0 %v8566_v51 }
 0x3af   : > { %3372 = vrot.lane.b32.xlu0 %v3356_v2, %s8828_s27 }
 0x3b0   : > { %v2968_v10 = vpop.permute.xlu2 %2967  ;;  %v11465_v35 = vpop.f32.mrf.mxu2 }
 0x3b1   : > { %13749 = vst [vmem:[#allocation18_spill] sm:$0xff] %v11465_v35  ;;  %v4052_v12 = vpop.f32.mrf.mxu0  ;;  %5461 = vmatpush.bf16.msra.mxu0 %v8565_v16 }
 0x3b2   : > { %2990 = vst.msk [vmem:[#allocation2 + $0x158] sm:$0xff] %vm758_vm13, %v2968_v10  ;;  %v4150_v30 = vadd.f32 %v4149_v15, %v4052_v12  ;;  %v4154_v61 = vpop.f32.mrf.mxu1  ;;  %v2890_v15 = vsel %vm618_vm15, 0.0, %v2873_v26  ;;  %v8564_v26 = vld [vmem:[%s13601_s2 + $0x90] sm:$0xff] }
 0x3b4   : > { %5342 = vmatmul.bf16.gmra.mxu3 %v11414_v60  ;;  %4750 = vmatmul.bf16.gmra.mxu0 %v11108_v17 }
 0x3b5   : > { %4893 = vmatmul.bf16.gmra.mxu1 %v11320_v59  ;;  %5462 = vmatpush.bf16.msra.mxu0 %v8564_v26 }
 0x3b7   : > { %3608 = vrot.lane.b32.xlu0 %v11114_v32, %s8826_s15  ;;  %v11479_v12 = vpop.f32.mrf.mxu3 }
 0x3b8   : > { %v2925_v2 = vpop.permute.xlu1 %2924  ;;  %v4283_v35 = vpop.f32.mrf.mxu2 }
 0x3b9   : > { %v2875_v10 = vpop.permute.xlu0 %2874  ;;  %v2944_v51 = vsel %vm708_vm9, %v2890_v15, %v2925_v2  ;;  %v11484_v17 = vadd.f32 %v4283_v35, %v4145_v9  ;;  %v11487_v28 = vpop.f32.mrf.mxu0  ;;  %v3344_v15 = vrot.slane %v11420_v33, 1  ;;  %v3305_v9 = vrot.slane %v11391_v21, 7  ;;  %v8563_v35 = vld [vmem:[%s13601_s2 + $0x88] sm:$0xff] }
 0x3ba   : > { %v2945_v59 = vsel %vm708_vm9, %v2875_v10, %v2927_v57  ;;  %2973 = vrot.lane.b32.xlu1 %v2944_v51, %s8826_s15  ;;  %13750 = vst [vmem:[#allocation11_spill] sm:$0xff] %v11487_v28  ;;  %v11489_v54 = vpop.f32.mrf.mxu1  ;;  %v11495_v16 = vpop.permute.xlu2 %2928  ;;  %v3204_v2 = vmax.f32 %v11125_v50, %v3171_v63  ;;  %5463 = vmatpush.bf16.msra.mxu0 %v8563_v35  ;;  %v8562_v50 = vld [vmem:[%s13601_s2 + $0x80] sm:$0xff] }
 0x3bb   : > { %13751 = vst [vmem:[#allocation17_spill] sm:$0xff] %v11489_v54  ;;  %2975 = vrot.lane.b32.xlu2 %v2945_v59, %s8826_s15  ;;  %v3306_v59 = vsel %vm618_vm15, %v3304_v6, %v3305_v9  ;;  %v3346_v33 = vsel %vm659_vm10, %v3344_v15, %v3345_v38 }
 0x3bc   : > { %v3225_v63 = vsel %vm525_vm2, %v3204_v2, -inf }
 0x3be   : > { %5464 = vmatpush.bf16.msra.mxu0 %v8562_v50 }
 0x3bf   : > { %v11498_v57 = vpop.f32.mrf.mxu3 }
 0x3c0   : > { %13752 = vst [vmem:[#allocation15_spill] sm:$0xff] %v11498_v57  ;;  %v3169_v10 = vpop.permute.xlu1 %3168  ;;  %v11505_v54 = vpop.f32.mrf.mxu2 }
 0x3c1   : > { %v3167_v51 = vpop.permute.xlu0 %3166  ;;  %v4057_v21 = vpop.f32.mrf.mxu0 }
 0x3c2   : > { %v3202_v26 = vmax.f32 %v11047_v49, %v3167_v51  ;;  %3320 = vrot.lane.b32.xlu1 %v3306_v59, %s8827_s26  ;;  %v4159_v57 = vpop.f32.mrf.mxu1  ;;  %v4155_v28 = vadd.f32 %v4154_v61, %v4057_v21  ;;  %v11519_v49 = vpop.permute.xlu2 %3590  ;;  %v3203_v61 = vmax.f32 %v11080_v31, %v3169_v10 }
 0x3c3   : > { %3370 = vrot.lane.b32.xlu2 %v3346_v33, %s8828_s27 }
 0x3c4   : > { %v3224_v6 = vsel %vm525_vm2, %v3202_v26, -inf  ;;  %4755 = vmatmul.bf16.gmra.mxu0 %v11195_v46  ;;  %v3227_v31 = vsel %vm525_vm2, %v3203_v61, -inf }
 0x3c5   : > { %v3226_v9 = vmax.f32 %v3224_v6, %v3225_v63  ;;  %4898 = vmatmul.bf16.gmra.mxu1 %v11327_v20 }
 0x3c7   : > { %v3240_v38 = vadd.f32 %v11170_v0, %v3226_v9  ;;  %v11522_v15 = vpop.f32.mrf.mxu3 }
 0x3c8   : > { %13753 = vst [vmem:[#allocation13_spill] sm:$0xff] %v11522_v15  ;;  %v2966_v35 = vpop.permute.xlu1 %2965  ;;  %v4288_v2 = vpop.f32.mrf.mxu2 }
 0x3c9   : > { %v3256_v51 = vmin.f32 %v3240_v38, 0.0  ;;  %v3173_v59 = vpop.permute.xlu0 %3172  ;;  %2989 = vst.msk [vmem:[#allocation2 + $0x150] sm:$0xff] %vm758_vm13, %v2966_v35  ;;  %v11527_v46 = vadd.f32 %v4288_v2, %v4150_v30  ;;  %v11531_v20 = vpop.f32.mrf.mxu0  ;;  %vm3248_vm4 = vcmp.gt.f32.partialorder %v3240_v38, 0.0 }
 0x3ca   : > { %v3205_v26 = vmax.f32 %v11176_v56, %v3173_v59  ;;  %3604 = vrot.lane.b32.xlu1 %v11043_v24, %s8826_s15  ;;  %13755 = vst [vmem:[#allocation14_spill] sm:$0xff] %v11531_v20  ;;  %v11533_v33 = vpop.f32.mrf.mxu1 }
 0x3cb   : > { %13754 = vst [vmem:[#allocation19_spill] sm:$0xff] %v11527_v46  ;;  %v3270_v21 = vmul.f32 1.442695, %v3256_v51  ;;  %3606 = vrot.lane.b32.xlu2 %v11077_v45, %s8826_s15 }
 0x3cc   : > { %v3228_v10 = vsel %vm525_vm2, %v3205_v26, -inf }
 0x3cd   : > { %8726 = vpow2.f32 %v3270_v21  ;;  %v3229_v50 = vmax.f32 %v3227_v31, %v3228_v10  ;;  %v2970_v56 = vpop.permute.xlu2 %2969 }
 0x3ce   : > { %2991 = vst.msk [vmem:[#allocation2 + $0x160] sm:$0xff] %vm758_vm13, %v2970_v56 }
 0x3cf   : > { %v3241_v30 = vadd.f32 %v11170_v0, %v3229_v50  ;;  %v11541_v63 = vpop.f32.mrf.mxu3 }
 0x3d0   : > { %v2534_v6 = vpop.permute.xlu1 %2533  ;;  %v11544_v51 = vpop.f32.mrf.mxu2 }
 0x3d1   : > { %v3257_v9 = vmin.f32 %v3241_v30, 0.0  ;;  %v2532_v35 = vpop.permute.xlu0 %2531  ;;  %2550 = vst.msk [vmem:[#allocation2 + $0x148] sm:$0xff] %vm758_vm13, %v2534_v6  ;;  %v4062_v61 = vpop.f32.mrf.mxu0  ;;  %vm3249_vm5 = vcmp.gt.f32.partialorder %v3241_v30, 0.0 }
 0x3d2   : > { %2549 = vst.msk [vmem:[#allocation2 + $0x140] sm:$0xff] %vm758_vm13, %v2532_v35  ;;  %3610 = vrot.lane.b32.xlu1 %v11161_v27, %s8826_s15  ;;  %v4864_v59 = vpop.f32.mrf.mxu1  ;;  %v4160_v26 = vadd.f32 %v4159_v57, %v4062_v61 }
 0x3d3   : > { %v8727_v2 = vpop.eup %8726  ;;  %v3272_v0 = vmul.f32 1.442695, %v3257_v9 }
 0x3d4   : > { %v7612_v21 = vadd.f32 -1.0, %v8727_v2  ;;  %4760 = vmatmul.bf16.gmra.mxu0 %v11267_v8 }
 0x3d5   : > { %8728 = vpow2.f32 %v3272_v0 }
 0x3d6   : > { %v3288_v31 = vsel %vm3248_vm4, %v3240_v38, %v7612_v21 }
 0x3d7   : > { %v11550_v10 = vpop.f32.mrf.mxu3  ;;  %3401 = vst.msk [vmem:[#allocation2 + $0x1c0] sm:$0xff] %vm525_vm2, %v3288_v31  ;;  %v3307_v56 = vrot.slane %v3288_v31, 7 }
 0x3d8   : > { %13756 = vst [vmem:[#allocation20_spill] sm:$0xff] %v11550_v10  ;;  %v2879_v50 = vpop.permute.xlu1 %2878  ;;  %v5141_v6 = vld [vmem:[#allocation2 + $0x148] sm:$0xff]  ;;  %v4293_v20 = vpop.f32.mrf.mxu2 }
 0x3d9   : > { %v2877_v35 = vpop.permute.xlu0 %2876  ;;  %v5140_v46 = vld [vmem:[#allocation2 + $0x140] sm:$0xff]  ;;  %v11554_v9 = vadd.f32 %v4293_v20, %v4155_v28  ;;  %v11557_v57 = vpop.f32.mrf.mxu0 }
 0x3da   : > { %v2891_v15 = vsel %vm618_vm15, 0.0, %v2877_v35  ;;  %3322 = vrot.lane.b32.xlu1 %v3307_v56, %s8827_s26  ;;  %v11559_v8 = vpack.c.bf16 %v5141_v6, %v5140_v46  ;;  %v11563_v2 = vpop.f32.mrf.mxu1 }
 0x3db   : > { %v8729_v38 = vpop.eup %8728  ;;  %v2946_v61 = vsel %vm708_vm9, %v2891_v15, %v11495_v16  ;;  %13757 = vst [vmem:[#allocation22_spill] sm:$0xff] %v11563_v2  ;;  %v3637_v2 = vmax.f32 %v10915_v19, %v11519_v49 }
 0x3dc   : > { %2977 = vrot.lane.b32.xlu2 %v2946_v61, %s8826_s15  ;;  %5245 = vmatmul.bf16.gmra.mxu2 %v11559_v8  ;;  %v7613_v0 = vadd.f32 -1.0, %v8729_v38 }
 0x3dd   : > { %5347 = vmatmul.bf16.gmra.mxu3 %v11559_v8 }
 0x3de   : > { %v3289_v28 = vsel %vm3249_vm5, %v3241_v30, %v7613_v0 }
 0x3df   : > { %v11568_v20 = vpop.f32.mrf.mxu3  ;;  %v3348_v21 = vrot.slane %v3289_v28, 1  ;;  %3402 = vst.msk [vmem:[#allocation2 + $0x1c8] sm:$0xff] %vm525_vm2, %v3289_v28  ;;  %v3308_v46 = vrot.slane %v3289_v28, 7 }
 0x3e0   : > { %v3589_v6 = vpop.permute.xlu1 %3588  ;;  %v11571_v16 = vpop.f32.mrf.mxu2 }
 0x3e1   : > { %v2931_v35 = vpop.permute.xlu0 %2930  ;;  %13758 = vst [vmem:[#allocation21_spill] sm:$0xff] %v11571_v16  ;;  %v3357_v15 = vsel %vm659_vm10, %v3348_v21, 0.0  ;;  %v4726_v38 = vpop.f32.mrf.mxu0  ;;  %v3309_v30 = vsel %vm618_vm15, %v3307_v56, %v3308_v46  ;;  %v3347_v56 = vrot.slane %v3288_v31, 1 }
 0x3e2   : > { %v2947_v61 = vsel %vm708_vm9, %v2879_v50, %v2931_v35  ;;  %3376 = vrot.lane.b32.xlu1 %v3357_v15, %s8828_s27  ;;  %v4727_v0 = vadd.f32 %v4726_v38, %v11370_v22  ;;  %v4869_v10 = vpop.f32.mrf.mxu1  ;;  %v5142_v35 = vld [vmem:[#allocation2 + $0x150] sm:$0xff]  ;;  %v3317_v15 = vpop.permute.xlu2 %3316 }
 0x3e3   : > { %2979 = vrot.lane.b32.xlu0 %v2947_v61, %s8826_s15  ;;  %v3636_v61 = vmax.f32 %v10896_v5, %v3589_v6  ;;  %v3349_v5 = vsel %vm659_vm10, %v3347_v56, %v3348_v21 }
 0x3e4   : > { %3324 = vrot.lane.b32.xlu2 %v3309_v30, %s8827_s26  ;;  %v11580_v28 = vadd.f32 %v4864_v59, %v4727_v0  ;;  %5465 = vmatmul.bf16.vlgmr.msra.gmra.mxu0 %v11379_v53  ;;  %v5143_v59 = vld [vmem:[#allocation2 + $0x158] sm:$0xff]  ;;  %v11592_v53 = vld [vmem:[%s13603_s4] ss:$0 sm:$0xff] }
 0x3e5   : > { %v11602_v6 = vpack.c.bf16 %v5143_v59, %v5142_v35  ;;  %v3652_v30 = vsel %vm525_vm2, %v3636_v61, -inf }
 0x3e7   : > { %v11585_v50 = vpop.f32.mrf.mxu3 }
 0x3e8   : > { %13759 = vst [vmem:[#allocation23_spill] sm:$0xff] %v11585_v50  ;;  %v3595_v16 = vpop.permute.xlu1 %3594  ;;  %v4298_v38 = vpop.f32.mrf.mxu2 }
 0x3e9   : > { %v3593_v46 = vpop.permute.xlu0 %3592  ;;  %v3639_v22 = vmax.f32 %v10952_v14, %v3595_v16  ;;  %v11595_v49 = vadd.f32 %v4298_v38, %v4160_v26  ;;  %v11600_v31 = vpop.f32.mrf.mxu0  ;;  %v3655_v14 = vsel %vm525_vm2, %v3637_v2, -inf }
 0x3ea   : > { %v3638_v19 = vmax.f32 %v10933_v34, %v3593_v46  ;;  %3616 = vrot.lane.b32.xlu1 %v11305_v41, %s8826_s15  ;;  %v11617_v46 = vpop.f32.mrf.mxu1 }
 0x3eb   : > { %v3656_v16 = vsel %vm525_vm2, %v3639_v22, -inf  ;;  %3374 = vrot.lane.b32.xlu0 %v3349_v5, %s8828_s27  ;;  %13761 = vst [vmem:[#allocation5_spill] sm:$0xff] %v11617_v46  ;;  %v3597_v5 = vpop.permute.xlu2 %3596 }
 0x3ec   : > { %v3653_v34 = vsel %vm525_vm2, %v3638_v19, -inf  ;;  %v3657_v26 = vmax.f32 %v3655_v14, %v3656_v16  ;;  %3612 = vrot.lane.b32.xlu2 %v11222_v4, %s8826_s15  ;;  %5250 = vmatmul.bf16.gmra.mxu2 %v11602_v6 }
 0x3ed   : > { %v3654_v21 = vmax.f32 %v3652_v30, %v3653_v34  ;;  %5352 = vmatmul.bf16.gmra.mxu3 %v11602_v6 }
 0x3ee   : > { %v3681_v0 = vadd.f32 %v11592_v53, %v3657_v26 }
 0x3ef   : > { %v3680_v2 = vadd.f32 %v11592_v53, %v3654_v21  ;;  %v11615_v35 = vpop.f32.mrf.mxu3 }
 0x3f0   : > { %13760 = vst [vmem:[#allocation4_spill] sm:$0xff] %v11615_v35  ;;  %v3697_v56 = vmin.f32 %v3681_v0, 0.0  ;;  %v3315_v61 = vpop.permute.xlu1 %3314  ;;  %v11625_v30 = vpop.f32.mrf.mxu2  ;;  %vm3689_vm6 = vcmp.gt.f32.partialorder %v3681_v0, 0.0 }
 0x3f1   : > { %v3696_v22 = vmin.f32 %v3680_v2, 0.0  ;;  %v2972_v38 = vpop.permute.xlu0 %2971  ;;  %v4731_v19 = vpop.f32.mrf.mxu0  ;;  %vm3688_vm7 = vcmp.gt.f32.partialorder %v3680_v2, 0.0 }
 0x3f2   : > { %v3706_v59 = vmul.f32 1.442695, %v3697_v56  ;;  %2992 = vst.msk [vmem:[#allocation2 + $0x168] sm:$0xff] %vm758_vm13, %v2972_v38  ;;  %v4732_v16 = vadd.f32 %v4731_v19, %v11408_v29  ;;  %v3335_v56 = vsel %vm618_vm15, 0.0, %v3315_v61  ;;  %v5144_v29 = vld [vmem:[#allocation2 + $0x160] sm:$0xff]  ;;  %v4874_v50 = vpop.f32.mrf.mxu1 }
 0x3f3   : > { %v3704_v14 = vmul.f32 1.442695, %v3696_v22  ;;  %3614 = vrot.lane.b32.xlu0 %v11260_v3, %s8826_s15 }
 0x3f4   : > { %8730 = vpow2.f32 %v3706_v59  ;;  %3618 = vrot.lane.b32.xlu2 %v11332_v55, %s8826_s15  ;;  %v11627_v34 = vadd.f32 %v4869_v10, %v4732_v16  ;;  %5470 = vmatmul.bf16.gmra.mxu0 %v11414_v60 }
 0x3f5   : > { %8732 = vpow2.f32 %v3704_v14 }
 0x3f7   : > { %v11630_v26 = vpop.f32.mrf.mxu3 }
 0x3f8   : > { %v3369_v21 = vpop.permute.xlu1 %3368 }
 0x3f9   : > { %v3367_v22 = vpop.permute.xlu0 %3366  ;;  %v3389_v38 = vsel %vm708_vm9, %v3317_v15, %v3369_v21  ;;  %v5145_v59 = vld [vmem:[#allocation2 + $0x168] sm:$0xff]  ;;  %v11636_v10 = vpop.f32.mrf.mxu0 }
 0x3fa   : > { %v8731_v19 = vpop.eup %8730  ;;  %v3388_v14 = vsel %vm708_vm9, %v3335_v56, %v3367_v22  ;;  %3417 = vrot.lane.b32.xlu1 %v3389_v38, %s8826_s15  ;;  %13762 = vst [vmem:[#allocation7_spill] sm:$0xff] %v11636_v10  ;;  %v11638_v16 = vpack.c.bf16 %v5145_v59, %v5144_v29  ;;  %v3603_v15 = vpop.permute.xlu2 %3602  ;;  %v3640_v22 = vmax.f32 %v10972_v43, %v3597_v5 }
 0x3fb   : > { %v8733_v60 = vpop.eup %8732  ;;  %3415 = vrot.lane.b32.xlu0 %v3388_v14, %s8826_s15  ;;  %v7655_v35 = vadd.f32 -1.0, %v8731_v19  ;;  %v5231_v38 = vpop.f32.mrf.mxu2  ;;  %v3643_v59 = vmax.f32 %v11019_v58, %v3603_v15 }
 0x3fc   : > { %v7654_v61 = vadd.f32 -1.0, %v8733_v60  ;;  %5255 = vmatmul.bf16.gmra.mxu2 %v11638_v16  ;;  %v3658_v43 = vsel %vm525_vm2, %v3640_v22, -inf  ;;  %v11663_v58 = vpop.f32.mrf.mxu1 }
 0x3fd   : > { %5357 = vmatmul.bf16.gmra.mxu3 %v11638_v16  ;;  %v11643_v21 = vsel %vm3689_vm6, %v3681_v0, %v7655_v35 }
 0x3fe   : > { %v11645_v56 = vsel %vm3688_vm7, %v3680_v2, %v7654_v61  ;;  %3842 = vst.msk [vmem:[#allocation2 + $0x1d8] sm:$0xff] %vm525_vm2, %v11643_v21 }
 0x3ff   : > { %v11650_v29 = vpop.f32.mrf.mxu3  ;;  %3841 = vst.msk [vmem:[#allocation2 + $0x1d0] sm:$0xff] %vm525_vm2, %v11645_v56  ;;  %v3744_v14 = vrot.slane %v11645_v56, 7 }
 0x400   : > { %13763 = vst [vmem:[#allocation24_spill] sm:$0xff] %v11650_v29  ;;  %v3601_v19 = vpop.permute.xlu1 %3600  ;;  %v3662_v29 = vsel %vm525_vm2, %v3643_v59, -inf }
 0x401   : > { %v3599_v0 = vpop.permute.xlu0 %3598  ;;  %v3642_v2 = vmax.f32 %v11005_v1, %v3601_v19  ;;  %v4736_v60 = vpop.f32.mrf.mxu0 }
 0x402   : > { %v3641_v35 = vmax.f32 %v10983_v36, %v3599_v0  ;;  %3756 = vrot.lane.b32.xlu1 %v3744_v14, %s8827_s26  ;;  %v4737_v61 = vadd.f32 %v4736_v60, %v11439_v40  ;;  %v3785_v36 = vrot.slane %v11643_v21, 1 }
 0x403   : > { %v3659_v5 = vsel %vm525_vm2, %v3642_v2, -inf  ;;  %v11674_v60 = vpop.f32.mrf.mxu2 }
 0x404   : > { %v3661_v15 = vsel %vm525_vm2, %v3641_v35, -inf  ;;  %v3660_v46 = vmax.f32 %v3658_v43, %v3659_v5  ;;  %v11666_v1 = vadd.f32 %v4874_v50, %v4737_v61  ;;  %5475 = vmatmul.bf16.gmra.mxu0 %v11559_v8  ;;  %13766 = vst [vmem:[#allocation27_spill] sm:$0xff] %v11674_v60  ;;  %v3363_v50 = vpop.permute.xlu2 %3362 }
 0x405   : > { %v3663_v10 = vmax.f32 %v3661_v15, %v3662_v29  ;;  %v3800_v29 = vsel %vm659_vm10, %v3785_v36, 0.0  ;;  %v3745_v15 = vrot.slane %v11643_v21, 7 }
 0x406   : > { %13764 = vst [vmem:[#allocation25_spill] sm:$0xff] %v11666_v1  ;;  %v3682_v22 = vadd.f32 %v11592_v53, %v3660_v46 }
 0x407   : > { %v3683_v19 = vadd.f32 %v11592_v53, %v3663_v10  ;;  %v5328_v0 = vpop.f32.mrf.mxu3 }
 0x408   : > { %v3698_v40 = vmin.f32 %v3682_v22, 0.0  ;;  %v11672_v2 = vadd.f32 %v5328_v0, %v5231_v38  ;;  %v4879_v38 = vpop.f32.mrf.mxu1  ;;  %v3313_v0 = vpop.permute.xlu1 %3312  ;;  %vm3690_vm8 = vcmp.gt.f32.partialorder %v3682_v22, 0.0 }
 0x409   : > { %v3699_v59 = vmin.f32 %v3683_v19, 0.0  ;;  %v3311_v35 = vpop.permute.xlu0 %3310  ;;  %v11679_v5 = vpop.f32.mrf.mxu0  ;;  %vm3691_vm11 = vcmp.gt.f32.partialorder %v3683_v19, 0.0 }
 0x40a   : > { %13765 = vst [vmem:[#allocation26_spill] sm:$0xff] %v11672_v2  ;;  %v3708_v43 = vmul.f32 1.442695, %v3698_v40  ;;  %v3334_v8 = vsel %vm618_vm15, 0.0, %v3311_v35  ;;  %3810 = vrot.lane.b32.xlu1 %v3800_v29, %s8828_s27 }
 0x40b   : > { %v3710_v46 = vmul.f32 1.442695, %v3699_v59  ;;  %v3386_v10 = vsel %vm708_vm9, %v3334_v8, %v3363_v50  ;;  %v5236_v59 = vpop.f32.mrf.mxu2  ;;  %v3746_v50 = vsel %vm618_vm15, %v3744_v14, %v3745_v15  ;;  %v3784_v14 = vrot.slane %v11645_v56, 1 }
 0x40c   : > { %8734 = vpow2.f32 %v3708_v43  ;;  %3411 = vrot.lane.b32.xlu2 %v3386_v10, %s8826_s15 }
 0x40d   : > { %8736 = vpow2.f32 %v3710_v46 }
 0x40f   : > { %v11683_v61 = vpop.f32.mrf.mxu3 }
 0x411   : > { %v3365_v40 = vpop.permute.xlu0 %3364  ;;  %v4741_v29 = vpop.f32.mrf.mxu0 }
 0x412   : > { %v8735_v2 = vpop.eup %8734  ;;  %v3387_v35 = vsel %vm708_vm9, %v3313_v0, %v3365_v40  ;;  %v4742_v43 = vadd.f32 %v4741_v29, %v11479_v12 }
 0x413   : > { %v8737_v60 = vpop.eup %8736  ;;  %v7656_v1 = vadd.f32 -1.0, %v8735_v2  ;;  %3413 = vrot.lane.b32.xlu0 %v3387_v35, %s8826_s15 }
 0x414   : > { %3758 = vrot.lane.b32.xlu2 %v3746_v50, %s8827_s26  ;;  %v7657_v8 = vadd.f32 -1.0, %v8737_v60  ;;  %v11691_v21 = vadd.f32 %v4879_v38, %v4742_v43  ;;  %5480 = vmatmul.bf16.gmra.mxu0 %v11602_v6  ;;  %v11703_v60 = vpop.f32.mrf.mxu1 }
 0x415   : > { %v2976_v46 = vpop.permute.xlu2 %2975  ;;  %v11694_v10 = vsel %vm3690_vm8, %v3682_v22, %v7656_v1  ;;  %v3786_v1 = vsel %vm659_vm10, %v3784_v14, %v3785_v36 }
 0x416   : > { %2994 = vst.msk [vmem:[#allocation2 + $0x178] sm:$0xff] %vm758_vm13, %v2976_v46  ;;  %v3747_v2 = vrot.slane %v11694_v10, 7  ;;  %v11699_v15 = vsel %vm3691_vm11, %v3683_v19, %v7657_v8  ;;  %v11715_v19 = vpop.f32.mrf.mxu2 }
 0x417   : > { %v5333_v12 = vpop.f32.mrf.mxu3  ;;  %3843 = vst.msk [vmem:[#allocation2 + $0x1e0] sm:$0xff] %vm525_vm2, %v11694_v10  ;;  %v3788_v56 = vrot.slane %v11699_v15, 1  ;;  %v3748_v43 = vrot.slane %v11699_v15, 7 }
 0x418   : > { %v11705_v38 = vadd.f32 %v5333_v12, %v5236_v59  ;;  %3760 = vrot.lane.b32.xlu1 %v3747_v2, %s8827_s26  ;;  %3844 = vst.msk [vmem:[#allocation2 + $0x1e8] sm:$0xff] %vm525_vm2, %v11699_v15 }
 0x419   : > { %v3319_v6 = vpop.permute.xlu0 %3318  ;;  %v11711_v22 = vpop.f32.mrf.mxu0  ;;  %v3801_v59 = vsel %vm659_vm10, %v3788_v56, 0.0  ;;  %v3749_v8 = vsel %vm618_vm15, %v3747_v2, %v3748_v43 }
 0x41a   : > { %v3336_v0 = vsel %vm618_vm15, 0.0, %v3319_v6 }
 0x41b   : > { %3808 = vrot.lane.b32.xlu0 %v3786_v1, %s8828_s27 }
 0x41c   : > { %v11724_v36 = vpop.f32.mrf.mxu1 }
 0x41d   : > { %v3371_v40 = vpop.permute.xlu2 %3370 }
 0x41e   : > { %v3390_v35 = vsel %vm708_vm9, %v3336_v0, %v3371_v40  ;;  %v5241_v46 = vpop.f32.mrf.mxu2 }
 0x41f   : > { %3419 = vrot.lane.b32.xlu2 %v3390_v35, %s8826_s15  ;;  %v11720_v29 = vpop.f32.mrf.mxu3 }
 0x420   : > { %3814 = vrot.lane.b32.xlu1 %v3801_v59, %s8828_s27 }
 0x421   : > { %v11726_v50 = vpop.f32.mrf.mxu0  ;;  %v3373_v15 = vpop.permute.xlu0 %3372 }
 0x424   : > { %5485 = vmatmul.bf16.gmra.mxu0 %v11638_v16  ;;  %v4886_v0 = vpop.f32.mrf.mxu1  ;;  %v8577_v16 = vld [vmem:[%s13601_s2 + $0x38] sm:$0xff] }
 0x425   : > { %v3607_v59 = vpop.permute.xlu2 %3606  ;;  %5921 = vmatpush.bf16.msra.mxu2 %v8577_v16 }
 0x427   : > { %3762 = vrot.lane.b32.xlu2 %v3749_v8, %s8827_s26  ;;  %v5338_v14 = vpop.f32.mrf.mxu3  ;;  %v5147_v8 = vld [vmem:[#allocation2 + $0x178] sm:$0xff] }
 0x428   : > { %v11732_v12 = vadd.f32 %v5338_v14, %v5241_v46 }
 0x429   : > { %v4748_v6 = vpop.f32.mrf.mxu0 }
 0x42a   : > { %v4749_v1 = vadd.f32 %v4748_v6, %v11541_v63  ;;  %v8576_v63 = vld [vmem:[%s13601_s2 + $0x30] sm:$0xff] }
 0x42b   : > { %5922 = vmatpush.bf16.msra.mxu2 %v8576_v63 }
 0x42c   : > { %v2974_v40 = vpop.permute.xlu1 %2973  ;;  %v11735_v35 = vadd.f32 %v4886_v0, %v4749_v1  ;;  %v8575_v1 = vld [vmem:[%s13601_s2 + $0x28] sm:$0xff]  ;;  %v8593_v0 = vld [vmem:[%s13601_s2 + $0xb8] sm:$0xff] }
 0x42d   : > { %2993 = vst.msk [vmem:[#allocation2 + $0x170] sm:$0xff] %vm758_vm13, %v2974_v40  ;;  %v3609_v40 = vpop.permute.xlu0 %3608  ;;  %6059 = vmatpush.bf16.msra.mxu3 %v8593_v0 }
 0x42e   : > { %v3646_v16 = vmax.f32 %v11114_v32, %v3609_v40 }
 0x42f   : > { %5923 = vmatpush.bf16.msra.mxu2 %v8575_v1  ;;  %v8591_v1 = vld [vmem:[%s13601_s2 + $0xa8] sm:$0xff] }
 0x434   : > { %v3321_v2 = vpop.permute.xlu1 %3320  ;;  %v5146_v43 = vld [vmem:[#allocation2 + $0x170] sm:$0xff] }
 0x435   : > { %v3391_v46 = vsel %vm708_vm9, %v3321_v2, %v3373_v15  ;;  %v5156_v14 = vpack.c.bf16 %v5147_v8, %v5146_v43  ;;  %v3787_v15 = vrot.slane %v11694_v10, 1  ;;  %v8574_v43 = vld [vmem:[%s13601_s2 + $0x20] sm:$0xff]  ;;  %v8592_v8 = vld [vmem:[%s13601_s2 + $0xb0] sm:$0xff]  ;;  %v3665_v10 = vsel %vm525_vm2, %v3646_v16, -inf }
 0x436   : > { %v2978_v6 = vpop.permute.xlu2 %2977  ;;  %3421 = vrot.lane.b32.xlu0 %v3391_v46, %s8826_s15  ;;  %5924 = vmatpush.bf16.msra.mxu2 %v8574_v43  ;;  %v8590_v16 = vld [vmem:[%s13601_s2 + $0xa0] sm:$0xff] }
 0x437   : > { %2995 = vst.msk [vmem:[#allocation2 + $0x180] sm:$0xff] %vm758_vm13, %v2978_v6  ;;  %5260 = vmatmul.bf16.gmra.mxu2 %v5156_v14  ;;  %5362 = vmatmul.bf16.gmra.mxu3 %v5156_v14  ;;  %v3789_v46 = vsel %vm659_vm10, %v3787_v15, %v3788_v56  ;;  %v8573_v6 = vld [vmem:[%s13601_s2 + $0x18] sm:$0xff]  ;;  %v3645_v56 = vmax.f32 %v11077_v45, %v3607_v59  ;;  %v8572_v15 = vld [vmem:[%s13601_s2 + $0x10] sm:$0xff]  ;;  %v8571_v59 = vld [vmem:[%s13601_s2 + $0x8] sm:$0xff] }
 0x438   : > { %5490 = vmatmul.bf16.gmra.mxu0 %v5156_v14  ;;  %6060 = vmatpush.bf16.msra.mxu3 %v8592_v8 }
 0x439   : > { %v3667_v8 = vsel %vm525_vm2, %v3645_v56, -inf  ;;  %v11796_v56 = vpop.f32.mrf.mxu3 }
 0x43a   : > { %5925 = vmatpush.bf16.msra.mxu2 %v8573_v6  ;;  %v8570_v6 = vld [vmem:[%s13601_s2] sm:$0xff]  ;;  %13767 = vst [vmem:[#allocation28_spill] sm:$0xff] %v11796_v56 }
 0x43c   : > { %v3605_v2 = vpop.permute.xlu1 %3604  ;;  %6061 = vmatpush.bf16.msra.mxu3 %v8591_v1  ;;  %v8588_v1 = vld [vmem:[%s13601_s2 + $0x90] sm:$0xff] }
 0x43d   : > { %v3644_v63 = vmax.f32 %v11043_v24, %v3605_v2 }
 0x43e   : > { %3812 = vrot.lane.b32.xlu0 %v3789_v46, %s8828_s27  ;;  %5926 = vmatpush.bf16.msra.mxu2 %v8572_v15  ;;  %v8589_v46 = vld [vmem:[%s13601_s2 + $0x98] sm:$0xff] }
 0x43f   : > { %v3664_v32 = vsel %vm525_vm2, %v3644_v63, -inf }
 0x440   : > { %v3666_v14 = vmax.f32 %v3664_v32, %v3665_v10  ;;  %6062 = vmatpush.bf16.msra.mxu3 %v8590_v16  ;;  %v3325_v10 = vpop.permute.xlu2 %3324  ;;  %v8585_v16 = vld [vmem:[%s13601_s2 + $0x78] sm:$0xff] }
 0x441   : > { %5824 = vmatpush.bf16.msra.mxu1 %v8585_v16 }
 0x442   : > { %v3684_v24 = vadd.f32 %v11592_v53, %v3666_v14  ;;  %5927 = vmatpush.bf16.msra.mxu2 %v8571_v59 }
 0x444   : > { %v3700_v0 = vmin.f32 %v3684_v24, 0.0  ;;  %v3611_v40 = vpop.permute.xlu1 %3610  ;;  %6063 = vmatpush.bf16.msra.mxu3 %v8589_v46  ;;  %vm3692_vm12 = vcmp.gt.f32.partialorder %v3684_v24, 0.0 }
 0x445   : > { %v3647_v2 = vmax.f32 %v11161_v27, %v3611_v40 }
 0x446   : > { %v3712_v43 = vmul.f32 1.442695, %v3700_v0  ;;  %5928 = vmatpush.bf16.msra.mxu2 %v8570_v6 }
 0x447   : > { %v3668_v63 = vsel %vm525_vm2, %v3647_v2, -inf  ;;  %v8587_v2 = vld [vmem:[%s13601_s2 + $0x88] sm:$0xff] }
 0x448   : > { %8738 = vpow2.f32 %v3712_v43  ;;  %v3669_v45 = vmax.f32 %v3667_v8, %v3668_v63  ;;  %6064 = vmatpush.bf16.msra.mxu3 %v8588_v1  ;;  %v8584_v63 = vld [vmem:[%s13601_s2 + $0x70] sm:$0xff]  ;;  %v3613_v59 = vpop.permute.xlu2 %3612  ;;  %v11821_v1 = vpop.f32.mrf.mxu2 }
 0x449   : > { %5825 = vmatpush.bf16.msra.mxu1 %v8584_v63  ;;  %13768 = vst [vmem:[#allocation29_spill] sm:$0xff] %v11821_v1  ;;  %v8582_v63 = vld [vmem:[%s13601_s2 + $0x60] sm:$0xff] }
 0x44a   : > { %v3685_v27 = vadd.f32 %v11592_v53, %v3669_v45  ;;  %v8586_v45 = vld [vmem:[%s13601_s2 + $0x80] sm:$0xff] }
 0x44c   : > { %v3701_v32 = vmin.f32 %v3685_v27, 0.0  ;;  %v3323_v14 = vpop.permute.xlu1 %3322  ;;  %6065 = vmatpush.bf16.msra.mxu3 %v8587_v2  ;;  %vm3693_vm14 = vcmp.gt.f32.partialorder %v3685_v27, 0.0 }
 0x44e   : > { %v8739_v0 = vpop.eup %8738  ;;  %v3714_v40 = vmul.f32 1.442695, %v3701_v32 }
 0x44f   : > { %v7658_v15 = vadd.f32 -1.0, %v8739_v0  ;;  %v5343_v0 = vpop.f32.mrf.mxu3 }
 0x450   : > { %8740 = vpow2.f32 %v3714_v40  ;;  %6066 = vmatpush.bf16.msra.mxu3 %v8586_v45  ;;  %v3619_v56 = vpop.permute.xlu2 %3618 }
 0x451   : > { %v11804_v43 = vsel %vm3692_vm12, %v3684_v24, %v7658_v15  ;;  %v8583_v15 = vld [vmem:[%s13601_s2 + $0x68] sm:$0xff] }
 0x452   : > { %v13659_v8 = vrot.slane %v11804_v43, 7  ;;  %3845 = vst.msk [vmem:[#allocation2 + $0x1f0] sm:$0xff] %vm525_vm2, %v11804_v43  ;;  %5826 = vmatpush.bf16.msra.mxu1 %v8583_v15 }
 0x454   : > { %3764 = vrot.lane.b32.xlu1 %v13659_v8, %s8827_s26  ;;  %v3377_v24 = vpop.permute.xlu1 %3376  ;;  %v5148_v8 = vld [vmem:[#allocation2 + $0x180] sm:$0xff] }
 0x455   : > { %v2980_v46 = vpop.permute.xlu0 %2979  ;;  %v3393_v32 = vsel %vm708_vm9, %v3325_v10, %v3377_v24  ;;  %v3790_v10 = vrot.slane %v11804_v43, 1  ;;  %v3648_v24 = vmax.f32 %v11222_v4, %v3613_v59 }
 0x456   : > { %v8741_v6 = vpop.eup %8740  ;;  %2996 = vst.msk [vmem:[#allocation2 + $0x188] sm:$0xff] %vm758_vm13, %v2980_v46  ;;  %3425 = vrot.lane.b32.xlu0 %v3393_v32, %s8826_s15  ;;  %5827 = vmatpush.bf16.msra.mxu1 %v8582_v63 }
 0x457   : > { %v7659_v40 = vadd.f32 -1.0, %v8741_v6  ;;  %v3337_v6 = vsel %vm618_vm15, 0.0, %v3323_v14  ;;  %v3670_v1 = vsel %vm525_vm2, %v3648_v24, -inf  ;;  %v8580_v24 = vld [vmem:[%s13601_s2 + $0x50] sm:$0xff] }
 0x459   : > { %v3733_v16 = vsel %vm3693_vm14, %v3685_v27, %v7659_v40 }
 0x45a   : > { %v3791_v2 = vrot.slane %v3733_v16, 1  ;;  %3846 = vst.msk [vmem:[#allocation2 + $0x1f8] sm:$0xff] %vm525_vm2, %v3733_v16  ;;  %v3751_v63 = vrot.slane %v3733_v16, 7 }
 0x45c   : > { %v3617_v46 = vpop.permute.xlu1 %3616  ;;  %v3802_v45 = vsel %vm659_vm10, %v3791_v2, 0.0  ;;  %v3792_v32 = vsel %vm659_vm10, %v3790_v10, %v3791_v2 }
 0x45d   : > { %v3375_v27 = vpop.permute.xlu0 %3374  ;;  %v3650_v40 = vmax.f32 %v11305_v41, %v3617_v46  ;;  %3818 = vrot.lane.b32.xlu1 %v3802_v45, %s8828_s27  ;;  %v5149_v15 = vld [vmem:[#allocation2 + $0x188] sm:$0xff]  ;;  %v8581_v46 = vld [vmem:[%s13601_s2 + $0x58] sm:$0xff]  ;;  %v11847_v45 = vpop.f32.mrf.mxu3 }
 0x45e   : > { %v3392_v4 = vsel %vm708_vm9, %v3337_v6, %v3375_v27  ;;  %3816 = vrot.lane.b32.xlu0 %v3792_v32, %s8828_s27  ;;  %v5157_v59 = vpack.c.bf16 %v5149_v15, %v5148_v8  ;;  %5828 = vmatpush.bf16.msra.mxu1 %v8581_v46  ;;  %v13769_v15 = vrot.slane %v11804_v43, 7 }
 0x45f   : > { %v3671_v2 = vsel %vm525_vm2, %v3650_v40, -inf  ;;  %v5246_v10 = vpop.f32.mrf.mxu2  ;;  %3423 = vrot.lane.b32.xlu2 %v3392_v4, %s8826_s15 }
 0x460   : > { %v3672_v14 = vmax.f32 %v3670_v1, %v3671_v2  ;;  %v11842_v41 = vadd.f32 %v5343_v0, %v5246_v10  ;;  %5265 = vmatmul.bf16.gmra.mxu2 %v5157_v59  ;;  %5495 = vmatmul.bf16.gmra.mxu0 %v5157_v59  ;;  %v3651_v1 = vmax.f32 %v11332_v55, %v3619_v56 }
 0x461   : > { %v3752_v4 = vsel %vm618_vm15, %v13769_v15, %v3751_v63 }
 0x462   : > { %v3686_v8 = vadd.f32 %v11592_v53, %v3672_v14  ;;  %5829 = vmatpush.bf16.msra.mxu1 %v8580_v24  ;;  %v3674_v2 = vsel %vm525_vm2, %v3651_v1, -inf  ;;  %v8578_v14 = vld [vmem:[%s13601_s2 + $0x40] sm:$0xff] }
 0x464   : > { %v3702_v0 = vmin.f32 %v3686_v8, 0.0  ;;  %vm3694_vm3 = vcmp.gt.f32.partialorder %v3686_v8, 0.0 }
 0x465   : > { %v3615_v32 = vpop.permute.xlu0 %3614  ;;  %v5348_v56 = vpop.f32.mrf.mxu3 }
 0x466   : > { %v3716_v6 = vmul.f32 1.442695, %v3702_v0  ;;  %v3649_v27 = vmax.f32 %v11260_v3, %v3615_v32  ;;  %v3412_v40 = vpop.permute.xlu2 %3411  ;;  %v8579_v3 = vld [vmem:[%s13601_s2 + $0x48] sm:$0xff] }
 0x467   : > { %3435 = vst.msk [vmem:[#allocation2 + $0x190] sm:$0xff] %vm758_vm13, %v3412_v40  ;;  %v11859_v16 = vpop.f32.mrf.mxu2  ;;  %3766 = vrot.lane.b32.xlu2 %v3752_v4, %s8827_s26  ;;  %5830 = vmatpush.bf16.msra.mxu1 %v8579_v3 }
 0x468   : > { %8742 = vpow2.f32 %v3716_v6  ;;  %v3673_v55 = vsel %vm525_vm2, %v3649_v27, -inf }
 0x469   : > { %v3675_v43 = vmax.f32 %v3673_v55, %v3674_v2 }
 0x46b   : > { %v3687_v10 = vadd.f32 %v11592_v53, %v3675_v43  ;;  %5831 = vmatpush.bf16.msra.mxu1 %v8578_v14 }
 0x46c   : > { %v3418_v46 = vpop.permute.xlu1 %3417 }
 0x46d   : > { %v3703_v63 = vmin.f32 %v3687_v10, 0.0  ;;  %v3416_v24 = vpop.permute.xlu0 %3415  ;;  %3438 = vst.msk [vmem:[#allocation2 + $0x1a8] sm:$0xff] %vm758_vm13, %v3418_v46  ;;  %v5350_v4 = vpop.f32.mrf.mxu3  ;;  %vm3695_vm1 = vcmp.gt.f32.partialorder %v3687_v10, 0.0 }
 0x46e   : > { %v8743_v1 = vpop.eup %8742  ;;  %3437 = vst.msk [vmem:[#allocation2 + $0x1a0] sm:$0xff] %vm758_vm13, %v3416_v24  ;;  %v3759_v53 = vpop.permute.xlu2 %3758 }
 0x46f   : > { %v7660_v0 = vadd.f32 -1.0, %v8743_v1  ;;  %v3718_v32 = vmul.f32 1.442695, %v3703_v63  ;;  %v5251_v6 = vpop.f32.mrf.mxu2 }
 0x470   : > { %v11873_v27 = vadd.f32 %v5348_v56, %v5251_v6  ;;  %5929 = vmatmul.bf16.vlgmr.msra.gmra.mxu2 %v5157_v59 }
 0x471   : > { %8744 = vpow2.f32 %v3718_v32  ;;  %v3734_v40 = vsel %vm3694_vm3, %v3686_v8, %v7660_v0 }
 0x472   : > { %13770 = vst [vmem:[#allocation30_spill] sm:$0xff] %v11873_v27  ;;  %v3753_v15 = vrot.slane %v3734_v40, 7 }
 0x473   : > { %3847 = vst.msk [vmem:[#allocation2 + $0x200] sm:$0xff] %vm525_vm2, %v3734_v40 }
 0x474   : > { %3768 = vrot.lane.b32.xlu1 %v3753_v15, %s8827_s26  ;;  %v3757_v2 = vpop.permute.xlu1 %3756  ;;  %v5972_v55 = vld [vmem:[#allocation2 + $0x1a8] sm:$0xff] }
 0x475   : > { %v5971_v3 = vld [vmem:[#allocation2 + $0x1a0] sm:$0xff]  ;;  %v5353_v0 = vpop.f32.mrf.mxu3 }
 0x476   : > { %v5987_v43 = vpack.c.bf16 %v5972_v55, %v5971_v3  ;;  %v3793_v3 = vrot.slane %v3734_v40, 1 }
 0x477   : > { %v8745_v14 = vpop.eup %8744  ;;  %v5253_v46 = vpop.f32.mrf.mxu2 }
 0x478   : > { %v11877_v63 = vadd.f32 %v5350_v4, %v5253_v46  ;;  %6067 = vmatmul.bf16.vlgmr.msra.gmra.mxu3 %v5987_v43  ;;  %v7661_v56 = vadd.f32 -1.0, %v8745_v14 }
 0x479   : > { %v3420_v59 = vpop.permute.xlu2 %3419 }
 0x47a   : > { %3439 = vst.msk [vmem:[#allocation2 + $0x1b0] sm:$0xff] %vm758_vm13, %v3420_v59  ;;  %v3735_v8 = vsel %vm3695_vm1, %v3687_v10, %v7661_v56 }
 0x47b   : > { %v3794_v24 = vrot.slane %v3735_v8, 1  ;;  %3848 = vst.msk [vmem:[#allocation2 + $0x208] sm:$0xff] %vm525_vm2, %v3735_v8 }
 0x47c   : > { %v3811_v1 = vpop.permute.xlu1 %3810 }
 0x47d   : > { %v3833_v32 = vsel %vm708_vm9, %v3759_v53, %v3811_v1  ;;  %v3803_v6 = vsel %vm659_vm10, %v3794_v24, 0.0  ;;  %v3795_v10 = vsel %vm659_vm10, %v3793_v3, %v3794_v24  ;;  %v5355_v46 = vpop.f32.mrf.mxu3  ;;  %v3780_v1 = vsel %vm618_vm15, 0.0, %v3757_v2 }
 0x47e   : > { %3822 = vrot.lane.b32.xlu1 %v3803_v6, %s8828_s27  ;;  %3859 = vrot.lane.b32.xlu0 %v3833_v32, %s8826_s15  ;;  %v5383_v32 = vld [vmem:[#allocation2 + $0x190] sm:$0xff]  ;;  %v3754_v3 = vrot.slane %v3735_v8, 7 }
 0x47f   : > { %v5256_v4 = vpop.f32.mrf.mxu2 }
 0x480   : > { %v11885_v55 = vadd.f32 %v5353_v0, %v5256_v4  ;;  %v3755_v2 = vsel %vm618_vm15, %v3753_v15, %v3754_v3 }
 0x481   : > { %v3763_v24 = vpop.permute.xlu2 %3762 }
 0x485   : > { %v3414_v14 = vpop.permute.xlu0 %3413  ;;  %v5358_v15 = vpop.f32.mrf.mxu3 }
 0x486   : > { %3436 = vst.msk [vmem:[#allocation2 + $0x198] sm:$0xff] %vm758_vm13, %v3414_v14  ;;  %3820 = vrot.lane.b32.xlu0 %v3795_v10, %s8828_s27 }
 0x487   : > { %v5258_v56 = vpop.f32.mrf.mxu2 }
 0x488   : > { %v11890_v53 = vadd.f32 %v5355_v46, %v5258_v56  ;;  %v5740_v56 = vld [vmem:[#allocation2 + $0x1b0] sm:$0xff] }
 0x48a   : > { %v3761_v59 = vpop.permute.xlu1 %3760 }
 0x48d   : > { %v3809_v6 = vpop.permute.xlu0 %3808  ;;  %v5384_v27 = vld [vmem:[#allocation2 + $0x198] sm:$0xff] }
 0x48e   : > { %v3832_v0 = vsel %vm708_vm9, %v3780_v1, %v3809_v6  ;;  %v5392_v40 = vpack.c.bf16 %v5384_v27, %v5383_v32  ;;  %v3781_v27 = vsel %vm618_vm15, 0.0, %v3761_v59 }
 0x48f   : > { %3857 = vrot.lane.b32.xlu2 %v3832_v0, %s8826_s15 }
 0x490   : > { %5500 = vmatmul.bf16.gmra.mxu0 %v5392_v40  ;;  %5832 = vmatmul.bf16.vlgmr.msra.gmra.mxu1 %v5392_v40 }
 0x491   : > { %5934 = vmatmul.bf16.gmra.mxu2 %v5392_v40  ;;  %v5360_v40 = vpop.f32.mrf.mxu3 }
 0x492   : > { %v3815_v4 = vpop.permute.xlu1 %3814 }
 0x493   : > { %v3835_v14 = vsel %vm708_vm9, %v3763_v24, %v3815_v4 }
 0x494   : > { %3863 = vrot.lane.b32.xlu0 %v3835_v14, %s8826_s15  ;;  %v11909_v14 = vpop.f32.mrf.mxu0 }
 0x497   : > { %3770 = vrot.lane.b32.xlu2 %v3755_v2, %s8827_s26 }
 0x4a0   : > { %5837 = vmatmul.bf16.gmra.mxu1 %v5987_v43 }
 0x4a1   : > { %5939 = vmatmul.bf16.gmra.mxu2 %v5987_v43 }
 0x4a8   : > { %v3422_v10 = vpop.permute.xlu0 %3421 }
 0x4a9   : > { %3440 = vst.msk [vmem:[#allocation2 + $0x1b8] sm:$0xff] %vm758_vm13, %v3422_v10 }
 0x4b0   : > { %v3813_v46 = vpop.permute.xlu0 %3812  ;;  %v5741_v1 = vld [vmem:[#allocation2 + $0x1b8] sm:$0xff] }
 0x4b1   : > { %v3834_v8 = vsel %vm708_vm9, %v3781_v27, %v3813_v46  ;;  %v5754_v6 = vpack.c.bf16 %v5741_v1, %v5740_v56 }
 0x4b2   : > { %3861 = vrot.lane.b32.xlu2 %v3834_v8, %s8826_s15 }
 0x4b3   : > { %5842 = vmatmul.bf16.gmra.mxu1 %v5754_v6  ;;  %5944 = vmatmul.bf16.gmra.mxu2 %v5754_v6 }
 0x4b4   : > { %6072 = vmatmul.bf16.gmra.mxu3 %v5754_v6 }
 0x4b9   : > { %v3424_v32 = vpop.permute.xlu2 %3423 }
 0x4ba   : > { %3441 = vst.msk [vmem:[#allocation2 + $0x1c0] sm:$0xff] %vm758_vm13, %v3424_v32  ;;  %v5261_v43 = vpop.f32.mrf.mxu2  ;;  %v11916_v32 = vpop.f32.mrf.mxu0 }
 0x4bb   : > { %v11904_v0 = vadd.f32 %v5358_v15, %v5261_v43  ;;  %v4132_v43 = vadd.f32 %v11282_v25, %v11317_v11  ;;  %v11935_v25 = vpop.f32.mrf.mxu1 }
 0x4c1   : > { %v3767_v2 = vpop.permute.xlu2 %3766  ;;  %v5742_v1 = vld [vmem:[#allocation2 + $0x1c0] sm:$0xff] }
 0x4c2   : > { %v5263_v59 = vpop.f32.mrf.mxu2 }
 0x4c3   : > { %v11906_v24 = vadd.f32 %v5360_v40, %v5263_v59  ;;  %v11922_v40 = vpop.f32.mrf.mxu0  ;;  %v11925_v59 = vadd.f32 %v11404_v44, %v4132_v43 }
 0x4c5   : > { %13771 = vst [vmem:[#allocation31_spill] sm:$0xff] %v11906_v24 }
 0x4c6   : > { %v3765_v4 = vpop.permute.xlu1 %3764 }
 0x4c7   : > { %v3782_v27 = vsel %vm618_vm15, 0.0, %v3765_v4  ;;  %v5363_v4 = vpop.f32.mrf.mxu3 }
 0x4c8   : > { %v3426_v3 = vpop.permute.xlu0 %3425 }
 0x4c9   : > { %3442 = vst.msk [vmem:[#allocation2 + $0x1c8] sm:$0xff] %vm758_vm13, %v3426_v3 }
 0x4cf   : > { %v3819_v10 = vpop.permute.xlu1 %3818  ;;  %v5365_v11 = vpop.f32.mrf.mxu3 }
 0x4d0   : > { %v3837_v46 = vsel %vm708_vm9, %v3767_v2, %v3819_v10  ;;  %v3817_v56 = vpop.permute.xlu0 %3816  ;;  %v5743_v8 = vld [vmem:[#allocation2 + $0x1c8] sm:$0xff] }
 0x4d1   : > { %v3836_v6 = vsel %vm708_vm9, %v3782_v27, %v3817_v56  ;;  %3867 = vrot.lane.b32.xlu2 %v3837_v46, %s8826_s15  ;;  %v5755_v15 = vpack.c.bf16 %v5743_v8, %v5742_v1  ;;  %v11931_v27 = vpop.f32.mrf.mxu0  ;;  %v4147_v1 = vadd.f32 %v11428_v37, %v11450_v39 }
 0x4d2   : > { %3865 = vrot.lane.b32.xlu1 %v3836_v6, %s8826_s15 }
 0x4d3   : > { %5847 = vmatmul.bf16.gmra.mxu1 %v5755_v15  ;;  %5949 = vmatmul.bf16.gmra.mxu2 %v5755_v15  ;;  %v11943_v8 = vadd.f32 %v11505_v54, %v4147_v1 }
 0x4d4   : > { %6077 = vmatmul.bf16.gmra.mxu3 %v5755_v15 }
 0x4d9   : > { %4335 = vrot.lane.b32.xlu2 %v11235_v52, %s8826_s15 }
 0x4e1   : > { %4341 = vrot.lane.b32.xlu2 %v11925_v59, %s8826_s15 }
 0x4e3   : > { %v5266_v3 = vpop.f32.mrf.mxu2 }
 0x4e4   : > { %v11929_v2 = vadd.f32 %v5363_v4, %v5266_v3  ;;  %v11948_v4 = vpop.f32.mrf.mxu0 }
 0x4e6   : > { %13772 = vst [vmem:[#allocation32_spill] sm:$0xff] %v11929_v2  ;;  %v3769_v10 = vpop.permute.xlu1 %3768  ;;  %v13789_v2 = vld [vmem:[#allocation22_spill] sm:$0xff] }
 0x4e7   : > { %v3783_v37 = vsel %vm618_vm15, 0.0, %v3769_v10  ;;  %v4162_v10 = vadd.f32 %v11533_v33, %v11557_v57  ;;  %v13776_v57 = vld [vmem:[#allocation11_spill] sm:$0xff] }
 0x4e9   : > { %v3858_v46 = vpop.permute.xlu2 %3857  ;;  %4347 = vrot.lane.b32.xlu2 %v11448_v18, %s8826_s15 }
 0x4ea   : > { %3881 = vst.msk [vmem:[#allocation2 + $0x1d0] sm:$0xff] %vm758_vm13, %v3858_v46  ;;  %v4891_v46 = vpop.f32.mrf.mxu1 }
 0x4eb   : > { %v5268_v44 = vpop.f32.mrf.mxu2 }
 0x4ec   : > { %v11938_v56 = vadd.f32 %v5365_v11, %v5268_v44 }
 0x4ee   : > { %13773 = vst [vmem:[#allocation33_spill] sm:$0xff] %v11938_v56 }
 0x4f0   : > { %v3823_v6 = vpop.permute.xlu1 %3822  ;;  %v3860_v15 = vpop.permute.xlu0 %3859 }
 0x4f1   : > { %v3771_v43 = vpop.permute.xlu2 %3770  ;;  %3882 = vst.msk [vmem:[#allocation2 + $0x1d8] sm:$0xff] %vm758_vm13, %v3860_v15  ;;  %4353 = vrot.lane.b32.xlu2 %v11943_v8, %s8826_s15  ;;  %v5744_v54 = vld [vmem:[#allocation2 + $0x1d0] sm:$0xff]  ;;  %v4127_v15 = vadd.f32 %v11139_v23, %v11150_v7 }
 0x4f2   : > { %v3839_v3 = vsel %vm708_vm9, %v3771_v43, %v3823_v6  ;;  %v11959_v6 = vpop.f32.mrf.mxu0  ;;  %v11965_v43 = vpop.f32.mrf.mxu1 }
 0x4f3   : > { %3871 = vrot.lane.b32.xlu1 %v3839_v3, %s8826_s15  ;;  %v4137_v3 = vadd.f32 %v11337_v13, %v11389_v62  ;;  %v13775_v62 = vld [vmem:[#allocation16_spill] sm:$0xff] }
 0x4f8   : > { %v3821_v39 = vpop.permute.xlu0 %3820  ;;  %v5745_v11 = vld [vmem:[#allocation2 + $0x1d8] sm:$0xff] }
 0x4f9   : > { %v3838_v44 = vsel %vm708_vm9, %v3783_v37, %v3821_v39  ;;  %4359 = vrot.lane.b32.xlu2 %v11554_v9, %s8826_s15  ;;  %v5756_v1 = vpack.c.bf16 %v5745_v11, %v5744_v54  ;;  %v11970_v37 = vadd.f32 %v11625_v30, %v4162_v10  ;;  %v11973_v39 = vadd.f32 %v11339_v42, %v4127_v15  ;;  %v13774_v42 = vld [vmem:[#allocation8_spill] sm:$0xff]  ;;  %v13777_v30 = vld [vmem:[#allocation10_spill] sm:$0xff] }
 0x4fa   : > { %3869 = vrot.lane.b32.xlu0 %v3838_v44, %s8826_s15  ;;  %v11976_v54 = vadd.f32 %v11436_v47, %v4137_v3  ;;  %v11984_v23 = vpop.f32.mrf.mxu0  ;;  %v11987_v13 = vpop.f32.mrf.mxu1  ;;  %v4739_v47 = vadd.f32 %v11679_v5, %v13775_v62  ;;  %v4152_v11 = vadd.f32 %v13777_v30, %v13776_v57  ;;  %v13780_v10 = vld [vmem:[#allocation18_spill] sm:$0xff]  ;;  %v13781_v62 = vld [vmem:[#allocation13_spill] sm:$0xff] }
 0x4fb   : > { %4339 = vrot.lane.b32.xlu1 %v11368_v48, %s8826_s15  ;;  %5852 = vmatmul.bf16.gmra.mxu1 %v5756_v1 }
 0x4fc   : > { %5954 = vmatmul.bf16.gmra.mxu2 %v5756_v1  ;;  %6082 = vmatmul.bf16.gmra.mxu3 %v5756_v1  ;;  %v12001_v44 = vadd.f32 %v11663_v58, %v4739_v47  ;;  %v13779_v1 = vld [vmem:[#allocation6_spill] sm:$0xff] }
 0x4fd   : > { %v12005_v15 = vadd.f32 %v13780_v10, %v13779_v1 }
 0x4fe   : > { %13778 = vst [vmem:[#allocation8_spill] sm:$0xff] %v12001_v44 }
 0x501   : > { %4365 = vrot.lane.b32.xlu2 %v11970_v37, %s8826_s15 }
 0x502   : > { %4337 = vrot.lane.b32.xlu0 %v11973_v39, %s8826_s15  ;;  %v5468_v3 = vpop.f32.mrf.mxu0  ;;  %v4899_v5 = vpop.f32.mrf.mxu1 }
 0x503   : > { %4345 = vrot.lane.b32.xlu1 %v11976_v54, %s8826_s15 }
 0x506   : > { %v3864_v7 = vpop.permute.xlu0 %3863 }
 0x507   : > { %3884 = vst.msk [vmem:[#allocation2 + $0x1e8] sm:$0xff] %vm758_vm13, %v3864_v7  ;;  %v12008_v7 = vadd.f32 %v11544_v51, %v4152_v11  ;;  %v13783_v11 = vld [vmem:[#allocation19_spill] sm:$0xff] }
 0x509   : > { %4940 = vrot.lane.b32.xlu2 %v11627_v34, %s8826_s15 }
 0x50a   : > { %4343 = vrot.lane.b32.xlu0 %v13774_v42, %s8826_s15  ;;  %v12023_v51 = vpop.f32.mrf.mxu0  ;;  %v12031_v1 = vpop.f32.mrf.mxu1 }
 0x50b   : > { %4351 = vrot.lane.b32.xlu1 %v11484_v17, %s8826_s15 }
 0x50c   : > { %v3862_v33 = vpop.permute.xlu2 %3861 }
 0x50d   : > { %3883 = vst.msk [vmem:[#allocation2 + $0x1e0] sm:$0xff] %vm758_vm13, %v3862_v33  ;;  %v4747_v33 = vadd.f32 %v11726_v50, %v13781_v62  ;;  %v4754_v50 = vadd.f32 %v11916_v32, %v11568_v20  ;;  %v13785_v62 = vld [vmem:[#allocation14_spill] sm:$0xff]  ;;  %v4762_v20 = vadd.f32 %v11948_v4, %v11630_v26  ;;  %v13792_v4 = vld [vmem:[#allocation12_spill] sm:$0xff] }
 0x50e   : > { %v5747_v47 = vld [vmem:[#allocation2 + $0x1e8] sm:$0xff] }
 0x50f   : > { %v12019_v30 = vadd.f32 %v11724_v36, %v4747_v33  ;;  %v13784_v36 = vld [vmem:[#allocation9_spill] sm:$0xff] }
 0x510   : > { %v4729_v10 = vadd.f32 %v11600_v31, %v13784_v36  ;;  %v13786_v33 = vld [vmem:[#allocation17_spill] sm:$0xff] }
 0x511   : > { %4946 = vrot.lane.b32.xlu2 %v12001_v44, %s8826_s15  ;;  %13782 = vst [vmem:[#allocation16_spill] sm:$0xff] %v12019_v30  ;;  %v13791_v36 = vld [vmem:[#allocation25_spill] sm:$0xff] }
 0x512   : > { %4349 = vrot.lane.b32.xlu0 %v12005_v15, %s8826_s15  ;;  %v12043_v24 = vadd.f32 %v13789_v2, %v4729_v10  ;;  %v12053_v31 = vpop.f32.mrf.mxu0  ;;  %v5833_v32 = vpop.f32.mrf.mxu1  ;;  %v13793_v10 = vld [vmem:[#allocation7_spill] sm:$0xff] }
 0x513   : > { %4357 = vrot.lane.b32.xlu1 %v12008_v7, %s8826_s15  ;;  %v6068_v2 = vpop.f32.mrf.mxu3 }
 0x514   : > { %v5746_v58 = vld [vmem:[#allocation2 + $0x1e0] sm:$0xff] }
 0x515   : > { %v5757_v57 = vpack.c.bf16 %v5747_v47, %v5746_v58  ;;  %v4157_v58 = vadd.f32 %v13786_v33, %v13785_v62  ;;  %v12037_v47 = vadd.f32 %v4891_v46, %v4754_v50  ;;  %v12055_v46 = vadd.f32 %v4899_v5, %v4762_v20  ;;  %v5930_v50 = vpop.f32.mrf.mxu2  ;;  %v13794_v33 = vld [vmem:[#allocation27_spill] sm:$0xff] }
 0x516   : > { %v4734_v62 = vadd.f32 %v13793_v10, %v13792_v4  ;;  %v5331_v5 = vadd.f32 %v11683_v61, %v13794_v33  ;;  %v5931_v61 = vadd.f32 %v5930_v50, %v5833_v32 }
 0x517   : > { %5857 = vmatmul.bf16.gmra.mxu1 %v5757_v57  ;;  %5959 = vmatmul.bf16.gmra.mxu2 %v5757_v57  ;;  %13787 = vst [vmem:[#allocation11_spill] sm:$0xff] %v12037_v47 }
 0x518   : > { %6087 = vmatmul.bf16.gmra.mxu3 %v5757_v57  ;;  %v13788_v57 = vld [vmem:[#allocation21_spill] sm:$0xff]  ;;  %13790 = vst [vmem:[#allocation10_spill] sm:$0xff] %v12055_v46 }
 0x519   : > { %4952 = vrot.lane.b32.xlu2 %v12019_v30, %s8826_s15  ;;  %v12040_v56 = vadd.f32 %v13788_v57, %v4157_v58  ;;  %v13795_v58 = vld [vmem:[#allocation15_spill] sm:$0xff]  ;;  %v13796_v30 = vld [vmem:[#allocation5_spill] sm:$0xff] }
 0x51a   : > { %4355 = vrot.lane.b32.xlu0 %v13783_v11, %s8826_s15  ;;  %v4744_v57 = vadd.f32 %v11711_v22, %v13795_v58  ;;  %v5476_v20 = vpop.f32.mrf.mxu0  ;;  %v12075_v44 = vadd.f32 %v13796_v30, %v4734_v62  ;;  %v13797_v22 = vld [vmem:[#allocation20_spill] sm:$0xff]  ;;  %v12090_v30 = vadd.f32 %v6068_v2, %v5931_v61 }
 0x51b   : > { %4363 = vrot.lane.b32.xlu1 %v11595_v49, %s8826_s15  ;;  %v12106_v50 = vadd.f32 %v5476_v20, %v11732_v12 }
 0x51c   : > { %13798 = vst [vmem:[#allocation6_spill] sm:$0xff] %v12090_v30 }
 0x51d   : > { %v5932_v4 = vpop.f32.mrf.mxu2  ;;  %13800 = vst [vmem:[#allocation18_spill] sm:$0xff] %v12106_v50 }
 0x521   : > { %4958 = vrot.lane.b32.xlu2 %v12037_v47, %s8826_s15  ;;  %v12072_v47 = vadd.f32 %v5468_v3, %v5331_v5  ;;  %v4752_v3 = vadd.f32 %v11909_v14, %v13797_v22  ;;  %v13799_v14 = vld [vmem:[#allocation4_spill] sm:$0xff] }
 0x522   : > { %4361 = vrot.lane.b32.xlu0 %v12040_v56, %s8826_s15  ;;  %v4759_v32 = vadd.f32 %v11931_v27, %v13799_v14  ;;  %v13801_v27 = vld [vmem:[#allocation23_spill] sm:$0xff] }
 0x523   : > { %4938 = vrot.lane.b32.xlu1 %v12043_v24, %s8826_s15  ;;  %v12095_v62 = vadd.f32 %v11935_v25, %v4752_v3  ;;  %v4757_v12 = vadd.f32 %v11922_v40, %v13801_v27  ;;  %v13803_v40 = vld [vmem:[#allocation24_spill] sm:$0xff] }
 0x524   : > { %v12111_v25 = vadd.f32 %v11987_v13, %v4759_v32  ;;  %v13802_v32 = vld [vmem:[#allocation26_spill] sm:$0xff] }
 0x525   : > { %v5935_v33 = vpop.f32.mrf.mxu2  ;;  %v12125_v14 = vadd.f32 %v11965_v43, %v4757_v12 }
 0x529   : > { %4964 = vrot.lane.b32.xlu2 %v12055_v46, %s8826_s15  ;;  %v12070_v46 = vpop.f32.mrf.mxu1 }
 0x52a   : > { %4936 = vrot.lane.b32.xlu0 %v11580_v28, %s8826_s15 }
 0x52b   : > { %4944 = vrot.lane.b32.xlu1 %v13791_v36, %s8826_s15  ;;  %v3868_v26 = vpop.permute.xlu2 %3867  ;;  %v12078_v36 = vadd.f32 %v11703_v60, %v4744_v57  ;;  %v12092_v60 = vpop.f32.mrf.mxu0 }
 0x52c   : > { %3886 = vst.msk [vmem:[#allocation2 + $0x1f8] sm:$0xff] %vm758_vm13, %v3868_v26  ;;  %v12082_v26 = vpop.f32.mrf.mxu3 }
 0x52d   : > { %v5937_v61 = vpop.f32.mrf.mxu2 }
 0x531   : > { %5540 = vrot.lane.b32.xlu2 %v12072_v47, %s8826_s15  ;;  %v5838_v10 = vpop.f32.mrf.mxu1 }
 0x532   : > { %4942 = vrot.lane.b32.xlu0 %v12075_v44, %s8826_s15 }
 0x533   : > { %4950 = vrot.lane.b32.xlu1 %v12078_v36, %s8826_s15  ;;  %v12108_v2 = vpop.permute.xlu2 %4335  ;;  %v5481_v58 = vpop.f32.mrf.mxu0  ;;  %v5749_v27 = vld [vmem:[#allocation2 + $0x1f8] sm:$0xff] }
 0x537   : > { %v6073_v5 = vpop.f32.mrf.mxu3 }
 0x539   : > { %6140 = vrot.lane.b32.xlu2 %v12090_v30, %s8826_s15  ;;  %v5840_v57 = vpop.f32.mrf.mxu1 }
 0x53a   : > { %4948 = vrot.lane.b32.xlu0 %v11691_v21, %s8826_s15  ;;  %v5938_v3 = vadd.f32 %v5937_v61, %v5840_v57  ;;  %v4764_v57 = vadd.f32 %v11959_v6, %v13803_v40 }
 0x53b   : > { %4956 = vrot.lane.b32.xlu1 %v12095_v62, %s8826_s15  ;;  %v12133_v30 = vpop.permute.xlu2 %4341  ;;  %v5483_v43 = vpop.f32.mrf.mxu0 }
 0x53f   : > { %v6075_v20 = vpop.f32.mrf.mxu3 }
 0x540   : > { %v12122_v13 = vadd.f32 %v6075_v20, %v5938_v3  ;;  %v5336_v20 = vadd.f32 %v11720_v29, %v11715_v19  ;;  %v12148_v3 = vadd.f32 %v12031_v1, %v4764_v57  ;;  %v5936_v29 = vadd.f32 %v5935_v33, %v5838_v10 }
 0x541   : > { %5546 = vrot.lane.b32.xlu2 %v12106_v50, %s8826_s15  ;;  %v12129_v50 = vadd.f32 %v11984_v23, %v13802_v32  ;;  %v5346_v23 = vadd.f32 %v11847_v45, %v11859_v16  ;;  %v12163_v45 = vadd.f32 %v12023_v51, %v11705_v38  ;;  %v5843_v1 = vpop.f32.mrf.mxu1  ;;  %v5940_v32 = vpop.f32.mrf.mxu2  ;;  %v12178_v38 = vadd.f32 %v5481_v58, %v11842_v41 }
 0x542   : > { %4954 = vrot.lane.b32.xlu0 %v11735_v35, %s8826_s15  ;;  %v12151_v6 = vadd.f32 %v12053_v31, %v5336_v20  ;;  %v12165_v16 = vadd.f32 %v6073_v5, %v5936_v29  ;;  %v5933_v31 = vadd.f32 %v5932_v4, %v12070_v46  ;;  %v13804_v46 = vld [vmem:[#allocation29_spill] sm:$0xff]  ;;  %v13805_v4 = vld [vmem:[#allocation28_spill] sm:$0xff] }
 0x543   : > { %4962 = vrot.lane.b32.xlu1 %v12111_v25, %s8826_s15  ;;  %v12159_v19 = vpop.permute.xlu2 %4347  ;;  %v5486_v51 = vpop.f32.mrf.mxu0 }
 0x544   : > { %v3866_v22 = vpop.permute.xlu1 %3865  ;;  %v12175_v10 = vadd.f32 %v12082_v26, %v5933_v31 }
 0x545   : > { %3885 = vst.msk [vmem:[#allocation2 + $0x1f0] sm:$0xff] %vm758_vm13, %v3866_v22  ;;  %v12145_v22 = vadd.f32 %v5483_v43, %v5346_v23  ;;  %v5341_v43 = vadd.f32 %v13805_v4, %v13804_v46 }
 0x547   : > { %v12188_v41 = vadd.f32 %v12092_v60, %v5341_v43  ;;  %v5941_v60 = vadd.f32 %v5940_v32, %v5843_v1 }
 0x549   : > { %6146 = vrot.lane.b32.xlu2 %v12122_v13, %s8826_s15  ;;  %v5845_v33 = vpop.f32.mrf.mxu1 }
 0x54a   : > { %4960 = vrot.lane.b32.xlu0 %v12125_v14, %s8826_s15 }
 0x54b   : > { %5538 = vrot.lane.b32.xlu1 %v12129_v50, %s8826_s15  ;;  %v12172_v57 = vpop.permute.xlu2 %4353  ;;  %v5488_v31 = vpop.f32.mrf.mxu0 }
 0x54c   : > { %v5748_v61 = vld [vmem:[#allocation2 + $0x1f0] sm:$0xff] }
 0x54d   : > { %v5758_v12 = vpack.c.bf16 %v5749_v27, %v5748_v61  ;;  %v5942_v61 = vpop.f32.mrf.mxu2 }
 0x54e   : > { %v5943_v26 = vadd.f32 %v5942_v61, %v5845_v33 }
 0x54f   : > { %5862 = vmatmul.bf16.gmra.mxu1 %v5758_v12  ;;  %5964 = vmatmul.bf16.gmra.mxu2 %v5758_v12 }
 0x550   : > { %6092 = vmatmul.bf16.gmra.mxu3 %v5758_v12  ;;  %v4383_v12 = vmax.f32 %v11235_v52, %v12108_v2  ;;  %v12212_v52 = vadd.f32 %v5488_v31, %v11877_v63 }
 0x551   : > { %5552 = vrot.lane.b32.xlu2 %v12145_v22, %s8826_s15 }
 0x552   : > { %4966 = vrot.lane.b32.xlu0 %v12148_v3, %s8826_s15  ;;  %v4399_v46 = vsel %vm525_vm2, %v4383_v12, -inf  ;;  %13806 = vst [vmem:[#allocation13_spill] sm:$0xff] %v12212_v52 }
 0x553   : > { %5544 = vrot.lane.b32.xlu1 %v12151_v6, %s8826_s15  ;;  %v12190_v58 = vpop.permute.xlu2 %4359 }
 0x557   : > { %v6078_v40 = vpop.f32.mrf.mxu3 }
 0x558   : > { %v12208_v4 = vadd.f32 %v6078_v40, %v5941_v60 }
 0x55a   : > { %5542 = vrot.lane.b32.xlu0 %v12163_v45, %s8826_s15 }
 0x55b   : > { %6144 = vrot.lane.b32.xlu1 %v12165_v16, %s8826_s15  ;;  %v12214_v61 = vpop.permute.xlu2 %4365 }
 0x55f   : > { %v6080_v27 = vpop.f32.mrf.mxu3 }
 0x560   : > { %v12192_v23 = vadd.f32 %v6080_v27, %v5943_v26 }
 0x562   : > { %6142 = vrot.lane.b32.xlu0 %v12175_v10, %s8826_s15 }
 0x563   : > { %5550 = vrot.lane.b32.xlu1 %v12178_v38, %s8826_s15 }
 0x565   : > { %v3872_v5 = vpop.permute.xlu1 %3871 }
 0x566   : > { %3888 = vst.msk [vmem:[#allocation2 + $0x208] sm:$0xff] %vm758_vm13, %v3872_v5  ;;  %v12205_v5 = vld [vmem:[%s13604_s5] ss:$0 sm:$0xff] }
 0x56a   : > { %5548 = vrot.lane.b32.xlu0 %v12188_v41, %s8826_s15 }
 0x56b   : > { %6150 = vrot.lane.b32.xlu1 %v12192_v23, %s8826_s15 }
 0x56c   : > { %v3870_v20 = vpop.permute.xlu0 %3869 }
 0x56d   : > { %3887 = vst.msk [vmem:[#allocation2 + $0x200] sm:$0xff] %vm758_vm13, %v3870_v20  ;;  %v4340_v29 = vpop.permute.xlu1 %4339  ;;  %v5751_v27 = vld [vmem:[#allocation2 + $0x208] sm:$0xff] }
 0x56e   : > { %v4385_v33 = vmax.f32 %v11368_v48, %v4340_v29  ;;  %v4386_v48 = vmax.f32 %v11925_v59, %v12133_v30  ;;  %v13807_v59 = vld [vmem:[#allocation30_spill] sm:$0xff] }
 0x56f   : > { %v12227_v30 = vadd.f32 %v5486_v51, %v13807_v59 }
 0x570   : > { %v4400_v43 = vsel %vm525_vm2, %v4385_v33, -inf  ;;  %v4403_v29 = vsel %vm525_vm2, %v4386_v48, -inf  ;;  %v12234_v48 = vpop.permute.xlu2 %4940 }
 0x571   : > { %v4401_v2 = vmax.f32 %v4399_v46, %v4400_v43  ;;  %v5848_v46 = vpop.f32.mrf.mxu1 }
 0x572   : > { %6148 = vrot.lane.b32.xlu0 %v12208_v4, %s8826_s15 }
 0x573   : > { %v4427_v1 = vadd.f32 %v12205_v5, %v4401_v2  ;;  %5556 = vrot.lane.b32.xlu1 %v12212_v52, %s8826_s15  ;;  %v4389_v2 = vmax.f32 %v11448_v18, %v12159_v19  ;;  %v4392_v19 = vmax.f32 %v11943_v8, %v12172_v57 }
 0x574   : > { %v4338_v32 = vpop.permute.xlu0 %4337  ;;  %v5750_v40 = vld [vmem:[#allocation2 + $0x200] sm:$0xff] }
 0x575   : > { %v4443_v26 = vmin.f32 %v4427_v1, 0.0  ;;  %v4384_v63 = vmax.f32 %v11973_v39, %v4338_v32  ;;  %v4346_v12 = vpop.permute.xlu1 %4345  ;;  %v5759_v20 = vpack.c.bf16 %v5751_v27, %v5750_v40  ;;  %v5945_v39 = vpop.f32.mrf.mxu2  ;;  %vm4435_vm9 = vcmp.gt.f32.partialorder %v4427_v1, 0.0 }
 0x577   : > { %v4451_v31 = vmul.f32 1.442695, %v4443_v26  ;;  %v4402_v60 = vsel %vm525_vm2, %v4384_v63, -inf  ;;  %5867 = vmatmul.bf16.gmra.mxu1 %v5759_v20  ;;  %6097 = vmatmul.bf16.gmra.mxu3 %v5759_v20  ;;  %v4406_v20 = vsel %vm525_vm2, %v4389_v2, -inf }
 0x578   : > { %v4404_v33 = vmax.f32 %v4402_v60, %v4403_v29  ;;  %v5946_v29 = vadd.f32 %v5945_v39, %v5848_v46  ;;  %v4388_v46 = vmax.f32 %v11976_v54, %v4346_v12  ;;  %v8815_v39 = vld [vmem:[#allocation2] sm:$0xff] }
 0x579   : > { %8746 = vpow2.f32 %v4451_v31  ;;  %v5994_v2 = vpack.c.bf16 %v8815_v39, %v8815_v39 }
 0x57a   : > { %v4428_v43 = vadd.f32 %v12205_v5, %v4404_v33  ;;  %5554 = vrot.lane.b32.xlu0 %v12227_v30, %s8826_s15 }
 0x57c   : > { %v4444_v32 = vmin.f32 %v4428_v43, 0.0  ;;  %v4344_v40 = vpop.permute.xlu0 %4343  ;;  %vm4436_vm13 = vcmp.gt.f32.partialorder %v4428_v43, 0.0 }
 0x57d   : > { %v4387_v27 = vmax.f32 %v13774_v42, %v4344_v40  ;;  %v12237_v51 = vpop.permute.xlu1 %4351 }
 0x57e   : > { %v4453_v26 = vmul.f32 1.442695, %v4444_v32  ;;  %v5850_v32 = vpop.f32.mrf.mxu1 }
 0x57f   : > { %v8747_v63 = vpop.eup %8746  ;;  %v4405_v31 = vsel %vm525_vm2, %v4387_v27, -inf  ;;  %v6083_v60 = vpop.f32.mrf.mxu3 }
 0x580   : > { %v7790_v59 = vadd.f32 -1.0, %v8747_v63  ;;  %8748 = vpow2.f32 %v4453_v26  ;;  %v4407_v33 = vmax.f32 %v4405_v31, %v4406_v20  ;;  %v12241_v18 = vadd.f32 %v6083_v60, %v5946_v29  ;;  %v5491_v27 = vpop.f32.mrf.mxu0  ;;  %v5947_v20 = vpop.f32.mrf.mxu2 }
 0x581   : > { %v5948_v31 = vadd.f32 %v5947_v20, %v5850_v32  ;;  %v12252_v60 = vpop.permute.xlu2 %4946 }
 0x582   : > { %v4475_v42 = vsel %vm4435_vm9, %v4427_v1, %v7790_v59  ;;  %v4429_v40 = vadd.f32 %v12205_v5, %v4407_v33  ;;  %6152 = vrot.lane.b32.xlu2 %v12241_v18, %s8826_s15  ;;  %v4414_v1 = vsel %vm525_vm2, %v4392_v19, -inf  ;;  %v4408_v33 = vsel %vm525_vm2, %v4388_v46, -inf }
 0x583   : > { %4483 = vst.msk [vmem:[#allocation3] sm:$0xff] %vm525_vm2, %v4475_v42  ;;  %v12261_v19 = vadd.f32 %v5491_v27, %v11885_v55 }
 0x584   : > { %v4445_v26 = vmin.f32 %v4429_v40, 0.0  ;;  %v4350_v63 = vpop.permute.xlu0 %4349  ;;  %vm4437_vm4 = vcmp.gt.f32.partialorder %v4429_v40, 0.0 }
 0x585   : > { %v4390_v29 = vmax.f32 %v12005_v15, %v4350_v63  ;;  %v4358_v8 = vpop.permute.xlu1 %4357 }
 0x586   : > { %v8749_v57 = vpop.eup %8748  ;;  %v4455_v59 = vmul.f32 1.442695, %v4445_v26  ;;  %v4394_v54 = vmax.f32 %v12008_v7, %v4358_v8  ;;  %v4395_v7 = vmax.f32 %v11554_v9, %v12190_v58 }
 0x587   : > { %v7791_v12 = vadd.f32 -1.0, %v8749_v57  ;;  %v4409_v42 = vsel %vm525_vm2, %v4390_v29, -inf  ;;  %v6085_v39 = vpop.f32.mrf.mxu3  ;;  %6102 = vmatmul.bf16.gmra.mxu3 %v5994_v2  ;;  %v4391_v2 = vmax.f32 %v11484_v17, %v12237_v51 }
 0x588   : > { %8750 = vpow2.f32 %v4455_v59  ;;  %v4410_v15 = vmax.f32 %v4408_v33, %v4409_v42  ;;  %v4415_v63 = vsel %vm525_vm2, %v4394_v54, -inf  ;;  %v12258_v52 = vadd.f32 %v6085_v39, %v5948_v31  ;;  %v5493_v8 = vpop.f32.mrf.mxu0 }
 0x589   : > { %v4476_v32 = vsel %vm4436_vm13, %v4428_v43, %v7791_v12  ;;  %v4416_v26 = vmax.f32 %v4414_v1, %v4415_v63  ;;  %v4417_v57 = vsel %vm525_vm2, %v4395_v7, -inf  ;;  %v4411_v17 = vsel %vm525_vm2, %v4391_v2, -inf  ;;  %v12279_v12 = vpop.permute.xlu2 %4952  ;;  %v5853_v2 = vpop.f32.mrf.mxu1 }
 0x58a   : > { %4484 = vst.msk [vmem:[#allocation3 + $0x8] sm:$0xff] %vm525_vm2, %v4476_v32  ;;  %v4430_v46 = vadd.f32 %v12205_v5, %v4410_v15  ;;  %6154 = vrot.lane.b32.xlu0 %v12258_v52, %s8826_s15  ;;  %5558 = vrot.lane.b32.xlu2 %v12261_v19, %s8826_s15  ;;  %v12283_v42 = vadd.f32 %v5493_v8, %v11890_v53 }
 0x58b   : > { %v4432_v20 = vadd.f32 %v12205_v5, %v4416_v26  ;;  %v4398_v63 = vmax.f32 %v11970_v37, %v12214_v61 }
 0x58c   : > { %v4446_v55 = vmin.f32 %v4430_v46, 0.0  ;;  %v4356_v43 = vpop.permute.xlu0 %4355  ;;  %vm4438_vm5 = vcmp.gt.f32.partialorder %v4430_v46, 0.0 }
 0x58d   : > { %v4448_v27 = vmin.f32 %v4432_v20, 0.0  ;;  %v4393_v9 = vmax.f32 %v13783_v11, %v4356_v43  ;;  %v4364_v58 = vpop.permute.xlu1 %4363  ;;  %vm4440_vm6 = vcmp.gt.f32.partialorder %v4432_v20, 0.0 }
 0x58e   : > { %v8751_v29 = vpop.eup %8750  ;;  %v4457_v1 = vmul.f32 1.442695, %v4446_v55  ;;  %v4397_v31 = vmax.f32 %v11595_v49, %v4364_v58  ;;  %v5950_v58 = vpop.f32.mrf.mxu2 }
 0x58f   : > { %v7792_v59 = vadd.f32 -1.0, %v8751_v29  ;;  %v4461_v51 = vmul.f32 1.442695, %v4448_v27  ;;  %v4412_v54 = vsel %vm525_vm2, %v4393_v9, -inf  ;;  %v4421_v29 = vsel %vm525_vm2, %v4398_v63, -inf }
 0x590   : > { %8752 = vpow2.f32 %v4457_v1  ;;  %v4413_v33 = vmax.f32 %v4411_v17, %v4412_v54  ;;  %v4418_v11 = vsel %vm525_vm2, %v4397_v31, -inf }
 0x591   : > { %v4477_v39 = vsel %vm4437_vm4, %v4429_v40, %v7792_v59  ;;  %8754 = vpow2.f32 %v4461_v51  ;;  %v4419_v15 = vmax.f32 %v4417_v57, %v4418_v11  ;;  %v5951_v59 = vadd.f32 %v5950_v58, %v5853_v2  ;;  %v12299_v17 = vpop.permute.xlu2 %4958 }
 0x592   : > { %4485 = vst.msk [vmem:[#allocation3 + $0x10] sm:$0xff] %vm525_vm2, %v4477_v39  ;;  %v4431_v49 = vadd.f32 %v12205_v5, %v4413_v33  ;;  %5560 = vrot.lane.b32.xlu0 %v12283_v42, %s8826_s15 }
 0x593   : > { %v4433_v32 = vadd.f32 %v12205_v5, %v4419_v15 }
 0x594   : > { %v4447_v26 = vmin.f32 %v4431_v49, 0.0  ;;  %v4362_v7 = vpop.permute.xlu0 %4361  ;;  %vm4439_vm7 = vcmp.gt.f32.partialorder %v4431_v49, 0.0 }
 0x595   : > { %v4449_v53 = vmin.f32 %v4433_v32, 0.0  ;;  %v4396_v40 = vmax.f32 %v12040_v56, %v4362_v7  ;;  %v12293_v55 = vpop.permute.xlu1 %4938  ;;  %v4986_v56 = vmax.f32 %v11627_v34, %v12234_v48  ;;  %v5855_v7 = vpop.f32.mrf.mxu1  ;;  %vm4441_vm8 = vcmp.gt.f32.partialorder %v4433_v32, 0.0 }
 0x596   : > { %v8753_v43 = vpop.eup %8752  ;;  %v4459_v27 = vmul.f32 1.442695, %v4447_v26  ;;  %v5496_v26 = vpop.f32.mrf.mxu0 }
 0x597   : > { %v8755_v9 = vpop.eup %8754  ;;  %v7793_v37 = vadd.f32 -1.0, %v8753_v43  ;;  %v4463_v61 = vmul.f32 1.442695, %v4449_v53  ;;  %v4420_v8 = vsel %vm525_vm2, %v4396_v40, -inf  ;;  %v5001_v48 = vsel %vm525_vm2, %v4986_v56, -inf }
 0x598   : > { %v7795_v57 = vadd.f32 -1.0, %v8755_v9  ;;  %8756 = vpow2.f32 %v4459_v27  ;;  %v4422_v1 = vmax.f32 %v4420_v8, %v4421_v29  ;;  %v12315_v53 = vld [vmem:[%s13604_s5] ss:$0 sm:$0xff]  ;;  %v5952_v27 = vpop.f32.mrf.mxu2 }
 0x599   : > { %v4478_v31 = vsel %vm4438_vm5, %v4430_v46, %v7793_v37  ;;  %8758 = vpow2.f32 %v4463_v61  ;;  %v5953_v58 = vadd.f32 %v5952_v27, %v5855_v7  ;;  %v4985_v37 = vmax.f32 %v12043_v24, %v12293_v55  ;;  %v13809_v7 = vld [vmem:[#allocation16_spill] sm:$0xff] }
 0x59a   : > { %4486 = vst.msk [vmem:[#allocation3 + $0x18] sm:$0xff] %vm525_vm2, %v4478_v31  ;;  %v4480_v51 = vsel %vm4440_vm6, %v4432_v20, %v7795_v57  ;;  %v4434_v54 = vadd.f32 %v12205_v5, %v4422_v1  ;;  %v12324_v57 = vadd.f32 %v5496_v26, %v11904_v0  ;;  %v13808_v1 = vld [vmem:[#allocation8_spill] sm:$0xff]  ;;  %v12328_v31 = vpop.permute.xlu2 %4964 }
 0x59b   : > { %4488 = vst.msk [vmem:[#allocation3 + $0x28] sm:$0xff] %vm525_vm2, %v4480_v51  ;;  %v6088_v33 = vpop.f32.mrf.mxu3 }
 0x59c   : > { %v12304_v11 = vadd.f32 %v6088_v33, %v5951_v59  ;;  %v4937_v39 = vpop.permute.xlu0 %4936  ;;  %v4450_v46 = vmin.f32 %v4434_v54, 0.0  ;;  %vm4442_vm11 = vcmp.gt.f32.partialorder %v4434_v54, 0.0 }
 0x59d   : > { %v12306_v15 = vpop.permute.xlu1 %4944  ;;  %v4984_v63 = vmax.f32 %v11580_v28, %v4937_v39 }
 0x59e   : > { %v8757_v34 = vpop.eup %8756  ;;  %6156 = vrot.lane.b32.xlu1 %v12304_v11, %s8826_s15  ;;  %v4465_v5 = vmul.f32 1.442695, %v4450_v46 }
 0x59f   : > { %v8759_v20 = vpop.eup %8758  ;;  %v7794_v2 = vadd.f32 -1.0, %v8757_v34  ;;  %v5000_v40 = vsel %vm525_vm2, %v4984_v63, -inf }
 0x5a0   : > { %v7796_v28 = vadd.f32 -1.0, %v8759_v20  ;;  %v5002_v43 = vmax.f32 %v5000_v40, %v5001_v48  ;;  %8760 = vpow2.f32 %v4465_v5  ;;  %v5498_v48 = vpop.f32.mrf.mxu0  ;;  %v13810_v5 = vld [vmem:[#allocation25_spill] sm:$0xff] }
 0x5a1   : > { %v4479_v9 = vsel %vm4439_vm7, %v4431_v49, %v7794_v2  ;;  %v4989_v49 = vmax.f32 %v13808_v1, %v12252_v60  ;;  %v5003_v60 = vsel %vm525_vm2, %v4985_v37, -inf  ;;  %v4992_v2 = vmax.f32 %v13809_v7, %v12279_v12 }
 0x5a2   : > { %4487 = vst.msk [vmem:[#allocation3 + $0x20] sm:$0xff] %vm525_vm2, %v4479_v9  ;;  %v4481_v29 = vsel %vm4441_vm8, %v4433_v32, %v7796_v28  ;;  %v5028_v61 = vadd.f32 %v12315_v53, %v5002_v43  ;;  %v4988_v40 = vmax.f32 %v13810_v5, %v12306_v15  ;;  %v13811_v43 = vld [vmem:[#allocation31_spill] sm:$0xff] }
 0x5a3   : > { %4489 = vst.msk [vmem:[#allocation3 + $0x30] sm:$0xff] %vm525_vm2, %v4481_v29  ;;  %v6090_v8 = vpop.f32.mrf.mxu3  ;;  %v5009_v46 = vsel %vm525_vm2, %v4989_v49, -inf  ;;  %v12350_v27 = vadd.f32 %v5498_v48, %v13811_v43  ;;  %v5012_v49 = vsel %vm525_vm2, %v4992_v2, -inf }
 0x5a4   : > { %v12330_v56 = vadd.f32 %v6090_v8, %v5953_v58  ;;  %v4943_v59 = vpop.permute.xlu0 %4942  ;;  %v5044_v32 = vmin.f32 %v5028_v61, 0.0  ;;  %v12353_v8 = vpop.permute.xlu2 %5540  ;;  %vm5036_vm12 = vcmp.gt.f32.partialorder %v5028_v61, 0.0 }
 0x5a5   : > { %v4951_v51 = vpop.permute.xlu1 %4950  ;;  %v4987_v33 = vmax.f32 %v12075_v44, %v4943_v59  ;;  %v5006_v59 = vsel %vm525_vm2, %v4988_v40, -inf }
 0x5a6   : > { %v4991_v24 = vmax.f32 %v12078_v36, %v4951_v51  ;;  %5562 = vrot.lane.b32.xlu1 %v12324_v57, %s8826_s15  ;;  %6158 = vrot.lane.b32.xlu2 %v12330_v56, %s8826_s15  ;;  %v8761_v0 = vpop.eup %8760  ;;  %v5052_v55 = vmul.f32 1.442695, %v5044_v32 }
 0x5a7   : > { %v5004_v39 = vsel %vm525_vm2, %v4987_v33, -inf  ;;  %v7797_v63 = vadd.f32 -1.0, %v8761_v0 }
 0x5a8   : > { %v5010_v34 = vsel %vm525_vm2, %v4991_v24, -inf  ;;  %v5005_v44 = vmax.f32 %v5003_v60, %v5004_v39  ;;  %8762 = vpow2.f32 %v5052_v55  ;;  %v13812_v55 = vld [vmem:[#allocation11_spill] sm:$0xff] }
 0x5a9   : > { %v5011_v36 = vmax.f32 %v5009_v46, %v5010_v34  ;;  %v4482_v20 = vsel %vm4442_vm11, %v4434_v54, %v7797_v63  ;;  %v4995_v39 = vmax.f32 %v13812_v55, %v12299_v17 }
 0x5aa   : > { %v5029_v26 = vadd.f32 %v12315_v53, %v5005_v44  ;;  %4490 = vst.msk [vmem:[#allocation3 + $0x38] sm:$0xff] %vm525_vm2, %v4482_v20 }
 0x5ab   : > { %v5031_v28 = vadd.f32 %v12315_v53, %v5011_v36 }
 0x5ac   : > { %v5045_v9 = vmin.f32 %v5029_v26, 0.0  ;;  %v4949_v58 = vpop.permute.xlu0 %4948  ;;  %v12370_v17 = vpop.permute.xlu2 %6140  ;;  %vm5037_vm14 = vcmp.gt.f32.partialorder %v5029_v26, 0.0 }
 0x5ad   : > { %v5047_v29 = vmin.f32 %v5031_v28, 0.0  ;;  %v4957_v37 = vpop.permute.xlu1 %4956  ;;  %v4990_v54 = vmax.f32 %v11691_v21, %v4949_v58  ;;  %vm5039_vm3 = vcmp.gt.f32.partialorder %v5031_v28, 0.0 }
 0x5ae   : > { %v5054_v1 = vmul.f32 1.442695, %v5045_v9  ;;  %v4994_v12 = vmax.f32 %v12095_v62, %v4957_v37  ;;  %5564 = vrot.lane.b32.xlu2 %v12350_v27, %s8826_s15  ;;  %v8763_v15 = vpop.eup %8762 }
 0x5af   : > { %v5058_v32 = vmul.f32 1.442695, %v5047_v29  ;;  %v5007_v51 = vsel %vm525_vm2, %v4990_v54, -inf  ;;  %v7926_v33 = vadd.f32 -1.0, %v8763_v15  ;;  %v13813_v54 = vld [vmem:[#allocation10_spill] sm:$0xff] }
 0x5b0   : > { %8764 = vpow2.f32 %v5054_v1  ;;  %v5013_v21 = vsel %vm525_vm2, %v4994_v12, -inf  ;;  %v5008_v24 = vmax.f32 %v5006_v59, %v5007_v51  ;;  %v4998_v1 = vmax.f32 %v13813_v54, %v12328_v31 }
 0x5b1   : > { %8766 = vpow2.f32 %v5058_v32  ;;  %v5014_v0 = vmax.f32 %v5012_v49, %v5013_v21  ;;  %v5076_v62 = vsel %vm5036_vm12, %v5028_v61, %v7926_v33  ;;  %v5016_v61 = vsel %vm525_vm2, %v4995_v39, -inf }
 0x5b2   : > { %v5030_v60 = vadd.f32 %v12315_v53, %v5008_v24  ;;  %5085 = vst.msk [vmem:[#allocation3 + $0x40] sm:$0xff] %vm525_vm2, %v5076_v62  ;;  %v5587_v39 = vmax.f32 %v12072_v47, %v12353_v8  ;;  %v12395_v47 = vld [vmem:[%s13604_s5] ss:$0 sm:$0xff] }
 0x5b3   : > { %v5032_v46 = vadd.f32 %v12315_v53, %v5014_v0 }
 0x5b4   : > { %v5046_v63 = vmin.f32 %v5030_v60, 0.0  ;;  %v4955_v34 = vpop.permute.xlu0 %4954  ;;  %vm5038_vm1 = vcmp.gt.f32.partialorder %v5030_v60, 0.0  ;;  %v12380_v62 = vpop.permute.xlu2 %5546 }
 0x5b5   : > { %v5048_v44 = vmin.f32 %v5032_v46, 0.0  ;;  %v4963_v48 = vpop.permute.xlu1 %4962  ;;  %v4993_v36 = vmax.f32 %v11735_v35, %v4955_v34  ;;  %vm5040_vm9 = vcmp.gt.f32.partialorder %v5032_v46, 0.0 }
 0x5b6   : > { %v8765_v20 = vpop.eup %8764  ;;  %v5056_v7 = vmul.f32 1.442695, %v5046_v63  ;;  %v4997_v63 = vmax.f32 %v12111_v25, %v4963_v48 }
 0x5b7   : > { %v8767_v2 = vpop.eup %8766  ;;  %v7927_v5 = vadd.f32 -1.0, %v8765_v20  ;;  %v5060_v40 = vmul.f32 1.442695, %v5048_v44  ;;  %v5015_v43 = vsel %vm525_vm2, %v4993_v36, -inf }
 0x5b8   : > { %v7929_v9 = vadd.f32 -1.0, %v8767_v2  ;;  %8768 = vpow2.f32 %v5056_v7  ;;  %v5017_v58 = vmax.f32 %v5015_v43, %v5016_v61  ;;  %v5605_v2 = vsel %vm525_vm2, %v5587_v39, -inf  ;;  %v13815_v39 = vld [vmem:[#allocation18_spill] sm:$0xff] }
 0x5b9   : > { %v5077_v29 = vsel %vm5037_vm14, %v5029_v26, %v7927_v5  ;;  %8770 = vpow2.f32 %v5060_v40  ;;  %v5019_v26 = vsel %vm525_vm2, %v4998_v1, -inf  ;;  %v5021_v61 = vsel %vm525_vm2, %v4997_v63, -inf }
 0x5ba   : > { %v5079_v37 = vsel %vm5039_vm3, %v5031_v28, %v7929_v9  ;;  %5086 = vst.msk [vmem:[#allocation3 + $0x48] sm:$0xff] %vm525_vm2, %v5077_v29  ;;  %v5033_v35 = vadd.f32 %v12315_v53, %v5017_v58  ;;  %v5590_v63 = vmax.f32 %v13815_v39, %v12380_v62 }
 0x5bb   : > { %5088 = vst.msk [vmem:[#allocation3 + $0x58] sm:$0xff] %vm525_vm2, %v5079_v37 }
 0x5bc   : > { %v5049_v12 = vmin.f32 %v5033_v35, 0.0  ;;  %v4961_v15 = vpop.permute.xlu0 %4960  ;;  %vm5041_vm13 = vcmp.gt.f32.partialorder %v5033_v35, 0.0  ;;  %v6147_v37 = vpop.permute.xlu2 %6146 }
 0x5bd   : > { %v5539_v49 = vpop.permute.xlu1 %5538  ;;  %v4996_v59 = vmax.f32 %v12125_v14, %v4961_v15 }
 0x5be   : > { %v8769_v32 = vpop.eup %8768  ;;  %v5062_v51 = vmul.f32 1.442695, %v5049_v12  ;;  %v5586_v58 = vmax.f32 %v12129_v50, %v5539_v49  ;;  %v5858_v12 = vpop.f32.mrf.mxu1  ;;  %v12413_v50 = vld [vmem:[%s13604_s5] ss:$0 sm:$0xff] }
 0x5bf   : > { %v8771_v33 = vpop.eup %8770  ;;  %v7928_v28 = vadd.f32 -1.0, %v8769_v32  ;;  %v5018_v21 = vsel %vm525_vm2, %v4996_v59, -inf  ;;  %v5955_v49 = vpop.f32.mrf.mxu2 }
 0x5c0   : > { %v7930_v24 = vadd.f32 -1.0, %v8771_v33  ;;  %8772 = vpow2.f32 %v5062_v51  ;;  %v5020_v0 = vmax.f32 %v5018_v21, %v5019_v26  ;;  %v5602_v33 = vsel %vm525_vm2, %v5586_v58, -inf }
 0x5c1   : > { %v5078_v31 = vsel %vm5038_vm1, %v5030_v60, %v7928_v28 }
 0x5c2   : > { %v5080_v55 = vsel %vm5040_vm9, %v5032_v46, %v7930_v24  ;;  %5087 = vst.msk [vmem:[#allocation3 + $0x50] sm:$0xff] %vm525_vm2, %v5078_v31  ;;  %v5034_v14 = vadd.f32 %v12315_v53, %v5020_v0 }
 0x5c3   : > { %5089 = vst.msk [vmem:[#allocation3 + $0x60] sm:$0xff] %vm525_vm2, %v5080_v55  ;;  %v5956_v55 = vadd.f32 %v5955_v49, %v5858_v12 }
 0x5c4   : > { %v5050_v34 = vmin.f32 %v5034_v14, 0.0  ;;  %v4967_v44 = vpop.permute.xlu0 %4966  ;;  %vm5042_vm4 = vcmp.gt.f32.partialorder %v5034_v14, 0.0 }
 0x5c5   : > { %v5545_v36 = vpop.permute.xlu1 %5544  ;;  %v4999_v20 = vmax.f32 %v12148_v3, %v4967_v44 }
 0x5c6   : > { %v8773_v60 = vpop.eup %8772  ;;  %v5064_v7 = vmul.f32 1.442695, %v5050_v34  ;;  %v5589_v46 = vmax.f32 %v12151_v6, %v5545_v36  ;;  %v13814_v6 = vld [vmem:[#allocation6_spill] sm:$0xff] }
 0x5c7   : > { %v7931_v5 = vadd.f32 -1.0, %v8773_v60  ;;  %v5022_v25 = vsel %vm525_vm2, %v4999_v20, -inf  ;;  %v6188_v43 = vmax.f32 %v13814_v6, %v12370_v17 }
 0x5c8   : > { %8774 = vpow2.f32 %v5064_v7  ;;  %v5606_v3 = vsel %vm525_vm2, %v5589_v46, -inf  ;;  %v5023_v8 = vmax.f32 %v5021_v61, %v5022_v25 }
 0x5c9   : > { %v5081_v48 = vsel %vm5041_vm13, %v5033_v35, %v7931_v5  ;;  %v5607_v40 = vmax.f32 %v5605_v2, %v5606_v3  ;;  %v6204_v17 = vsel %vm525_vm2, %v6188_v43, -inf  ;;  %v5553_v5 = vpop.permute.xlu2 %5552 }
 0x5ca   : > { %5090 = vst.msk [vmem:[#allocation3 + $0x68] sm:$0xff] %vm525_vm2, %v5081_v48  ;;  %v5035_v9 = vadd.f32 %v12315_v53, %v5023_v8  ;;  %v5501_v48 = vpop.f32.mrf.mxu0  ;;  %v5593_v49 = vmax.f32 %v12145_v22, %v5553_v5 }
 0x5cb   : > { %v12405_v29 = vadd.f32 %v12395_v47, %v5607_v40  ;;  %v5860_v40 = vpop.f32.mrf.mxu1 }
 0x5cc   : > { %v5051_v54 = vmin.f32 %v5035_v9, 0.0  ;;  %v5543_v1 = vpop.permute.xlu0 %5542  ;;  %vm5043_vm5 = vcmp.gt.f32.partialorder %v5035_v9, 0.0  ;;  %v5612_v39 = vsel %vm525_vm2, %v5593_v49, -inf }
 0x5cd   : > { %v5647_v15 = vmin.f32 %v12405_v29, 0.0  ;;  %v6145_v35 = vpop.permute.xlu1 %6144  ;;  %v5588_v59 = vmax.f32 %v12163_v45, %v5543_v1  ;;  %v5957_v1 = vpop.f32.mrf.mxu2  ;;  %vm5639_vm6 = vcmp.gt.f32.partialorder %v12405_v29, 0.0 }
 0x5ce   : > { %v8775_v32 = vpop.eup %8774  ;;  %v5066_v51 = vmul.f32 1.442695, %v5051_v54  ;;  %v6190_v53 = vmax.f32 %v12165_v16, %v6145_v35  ;;  %v6191_v16 = vmax.f32 %v12122_v13, %v6147_v37  ;;  %v5608_v13 = vsel %vm525_vm2, %v5590_v63, -inf }
 0x5cf   : > { %v7932_v26 = vadd.f32 -1.0, %v8775_v32  ;;  %v5656_v28 = vmul.f32 1.442695, %v5647_v15  ;;  %v5603_v21 = vsel %vm525_vm2, %v5588_v59, -inf  ;;  %v5958_v15 = vadd.f32 %v5957_v1, %v5860_v40 }
 0x5d0   : > { %8776 = vpow2.f32 %v5066_v51  ;;  %v6205_v45 = vsel %vm525_vm2, %v6190_v53, -inf  ;;  %v5604_v24 = vmax.f32 %v5602_v33, %v5603_v21  ;;  %v6208_v61 = vsel %vm525_vm2, %v6191_v16, -inf  ;;  %v13816_v51 = vld [vmem:[#allocation32_spill] sm:$0xff] }
 0x5d1   : > { %v5082_v0 = vsel %vm5042_vm4, %v5034_v14, %v7932_v26  ;;  %8778 = vpow2.f32 %v5656_v28  ;;  %v6206_v31 = vmax.f32 %v6204_v17, %v6205_v45  ;;  %v12445_v53 = vadd.f32 %v5501_v48, %v13816_v51 }
 0x5d2   : > { %5091 = vst.msk [vmem:[#allocation3 + $0x70] sm:$0xff] %vm525_vm2, %v5082_v0  ;;  %v5630_v34 = vadd.f32 %v12395_v47, %v5604_v24 }
 0x5d3   : > { %v12425_v44 = vadd.f32 %v12413_v50, %v6206_v31  ;;  %v6093_v36 = vpop.f32.mrf.mxu3 }
 0x5d4   : > { %v5646_v20 = vmin.f32 %v5630_v34, 0.0  ;;  %v12427_v60 = vadd.f32 %v6093_v36, %v5956_v55  ;;  %v6143_v14 = vpop.permute.xlu0 %6142  ;;  %vm5638_vm7 = vcmp.gt.f32.partialorder %v5630_v34, 0.0 }
 0x5d5   : > { %v6248_v7 = vmin.f32 %v12425_v44, 0.0  ;;  %v5551_v46 = vpop.permute.xlu1 %5550  ;;  %v6189_v2 = vmax.f32 %v12175_v10, %v6143_v14  ;;  %vm6240_vm8 = vcmp.gt.f32.partialorder %v12425_v44, 0.0 }
 0x5d6   : > { %v8777_v62 = vpop.eup %8776  ;;  %v5654_v25 = vmul.f32 1.442695, %v5646_v20  ;;  %v5592_v3 = vmax.f32 %v12178_v38, %v5551_v46  ;;  %6160 = vrot.lane.b32.xlu0 %v12427_v60, %s8826_s15  ;;  %v13817_v46 = vld [vmem:[#allocation33_spill] sm:$0xff] }
 0x5d7   : > { %v8779_v8 = vpop.eup %8778  ;;  %v7933_v6 = vadd.f32 -1.0, %v8777_v62  ;;  %v6256_v43 = vmul.f32 1.442695, %v6248_v7  ;;  %v6207_v10 = vsel %vm525_vm2, %v6189_v2, -inf }
 0x5d8   : > { %v8063_v58 = vadd.f32 -1.0, %v8779_v8  ;;  %8780 = vpow2.f32 %v5654_v25  ;;  %v5609_v37 = vsel %vm525_vm2, %v5592_v3, -inf  ;;  %v6209_v54 = vmax.f32 %v6207_v10, %v6208_v61 }
 0x5d9   : > { %v5083_v38 = vsel %vm5043_vm5, %v5035_v9, %v7933_v6  ;;  %8782 = vpow2.f32 %v6256_v43  ;;  %v5610_v12 = vmax.f32 %v5608_v13, %v5609_v37 }
 0x5da   : > { %v5679_v35 = vsel %vm5639_vm6, %v12405_v29, %v8063_v58  ;;  %5092 = vst.msk [vmem:[#allocation3 + $0x78] sm:$0xff] %vm525_vm2, %v5083_v38  ;;  %v6233_v59 = vadd.f32 %v12413_v50, %v6209_v54 }
 0x5db   : > { %5688 = vst.msk [vmem:[#allocation3 + $0x88] sm:$0xff] %vm525_vm2, %v5679_v35  ;;  %v5632_v32 = vadd.f32 %v12395_v47, %v5610_v12  ;;  %v6095_v17 = vpop.f32.mrf.mxu3 }
 0x5dc   : > { %v6249_v9 = vmin.f32 %v6233_v59, 0.0  ;;  %v12448_v33 = vadd.f32 %v6095_v17, %v5958_v15  ;;  %v5549_v26 = vpop.permute.xlu0 %5548  ;;  %v6153_v24 = vpop.permute.xlu2 %6152  ;;  %vm6241_vm11 = vcmp.gt.f32.partialorder %v6233_v59, 0.0 }
 0x5dd   : > { %v5648_v28 = vmin.f32 %v5632_v32, 0.0  ;;  %v5591_v29 = vmax.f32 %v12188_v41, %v5549_v26  ;;  %v5503_v41 = vpop.f32.mrf.mxu0  ;;  %v6194_v14 = vmax.f32 %v12241_v18, %v6153_v24  ;;  %vm5640_vm12 = vcmp.gt.f32.partialorder %v5632_v32, 0.0  ;;  %v6151_v26 = vpop.permute.xlu1 %6150 }
 0x5de   : > { %v8781_v21 = vpop.eup %8780  ;;  %v6258_v45 = vmul.f32 1.442695, %v6249_v9  ;;  %6162 = vrot.lane.b32.xlu1 %v12448_v33, %s8826_s15  ;;  %5566 = vrot.lane.b32.xlu0 %v12445_v53, %s8826_s15  ;;  %v12464_v2 = vadd.f32 %v5503_v41, %v13817_v46  ;;  %v6193_v24 = vmax.f32 %v12192_v23, %v6151_v26  ;;  %v8214_v26 = vld [vmem:[%s13602_s3 + $0x500] sm:$0xff] }
 0x5df   : > { %v8783_v0 = vpop.eup %8782  ;;  %v8062_v31 = vadd.f32 -1.0, %v8781_v21  ;;  %v5658_v55 = vmul.f32 1.442695, %v5648_v28  ;;  %v5611_v22 = vsel %vm525_vm2, %v5591_v29, -inf  ;;  %v6211_v25 = vsel %vm525_vm2, %v6194_v14, -inf }
 0x5e0   : > { %v8198_v63 = vadd.f32 -1.0, %v8783_v0  ;;  %8784 = vpow2.f32 %v6258_v45  ;;  %v5613_v36 = vmax.f32 %v5611_v22, %v5612_v39  ;;  %v6213_v41 = vsel %vm525_vm2, %v6193_v24, -inf  ;;  %v8216_v24 = vld [vmem:[%s13602_s3 + $0x600] sm:$0xff] }
 0x5e1   : > { %v5678_v16 = vsel %vm5638_vm7, %v5630_v34, %v8062_v31  ;;  %8786 = vpow2.f32 %v5658_v55 }
 0x5e2   : > { %v6280_v20 = vsel %vm6240_vm8, %v12425_v44, %v8198_v63  ;;  %5687 = vst.msk [vmem:[#allocation3 + $0x80] sm:$0xff] %vm525_vm2, %v5678_v16  ;;  %v5633_v7 = vadd.f32 %v12395_v47, %v5613_v36 }
 0x5e3   : > { %6289 = vst.msk [vmem:[#allocation3 + $0xc0] sm:$0xff] %vm525_vm2, %v6280_v20 }
 0x5e4   : > { %v6149_v62 = vpop.permute.xlu0 %6148  ;;  %v5649_v13 = vmin.f32 %v5633_v7, 0.0  ;;  %v5559_v48 = vpop.permute.xlu2 %5558  ;;  %vm5641_vm14 = vcmp.gt.f32.partialorder %v5633_v7, 0.0 }
 0x5e5   : > { %v6192_v61 = vmax.f32 %v12208_v4, %v6149_v62  ;;  %v5596_v10 = vmax.f32 %v12261_v19, %v5559_v48  ;;  %v5960_v19 = vpop.f32.mrf.mxu2  ;;  %v5557_v23 = vpop.permute.xlu1 %5556 }
 0x5e6   : > { %v8785_v34 = vpop.eup %8784  ;;  %5568 = vrot.lane.b32.xlu1 %v12464_v2, %s8826_s15  ;;  %v5660_v3 = vmul.f32 1.442695, %v5649_v13  ;;  %v13818_v13 = vld [vmem:[#allocation13_spill] sm:$0xff] }
 0x5e7   : > { %v8787_v44 = vpop.eup %8786  ;;  %v8199_v5 = vadd.f32 -1.0, %v8785_v34  ;;  %v6210_v18 = vsel %vm525_vm2, %v6192_v61, -inf  ;;  %v5615_v12 = vsel %vm525_vm2, %v5596_v10, -inf  ;;  %v5595_v61 = vmax.f32 %v13818_v13, %v5557_v23  ;;  %v8219_v23 = vld [vmem:[%s13602_s3 + $0x18] sm:$0xff] }
 0x5e8   : > { %v8064_v8 = vadd.f32 -1.0, %v8787_v44  ;;  %v6212_v40 = vmax.f32 %v6210_v18, %v6211_v25  ;;  %8788 = vpow2.f32 %v5660_v3 }
 0x5e9   : > { %v6281_v6 = vsel %vm6241_vm11, %v6233_v59, %v8199_v5 }
 0x5ea   : > { %v5680_v43 = vsel %vm5640_vm12, %v5632_v32, %v8064_v8  ;;  %6290 = vst.msk [vmem:[#allocation3 + $0xc8] sm:$0xff] %vm525_vm2, %v6281_v6  ;;  %v6234_v4 = vadd.f32 %v12413_v50, %v6212_v40  ;;  %v5863_v32 = vpop.f32.mrf.mxu1  ;;  %v5617_v8 = vsel %vm525_vm2, %v5595_v61, -inf  ;;  %vm7188_vm12 = vcmask 1041408  }
 0x5eb   : > { %5689 = vst.msk [vmem:[#allocation3 + $0x90] sm:$0xff] %vm525_vm2, %v5680_v43  ;;  %v5961_v29 = vadd.f32 %v5960_v19, %v5863_v32  ;;  %v8206_v19 = vld [vmem:[%s13602_s3 + $0x100] sm:$0xff] }
 0x5ec   : > { %v6250_v58 = vmin.f32 %v6234_v4, 0.0  ;;  %v5555_v37 = vpop.permute.xlu0 %5554  ;;  %vm6242_vm3 = vcmp.gt.f32.partialorder %v6234_v4, 0.0 }
 0x5ed   : > { %v5594_v54 = vmax.f32 %v12227_v30, %v5555_v37  ;;  %v5962_v63 = vpop.f32.mrf.mxu2 }
 0x5ee   : > { %v6260_v1 = vmul.f32 1.442695, %v6250_v58  ;;  %v8789_v38 = vpop.eup %8788 }
 0x5ef   : > { %v5614_v15 = vsel %vm525_vm2, %v5594_v54, -inf  ;;  %v8065_v35 = vadd.f32 -1.0, %v8789_v38 }
 0x5f0   : > { %8790 = vpow2.f32 %v6260_v1  ;;  %v5616_v59 = vmax.f32 %v5614_v15, %v5615_v12 }
 0x5f1   : > { %v5681_v17 = vsel %vm5641_vm14, %v5633_v7, %v8065_v35  ;;  %vm7191_vm14 = vcmask 1043456  }
 0x5f2   : > { %v5634_v51 = vadd.f32 %v12395_v47, %v5616_v59  ;;  %5690 = vst.msk [vmem:[#allocation3 + $0x98] sm:$0xff] %vm525_vm2, %v5681_v17  ;;  %v5865_v31 = vpop.f32.mrf.mxu1 }
 0x5f3   : > { %v5963_v14 = vadd.f32 %v5962_v63, %v5865_v31  ;;  %v8209_v31 = vld [vmem:[%s13602_s3 + $0x208] sm:$0xff] }
 0x5f4   : > { %v5650_v49 = vmin.f32 %v5634_v51, 0.0  ;;  %vm5642_vm1 = vcmp.gt.f32.partialorder %v5634_v51, 0.0  ;;  %v6298_v63 = vld [vmem:[#allocation3 + $0x8] sm:$0xff] }
 0x5f5   : > { %v5965_v25 = vpop.f32.mrf.mxu2 }
 0x5f6   : > { %v8791_v9 = vpop.eup %8790  ;;  %v5662_v30 = vmul.f32 1.442695, %v5650_v49  ;;  %v8208_v49 = vld [vmem:[%s13602_s3 + $0x200] sm:$0xff] }
 0x5f7   : > { %v8200_v28 = vadd.f32 -1.0, %v8791_v9  ;;  %v8210_v9 = vld [vmem:[%s13602_s3 + $0x300] sm:$0xff] }
 0x5f8   : > { %8792 = vpow2.f32 %v5662_v30  ;;  %v8212_v30 = vld [vmem:[%s13602_s3 + $0x400] sm:$0xff] }
 0x5f9   : > { %v6282_v21 = vsel %vm6242_vm3, %v6234_v4, %v8200_v28  ;;  %v6297_v28 = vld [vmem:[#allocation3] sm:$0xff]  ;;  %vm7193_vm3 = vcmask 1044480  }
 0x5fa   : > { %6291 = vst.msk [vmem:[#allocation3 + $0xd0] sm:$0xff] %vm525_vm2, %v6282_v21  ;;  %v6098_v45 = vpop.f32.mrf.mxu3  ;;  %v5868_v34 = vpop.f32.mrf.mxu1  ;;  %v8207_v21 = vld [vmem:[%s13602_s3 + $0x108] sm:$0xff] }
 0x5fb   : > { %v12482_v0 = vadd.f32 %v6098_v45, %v5961_v29  ;;  %v5966_v40 = vadd.f32 %v5965_v25, %v5868_v34  ;;  %v6300_v29 = vld [vmem:[%s13602_s3 + $0x8] sm:$0xff]  ;;  %v8218_v45 = vld [vmem:[%s13602_s3 + $0x10] sm:$0xff]  ;;  %v6349_v34 = vld [vmem:[#allocation3 + $0x18] sm:$0xff] }
 0x5fc   : > { %v6155_v55 = vpop.permute.xlu0 %6154  ;;  %v8226_v25 = vld [vmem:[%s13602_s3 + $0x410] sm:$0xff] }
 0x5fd   : > { %v6195_v22 = vmax.f32 %v12258_v52, %v6155_v55  ;;  %6164 = vrot.lane.b32.xlu2 %v12482_v0, %s8826_s15  ;;  %v5967_v38 = vpop.f32.mrf.mxu2  ;;  %v8220_v55 = vld [vmem:[%s13602_s3 + $0x110] sm:$0xff] }
 0x5fe   : > { %v8793_v39 = vpop.eup %8792 }
 0x5ff   : > { %v8066_v16 = vadd.f32 -1.0, %v8793_v39  ;;  %v6214_v36 = vsel %vm525_vm2, %v6195_v22, -inf  ;;  %v8222_v22 = vld [vmem:[%s13602_s3 + $0x210] sm:$0xff] }
 0x600   : > { %v6215_v20 = vmax.f32 %v6213_v41, %v6214_v36  ;;  %v6348_v39 = vld [vmem:[#allocation3 + $0x10] sm:$0xff]  ;;  %v8211_v41 = vld [vmem:[%s13602_s3 + $0x308] sm:$0xff] }
 0x601   : > { %v5682_v7 = vsel %vm5642_vm1, %v5634_v51, %v8066_v16  ;;  %v6299_v51 = vld [vmem:[%s13602_s3] sm:$0xff]  ;;  %v8213_v16 = vld [vmem:[%s13602_s3 + $0x408] sm:$0xff]  ;;  %v6353_v13 = vmul.f32 %v8218_v45, %v6348_v39  ;;  %v6360_v61 = vmul.f32 %v8220_v55, %v6348_v39  ;;  %vm7195_vm1 = vcmask 1045504  }
 0x602   : > { %5691 = vst.msk [vmem:[#allocation3 + $0xa0] sm:$0xff] %vm525_vm2, %v5682_v7  ;;  %v6235_v46 = vadd.f32 %v12413_v50, %v6215_v20  ;;  %v6100_v52 = vpop.f32.mrf.mxu3  ;;  %v5870_v54 = vpop.f32.mrf.mxu1  ;;  %v6301_v36 = vmul.f32 %v6299_v51, %v6297_v28  ;;  %v6308_v20 = vmul.f32 %v8206_v19, %v6297_v28  ;;  %v8221_v7 = vld [vmem:[%s13602_s3 + $0x118] sm:$0xff]  ;;  %v8233_v19 = vld [vmem:[%s13602_s3 + $0x28] sm:$0xff] }
 0x603   : > { %v12491_v62 = vadd.f32 %v6100_v52, %v5963_v14  ;;  %v5968_v15 = vadd.f32 %v5967_v38, %v5870_v54  ;;  %v6315_v14 = vmul.f32 %v8208_v49, %v6297_v28  ;;  %v8224_v52 = vld [vmem:[%s13602_s3 + $0x310] sm:$0xff]  ;;  %v6330_v54 = vmul.f32 %v8213_v16, %v6298_v63  ;;  %v8227_v38 = vld [vmem:[%s13602_s3 + $0x418] sm:$0xff]  ;;  %v8235_v49 = vld [vmem:[%s13602_s3 + $0x128] sm:$0xff] }
 0x604   : > { %v6251_v44 = vmin.f32 %v6235_v46, 0.0  ;;  %v5561_v5 = vpop.permute.xlu0 %5560  ;;  %vm6243_vm9 = vcmp.gt.f32.partialorder %v6235_v46, 0.0  ;;  %v8231_v51 = vld [vmem:[%s13602_s3 + $0x618] sm:$0xff]  ;;  %v6401_v45 = vld [vmem:[#allocation3 + $0x28] sm:$0xff] }
 0x605   : > { %6166 = vrot.lane.b32.xlu0 %v12491_v62, %s8826_s15  ;;  %v5597_v18 = vmax.f32 %v12283_v42, %v5561_v5  ;;  %v6336_v5 = vmul.f32 %v8214_v26, %v6297_v28 }
 0x606   : > { %v6262_v3 = vmul.f32 1.442695, %v6251_v44  ;;  %v6329_v44 = vmul.f32 %v8212_v30, %v6297_v28 }
 0x607   : > { %v5618_v48 = vsel %vm525_vm2, %v5597_v18, -inf  ;;  %v6302_v18 = vmul.f32 %v6300_v29, %v6298_v63  ;;  %v6362_v29 = vadd.f32 %v6360_v61, %v6308_v20 }
 0x608   : > { %8794 = vpow2.f32 %v6262_v3  ;;  %v5619_v6 = vmax.f32 %v5617_v8, %v5618_v48  ;;  %v8228_v3 = vld [vmem:[%s13602_s3 + $0x510] sm:$0xff]  ;;  %v6309_v8 = vmul.f32 %v8207_v21, %v6298_v63  ;;  %v6367_v48 = vmul.f32 %v8222_v22, %v6348_v39 }
 0x60a   : > { %v6103_v43 = vpop.f32.mrf.mxu3  ;;  %v5635_v4 = vadd.f32 %v12395_v47, %v5619_v6  ;;  %v8217_v6 = vld [vmem:[%s13602_s3 + $0x608] sm:$0xff]  ;;  %v6369_v55 = vadd.f32 %v6367_v48, %v6315_v14  ;;  %v6413_v14 = vmul.f32 %v8235_v49, %v6401_v45 }
 0x60b   : > { %v12500_v10 = vadd.f32 %v6103_v43, %v5966_v40  ;;  %v8215_v40 = vld [vmem:[%s13602_s3 + $0x508] sm:$0xff]  ;;  %v6343_v43 = vmul.f32 %v8216_v24, %v6297_v28  ;;  %v6344_v26 = vmul.f32 %v8217_v6, %v6298_v63  ;;  %v8234_v24 = vld [vmem:[%s13602_s3 + $0x120] sm:$0xff] }
 0x60c   : > { %v5651_v58 = vmin.f32 %v5635_v4, 0.0  ;;  %vm5643_vm13 = vcmp.gt.f32.partialorder %v5635_v4, 0.0  ;;  %v6337_v30 = vmul.f32 %v8215_v40, %v6298_v63  ;;  %v8242_v6 = vld [vmem:[%s13602_s3 + $0x520] sm:$0xff] }
 0x60d   : > { %6168 = vrot.lane.b32.xlu1 %v12500_v10, %s8826_s15 }
 0x60e   : > { %v8795_v37 = vpop.eup %8794  ;;  %v5664_v42 = vmul.f32 1.442695, %v5651_v58  ;;  %v8223_v58 = vld [vmem:[%s13602_s3 + $0x218] sm:$0xff] }
 0x60f   : > { %v8201_v1 = vadd.f32 -1.0, %v8795_v37  ;;  %v6323_v37 = vmul.f32 %v8211_v41, %v6298_v63  ;;  %v6368_v21 = vmul.f32 %v8223_v58, %v6349_v34  ;;  %v6382_v41 = vmul.f32 %v8227_v38, %v6349_v34 }
 0x610   : > { %8796 = vpow2.f32 %v5664_v42  ;;  %v6374_v42 = vmul.f32 %v8224_v52, %v6348_v39  ;;  %v6396_v52 = vmul.f32 %v8231_v51, %v6349_v34 }
 0x611   : > { %v6283_v12 = vsel %vm6243_vm9, %v6235_v46, %v8201_v1  ;;  %v6322_v46 = vmul.f32 %v8210_v9, %v6297_v28  ;;  %v8225_v1 = vld [vmem:[%s13602_s3 + $0x318] sm:$0xff]  ;;  %v8232_v9 = vld [vmem:[%s13602_s3 + $0x20] sm:$0xff]  ;;  %v6355_v28 = vadd.f32 %v6353_v13, %v6301_v36 }
 0x612   : > { %6292 = vst.msk [vmem:[#allocation3 + $0xd8] sm:$0xff] %vm525_vm2, %v6283_v12  ;;  %v6105_v35 = vpop.f32.mrf.mxu3  ;;  %v6354_v12 = vmul.f32 %v8219_v23, %v6349_v34  ;;  %v6375_v22 = vmul.f32 %v8225_v1, %v6349_v34 }
 0x613   : > { %v12505_v59 = vadd.f32 %v6105_v35, %v5968_v15  ;;  %v6361_v15 = vmul.f32 %v8221_v7, %v6349_v34  ;;  %v6381_v35 = vmul.f32 %v8226_v25, %v6348_v39  ;;  %v6376_v16 = vadd.f32 %v6374_v42, %v6322_v46  ;;  %v8238_v25 = vld [vmem:[%s13602_s3 + $0x320] sm:$0xff] }
 0x614   : > { %v6356_v36 = vadd.f32 %v6354_v12, %v6302_v18  ;;  %v8240_v46 = vld [vmem:[%s13602_s3 + $0x420] sm:$0xff]  ;;  %v6377_v18 = vadd.f32 %v6375_v22, %v6323_v37  ;;  %v6398_v42 = vadd.f32 %v6396_v52, %v6344_v26  ;;  %v8241_v12 = vld [vmem:[%s13602_s3 + $0x428] sm:$0xff]  ;;  %v12630_v37 = vld [vmem:[#allocation3 + $0x38] sm:$0xff] }
 0x615   : > { %6170 = vrot.lane.b32.xlu2 %v12505_v59, %s8826_s15  ;;  %v6363_v20 = vadd.f32 %v6361_v15, %v6309_v8  ;;  %v6383_v13 = vadd.f32 %v6381_v35, %v6329_v44  ;;  %v6384_v44 = vadd.f32 %v6382_v41, %v6330_v54  ;;  %v8239_v8 = vld [vmem:[%s13602_s3 + $0x328] sm:$0xff]  ;;  %v6452_v26 = vld [vmem:[#allocation3 + $0x30] sm:$0xff]  ;;  %v6434_v22 = vmul.f32 %v8241_v12, %v6401_v45 }
 0x616   : > { %v8797_v47 = vpop.eup %8796 }
 0x617   : > { %v8067_v32 = vadd.f32 -1.0, %v8797_v47  ;;  %v8229_v47 = vld [vmem:[%s13602_s3 + $0x518] sm:$0xff]  ;;  %v6415_v15 = vadd.f32 %v6413_v14, %v6363_v20  ;;  %v6436_v20 = vadd.f32 %v6434_v22, %v6384_v44 }
 0x618   : > { %v6389_v23 = vmul.f32 %v8229_v47, %v6349_v34  ;;  %v8255_v14 = vld [vmem:[%s13602_s3 + $0x438] sm:$0xff] }
 0x619   : > { %v5683_v17 = vsel %vm5643_vm13, %v5635_v4, %v8067_v32  ;;  %v6316_v4 = vmul.f32 %v8209_v31, %v6298_v63  ;;  %v6388_v32 = vmul.f32 %v8228_v3, %v6348_v39  ;;  %v6400_v31 = vld [vmem:[#allocation3 + $0x20] sm:$0xff]  ;;  %v6406_v3 = vmul.f32 %v8233_v19, %v6401_v45 }
 0x61a   : > { %5692 = vst.msk [vmem:[#allocation3 + $0xa8] sm:$0xff] %vm525_vm2, %v5683_v17  ;;  %v8230_v17 = vld [vmem:[%s13602_s3 + $0x610] sm:$0xff]  ;;  %v8236_v63 = vld [vmem:[%s13602_s3 + $0x220] sm:$0xff]  ;;  %v6405_v48 = vmul.f32 %v8232_v9, %v6400_v31  ;;  %v6412_v40 = vmul.f32 %v8234_v24, %v6400_v31  ;;  %v6391_v58 = vadd.f32 %v6389_v23, %v6337_v30  ;;  %v6426_v38 = vmul.f32 %v8238_v25, %v6400_v31  ;;  %v8245_v9 = vld [vmem:[%s13602_s3 + $0x628] sm:$0xff] }
 0x61b   : > { %v6395_v7 = vmul.f32 %v8230_v17, %v6348_v39  ;;  %v6390_v61 = vadd.f32 %v6388_v32, %v6336_v5  ;;  %v8237_v39 = vld [vmem:[%s13602_s3 + $0x228] sm:$0xff]  ;;  %v6370_v34 = vadd.f32 %v6368_v21, %v6316_v4  ;;  %v6419_v5 = vmul.f32 %v8236_v63, %v6400_v31  ;;  %v8244_v4 = vld [vmem:[%s13602_s3 + $0x620] sm:$0xff]  ;;  %v8247_v32 = vld [vmem:[%s13602_s3 + $0x38] sm:$0xff] }
 0x61c   : > { %v6408_v54 = vadd.f32 %v6406_v3, %v6356_v36  ;;  %v6420_v35 = vmul.f32 %v8237_v39, %v6401_v45  ;;  %v6433_v47 = vmul.f32 %v8240_v46, %v6400_v31  ;;  %v6407_v17 = vadd.f32 %v6405_v48, %v6355_v28  ;;  %v8249_v30 = vld [vmem:[%s13602_s3 + $0x138] sm:$0xff]  ;;  %v8246_v28 = vld [vmem:[%s13602_s3 + $0x30] sm:$0xff] }
 0x61d   : > { %v6397_v1 = vadd.f32 %v6395_v7, %v6343_v43  ;;  %v8243_v43 = vld [vmem:[%s13602_s3 + $0x528] sm:$0xff]  ;;  %v6414_v51 = vadd.f32 %v6412_v40, %v6362_v29  ;;  %v6427_v19 = vmul.f32 %v8239_v8, %v6401_v45  ;;  %v6440_v49 = vmul.f32 %v8242_v6, %v6400_v31  ;;  %v8251_v29 = vld [vmem:[%s13602_s3 + $0x238] sm:$0xff]  ;;  %v8256_v8 = vld [vmem:[%s13602_s3 + $0x530] sm:$0xff] }
 0x61e   : > { %v6421_v21 = vadd.f32 %v6419_v5, %v6369_v55  ;;  %v6422_v24 = vadd.f32 %v6420_v35, %v6370_v34  ;;  %v6447_v41 = vmul.f32 %v8244_v4, %v6400_v31  ;;  %v6428_v23 = vadd.f32 %v6426_v38, %v6376_v16  ;;  %v8248_v55 = vld [vmem:[%s13602_s3 + $0x130] sm:$0xff]  ;;  %v8253_v31 = vld [vmem:[%s13602_s3 + $0x338] sm:$0xff]  ;;  %v6503_v4 = vld [vmem:[#allocation3 + $0x40] sm:$0xff] }
 0x61f   : > { %v6429_v7 = vadd.f32 %v6427_v19, %v6377_v18  ;;  %v6441_v52 = vmul.f32 %v8243_v43, %v6401_v45  ;;  %v6458_v63 = vmul.f32 %v8247_v32, %v12630_v37  ;;  %v6435_v36 = vadd.f32 %v6433_v47, %v6383_v13  ;;  %v8250_v16 = vld [vmem:[%s13602_s3 + $0x230] sm:$0xff]  ;;  %v6504_v19 = vld [vmem:[#allocation3 + $0x48] sm:$0xff] }
 0x620   : > { %v6448_v25 = vmul.f32 %v8245_v9, %v6401_v45  ;;  %v6465_v3 = vmul.f32 %v8249_v30, %v12630_v37  ;;  %v6442_v48 = vadd.f32 %v6440_v49, %v6390_v61  ;;  %v6457_v39 = vmul.f32 %v8246_v28, %v6452_v26  ;;  %v8252_v13 = vld [vmem:[%s13602_s3 + $0x330] sm:$0xff]  ;;  %v8257_v45 = vld [vmem:[%s13602_s3 + $0x538] sm:$0xff] }
 0x621   : > { %v6443_v40 = vadd.f32 %v6441_v52, %v6391_v58  ;;  %v6472_v46 = vmul.f32 %v8251_v29, %v12630_v37  ;;  %v6449_v34 = vadd.f32 %v6447_v41, %v6397_v1  ;;  %v6464_v44 = vmul.f32 %v8248_v55, %v6452_v26  ;;  %v8254_v61 = vld [vmem:[%s13602_s3 + $0x430] sm:$0xff] }
 0x622   : > { %v6450_v18 = vadd.f32 %v6448_v25, %v6398_v42  ;;  %v6479_v5 = vmul.f32 %v8253_v31, %v12630_v37  ;;  %v6459_v6 = vadd.f32 %v6457_v39, %v6407_v17  ;;  %v6460_v58 = vadd.f32 %v6458_v63, %v6408_v54  ;;  %v8258_v1 = vld [vmem:[%s13602_s3 + $0x630] sm:$0xff]  ;;  %v8259_v42 = vld [vmem:[%s13602_s3 + $0x638] sm:$0xff]  ;;  %v8260_v54 = vld [vmem:[%s13602_s3 + $0x40] sm:$0xff] }
 0x623   : > { %v6471_v38 = vmul.f32 %v8250_v16, %v6452_v26  ;;  %v6486_v12 = vmul.f32 %v8255_v14, %v12630_v37  ;;  %v6466_v35 = vadd.f32 %v6464_v44, %v6414_v51  ;;  %v6467_v47 = vadd.f32 %v6465_v3, %v6415_v15  ;;  %v8262_v17 = vld [vmem:[%s13602_s3 + $0x140] sm:$0xff]  ;;  %v8261_v15 = vld [vmem:[%s13602_s3 + $0x48] sm:$0xff] }
 0x624   : > { %v6478_v43 = vmul.f32 %v8252_v13, %v6452_v26  ;;  %v6493_v32 = vmul.f32 %v8257_v45, %v12630_v37  ;;  %v6474_v9 = vadd.f32 %v6472_v46, %v6422_v24  ;;  %v6485_v30 = vmul.f32 %v8254_v61, %v6452_v26  ;;  %v8263_v51 = vld [vmem:[%s13602_s3 + $0x148] sm:$0xff]  ;;  %v8266_v63 = vld [vmem:[%s13602_s3 + $0x340] sm:$0xff] }
 0x625   : > { %v6473_v49 = vadd.f32 %v6471_v38, %v6421_v21  ;;  %v6492_v22 = vmul.f32 %v8256_v8, %v6452_v26  ;;  %v6481_v28 = vadd.f32 %v6479_v5, %v6429_v7  ;;  %v6499_v29 = vmul.f32 %v8258_v1, %v6452_v26  ;;  %v8264_v21 = vld [vmem:[%s13602_s3 + $0x240] sm:$0xff]  ;;  %v8265_v24 = vld [vmem:[%s13602_s3 + $0x248] sm:$0xff]  ;;  %v6555_v5 = vld [vmem:[#allocation3 + $0x50] sm:$0xff] }
 0x626   : > { %v6480_v41 = vadd.f32 %v6478_v43, %v6428_v23  ;;  %v6500_v52 = vmul.f32 %v8259_v42, %v12630_v37  ;;  %v6487_v55 = vadd.f32 %v6485_v30, %v6435_v36  ;;  %v6488_v31 = vadd.f32 %v6486_v12, %v6436_v20  ;;  %v8267_v37 = vld [vmem:[%s13602_s3 + $0x348] sm:$0xff]  ;;  %v8268_v26 = vld [vmem:[%s13602_s3 + $0x440] sm:$0xff]  ;;  %v8274_v1 = vld [vmem:[%s13602_s3 + $0x50] sm:$0xff] }
 0x627   : > { %v6494_v25 = vadd.f32 %v6492_v22, %v6442_v48  ;;  %v6508_v23 = vmul.f32 %v8260_v54, %v6503_v4  ;;  %v8269_v7 = vld [vmem:[%s13602_s3 + $0x448] sm:$0xff]  ;;  %v6495_v3 = vadd.f32 %v6493_v32, %v6443_v40  ;;  %v6509_v16 = vmul.f32 %v8261_v15, %v6504_v19  ;;  %v8270_v36 = vld [vmem:[%s13602_s3 + $0x540] sm:$0xff]  ;;  %v8276_v54 = vld [vmem:[%s13602_s3 + $0x150] sm:$0xff] }
 0x628   : > { %v6515_v14 = vmul.f32 %v8262_v17, %v6503_v4  ;;  %v6516_v39 = vmul.f32 %v8263_v51, %v6504_v19  ;;  %v8271_v20 = vld [vmem:[%s13602_s3 + $0x548] sm:$0xff]  ;;  %v8272_v48 = vld [vmem:[%s13602_s3 + $0x640] sm:$0xff]  ;;  %v6501_v46 = vadd.f32 %v6499_v29, %v6449_v34  ;;  %v6522_v13 = vmul.f32 %v8264_v21, %v6503_v4  ;;  %v8278_v51 = vld [vmem:[%s13602_s3 + $0x250] sm:$0xff]  ;;  %v12741_v29 = vpop.permute.xlu1 %6156 }
 0x629   : > { %v6523_v45 = vmul.f32 %v8265_v24, %v6504_v19  ;;  %v6529_v44 = vmul.f32 %v8266_v63, %v6503_v4  ;;  %v8273_v40 = vld [vmem:[%s13602_s3 + $0x648] sm:$0xff]  ;;  %v6502_v61 = vadd.f32 %v6500_v52, %v6450_v18  ;;  %v6530_v8 = vmul.f32 %v8267_v37, %v6504_v19  ;;  %v8275_v18 = vld [vmem:[%s13602_s3 + $0x58] sm:$0xff] }
 0x62a   : > { %v6536_v38 = vmul.f32 %v8268_v26, %v6503_v4  ;;  %v6537_v12 = vmul.f32 %v8269_v7, %v6504_v19  ;;  %v6510_v42 = vadd.f32 %v6508_v23, %v6459_v6  ;;  %v6543_v43 = vmul.f32 %v8270_v36, %v6503_v4  ;;  %v6556_v6 = vld [vmem:[#allocation3 + $0x58] sm:$0xff] }
 0x62b   : > { %v6544_v32 = vmul.f32 %v8271_v20, %v6504_v19  ;;  %v6550_v34 = vmul.f32 %v8272_v48, %v6503_v4  ;;  %v6511_v17 = vadd.f32 %v6509_v16, %v6460_v58  ;;  %v6517_v30 = vadd.f32 %v6515_v14, %v6466_v35  ;;  %v8280_v58 = vld [vmem:[%s13602_s3 + $0x350] sm:$0xff]  ;;  %v8277_v23 = vld [vmem:[%s13602_s3 + $0x158] sm:$0xff] }
 0x62c   : > { %v6518_v22 = vadd.f32 %v6516_v39, %v6467_v47  ;;  %v6551_v15 = vmul.f32 %v8273_v40, %v6504_v19  ;;  %v6524_v4 = vadd.f32 %v6522_v13, %v6473_v49  ;;  %v6525_v52 = vadd.f32 %v6523_v45, %v6474_v9  ;;  %v8282_v35 = vld [vmem:[%s13602_s3 + $0x450] sm:$0xff]  ;;  %v8279_v49 = vld [vmem:[%s13602_s3 + $0x258] sm:$0xff]  ;;  %v12770_v45 = vld [vmem:[#allocation3 + $0x68] sm:$0xff] }
 0x62d   : > { %v6531_v21 = vadd.f32 %v6529_v44, %v6480_v41  ;;  %v6560_v24 = vmul.f32 %v8274_v1, %v6555_v5  ;;  %v6532_v47 = vadd.f32 %v6530_v8, %v6481_v28  ;;  %v6538_v19 = vadd.f32 %v6536_v38, %v6487_v55  ;;  %v8284_v9 = vld [vmem:[%s13602_s3 + $0x550] sm:$0xff]  ;;  %v8281_v28 = vld [vmem:[%s13602_s3 + $0x358] sm:$0xff]  ;;  %v12778_v1 = vld [vmem:[#allocation3 + $0x60] sm:$0xff] }
 0x62e   : > { %v6539_v63 = vadd.f32 %v6537_v12, %v6488_v31  ;;  %v6567_v37 = vmul.f32 %v8276_v54, %v6555_v5  ;;  %v6545_v41 = vadd.f32 %v6543_v43, %v6494_v25  ;;  %v6546_v26 = vadd.f32 %v6544_v32, %v6495_v3  ;;  %v8286_v55 = vld [vmem:[%s13602_s3 + $0x650] sm:$0xff]  ;;  %v8283_v36 = vld [vmem:[%s13602_s3 + $0x458] sm:$0xff]  ;;  %v8289_v12 = vld [vmem:[%s13602_s3 + $0x68] sm:$0xff] }
 0x62f   : > { %v6552_v7 = vadd.f32 %v6550_v34, %v6501_v46  ;;  %v6574_v16 = vmul.f32 %v8278_v51, %v6555_v5  ;;  %v6553_v31 = vadd.f32 %v6551_v15, %v6502_v61  ;;  %v6561_v14 = vmul.f32 %v8275_v18, %v6556_v6  ;;  %v8285_v46 = vld [vmem:[%s13602_s3 + $0x558] sm:$0xff]  ;;  %v8288_v54 = vld [vmem:[%s13602_s3 + $0x60] sm:$0xff]  ;;  %v8291_v51 = vld [vmem:[%s13602_s3 + $0x168] sm:$0xff] }
 0x630   : > { %v6581_v39 = vmul.f32 %v8280_v58, %v6555_v5  ;;  %v6588_v20 = vmul.f32 %v8282_v35, %v6555_v5  ;;  %v6562_v25 = vadd.f32 %v6560_v24, %v6510_v42  ;;  %v6568_v3 = vmul.f32 %v8277_v23, %v6556_v6  ;;  %v8287_v8 = vld [vmem:[%s13602_s3 + $0x658] sm:$0xff]  ;;  %v8293_v58 = vld [vmem:[%s13602_s3 + $0x268] sm:$0xff] }
 0x631   : > { %v6575_v48 = vmul.f32 %v8279_v49, %v6556_v6  ;;  %v6595_v13 = vmul.f32 %v8284_v9, %v6555_v5  ;;  %v6563_v44 = vadd.f32 %v6561_v14, %v6511_v17  ;;  %v6569_v40 = vadd.f32 %v6567_v37, %v6517_v30  ;;  %v8295_v35 = vld [vmem:[%s13602_s3 + $0x368] sm:$0xff]  ;;  %v12808_v49 = vpop.permute.xlu1 %5562 }
 0x632   : > { %v6582_v61 = vmul.f32 %v8281_v28, %v6556_v6  ;;  %v6602_v38 = vmul.f32 %v8286_v55, %v6555_v5  ;;  %v6570_v42 = vadd.f32 %v6568_v3, %v6518_v22  ;;  %v6576_v43 = vadd.f32 %v6574_v16, %v6524_v4  ;;  %v8290_v5 = vld [vmem:[%s13602_s3 + $0x160] sm:$0xff] }
 0x633   : > { %v6577_v32 = vadd.f32 %v6575_v48, %v6525_v52  ;;  %v6589_v34 = vmul.f32 %v8283_v36, %v6556_v6  ;;  %v6583_v17 = vadd.f32 %v6581_v39, %v6531_v21  ;;  %v6590_v15 = vadd.f32 %v6588_v20, %v6538_v19  ;;  %v8292_v22 = vld [vmem:[%s13602_s3 + $0x260] sm:$0xff]  ;;  %v6159_v36 = vpop.permute.xlu2 %6158 }
 0x634   : > { %v6584_v30 = vadd.f32 %v6582_v61, %v6532_v47  ;;  %v6596_v18 = vmul.f32 %v8285_v46, %v6556_v6  ;;  %v6597_v52 = vadd.f32 %v6595_v13, %v6545_v41  ;;  %v6603_v24 = vmul.f32 %v8287_v8, %v6556_v6  ;;  %v8294_v6 = vld [vmem:[%s13602_s3 + $0x360] sm:$0xff] }
 0x635   : > { %v6591_v4 = vadd.f32 %v6589_v34, %v6539_v63  ;;  %v6613_v21 = vmul.f32 %v8289_v12, %v12770_v45  ;;  %v6196_v47 = vmax.f32 %v12304_v11, %v12741_v29  ;;  %v6604_v23 = vadd.f32 %v6602_v38, %v6552_v7  ;;  %v8297_v63 = vld [vmem:[%s13602_s3 + $0x468] sm:$0xff]  ;;  %v8298_v39 = vld [vmem:[%s13602_s3 + $0x560] sm:$0xff]  ;;  %v12840_v38 = vld [vmem:[#allocation3 + $0x70] sm:$0xff] }
 0x636   : > { %v6598_v19 = vadd.f32 %v6596_v18, %v6546_v26  ;;  %v6612_v37 = vmul.f32 %v8288_v54, %v12778_v1  ;;  %v12810_v41 = vadd.f32 %v6603_v24, %v6553_v31  ;;  %v6619_v16 = vmul.f32 %v8290_v5, %v12778_v1  ;;  %v8296_v26 = vld [vmem:[%s13602_s3 + $0x460] sm:$0xff]  ;;  %v8299_v7 = vld [vmem:[%s13602_s3 + $0x568] sm:$0xff]  ;;  %v12846_v18 = vld [vmem:[#allocation3 + $0x78] sm:$0xff] }
 0x637   : > { %v6620_v11 = vmul.f32 %v8291_v51, %v12770_v45  ;;  %v6626_v29 = vmul.f32 %v8292_v22, %v12778_v1  ;;  %v6627_v31 = vmul.f32 %v8293_v58, %v12770_v45  ;;  %v6634_v14 = vmul.f32 %v8295_v35, %v12770_v45  ;;  %v8300_v8 = vld [vmem:[%s13602_s3 + $0x660] sm:$0xff]  ;;  %v8301_v54 = vld [vmem:[%s13602_s3 + $0x668] sm:$0xff] }
 0x638   : > { %v12822_v55 = vadd.f32 %v6612_v37, %v6562_v25  ;;  %v6615_v20 = vadd.f32 %v6613_v21, %v6563_v44  ;;  %v12829_v3 = vadd.f32 %v6619_v16, %v6569_v40  ;;  %v6633_v48 = vmul.f32 %v8294_v6, %v12778_v1  ;;  %v8302_v21 = vld [vmem:[%s13602_s3 + $0x70] sm:$0xff] }
 0x639   : > { %v6641_v46 = vmul.f32 %v8297_v63, %v12770_v45  ;;  %v6640_v13 = vmul.f32 %v8296_v26, %v12778_v1  ;;  %v6648_v61 = vmul.f32 %v8299_v7, %v12770_v45  ;;  %v6622_v40 = vadd.f32 %v6620_v11, %v6570_v42  ;;  %v8303_v42 = vld [vmem:[%s13602_s3 + $0x78] sm:$0xff]  ;;  %v8308_v37 = vld [vmem:[%s13602_s3 + $0x370] sm:$0xff] }
 0x63a   : > { %v6628_v12 = vadd.f32 %v6626_v29, %v6576_v43  ;;  %v6647_v34 = vmul.f32 %v8298_v39, %v12778_v1  ;;  %v6629_v5 = vadd.f32 %v6627_v31, %v6577_v32  ;;  %v6635_v51 = vadd.f32 %v6633_v48, %v6583_v17  ;;  %v8304_v17 = vld [vmem:[%s13602_s3 + $0x170] sm:$0xff]  ;;  %v8309_v29 = vld [vmem:[%s13602_s3 + $0x378] sm:$0xff] }
 0x63b   : > { %v12848_v22 = vadd.f32 %v6634_v14, %v6584_v30  ;;  %v12850_v24 = vadd.f32 %v6640_v13, %v6590_v15  ;;  %v12861_v58 = vadd.f32 %v6641_v46, %v6591_v4  ;;  %v6654_v32 = vmul.f32 %v8300_v8, %v12778_v1  ;;  %v8305_v30 = vld [vmem:[%s13602_s3 + $0x178] sm:$0xff]  ;;  %v8306_v1 = vld [vmem:[%s13602_s3 + $0x270] sm:$0xff] }
 0x63c   : > { %v12863_v35 = vadd.f32 %v6647_v34, %v6597_v52  ;;  %v6197_v15 = vmax.f32 %v12330_v56, %v6159_v36  ;;  %v6655_v4 = vmul.f32 %v8301_v54, %v12770_v45  ;;  %v8307_v52 = vld [vmem:[%s13602_s3 + $0x278] sm:$0xff]  ;;  %v6664_v45 = vmul.f32 %v8302_v21, %v12840_v38  ;;  %v5565_v36 = vpop.permute.xlu2 %5564  ;;  %v12925_v34 = vld [vmem:[%s13604_s5] ss:$0 sm:$0xff] }
 0x63d   : > { %v6665_v63 = vmul.f32 %v8303_v42, %v12846_v18  ;;  %v6671_v16 = vmul.f32 %v8304_v17, %v12840_v38  ;;  %v6672_v11 = vmul.f32 %v8305_v30, %v12846_v18  ;;  %v6679_v7 = vmul.f32 %v8307_v52, %v12846_v18  ;;  %v8311_v8 = vld [vmem:[%s13602_s3 + $0x478] sm:$0xff]  ;;  %v8312_v42 = vld [vmem:[%s13602_s3 + $0x570] sm:$0xff] }
 0x63e   : > { %v12914_v13 = vadd.f32 %v6664_v45, %v12822_v55  ;;  %v5599_v17 = vmax.f32 %v12350_v27, %v5565_v36 }
 0x63f   : > { %v12938_v21 = vadd.f32 %v6672_v11, %v6622_v40  ;;  %v8315_v40 = vld [vmem:[%s13602_s3 + $0x678] sm:$0xff] }
 0x640   : > { %v5623_v11 = vsel %vm525_vm2, %v5599_v17, -inf  ;;  %v8325_v17 = vld [vmem:[%s13602_s3 + $0x488] sm:$0xff] }
 0x648   : > { %v6161_v9 = vpop.permute.xlu0 %6160 }
 0x649   : > { %v6198_v28 = vmax.f32 %v12427_v60, %v6161_v9  ;;  %v6216_v60 = vsel %vm525_vm2, %v6196_v47, -inf  ;;  %v12875_v47 = vadd.f32 %v6648_v61, %v6598_v19  ;;  %v12888_v19 = vadd.f32 %v6654_v32, %v6604_v23  ;;  %v8313_v32 = vld [vmem:[%s13602_s3 + $0x578] sm:$0xff] }
 0x64a   : > { %v6678_v23 = vmul.f32 %v8306_v1, %v12840_v38  ;;  %v12916_v61 = vadd.f32 %v6665_v63, %v6615_v20  ;;  %v12936_v20 = vadd.f32 %v6671_v16, %v12829_v3  ;;  %v8314_v3 = vld [vmem:[%s13602_s3 + $0x670] sm:$0xff]  ;;  %v8318_v16 = vld [vmem:[%s13602_s3 + $0x180] sm:$0xff] }
 0x64b   : > { %v6217_v25 = vsel %vm525_vm2, %v6198_v28, -inf  ;;  %v6685_v28 = vmul.f32 %v8308_v37, %v12840_v38 }
 0x64c   : > { %v6218_v44 = vmax.f32 %v6216_v60, %v6217_v25  ;;  %v6686_v60 = vmul.f32 %v8309_v29, %v12846_v18  ;;  %v12911_v25 = vadd.f32 %v6655_v4, %v12810_v41  ;;  %v8817_v41 = vld [vmem:[%s13604_s5] ss:$0 sm:$0xff]  ;;  %v6680_v30 = vadd.f32 %v6678_v23, %v6628_v12 }
 0x64d   : > { %v12955_v4 = vld [vmem:[#allocation3 + $0x80] sm:$0xff]  ;;  %v6693_v12 = vmul.f32 %v8311_v8, %v12846_v18 }
 0x64e   : > { %v12859_v43 = vadd.f32 %v12413_v50, %v6218_v44  ;;  %v5598_v50 = vmax.f32 %v12324_v57, %v12808_v49  ;;  %v12960_v27 = vadd.f32 %v6686_v60, %v12848_v22  ;;  %v6706_v22 = vmul.f32 %v8314_v3, %v12840_v38  ;;  %v8322_v23 = vld [vmem:[%s13602_s3 + $0x380] sm:$0xff] }
 0x64f   : > { %v8326_v3 = vld [vmem:[%s13602_s3 + $0x580] sm:$0xff] }
 0x650   : > { %v6252_v56 = vmin.f32 %v12859_v43, 0.0  ;;  %v6163_v6 = vpop.permute.xlu1 %6162  ;;  %v5567_v57 = vpop.permute.xlu0 %5566  ;;  %v5620_v31 = vsel %vm525_vm2, %v5598_v50, -inf  ;;  %v12947_v50 = vadd.f32 %v6685_v28, %v6635_v51  ;;  %vm6244_vm4 = vcmp.gt.f32.partialorder %v12859_v43, 0.0 }
 0x651   : > { %v6199_v49 = vmax.f32 %v12448_v33, %v6163_v6  ;;  %v5600_v9 = vmax.f32 %v12445_v53, %v5567_v57  ;;  %v8310_v33 = vld [vmem:[%s13602_s3 + $0x470] sm:$0xff]  ;;  %v6219_v53 = vsel %vm525_vm2, %v6197_v15, -inf  ;;  %v6681_v15 = vadd.f32 %v6679_v7, %v6629_v5  ;;  %v8316_v5 = vld [vmem:[%s13602_s3 + $0x80] sm:$0xff] }
 0x652   : > { %v6264_v26 = vmul.f32 1.442695, %v6252_v56  ;;  %v6692_v44 = vmul.f32 %v8310_v33, %v12840_v38  ;;  %v6699_v6 = vmul.f32 %v8312_v42, %v12840_v38  ;;  %v6700_v57 = vmul.f32 %v8313_v32, %v12846_v18  ;;  %v8317_v38 = vld [vmem:[%s13602_s3 + $0x88] sm:$0xff] }
 0x653   : > { %v6220_v14 = vsel %vm525_vm2, %v6199_v49, -inf  ;;  %v5621_v39 = vsel %vm525_vm2, %v5600_v9, -inf  ;;  %v6707_v9 = vmul.f32 %v8315_v40, %v12846_v18  ;;  %v6715_v18 = vmul.f32 %v8316_v5, %v12955_v4  ;;  %v8319_v33 = vld [vmem:[%s13602_s3 + $0x188] sm:$0xff]  ;;  %v13042_v5 = vld [vmem:[#allocation3 + $0x98] sm:$0xff] }
 0x654   : > { %8798 = vpow2.f32 %v6264_v26  ;;  %v6221_v48 = vmax.f32 %v6219_v53, %v6220_v14  ;;  %v5622_v46 = vmax.f32 %v5620_v31, %v5621_v39  ;;  %v12968_v56 = vadd.f32 %v6692_v44, %v12850_v24  ;;  %v12980_v24 = vld [vmem:[#allocation3 + $0x88] sm:$0xff] }
 0x655   : > { %v12993_v28 = vadd.f32 %v6693_v12, %v12861_v58  ;;  %v8321_v53 = vld [vmem:[%s13602_s3 + $0x288] sm:$0xff]  ;;  %v6722_v14 = vmul.f32 %v8318_v16, %v12955_v4  ;;  %v6701_v58 = vadd.f32 %v6699_v6, %v12863_v35  ;;  %v6702_v60 = vadd.f32 %v6700_v57, %v12875_v47  ;;  %v8324_v35 = vld [vmem:[%s13602_s3 + $0x480] sm:$0xff]  ;;  %v8334_v16 = vld [vmem:[%s13602_s3 + $0x290] sm:$0xff] }
 0x656   : > { %v12928_v54 = vadd.f32 %v12925_v34, %v6221_v48  ;;  %v12933_v55 = vadd.f32 %v8817_v41, %v5622_v46  ;;  %v6716_v48 = vmul.f32 %v8317_v38, %v12980_v24  ;;  %v6736_v46 = vmul.f32 %v8322_v23, %v12955_v4  ;;  %v8323_v42 = vld [vmem:[%s13602_s3 + $0x388] sm:$0xff] }
 0x657   : > { %v6708_v8 = vadd.f32 %v6706_v22, %v12888_v19  ;;  %v6730_v44 = vmul.f32 %v8321_v53, %v12980_v24  ;;  %v6709_v32 = vadd.f32 %v6707_v9, %v12911_v25  ;;  %v6717_v47 = vadd.f32 %v6715_v18, %v12914_v13  ;;  %v8327_v40 = vld [vmem:[%s13602_s3 + $0x588] sm:$0xff]  ;;  %v8333_v9 = vld [vmem:[%s13602_s3 + $0x198] sm:$0xff] }
 0x658   : > { %v6253_v1 = vmin.f32 %v12928_v54, 0.0  ;;  %v5652_v52 = vmin.f32 %v12933_v55, 0.0  ;;  %v5569_v37 = vpop.permute.xlu1 %5568  ;;  %v6718_v19 = vadd.f32 %v6716_v48, %v12916_v61  ;;  %v6724_v25 = vadd.f32 %v6722_v14, %v12936_v20  ;;  %v8337_v48 = vld [vmem:[%s13602_s3 + $0x398] sm:$0xff] }
 0x659   : > { %v5601_v51 = vmax.f32 %v12464_v2, %v5569_v37  ;;  %v8320_v2 = vld [vmem:[%s13602_s3 + $0x280] sm:$0xff]  ;;  %v13037_v61 = vadd.f32 %v6730_v44, %v6681_v15  ;;  %v6737_v6 = vmul.f32 %v8323_v42, %v12980_v24  ;;  %v13046_v57 = vadd.f32 %v6736_v46, %v12947_v50  ;;  %v8332_v50 = vld [vmem:[%s13602_s3 + $0x190] sm:$0xff] }
 0x65a   : > { %v8799_v45 = vpop.eup %8798  ;;  %v6266_v63 = vmul.f32 1.442695, %v6253_v1  ;;  %v5666_v49 = vmul.f32 1.442695, %v5652_v52  ;;  %v6729_v39 = vmul.f32 %v8320_v2, %v12955_v4  ;;  %v13033_v1 = vld [vmem:[#allocation3 + $0x90] sm:$0xff]  ;;  %v8328_v37 = vld [vmem:[%s13602_s3 + $0x680] sm:$0xff]  ;;  %v6743_v20 = vmul.f32 %v8324_v35, %v12955_v4 }
 0x65b   : > { %v8202_v29 = vadd.f32 -1.0, %v8799_v45  ;;  %v5624_v26 = vsel %vm525_vm2, %v5601_v51, -inf  ;;  %v6751_v22 = vmul.f32 %v8327_v40, %v12980_v24  ;;  %vm6245_vm5 = vcmp.gt.f32.partialorder %v12928_v54, 0.0  ;;  %v8338_v35 = vld [vmem:[%s13602_s3 + $0x490] sm:$0xff]  ;;  %v8343_v40 = vld [vmem:[%s13602_s3 + $0x698] sm:$0xff] }
 0x65c   : > { %8800 = vpow2.f32 %v6266_v63  ;;  %v5625_v7 = vmax.f32 %v5623_v11, %v5624_v26  ;;  %v6731_v52 = vadd.f32 %v6729_v39, %v6680_v30  ;;  %v8331_v30 = vld [vmem:[%s13602_s3 + $0x98] sm:$0xff]  ;;  %v6744_v63 = vmul.f32 %v8325_v17, %v12980_v24  ;;  %v8329_v11 = vld [vmem:[%s13602_s3 + $0x688] sm:$0xff] }
 0x65d   : > { %v6284_v31 = vsel %vm6244_vm4, %v12859_v43, %v8202_v29  ;;  %8802 = vpow2.f32 %v5666_v49  ;;  %v6723_v43 = vmul.f32 %v8319_v33, %v12980_v24  ;;  %v6750_v49 = vmul.f32 %v8326_v3, %v12955_v4  ;;  %v8335_v26 = vld [vmem:[%s13602_s3 + $0x298] sm:$0xff] }
 0x65e   : > { %6293 = vst.msk [vmem:[#allocation3 + $0xe0] sm:$0xff] %vm525_vm2, %v6284_v31  ;;  %v13005_v36 = vadd.f32 %v8817_v41, %v5625_v7  ;;  %v6757_v29 = vmul.f32 %v8328_v37, %v12955_v4  ;;  %vm5644_vm6 = vcmp.gt.f32.partialorder %v12933_v55, 0.0  ;;  %v6768_v23 = vmul.f32 %v8331_v30, %v13042_v5  ;;  %v6814_v37 = vld [vmem:[#allocation3 + $0xa0] sm:$0xff] }
 0x65f   : > { %v6725_v13 = vadd.f32 %v6723_v43, %v12938_v21  ;;  %v8330_v21 = vld [vmem:[%s13602_s3 + $0x90] sm:$0xff]  ;;  %v6774_v33 = vmul.f32 %v8332_v50, %v13033_v1  ;;  %v6775_v4 = vmul.f32 %v8333_v9, %v13042_v5  ;;  %v6781_v53 = vmul.f32 %v8334_v16, %v13033_v1  ;;  %v8350_v30 = vld [vmem:[%s13602_s3 + $0x3a0] sm:$0xff] }
 0x660   : > { %v5653_v41 = vmin.f32 %v13005_v36, 0.0  ;;  %v6767_v18 = vmul.f32 %v8330_v21, %v13033_v1  ;;  %v6739_v31 = vadd.f32 %v6737_v6, %v12960_v27  ;;  %v6745_v14 = vadd.f32 %v6743_v20, %v12968_v56  ;;  %v8339_v27 = vld [vmem:[%s13602_s3 + $0x498] sm:$0xff]  ;;  %v13123_v6 = vpop.permute.xlu2 %6164  ;;  %v8348_v21 = vld [vmem:[%s13602_s3 + $0x2a0] sm:$0xff] }
 0x661   : > { %v6758_v39 = vmul.f32 %v8329_v11, %v12980_v24  ;;  %v6746_v46 = vadd.f32 %v6744_v63, %v12993_v28  ;;  %v6752_v43 = vadd.f32 %v6750_v49, %v6701_v58  ;;  %v6753_v44 = vadd.f32 %v6751_v22, %v6702_v60  ;;  %v8340_v28 = vld [vmem:[%s13602_s3 + $0x590] sm:$0xff]  ;;  %v8341_v58 = vld [vmem:[%s13602_s3 + $0x598] sm:$0xff]  ;;  %v8352_v63 = vld [vmem:[%s13602_s3 + $0x4a0] sm:$0xff] }
 0x662   : > { %v8801_v12 = vpop.eup %8800  ;;  %v5668_v51 = vmul.f32 1.442695, %v5653_v41  ;;  %v6759_v42 = vadd.f32 %v6757_v29, %v6708_v8  ;;  %v6769_v24 = vadd.f32 %v6767_v18, %v6717_v47  ;;  %v13102_v41 = vadd.f32 %v6768_v23, %v6718_v19  ;;  %v8342_v60 = vld [vmem:[%s13602_s3 + $0x690] sm:$0xff]  ;;  %v8354_v49 = vld [vmem:[%s13602_s3 + $0x5a0] sm:$0xff]  ;;  %v6918_v18 = vld [vmem:[#allocation3 + $0xc8] sm:$0xff] }
 0x663   : > { %v8803_v15 = vpop.eup %8802  ;;  %v8203_v45 = vadd.f32 -1.0, %v8801_v12  ;;  %v6760_v56 = vadd.f32 %v6758_v39, %v6709_v32  ;;  %v6776_v3 = vadd.f32 %v6774_v33, %v6724_v25  ;;  %v13114_v32 = vadd.f32 %v6775_v4, %v6725_v13  ;;  %v8344_v12 = vld [vmem:[%s13602_s3 + $0xa0] sm:$0xff] }
 0x664   : > { %v8068_v2 = vadd.f32 -1.0, %v8803_v15  ;;  %8804 = vpow2.f32 %v5668_v51  ;;  %v6783_v47 = vadd.f32 %v6781_v53, %v6731_v52  ;;  %v6789_v19 = vmul.f32 %v8337_v48, %v13042_v5  ;;  %v8346_v52 = vld [vmem:[%s13602_s3 + $0x1a0] sm:$0xff]  ;;  %v8375_v48 = vld [vmem:[%s13602_s3 + $0x1c8] sm:$0xff] }
 0x665   : > { %v6285_v38 = vsel %vm6245_vm5, %v12928_v54, %v8203_v45  ;;  %v8336_v54 = vld [vmem:[%s13602_s3 + $0x390] sm:$0xff]  ;;  %v6795_v25 = vmul.f32 %v8338_v35, %v13033_v1  ;;  %v6796_v13 = vmul.f32 %v8339_v27, %v13042_v5  ;;  %vm5645_vm7 = vcmp.gt.f32.partialorder %v13005_v36, 0.0  ;;  %v8374_v4 = vld [vmem:[%s13602_s3 + $0x1c0] sm:$0xff] }
 0x666   : > { %6294 = vst.msk [vmem:[#allocation3 + $0xe8] sm:$0xff] %vm525_vm2, %v6285_v38  ;;  %v5684_v7 = vsel %vm5644_vm6, %v12933_v55, %v8068_v2  ;;  %v6782_v55 = vmul.f32 %v8335_v26, %v13042_v5  ;;  %v6788_v17 = vmul.f32 %v8336_v54, %v13033_v1  ;;  %v6803_v15 = vmul.f32 %v8341_v58, %v13042_v5  ;;  %v8356_v2 = vld [vmem:[%s13602_s3 + $0x6a0] sm:$0xff]  ;;  %v8381_v58 = vld [vmem:[%s13602_s3 + $0x4c8] sm:$0xff] }
 0x667   : > { %5693 = vst.msk [vmem:[#allocation3 + $0xb0] sm:$0xff] %vm525_vm2, %v5684_v7  ;;  %v6809_v45 = vmul.f32 %v8342_v60, %v13033_v1  ;;  %v6810_v9 = vmul.f32 %v8343_v40, %v13042_v5  ;;  %v6819_v16 = vmul.f32 %v8344_v12, %v6814_v37  ;;  %v13158_v11 = vadd.f32 %v6789_v19, %v6739_v31  ;;  %v8373_v5 = vld [vmem:[%s13602_s3 + $0xc8] sm:$0xff]  ;;  %v8376_v53 = vld [vmem:[%s13602_s3 + $0x2c0] sm:$0xff]  ;;  %v6969_v12 = vld [vmem:[#allocation3 + $0xd0] sm:$0xff] }
 0x668   : > { %v13126_v20 = vadd.f32 %v6782_v55, %v13037_v61  ;;  %v6802_v61 = vmul.f32 %v8340_v28, %v13033_v1  ;;  %v6790_v50 = vadd.f32 %v6788_v17, %v13046_v57  ;;  %v13155_v1 = vld [vmem:[#allocation3 + $0xc0] sm:$0xff]  ;;  %v6826_v29 = vmul.f32 %v8346_v52, %v6814_v37  ;;  %v8379_v28 = vld [vmem:[%s13602_s3 + $0x3c8] sm:$0xff] }
 0x669   : > { %v6833_v26 = vmul.f32 %v8348_v21, %v6814_v37  ;;  %v6840_v38 = vmul.f32 %v8350_v30, %v6814_v37  ;;  %v6797_v57 = vadd.f32 %v6795_v25, %v6745_v14  ;;  %v13166_v23 = vadd.f32 %v6796_v13, %v6746_v46  ;;  %v8378_v54 = vld [vmem:[%s13602_s3 + $0x3c0] sm:$0xff]  ;;  %v8377_v46 = vld [vmem:[%s13602_s3 + $0x2c8] sm:$0xff]  ;;  %v8388_v21 = vld [vmem:[%s13602_s3 + $0x1d0] sm:$0xff] }
 0x66a   : > { %v8805_v8 = vpop.eup %8804  ;;  %v6847_v7 = vmul.f32 %v8352_v63, %v6814_v37  ;;  %v6854_v33 = vmul.f32 %v8354_v49, %v6814_v37  ;;  %v6804_v31 = vadd.f32 %v6802_v61, %v6752_v43  ;;  %v13177_v39 = vadd.f32 %v6803_v15, %v6753_v44  ;;  %v8380_v35 = vld [vmem:[%s13602_s3 + $0x4c0] sm:$0xff]  ;;  %v8390_v30 = vld [vmem:[%s13602_s3 + $0x2d0] sm:$0xff]  ;;  %v6815_v15 = vld [vmem:[#allocation3 + $0xa8] sm:$0xff] }
 0x66b   : > { %v8069_v51 = vadd.f32 -1.0, %v8805_v8  ;;  %v6811_v14 = vadd.f32 %v6809_v45, %v6759_v42  ;;  %v6861_v55 = vmul.f32 %v8356_v2, %v6814_v37  ;;  %v8382_v43 = vld [vmem:[%s13602_s3 + $0x5c0] sm:$0xff]  ;;  %v13191_v44 = vadd.f32 %v6810_v9, %v6760_v56  ;;  %v8383_v56 = vld [vmem:[%s13602_s3 + $0x5c8] sm:$0xff]  ;;  %v8392_v61 = vld [vmem:[%s13602_s3 + $0x3d0] sm:$0xff] }
 0x66c   : > { %v13193_v42 = vadd.f32 %v6819_v16, %v6769_v24  ;;  %v13198_v17 = vmul.f32 %v8373_v5, %v6918_v18  ;;  %v8384_v24 = vld [vmem:[%s13602_s3 + $0x6c0] sm:$0xff]  ;;  %v13212_v60 = vadd.f32 %v6826_v29, %v6776_v3  ;;  %v13214_v8 = vadd.f32 %v6833_v26, %v6783_v47  ;;  %v8385_v37 = vld [vmem:[%s13602_s3 + $0x6c8] sm:$0xff]  ;;  %v8394_v9 = vld [vmem:[%s13602_s3 + $0x4d0] sm:$0xff] }
 0x66d   : > { %v5685_v22 = vsel %vm5645_vm7, %v13005_v36, %v8069_v51  ;;  %v8372_v36 = vld [vmem:[%s13602_s3 + $0xc0] sm:$0xff]  ;;  %v13216_v19 = vadd.f32 %v6840_v38, %v6790_v50  ;;  %v13219_v40 = vmul.f32 %v8374_v4, %v13155_v1  ;;  %v8386_v51 = vld [vmem:[%s13602_s3 + $0xd0] sm:$0xff]  ;;  %v13227_v13 = vadd.f32 %v6847_v7, %v6797_v57  ;;  %v8345_v45 = vld [vmem:[%s13602_s3 + $0xa8] sm:$0xff] }
 0x66e   : > { %5694 = vst.msk [vmem:[#allocation3 + $0xb8] sm:$0xff] %vm525_vm2, %v5685_v22  ;;  %v13196_v27 = vmul.f32 %v8372_v36, %v13155_v1  ;;  %v13229_v3 = vadd.f32 %v6854_v33, %v6804_v31  ;;  %v13231_v47 = vmul.f32 %v8375_v48, %v6918_v18  ;;  %v13234_v52 = vmul.f32 %v8376_v53, %v13155_v1  ;;  %v8347_v16 = vld [vmem:[%s13602_s3 + $0x1a8] sm:$0xff]  ;;  %v8396_v31 = vld [vmem:[%s13602_s3 + $0x5d0] sm:$0xff] }
 0x66f   : > { %v6171_v25 = vpop.permute.xlu2 %6170  ;;  %v13248_v63 = vadd.f32 %v6861_v55, %v6811_v14  ;;  %v13250_v49 = vmul.f32 %v8377_v46, %v6918_v18  ;;  %v13253_v22 = vmul.f32 %v8378_v54, %v13155_v1  ;;  %v13255_v50 = vmul.f32 %v8379_v28, %v6918_v18  ;;  %v8349_v2 = vld [vmem:[%s13602_s3 + $0x2a8] sm:$0xff] }
 0x670   : > { %v8351_v29 = vld [vmem:[%s13602_s3 + $0x3a8] sm:$0xff]  ;;  %v13270_v26 = vmul.f32 %v8380_v35, %v13155_v1  ;;  %v13272_v38 = vmul.f32 %v8381_v58, %v6918_v18  ;;  %v13275_v36 = vmul.f32 %v8382_v43, %v13155_v1  ;;  %v13277_v5 = vmul.f32 %v8383_v56, %v6918_v18  ;;  %v6970_v56 = vld [vmem:[#allocation3 + $0xd8] sm:$0xff] }
 0x671   : > { %v6203_v57 = vmax.f32 %v12505_v59, %v6171_v25  ;;  %v8353_v7 = vld [vmem:[%s13602_s3 + $0x4a8] sm:$0xff]  ;;  %v13287_v4 = vmul.f32 %v8384_v24, %v13155_v1  ;;  %v13289_v53 = vmul.f32 %v8385_v37, %v6918_v18  ;;  %v13291_v54 = vmul.f32 %v8386_v51, %v6969_v12  ;;  %v8398_v18 = vld [vmem:[%s13602_s3 + $0x6d0] sm:$0xff]  ;;  %v8387_v24 = vld [vmem:[%s13602_s3 + $0xd8] sm:$0xff] }
 0x672   : > { %v8355_v33 = vld [vmem:[%s13602_s3 + $0x5a8] sm:$0xff]  ;;  %v6820_v14 = vmul.f32 %v8345_v45, %v6815_v15  ;;  %v13299_v48 = vmul.f32 %v8388_v21, %v6969_v12  ;;  %v13301_v46 = vmul.f32 %v8390_v30, %v6969_v12  ;;  %v13303_v1 = vmul.f32 %v8392_v61, %v6969_v12  ;;  %v8389_v37 = vld [vmem:[%s13602_s3 + $0x1d8] sm:$0xff] }
 0x673   : > { %v8357_v55 = vld [vmem:[%s13602_s3 + $0x6a8] sm:$0xff]  ;;  %v6827_v43 = vmul.f32 %v8347_v16, %v6815_v15  ;;  %v6834_v28 = vmul.f32 %v8349_v2, %v6815_v15  ;;  %v6841_v58 = vmul.f32 %v8351_v29, %v6815_v15  ;;  %v6848_v51 = vmul.f32 %v8353_v7, %v6815_v15  ;;  %v8391_v16 = vld [vmem:[%s13602_s3 + $0x2d8] sm:$0xff] }
 0x674   : > { %13819 = vst [vmem:[#allocation19_spill] sm:$0xff] %v13299_v48  ;;  %v6855_v25 = vmul.f32 %v8355_v33, %v6815_v15  ;;  %v13315_v21 = vmul.f32 %v8394_v9, %v6969_v12  ;;  %v13317_v30 = vmul.f32 %v8396_v31, %v6969_v12  ;;  %v6862_v45 = vmul.f32 %v8357_v55, %v6815_v15  ;;  %v8393_v2 = vld [vmem:[%s13602_s3 + $0x3d8] sm:$0xff] }
 0x675   : > { %13820 = vst [vmem:[#allocation9_spill] sm:$0xff] %v13301_v46  ;;  %v13327_v29 = vmul.f32 %v8398_v18, %v6969_v12  ;;  %v6200_v9 = vmax.f32 %v12482_v0, %v13123_v6  ;;  %v13331_v33 = vmul.f32 %v8387_v24, %v6970_v56  ;;  %v8395_v15 = vld [vmem:[%s13602_s3 + $0x4d8] sm:$0xff]  ;;  %v6829_v0 = vadd.f32 %v6827_v43, %v13114_v32  ;;  %v6866_v18 = vld [vmem:[#allocation3 + $0xb0] sm:$0xff] }
 0x676   : > { %13821 = vst [vmem:[#allocation14_spill] sm:$0xff] %v13303_v1  ;;  %v8397_v31 = vld [vmem:[%s13602_s3 + $0x5d8] sm:$0xff]  ;;  %v6836_v6 = vadd.f32 %v6834_v28, %v13126_v20  ;;  %v6843_v55 = vadd.f32 %v6841_v58, %v13158_v11  ;;  %v8360_v24 = vld [vmem:[%s13602_s3 + $0x1b0] sm:$0xff]  ;;  %v6857_v32 = vadd.f32 %v6855_v25, %v13177_v39  ;;  %v13365_v43 = vmul.f32 %v8391_v16, %v6970_v56 }
 0x677   : > { %v6167_v59 = vpop.permute.xlu0 %6166  ;;  %13822 = vst [vmem:[#allocation17_spill] sm:$0xff] %v13315_v21  ;;  %v8399_v12 = vld [vmem:[%s13602_s3 + $0x6d8] sm:$0xff]  ;;  %v6864_v28 = vadd.f32 %v6862_v45, %v13191_v44  ;;  %v8362_v58 = vld [vmem:[%s13602_s3 + $0x2b0] sm:$0xff]  ;;  %v13379_v25 = vmul.f32 %v8395_v15, %v6970_v56  ;;  %v6222_v44 = vsel %vm525_vm2, %v6200_v9, -inf }
 0x678   : > { %v6201_v35 = vmax.f32 %v12491_v62, %v6167_v59  ;;  %13823 = vst [vmem:[#allocation21_spill] sm:$0xff] %v13317_v30  ;;  %v6226_v62 = vsel %vm525_vm2, %v6203_v57, -inf  ;;  %v13333_v57 = vmul.f32 %v8389_v37, %v6970_v56  ;;  %v6822_v59 = vadd.f32 %v6820_v14, %v13102_v41  ;;  %v6867_v14 = vld [vmem:[#allocation3 + $0xb8] sm:$0xff]  ;;  %v8364_v39 = vld [vmem:[%s13602_s3 + $0x3b0] sm:$0xff] }
 0x679   : > { %13824 = vst [vmem:[#allocation22_spill] sm:$0xff] %v13327_v29  ;;  %v6850_v41 = vadd.f32 %v6848_v51, %v13166_v23  ;;  %v8359_v20 = vld [vmem:[%s13602_s3 + $0xb8] sm:$0xff]  ;;  %v13377_v51 = vmul.f32 %v8393_v2, %v6970_v56  ;;  %v8366_v29 = vld [vmem:[%s13602_s3 + $0x4b0] sm:$0xff]  ;;  %v13394_v15 = vmul.f32 %v8399_v12, %v6970_v56 }
 0x67a   : > { %v6225_v61 = vsel %vm525_vm2, %v6201_v35, -inf  ;;  %13825 = vst [vmem:[#allocation12_spill] sm:$0xff] %v13331_v33  ;;  %v8358_v35 = vld [vmem:[%s13602_s3 + $0xb0] sm:$0xff]  ;;  %v8361_v11 = vld [vmem:[%s13602_s3 + $0x1b8] sm:$0xff] }
 0x67b   : > { %v6227_v7 = vmax.f32 %v6225_v61, %v6226_v62  ;;  %13826 = vst [vmem:[#allocation7_spill] sm:$0xff] %v13333_v57  ;;  %v8363_v23 = vld [vmem:[%s13602_s3 + $0x2b8] sm:$0xff]  ;;  %v13381_v62 = vmul.f32 %v8397_v31, %v6970_v56  ;;  %v6871_v16 = vmul.f32 %v8358_v35, %v6866_v18  ;;  %v6872_v31 = vmul.f32 %v8359_v20, %v6867_v14  ;;  %v8368_v35 = vld [vmem:[%s13602_s3 + $0x5b0] sm:$0xff] }
 0x67c   : > { %13827 = vst [vmem:[#allocation27_spill] sm:$0xff] %v13365_v43  ;;  %v8367_v2 = vld [vmem:[%s13602_s3 + $0x4b8] sm:$0xff]  ;;  %v6879_v30 = vmul.f32 %v8361_v11, %v6867_v14  ;;  %v6886_v1 = vmul.f32 %v8363_v23, %v6867_v14  ;;  %v6892_v43 = vmul.f32 %v8364_v39, %v6866_v18  ;;  %v8370_v56 = vld [vmem:[%s13602_s3 + $0x6b0] sm:$0xff]  ;;  %v6899_v20 = vmul.f32 %v8366_v29, %v6866_v18 }
 0x67d   : > { %v13355_v37 = vadd.f32 %v12925_v34, %v6227_v7  ;;  %13828 = vst [vmem:[#allocation15_spill] sm:$0xff] %v13377_v51  ;;  %v8365_v7 = vld [vmem:[%s13602_s3 + $0x3b8] sm:$0xff]  ;;  %v6885_v51 = vmul.f32 %v8362_v58, %v6866_v18  ;;  %v6900_v11 = vmul.f32 %v8367_v2, %v6867_v14  ;;  %v6873_v58 = vadd.f32 %v6871_v16, %v13193_v42  ;;  %v13837_v16 = vld [vmem:[#allocation14_spill] sm:$0xff] }
 0x67e   : > { %13829 = vst [vmem:[#allocation5_spill] sm:$0xff] %v13379_v25  ;;  %v8369_v25 = vld [vmem:[%s13602_s3 + $0x5b8] sm:$0xff]  ;;  %v6874_v23 = vadd.f32 %v6872_v31, %v6822_v59  ;;  %v6913_v39 = vmul.f32 %v8370_v56, %v6866_v18  ;;  %v6881_v33 = vadd.f32 %v6879_v30, %v6829_v0  ;;  %v6894_v29 = vadd.f32 %v6892_v43, %v13216_v19 }
 0x67f   : > { %13830 = vst [vmem:[#allocation20_spill] sm:$0xff] %v13381_v62  ;;  %v6255_v61 = vmin.f32 %v13355_v37, 0.0  ;;  %v6169_v45 = vpop.permute.xlu1 %6168  ;;  %v6878_v62 = vmul.f32 %v8360_v24, %v6866_v18  ;;  %v6893_v24 = vmul.f32 %v8365_v7, %v6867_v14  ;;  %v6888_v7 = vadd.f32 %v6886_v1, %v6836_v6  ;;  %v13833_v43 = vld [vmem:[#allocation19_spill] sm:$0xff] }
 0x680   : > { %13831 = vst [vmem:[#allocation4_spill] sm:$0xff] %v13394_v15  ;;  %v6202_v9 = vmax.f32 %v12500_v10, %v6169_v45  ;;  %v8371_v10 = vld [vmem:[%s13602_s3 + $0x6b8] sm:$0xff]  ;;  %v6906_v15 = vmul.f32 %v8368_v35, %v6866_v18  ;;  %v6902_v42 = vadd.f32 %v6900_v11, %v6850_v41  ;;  %v6925_v30 = vadd.f32 %v13198_v17, %v6874_v23  ;;  %v8402_v17 = vld [vmem:[%s13602_s3 + $0x1e0] sm:$0xff]  ;;  %v13839_v35 = vld [vmem:[#allocation17_spill] sm:$0xff] }
 0x681   : > { %v6270_v21 = vmul.f32 1.442695, %v6255_v61  ;;  %v6907_v61 = vmul.f32 %v8369_v25, %v6867_v14  ;;  %v6914_v46 = vmul.f32 %v8371_v10, %v6867_v14  ;;  %v6880_v48 = vadd.f32 %v6878_v62, %v13212_v60  ;;  %v8403_v10 = vld [vmem:[%s13602_s3 + $0x1e8] sm:$0xff]  ;;  %v13843_v23 = vld [vmem:[#allocation22_spill] sm:$0xff] }
 0x682   : > { %v6223_v12 = vsel %vm525_vm2, %v6202_v9, -inf  ;;  %v6887_v9 = vadd.f32 %v6885_v51, %v13214_v8  ;;  %v6908_v59 = vadd.f32 %v6906_v15, %v13229_v3  ;;  %v6924_v60 = vadd.f32 %v13196_v27, %v6873_v58  ;;  %v8400_v27 = vld [vmem:[%s13602_s3 + $0xe0] sm:$0xff]  ;;  %v13835_v51 = vld [vmem:[#allocation9_spill] sm:$0xff] }
 0x683   : > { %8806 = vpow2.f32 %v6270_v21  ;;  %v6224_v45 = vmax.f32 %v6222_v44, %v6223_v12  ;;  %v6895_v21 = vadd.f32 %v6893_v24, %v6843_v55  ;;  %v6901_v44 = vadd.f32 %v6899_v20, %v13227_v13  ;;  %v13836_v62 = vld [vmem:[#allocation27_spill] sm:$0xff]  ;;  %v8405_v12 = vld [vmem:[%s13602_s3 + $0x2e8] sm:$0xff] }
 0x684   : > { %v6909_v18 = vadd.f32 %v6907_v61, %v6857_v32  ;;  %v6916_v14 = vadd.f32 %v6914_v46, %v6864_v28  ;;  %vm6247_vm8 = vcmp.gt.f32.partialorder %v13355_v37, 0.0  ;;  %v6931_v1 = vadd.f32 %v13219_v40, %v6880_v48  ;;  %v13429_v46 = vld [vmem:[#allocation3 + $0xe0] sm:$0xff]  ;;  %v13834_v28 = vld [vmem:[#allocation7_spill] sm:$0xff]  ;;  %v13841_v11 = vld [vmem:[#allocation21_spill] sm:$0xff] }
 0x685   : > { %v13412_v57 = vadd.f32 %v12925_v34, %v6224_v45  ;;  %v6915_v34 = vadd.f32 %v6913_v39, %v13248_v63  ;;  %v6932_v13 = vadd.f32 %v13231_v47, %v6881_v33  ;;  %v6938_v6 = vadd.f32 %v13234_v52, %v6887_v9  ;;  %v13832_v32 = vld [vmem:[#allocation12_spill] sm:$0xff]  ;;  %v13838_v15 = vld [vmem:[#allocation15_spill] sm:$0xff]  ;;  %v13840_v24 = vld [vmem:[#allocation5_spill] sm:$0xff] }
 0x686   : > { %v6939_v3 = vadd.f32 %v13250_v49, %v6888_v7  ;;  %v6945_v63 = vadd.f32 %v13253_v22, %v6894_v29  ;;  %v6946_v40 = vadd.f32 %v13255_v50, %v6895_v21  ;;  %v6952_v47 = vadd.f32 %v13270_v26, %v6901_v44  ;;  %v13842_v61 = vld [vmem:[#allocation20_spill] sm:$0xff]  ;;  %v8407_v29 = vld [vmem:[%s13602_s3 + $0x3e8] sm:$0xff] }
 0x687   : > { %v6254_v25 = vmin.f32 %v13412_v57, 0.0  ;;  %v6953_v52 = vadd.f32 %v13272_v38, %v6902_v42  ;;  %v6959_v22 = vadd.f32 %v13275_v36, %v6908_v59  ;;  %v6960_v48 = vadd.f32 %v13277_v5, %v6909_v18  ;;  %v8404_v9 = vld [vmem:[%s13602_s3 + $0x2e0] sm:$0xff] }
 0x688   : > { %v6966_v33 = vadd.f32 %v13287_v4, %v6915_v34  ;;  %v6967_v55 = vadd.f32 %v13289_v53, %v6916_v14  ;;  %v6976_v41 = vadd.f32 %v13291_v54, %v6924_v60  ;;  %v7026_v50 = vmul.f32 %v8400_v27, %v13429_v46  ;;  %v7022_v4 = vld [vmem:[#allocation3 + $0xe8] sm:$0xff]  ;;  %v8406_v7 = vld [vmem:[%s13602_s3 + $0x3e0] sm:$0xff]  ;;  %v8415_v14 = vld [vmem:[%s13602_s3 + $0xf8] sm:$0xff] }
 0x689   : > { %v8807_v8 = vpop.eup %8806  ;;  %v6268_v19 = vmul.f32 1.442695, %v6254_v25  ;;  %v7033_v26 = vmul.f32 %v8402_v17, %v13429_v46  ;;  %v6977_v38 = vadd.f32 %v13832_v32, %v6925_v30  ;;  %v6984_v36 = vadd.f32 %v13834_v28, %v6932_v13  ;;  %v8401_v53 = vld [vmem:[%s13602_s3 + $0xe8] sm:$0xff]  ;;  %v13844_v44 = vld [vmem:[#allocation4_spill] sm:$0xff]  ;;  %v8419_v13 = vld [vmem:[%s13602_s3 + $0x2f8] sm:$0xff] }
 0x68a   : > { %v8205_v0 = vadd.f32 -1.0, %v8807_v8  ;;  %v13453_v5 = vadd.f32 %v13835_v51, %v6938_v6  ;;  %v6991_v54 = vadd.f32 %v13836_v62, %v6939_v3  ;;  %v13460_v2 = vadd.f32 %v13837_v16, %v6945_v63  ;;  %v8408_v18 = vld [vmem:[%s13602_s3 + $0x4e0] sm:$0xff]  ;;  %v8409_v34 = vld [vmem:[%s13602_s3 + $0x4e8] sm:$0xff] }
 0x68b   : > { %8808 = vpow2.f32 %v6268_v19  ;;  %v6998_v31 = vadd.f32 %v13838_v15, %v6946_v40  ;;  %v13464_v56 = vadd.f32 %v13839_v35, %v6952_v47  ;;  %v7005_v20 = vadd.f32 %v13840_v24, %v6953_v52  ;;  %v8411_v17 = vld [vmem:[%s13602_s3 + $0x5e8] sm:$0xff]  ;;  %v8423_v47 = vld [vmem:[%s13602_s3 + $0x4f8] sm:$0xff] }
 0x68c   : > { %v6287_v49 = vsel %vm6247_vm8, %v13355_v37, %v8205_v0  ;;  %v6983_v37 = vadd.f32 %v13833_v43, %v6931_v1  ;;  %v13474_v45 = vadd.f32 %v13841_v11, %v6959_v22  ;;  %v7012_v58 = vadd.f32 %v13842_v61, %v6960_v48  ;;  %v8417_v1 = vld [vmem:[%s13602_s3 + $0x1f8] sm:$0xff]  ;;  %v8413_v40 = vld [vmem:[%s13602_s3 + $0x6e8] sm:$0xff] }
 0x68d   : > { %6296 = vst.msk [vmem:[#allocation3 + $0xf8] sm:$0xff] %vm525_vm2, %v6287_v49  ;;  %v13478_v39 = vadd.f32 %v13843_v23, %v6966_v33  ;;  %vm6246_vm11 = vcmp.gt.f32.partialorder %v13412_v57, 0.0  ;;  %v7019_v25 = vadd.f32 %v13844_v44, %v6967_v55  ;;  %v7027_v42 = vmul.f32 %v8401_v53, %v7022_v4  ;;  %v8421_v0 = vld [vmem:[%s13602_s3 + $0x3f8] sm:$0xff]  ;;  %v8414_v23 = vld [vmem:[%s13602_s3 + $0xf0] sm:$0xff] }
 0x68e   : > { %v13491_v59 = vadd.f32 %v7026_v50, %v6976_v41  ;;  %v7034_v30 = vmul.f32 %v8403_v10, %v7022_v4  ;;  %v13502_v8 = vadd.f32 %v7033_v26, %v6983_v37  ;;  %v7041_v19 = vmul.f32 %v8405_v12, %v7022_v4  ;;  %v8425_v55 = vld [vmem:[%s13602_s3 + $0x5f8] sm:$0xff]  ;;  %v8410_v37 = vld [vmem:[%s13602_s3 + $0x5e0] sm:$0xff] }
 0x68f   : > { %v7029_v6 = vadd.f32 %v7027_v42, %v6977_v38  ;;  %v7040_v3 = vmul.f32 %v8404_v9, %v13429_v46  ;;  %v7047_v63 = vmul.f32 %v8406_v7, %v13429_v46  ;;  %v7048_v27 = vmul.f32 %v8407_v29, %v7022_v4  ;;  %v8427_v41 = vld [vmem:[%s13602_s3 + $0x6f8] sm:$0xff]  ;;  %v8416_v7 = vld [vmem:[%s13602_s3 + $0x1f0] sm:$0xff] }
 0x690   : > { %v7036_v49 = vadd.f32 %v7034_v30, %v6984_v36  ;;  %v7043_v22 = vadd.f32 %v7041_v19, %v6991_v54  ;;  %v7055_v48 = vmul.f32 %v8409_v34, %v7022_v4  ;;  %v7062_v28 = vmul.f32 %v8411_v17, %v7022_v4  ;;  %v8412_v36 = vld [vmem:[%s13602_s3 + $0x6e0] sm:$0xff] }
 0x691   : > { %v8809_v21 = vpop.eup %8808  ;;  %v7050_v43 = vadd.f32 %v7048_v27, %v6998_v31  ;;  %v7069_v62 = vmul.f32 %v8413_v40, %v7022_v4  ;;  %v7061_v12 = vmul.f32 %v8410_v37, %v13429_v46  ;;  %v7068_v11 = vmul.f32 %v8412_v36, %v13429_v46 }
 0x692   : > { %v8204_v60 = vadd.f32 -1.0, %v8809_v21  ;;  %v7057_v53 = vadd.f32 %v7055_v48, %v7005_v20  ;;  %v7064_v24 = vadd.f32 %v7062_v28, %v7012_v58  ;;  %v7042_v9 = vadd.f32 %v7040_v3, %v13453_v5  ;;  %v8418_v58 = vld [vmem:[%s13602_s3 + $0x2f0] sm:$0xff] }
 0x693   : > { %v7071_v61 = vadd.f32 %v7069_v62, %v7019_v25  ;;  %v7049_v4 = vadd.f32 %v7047_v63, %v13460_v2  ;;  %v7063_v21 = vadd.f32 %v7061_v12, %v13474_v45  ;;  %v7070_v5 = vadd.f32 %v7068_v11, %v13478_v39  ;;  %v8422_v2 = vld [vmem:[%s13602_s3 + $0x4f0] sm:$0xff] }
 0x694   : > { %v6286_v52 = vsel %vm6246_vm11, %v13412_v57, %v8204_v60  ;;  %v7074_v33 = vld [vmem:[#allocation3 + $0xf8] sm:$0xff]  ;;  %v7054_v57 = vmul.f32 %v8408_v18, %v13429_v46  ;;  %v8420_v46 = vld [vmem:[%s13602_s3 + $0x3f0] sm:$0xff] }
 0x695   : > { %6295 = vst.msk [vmem:[#allocation3 + $0xf0] sm:$0xff] %vm525_vm2, %v6286_v52  ;;  %v7079_v50 = vmul.f32 %v8415_v14, %v7074_v33  ;;  %v7086_v26 = vmul.f32 %v8417_v1, %v7074_v33  ;;  %v7093_v32 = vmul.f32 %v8419_v13, %v7074_v33  ;;  %v7100_v38 = vmul.f32 %v8421_v0, %v7074_v33  ;;  %v8426_v25 = vld [vmem:[%s13602_s3 + $0x6f0] sm:$0xff] }
 0x696   : > { %v7107_v51 = vmul.f32 %v8423_v47, %v7074_v33  ;;  %v7114_v54 = vmul.f32 %v8425_v55, %v7074_v33  ;;  %v7121_v16 = vmul.f32 %v8427_v41, %v7074_v33  ;;  %v7056_v20 = vadd.f32 %v7054_v57, %v13464_v56  ;;  %v8424_v56 = vld [vmem:[%s13602_s3 + $0x5f0] sm:$0xff] }
 0x697   : > { %v7081_v15 = vadd.f32 %v7079_v50, %v7029_v6  ;;  %v7088_v35 = vadd.f32 %v7086_v26, %v7036_v49  ;;  %v7095_v10 = vadd.f32 %v7093_v32, %v7043_v22  ;;  %v7102_v31 = vadd.f32 %v7100_v38, %v7050_v43 }
 0x698   : > { %v7109_v29 = vadd.f32 %v7107_v51, %v7057_v53  ;;  %v7116_v44 = vadd.f32 %v7114_v54, %v7064_v24  ;;  %v7123_v42 = vadd.f32 %v7121_v16, %v7071_v61 }
 0x699   : > { %v7125_v34 = vsel %vm525_vm2, %v7081_v15, 0.0  ;;  %v7134_v45 = vsel %vm525_vm2, %v7088_v35, 0.0  ;;  %v7143_v39 = vsel %vm525_vm2, %v7095_v10, 0.0  ;;  %v7152_v14 = vsel %vm525_vm2, %v7102_v31, 0.0 }
 0x69a   : > { %v7161_v3 = vsel %vm525_vm2, %v7109_v29, 0.0  ;;  %v7170_v22 = vsel %vm525_vm2, %v7116_v44, 0.0  ;;  %v7179_v57 = vsel %vm525_vm2, %v7123_v42, 0.0 }
 0x69c   : > { %v7073_v18 = vld [vmem:[#allocation3 + $0xf0] sm:$0xff] }
 0x69d   : > { %v7078_v60 = vmul.f32 %v8414_v23, %v7073_v18  ;;  %v7085_v30 = vmul.f32 %v8416_v7, %v7073_v18  ;;  %v7092_v19 = vmul.f32 %v8418_v58, %v7073_v18  ;;  %v7099_v1 = vmul.f32 %v8420_v46, %v7073_v18 }
 0x69e   : > { %v7106_v13 = vmul.f32 %v8422_v2, %v7073_v18  ;;  %v7113_v0 = vmul.f32 %v8424_v56, %v7073_v18  ;;  %v7120_v6 = vmul.f32 %v8426_v25, %v7073_v18 }
 0x69f   : > { %v7080_v63 = vadd.f32 %v7078_v60, %v13491_v59  ;;  %v7087_v27 = vadd.f32 %v7085_v30, %v13502_v8  ;;  %v7094_v17 = vadd.f32 %v7092_v19, %v7042_v9  ;;  %v7101_v40 = vadd.f32 %v7099_v1, %v7049_v4 }
 0x6a0   : > { %v7108_v47 = vadd.f32 %v7106_v13, %v7056_v20  ;;  %v7115_v52 = vadd.f32 %v7113_v0, %v7063_v21  ;;  %v7122_v49 = vadd.f32 %v7120_v6, %v7070_v5 }
 0x6a1   : > { %v7124_v48 = vsel %vm525_vm2, %v7080_v63, 0.0  ;;  %v7133_v33 = vsel %vm525_vm2, %v7087_v27, 0.0  ;;  %v7142_v55 = vsel %vm525_vm2, %v7094_v17, 0.0  ;;  %v7151_v41 = vsel %vm525_vm2, %v7101_v40, 0.0 }
 0x6a2   : > { %v7126_v50 = vadd.f32 %v7125_v34, %v7124_v48  ;;  %v7135_v26 = vadd.f32 %v7134_v45, %v7133_v33  ;;  %v7144_v59 = vadd.f32 %v7143_v39, %v7142_v55  ;;  %v7153_v32 = vadd.f32 %v7152_v14, %v7151_v41  ;;  %v7201_v33 = vld [vmem:[%s13605_s6] sm:$0xff] }
 0x6a3   : > { %v7160_v8 = vsel %vm525_vm2, %v7108_v47, 0.0  ;;  %v7169_v38 = vsel %vm525_vm2, %v7115_v52, 0.0  ;;  %v7178_v43 = vsel %vm525_vm2, %v7122_v49, 0.0 }
 0x6a4   : > { %v7127_v37 = vrot.slane %v7126_v50, 4  ;;  %v7136_v28 = vrot.slane %v7135_v26, 4  ;;  %v7145_v36 = vrot.slane %v7144_v59, 4  ;;  %v7154_v51 = vrot.slane %v7153_v32, 4 }
 0x6a5   : > { %v7162_v53 = vadd.f32 %v7161_v3, %v7160_v8  ;;  %v7171_v62 = vadd.f32 %v7170_v22, %v7169_v38  ;;  %v7180_v54 = vadd.f32 %v7179_v57, %v7178_v43 }
 0x6a6   : > { %v7128_v16 = vadd.f32 %v7127_v37, %v7126_v50  ;;  %v7137_v15 = vadd.f32 %v7136_v28, %v7135_v26  ;;  %v7146_v35 = vadd.f32 %v7145_v36, %v7144_v59  ;;  %v7155_v10 = vadd.f32 %v7154_v51, %v7153_v32 }
 0x6a7   : > { %v7163_v31 = vrot.slane %v7162_v53, 4  ;;  %v7172_v12 = vrot.slane %v7171_v62, 4  ;;  %v7181_v24 = vrot.slane %v7180_v54, 4 }
 0x6a8   : > { %v7129_v11 = vrot.slane %v7128_v16, 2  ;;  %v7138_v61 = vrot.slane %v7137_v15, 2  ;;  %v7147_v23 = vrot.slane %v7146_v35, 2  ;;  %v7156_v9 = vrot.slane %v7155_v10, 2 }
 0x6a9   : > { %v7164_v4 = vadd.f32 %v7163_v31, %v7162_v53  ;;  %v7173_v20 = vadd.f32 %v7172_v12, %v7171_v62  ;;  %v7182_v7 = vadd.f32 %v7181_v24, %v7180_v54 }
 0x6aa   : > { %v7130_v58 = vadd.f32 %v7129_v11, %v7128_v16  ;;  %v7139_v46 = vadd.f32 %v7138_v61, %v7137_v15  ;;  %v7148_v29 = vadd.f32 %v7147_v23, %v7146_v35  ;;  %v7157_v21 = vadd.f32 %v7156_v9, %v7155_v10 }
 0x6ab   : > { %v7165_v5 = vrot.slane %v7164_v4, 2  ;;  %v7174_v2 = vrot.slane %v7173_v20, 2  ;;  %v7183_v56 = vrot.slane %v7182_v7, 2 }
 0x6ac   : > { %v7131_v44 = vrot.slane %v7130_v58, 1  ;;  %v7140_v25 = vrot.slane %v7139_v46, 1  ;;  %v7149_v42 = vrot.slane %v7148_v29, 1  ;;  %v7158_v18 = vrot.slane %v7157_v21, 1 }
 0x6ad   : > { %v7166_v34 = vadd.f32 %v7165_v5, %v7164_v4  ;;  %v7175_v45 = vadd.f32 %v7174_v2, %v7173_v20  ;;  %v7184_v39 = vadd.f32 %v7183_v56, %v7182_v7 }
 0x6ae   : > { %v7132_v14 = vadd.f32 %v7131_v44, %v7130_v58  ;;  %v7141_v60 = vadd.f32 %v7140_v25, %v7139_v46  ;;  %v7150_v30 = vadd.f32 %v7149_v42, %v7148_v29  ;;  %v7159_v0 = vadd.f32 %v7158_v18, %v7157_v21 }
 0x6af   : > { %v7167_v19 = vrot.slane %v7166_v34, 1  ;;  %v7176_v1 = vrot.slane %v7175_v45, 1  ;;  %v7185_v13 = vrot.slane %v7184_v39, 1 }
 0x6b0   : > { %v7187_v6 = vsel %vm618_vm15, %v7132_v14, %v7141_v60 }
 0x6b1   : > { %v7168_v3 = vadd.f32 %v7167_v19, %v7166_v34  ;;  %v7189_v63 = vsel %vm7188_vm12, %v7187_v6, %v7150_v30  ;;  %v7177_v27 = vadd.f32 %v7176_v1, %v7175_v45  ;;  %v7186_v40 = vadd.f32 %v7185_v13, %v7184_v39 }
 0x6b2   : > { %v7190_v17 = vsel %vm392_vm0, %v7189_v63, %v7159_v0  ;;  %vm7203_vm0 = vcmask 7168  }
 0x6b3   : > { %v7192_v47 = vsel %vm7191_vm14, %v7190_v17, %v7168_v3 }
 0x6b4   : > { %v7194_v52 = vsel %vm7193_vm3, %v7192_v47, %v7177_v27 }
 0x6b5   : > { %v7196_v49 = vsel %vm7195_vm1, %v7194_v52, %v7186_v40 }
 0x6b6   : > { %v7197_v22 = vsel %vm659_vm10, %v7196_v49, 0.0 }
 0x6b7   : > { %v7198_v48 = vsel %vm525_vm2, %v7197_v22, 0.0 }
 0x6b8   : > { %7199 = vadd.xlane.f32.xlu0 %v7198_v48 }
 0x72b   : > { %v7200_v55 = vpop.xlane.xlu0 %7199 }
 0x72c   : > { %v7202_v41 = vadd.f32 %v7201_v33, %v7200_v55 }
 0x72e   : > { %7204 = vst.msk [vmem:[%s276_s23] sm:$0xff] %vm7203_vm0, %v7202_v41 }
 0x72f PF: > { %s17_s24 = sadd.s32 1, %s8824_s24  }
 0x730   : > { %p14_p4 = scmp.ge.s32.totalorder %s17_s24, 4  }
 0x732   :  { %16 = sbr.rel (!%p14_p4) target bundleno = 1 (0x1), region = 222 }

</bundles_post_ra>
